<compile_context>
chip_gen: v7x
topology: tpu7x:2x2x1
jax: 0.10.0
libtpu: 0.0.40
codegen_flags: <defaults>
</compile_context>

<pallas_src>
import functools
import math

import jax
import jax.numpy as jnp
import numpy as np
from jax import lax
from jax.experimental import pallas as pl
from jax.experimental.pallas import tpu as pltpu


# ---------------------------------------------------------------------------
# Config (the `param` dict the PyTorch module is constructed with).
# ---------------------------------------------------------------------------
PARAM = dict(
    data_augmentation=False,
    dropout=0.2,
    activation="relu",
    filters=8,
    filter_org="same",
    conv_kernel_size=3,
    dim=96,                    # input spatial size (NCHW: (N, 3, 96, 96))
    batch_normalization=False,
    dense_neurons=64,          # overwritten by curr_dim**2 * filters[4] in __init__
)

NUM_CLASSES = 10
NUM_CONV_LAYERS = 5


def filter_logic(filt, org):
    org = org.lower()
    if org == "same":
        return [filt] * 5
    if org == "double":
        return [filt * (2 ** i) for i in range(5)]
    if org == "half":
        return [max(filt // (2 ** i), 1) for i in range(5)]
    raise ValueError(org)


def make_activation(name):
    name = name.lower()
    if name == "relu":
        return lambda x: jnp.maximum(x, 0.0)
    if name == "leakyrelu":
        return lambda x: jnp.where(x >= 0, x, 0.01 * x)
    if name == "gelu":
        return lambda x: jax.nn.gelu(x, approximate=True)
    if name == "selu":
        alpha = 1.6732632423543772
        scale = 1.0507009873554805
        return lambda x: scale * jnp.where(x > 0, x, alpha * (jnp.exp(x) - 1.0))
    if name == "mish":
        return lambda x: x * jnp.tanh(jax.nn.softplus(x))
    raise ValueError(name)


# ---------------------------------------------------------------------------
# Parameter init (deterministic, PyTorch default-style uniform bounds)
# ---------------------------------------------------------------------------
def init_params(key, param):
    ks = param["conv_kernel_size"]
    filters = filter_logic(param["filters"], param["filter_org"])
    curr = param["dim"]
    p = {}
    in_c = 3
    for li, out_c in enumerate(filters, start=1):
        key, kw, kb = jax.random.split(key, 3)
        fan_in = in_c * ks * ks
        bound = 1.0 / math.sqrt(fan_in)
        # weight laid out as (kh, kw, Cin, Cout)  (torch weight.permute(2,3,1,0))
        p[f"conv{li}_w"] = jax.random.uniform(kw, (ks, ks, in_c, out_c),
                                              jnp.float32, -bound, bound)
        p[f"conv{li}_b"] = jax.random.uniform(kb, (out_c,), jnp.float32, -bound, bound)
        curr -= ks - 1     # valid conv
        curr //= 2         # maxpool
        in_c = out_c

    dense_in = curr * curr * filters[4]
    dense_neurons = dense_in   # mirrors: self.dense_neurons = curr_dim**2 * filters[4]
    key, kw1, kb1, kw2, kb2 = jax.random.split(key, 5)
    b1 = 1.0 / math.sqrt(dense_in)
    p["fc1_w"] = jax.random.uniform(kw1, (dense_in, dense_neurons), jnp.float32, -b1, b1)
    p["fc1_b"] = jax.random.uniform(kb1, (1, dense_neurons), jnp.float32, -b1, b1)
    b2 = 1.0 / math.sqrt(dense_neurons)
    p["out_w"] = jax.random.uniform(kw2, (dense_neurons, NUM_CLASSES), jnp.float32, -b2, b2)
    p["out_b"] = jax.random.uniform(kb2, (1, NUM_CLASSES), jnp.float32, -b2, b2)
    return p


# ---------------------------------------------------------------------------
# One-time (outside jit) weight preprocessing: block-Toeplitz conv matrices,
# lane-tiled biases, and 0/1 maxpool selection matrices for every conv layer.
# ---------------------------------------------------------------------------
def build_layer_constants(params, param):
    ks = param["conv_kernel_size"]
    filters = filter_logic(param["filters"], param["filter_org"])
    curr = param["dim"]
    consts = []
    in_c = 3
    for li, out_c in enumerate(filters, start=1):
        w = np.asarray(params[f"conv{li}_w"], np.float32)   # (ks, ks, Cin, Cout)
        b = np.asarray(params[f"conv{li}_b"], np.float32)   # (Cout,)
        W = curr
        Wo = W - ks + 1
        Wp = Wo // 2
        Ho, Hp = Wo, Wp                                      # square images

        if li == 1:
            # Input arrives per image as NCHW planes (Cin, H, W); one Toeplitz
            # matrix per (ki, ci) tap maps the W axis to Wo*Cout output lanes.
            T = np.zeros((ks * in_c, W, Wo * out_c), np.float32)
            for ki in range(ks):
                for ci in range(in_c):
                    for kj in range(ks):
                        for wo in range(Wo):
                            T[ki * in_c + ci, wo + kj,
                              wo * out_c:(wo + 1) * out_c] = w[ki, kj, ci, :]
        else:
            # Input is a 2D (H, W*Cin) slab (lane index = w*Cin + ci).
            T = np.zeros((ks, W * in_c, Wo * out_c), np.float32)
            for ki in range(ks):
                for kj in range(ks):
                    for wo in range(Wo):
                        T[ki, (wo + kj) * in_c:(wo + kj + 1) * in_c,
                          wo * out_c:(wo + 1) * out_c] = w[ki, kj]

        b_tiled = np.tile(b, Wo)[None, :]                    # (1, Wo*Cout)

        P = np.zeros((2, Hp, Ho), np.float32)                # maxpool row selectors
        for hp in range(Hp):
            P[0, hp, 2 * hp] = 1.0
            P[1, hp, 2 * hp + 1] = 1.0

        S = np.zeros((2, Wo * out_c, Wp * out_c), np.float32)  # maxpool lane selectors
        for wp in range(Wp):
            for co in range(out_c):
                S[0, (2 * wp) * out_c + co, wp * out_c + co] = 1.0
                S[1, (2 * wp + 1) * out_c + co, wp * out_c + co] = 1.0

        consts.extend([
            jnp.asarray(T, jnp.bfloat16),
            jnp.asarray(b_tiled, jnp.float32),
            jnp.asarray(P, jnp.bfloat16),
            jnp.asarray(S, jnp.bfloat16),
        ])
        curr = Wp
        in_c = out_c

    # TODO(synk): the flatten path in the kernel assumes the final feature map
    # is 1x1 (true for dim=96, ks=3); a general (C,H,W)-ordered flatten would
    # need a row permutation folded into fc1_w.
    assert curr == 1, curr
    return consts


# ---------------------------------------------------------------------------
# Pallas kernel: entire forward for one image per grid step.
# ---------------------------------------------------------------------------
def _pool2x2(a_bf16, p_ref, s_ref):
    """MaxPool2d((2,2),(2,2)) on a lane-dense (Ho, Wo*C) slab via exact 0/1
    selection matmuls (rows then lane-blocks) + elementwise max."""
    zh = jnp.maximum(
        jnp.dot(p_ref[0], a_bf16, preferred_element_type=jnp.float32),
        jnp.dot(p_ref[1], a_bf16, preferred_element_type=jnp.float32),
    ).astype(jnp.bfloat16)
    return jnp.maximum(
        jnp.dot(zh, s_ref[0], preferred_element_type=jnp.float32),
        jnp.dot(zh, s_ref[1], preferred_element_type=jnp.float32),
    ).astype(jnp.bfloat16)


def _fused_forward_kernel(act_fn, ks, n_conv, *refs):
    x_ref = refs[0]
    layer_refs = [refs[1 + 4 * l: 5 + 4 * l] for l in range(n_conv)]
    fc1_w_ref, fc1_b_ref, out_w_ref, out_b_ref = refs[1 + 4 * n_conv: 5 + 4 * n_conv]
    o_ref = refs[5 + 4 * n_conv]

    # ---- conv1 + act + pool: NCHW planes -> lane-dense (Hp, Wp*Cout) -------
    t_ref, b_ref, p_ref, s_ref = layer_refs[0]
    _, cin, h, w = x_ref.shape
    ho = h - ks + 1
    planes = x_ref[0].astype(jnp.bfloat16)            # (Cin, H, W)
    acc = None
    for ki in range(ks):
        for ci in range(cin):
            term = jnp.dot(planes[ci, ki:ki + ho, :], t_ref[ki * cin + ci],
                           preferred_element_type=jnp.float32)
            acc = term if acc is None else acc + term
    a = act_fn(acc + b_ref[...]).astype(jnp.bfloat16)
    x2d = _pool2x2(a, p_ref, s_ref)                   # (Hp, Wp*Cout) bf16

    # ---- conv2..conv5 (+ act + pool) on 2D (H, W*C) slabs -------------------
    for l in range(1, n_conv):
        t_ref, b_ref, p_ref, s_ref = layer_refs[l]
        ho = x2d.shape[0] - ks + 1
        acc = None
        for ki in range(ks):
            term = jnp.dot(x2d[ki:ki + ho, :], t_ref[ki],
                           preferred_element_type=jnp.float32)
            acc = term if acc is None else acc + term
        a = act_fn(acc + b_ref[...]).astype(jnp.bfloat16)
        x2d = _pool2x2(a, p_ref, s_ref)
        # TODO(synk): BatchNorm2d branch only when param['batch_normalization'];
        # this config uses False.  Dropout layers are identity in eval mode.

    # ---- flatten (final map is 1x1 -> just the channel vector) + dense head -
    feat = x2d.astype(jnp.float32)                    # (1, C5)
    hdn = act_fn(jnp.dot(feat, fc1_w_ref[...],
                         preferred_element_type=jnp.float32) + fc1_b_ref[...])
    logits = jnp.dot(hdn, out_w_ref[...],
                     preferred_element_type=jnp.float32) + out_b_ref[...]
    m = jnp.max(logits, axis=-1, keepdims=True)
    lse = jnp.log(jnp.sum(jnp.exp(logits - m), axis=-1, keepdims=True)) + m
    o_ref[0] = (logits - lse).astype(o_ref.dtype)     # LogSoftmax(dim=1)


# ---------------------------------------------------------------------------
# Wrapper: one pallas_call for the whole network.
# ---------------------------------------------------------------------------
def _resident_spec(a):
    zeros = (0,) * a.ndim
    return pl.BlockSpec(a.shape, lambda i, _z=zeros: _z)


def make_forward(params, param):
    """Returns a jit-able `x_nchw -> log_probs` forward (eval mode)."""
    act_fn = make_activation(param["activation"])
    ks = param["conv_kernel_size"]
    weights = build_layer_constants(params, param) + [
        params["fc1_w"], params["fc1_b"], params["out_w"], params["out_b"]]

    def forward(x_nchw):
        n, c, h, w = x_nchw.shape
        in_specs = [pl.BlockSpec((1, c, h, w), lambda i: (i, 0, 0, 0))]
        in_specs += [_resident_spec(a) for a in weights]
        out = pl.pallas_call(
            functools.partial(_fused_forward_kernel, act_fn, ks, NUM_CONV_LAYERS),
            out_shape=jax.ShapeDtypeStruct((n, 1, NUM_CLASSES), jnp.float32),
            grid=(n,),
            in_specs=in_specs,
            out_specs=pl.BlockSpec((1, 1, NUM_CLASSES), lambda i: (i, 0, 0)),
            compiler_params=pltpu.CompilerParams(
                dimension_semantics=("parallel",),   # one image per core on v7x
                vmem_limit_bytes=32 * 1024 * 1024,
            ),
        )(x_nchw, *weights)
        return out.reshape(n, NUM_CLASSES)

    return forward


# ---------------------------------------------------------------------------
# Pure-JAX reference (f32), for a numerical sanity check of the kernel.
# ---------------------------------------------------------------------------
def reference_forward(x_nchw, params, param):
    act = make_activation(param["activation"])
    x = jnp.transpose(x_nchw, (0, 2, 3, 1))                 # NCHW -> NHWC
    for li in range(1, NUM_CONV_LAYERS + 1):
        w = params[f"conv{li}_w"]                           # (kh, kw, Cin, Cout)
        b = params[f"conv{li}_b"]
        x = lax.conv_general_dilated(
            x, w, window_strides=(1, 1), padding="VALID",
            dimension_numbers=("NHWC", "HWIO", "NHWC")) + b
        x = act(x)
        x = lax.reduce_window(x, -jnp.inf, lax.max,
                              (1, 2, 2, 1), (1, 2, 2, 1), "VALID")
    n = x.shape[0]
    feat = x.reshape(n, -1)       # final map is 1x1 -> matches torch.flatten(r, 1)
    hdn = act(feat @ params["fc1_w"] + params["fc1_b"])
    logits = hdn @ params["out_w"] + params["out_b"]
    return jax.nn.log_softmax(logits, axis=1)


if __name__ == "__main__":
    key = jax.random.PRNGKey(0)
    kx, kp = jax.random.split(key)
    params = init_params(kp, PARAM)
    # (N, C, H, W) like the PyTorch module; dim=96 is required to survive the
    # five conv(valid)+pool(2,2) stages down to a 1x1 map.
    x = jax.random.normal(kx, (2, 3, PARAM["dim"], PARAM["dim"]), jnp.float32)

    fwd = jax.jit(make_forward(params, PARAM))
    out = fwd(x)
    jax.block_until_ready(out)

    assert out.shape == (2, NUM_CLASSES), out.shape
    # LogSoftmax rows must exponentiate to a probability distribution.
    assert jnp.allclose(jnp.sum(jnp.exp(out), axis=1), 1.0, atol=1e-4)
    # bf16-matmul kernel path vs f32 pure-JAX reference.
    ref = reference_forward(x, params, PARAM)
    assert jnp.allclose(out, ref, atol=1e-1, rtol=1e-1)
    print("KERNEL_OK")
</pallas_src>

<mosaic_0001>
module attributes {stable_mosaic.version = 11 : i64} {
  func.func @_fused_forward_kernel(%arg0: i32, %arg1: memref<1x3x96x96xf32, #tpu.memory_space<vmem>>, %arg2: memref<9x96x752xbf16, #tpu.memory_space<vmem>>, %arg3: memref<1x752xf32, #tpu.memory_space<vmem>>, %arg4: memref<2x47x94xbf16, #tpu.memory_space<vmem>>, %arg5: memref<2x752x376xbf16, #tpu.memory_space<vmem>>, %arg6: memref<3x376x360xbf16, #tpu.memory_space<vmem>>, %arg7: memref<1x360xf32, #tpu.memory_space<vmem>>, %arg8: memref<2x22x45xbf16, #tpu.memory_space<vmem>>, %arg9: memref<2x360x176xbf16, #tpu.memory_space<vmem>>, %arg10: memref<3x176x160xbf16, #tpu.memory_space<vmem>>, %arg11: memref<1x160xf32, #tpu.memory_space<vmem>>, %arg12: memref<2x10x20xbf16, #tpu.memory_space<vmem>>, %arg13: memref<2x160x80xbf16, #tpu.memory_space<vmem>>, %arg14: memref<3x80x64xbf16, #tpu.memory_space<vmem>>, %arg15: memref<1x64xf32, #tpu.memory_space<vmem>>, %arg16: memref<2x4x8xbf16, #tpu.memory_space<vmem>>, %arg17: memref<2x64x32xbf16, #tpu.memory_space<vmem>>, %arg18: memref<3x32x16xbf16, #tpu.memory_space<vmem>>, %arg19: memref<1x16xf32, #tpu.memory_space<vmem>>, %arg20: memref<2x1x2xbf16, #tpu.memory_space<vmem>>, %arg21: memref<2x16x8xbf16, #tpu.memory_space<vmem>>, %arg22: memref<8x8xf32, #tpu.memory_space<vmem>>, %arg23: memref<1x8xf32, #tpu.memory_space<vmem>>, %arg24: memref<8x10xf32, #tpu.memory_space<vmem>>, %arg25: memref<1x10xf32, #tpu.memory_space<vmem>>, %arg26: memref<1x1x10xf32, #tpu.memory_space<vmem>>) attributes {dimension_semantics = [#tpu.dimension_semantics<parallel>], iteration_bounds = array<i64: 2>, scalar_prefetch = 0 : i64, scratch_operands = 0 : i64, tpu.core_type = #tpu.core_type<tc>, window_params = [{transform_indices = @transform_0, window_bounds = array<i64: 1, 3, 96, 96>}, {pipeline_mode = #tpu.pipeline_mode<synchronous>, transform_indices = @transform_1, window_bounds = array<i64: 9, 96, 752>}, {pipeline_mode = #tpu.pipeline_mode<synchronous>, transform_indices = @transform_2, window_bounds = array<i64: 1, 752>}, {pipeline_mode = #tpu.pipeline_mode<synchronous>, transform_indices = @transform_3, window_bounds = array<i64: 2, 47, 94>}, {pipeline_mode = #tpu.pipeline_mode<synchronous>, transform_indices = @transform_4, window_bounds = array<i64: 2, 752, 376>}, {pipeline_mode = #tpu.pipeline_mode<synchronous>, transform_indices = @transform_5, window_bounds = array<i64: 3, 376, 360>}, {pipeline_mode = #tpu.pipeline_mode<synchronous>, transform_indices = @transform_6, window_bounds = array<i64: 1, 360>}, {pipeline_mode = #tpu.pipeline_mode<synchronous>, transform_indices = @transform_7, window_bounds = array<i64: 2, 22, 45>}, {pipeline_mode = #tpu.pipeline_mode<synchronous>, transform_indices = @transform_8, window_bounds = array<i64: 2, 360, 176>}, {pipeline_mode = #tpu.pipeline_mode<synchronous>, transform_indices = @transform_9, window_bounds = array<i64: 3, 176, 160>}, {pipeline_mode = #tpu.pipeline_mode<synchronous>, transform_indices = @transform_10, window_bounds = array<i64: 1, 160>}, {pipeline_mode = #tpu.pipeline_mode<synchronous>, transform_indices = @transform_11, window_bounds = array<i64: 2, 10, 20>}, {pipeline_mode = #tpu.pipeline_mode<synchronous>, transform_indices = @transform_12, window_bounds = array<i64: 2, 160, 80>}, {pipeline_mode = #tpu.pipeline_mode<synchronous>, transform_indices = @transform_13, window_bounds = array<i64: 3, 80, 64>}, {pipeline_mode = #tpu.pipeline_mode<synchronous>, transform_indices = @transform_14, window_bounds = array<i64: 1, 64>}, {pipeline_mode = #tpu.pipeline_mode<synchronous>, transform_indices = @transform_15, window_bounds = array<i64: 2, 4, 8>}, {pipeline_mode = #tpu.pipeline_mode<synchronous>, transform_indices = @transform_16, window_bounds = array<i64: 2, 64, 32>}, {pipeline_mode = #tpu.pipeline_mode<synchronous>, transform_indices = @transform_17, window_bounds = array<i64: 3, 32, 16>}, {pipeline_mode = #tpu.pipeline_mode<synchronous>, transform_indices = @transform_18, window_bounds = array<i64: 1, 16>}, {pipeline_mode = #tpu.pipeline_mode<synchronous>, transform_indices = @transform_19, window_bounds = array<i64: 2, 1, 2>}, {pipeline_mode = #tpu.pipeline_mode<synchronous>, transform_indices = @transform_20, window_bounds = array<i64: 2, 16, 8>}, {pipeline_mode = #tpu.pipeline_mode<synchronous>, transform_indices = @transform_21, window_bounds = array<i64: 8, 8>}, {pipeline_mode = #tpu.pipeline_mode<synchronous>, transform_indices = @transform_22, window_bounds = array<i64: 1, 8>}, {pipeline_mode = #tpu.pipeline_mode<synchronous>, transform_indices = @transform_23, window_bounds = array<i64: 8, 10>}, {pipeline_mode = #tpu.pipeline_mode<synchronous>, transform_indices = @transform_24, window_bounds = array<i64: 1, 10>}, {transform_indices = @transform_25, window_bounds = array<i64: 1, 1, 10>}]} {
    %c0 = arith.constant 0 : index
    %c0_0 = arith.constant 0 : index
    %c0_1 = arith.constant 0 : index
    %c0_2 = arith.constant 0 : index
    %0 = vector.load %arg1[%c0, %c0_0, %c0_1, %c0_2] : memref<1x3x96x96xf32, #tpu.memory_space<vmem>>, vector<1x3x96x96xf32>
    %1 = vector.shape_cast %0 : vector<1x3x96x96xf32> to vector<3x96x96xf32>
    %2 = arith.truncf %1 : vector<3x96x96xf32> to vector<3x96x96xbf16>
    %3 = vector.extract_strided_slice %2 {offsets = [0, 0, 0], sizes = [1, 94, 96], strides = [1, 1, 1]} : vector<3x96x96xbf16> to vector<1x94x96xbf16>
    %4 = vector.shape_cast %3 : vector<1x94x96xbf16> to vector<94x96xbf16>
    %c0_3 = arith.constant 0 : index
    %c0_4 = arith.constant 0 : index
    %c0_5 = arith.constant 0 : index
    %5 = vector.load %arg2[%c0_3, %c0_4, %c0_5] : memref<9x96x752xbf16, #tpu.memory_space<vmem>>, vector<1x96x752xbf16>
    %6 = vector.shape_cast %5 : vector<1x96x752xbf16> to vector<96x752xbf16>
    %cst = arith.constant dense<0.000000e+00> : vector<94x752xf32>
    %7 = tpu.matmul %4, %6, %cst {dimension_numbers = #tpu.dot_dimension_numbers<[1], [0], [0], [1], [0, 0, 1, 1], [], []>} : vector<94x96xbf16>, vector<96x752xbf16>, vector<94x752xf32> -> vector<94x752xf32>
    %8 = vector.extract_strided_slice %2 {offsets = [1, 0, 0], sizes = [1, 94, 96], strides = [1, 1, 1]} : vector<3x96x96xbf16> to vector<1x94x96xbf16>
    %9 = vector.shape_cast %8 : vector<1x94x96xbf16> to vector<94x96xbf16>
    %c1 = arith.constant 1 : index
    %c0_6 = arith.constant 0 : index
    %c0_7 = arith.constant 0 : index
    %10 = vector.load %arg2[%c1, %c0_6, %c0_7] : memref<9x96x752xbf16, #tpu.memory_space<vmem>>, vector<1x96x752xbf16>
    %11 = vector.shape_cast %10 : vector<1x96x752xbf16> to vector<96x752xbf16>
    %cst_8 = arith.constant dense<0.000000e+00> : vector<94x752xf32>
    %12 = tpu.matmul %9, %11, %cst_8 {dimension_numbers = #tpu.dot_dimension_numbers<[1], [0], [0], [1], [0, 0, 1, 1], [], []>} : vector<94x96xbf16>, vector<96x752xbf16>, vector<94x752xf32> -> vector<94x752xf32>
    %13 = arith.addf %7, %12 : vector<94x752xf32>
    %14 = vector.extract_strided_slice %2 {offsets = [2, 0, 0], sizes = [1, 94, 96], strides = [1, 1, 1]} : vector<3x96x96xbf16> to vector<1x94x96xbf16>
    %15 = vector.shape_cast %14 : vector<1x94x96xbf16> to vector<94x96xbf16>
    %c2 = arith.constant 2 : index
    %c0_9 = arith.constant 0 : index
    %c0_10 = arith.constant 0 : index
    %16 = vector.load %arg2[%c2, %c0_9, %c0_10] : memref<9x96x752xbf16, #tpu.memory_space<vmem>>, vector<1x96x752xbf16>
    %17 = vector.shape_cast %16 : vector<1x96x752xbf16> to vector<96x752xbf16>
    %cst_11 = arith.constant dense<0.000000e+00> : vector<94x752xf32>
    %18 = tpu.matmul %15, %17, %cst_11 {dimension_numbers = #tpu.dot_dimension_numbers<[1], [0], [0], [1], [0, 0, 1, 1], [], []>} : vector<94x96xbf16>, vector<96x752xbf16>, vector<94x752xf32> -> vector<94x752xf32>
    %19 = arith.addf %13, %18 : vector<94x752xf32>
    %20 = vector.extract_strided_slice %2 {offsets = [0, 1, 0], sizes = [1, 94, 96], strides = [1, 1, 1]} : vector<3x96x96xbf16> to vector<1x94x96xbf16>
    %21 = vector.shape_cast %20 : vector<1x94x96xbf16> to vector<94x96xbf16>
    %c3 = arith.constant 3 : index
    %c0_12 = arith.constant 0 : index
    %c0_13 = arith.constant 0 : index
    %22 = vector.load %arg2[%c3, %c0_12, %c0_13] : memref<9x96x752xbf16, #tpu.memory_space<vmem>>, vector<1x96x752xbf16>
    %23 = vector.shape_cast %22 : vector<1x96x752xbf16> to vector<96x752xbf16>
    %cst_14 = arith.constant dense<0.000000e+00> : vector<94x752xf32>
    %24 = tpu.matmul %21, %23, %cst_14 {dimension_numbers = #tpu.dot_dimension_numbers<[1], [0], [0], [1], [0, 0, 1, 1], [], []>} : vector<94x96xbf16>, vector<96x752xbf16>, vector<94x752xf32> -> vector<94x752xf32>
    %25 = arith.addf %19, %24 : vector<94x752xf32>
    %26 = vector.extract_strided_slice %2 {offsets = [1, 1, 0], sizes = [1, 94, 96], strides = [1, 1, 1]} : vector<3x96x96xbf16> to vector<1x94x96xbf16>
    %27 = vector.shape_cast %26 : vector<1x94x96xbf16> to vector<94x96xbf16>
    %c4 = arith.constant 4 : index
    %c0_15 = arith.constant 0 : index
    %c0_16 = arith.constant 0 : index
    %28 = vector.load %arg2[%c4, %c0_15, %c0_16] : memref<9x96x752xbf16, #tpu.memory_space<vmem>>, vector<1x96x752xbf16>
    %29 = vector.shape_cast %28 : vector<1x96x752xbf16> to vector<96x752xbf16>
    %cst_17 = arith.constant dense<0.000000e+00> : vector<94x752xf32>
    %30 = tpu.matmul %27, %29, %cst_17 {dimension_numbers = #tpu.dot_dimension_numbers<[1], [0], [0], [1], [0, 0, 1, 1], [], []>} : vector<94x96xbf16>, vector<96x752xbf16>, vector<94x752xf32> -> vector<94x752xf32>
    %31 = arith.addf %25, %30 : vector<94x752xf32>
    %32 = vector.extract_strided_slice %2 {offsets = [2, 1, 0], sizes = [1, 94, 96], strides = [1, 1, 1]} : vector<3x96x96xbf16> to vector<1x94x96xbf16>
    %33 = vector.shape_cast %32 : vector<1x94x96xbf16> to vector<94x96xbf16>
    %c5 = arith.constant 5 : index
    %c0_18 = arith.constant 0 : index
    %c0_19 = arith.constant 0 : index
    %34 = vector.load %arg2[%c5, %c0_18, %c0_19] : memref<9x96x752xbf16, #tpu.memory_space<vmem>>, vector<1x96x752xbf16>
    %35 = vector.shape_cast %34 : vector<1x96x752xbf16> to vector<96x752xbf16>
    %cst_20 = arith.constant dense<0.000000e+00> : vector<94x752xf32>
    %36 = tpu.matmul %33, %35, %cst_20 {dimension_numbers = #tpu.dot_dimension_numbers<[1], [0], [0], [1], [0, 0, 1, 1], [], []>} : vector<94x96xbf16>, vector<96x752xbf16>, vector<94x752xf32> -> vector<94x752xf32>
    %37 = arith.addf %31, %36 : vector<94x752xf32>
    %38 = vector.extract_strided_slice %2 {offsets = [0, 2, 0], sizes = [1, 94, 96], strides = [1, 1, 1]} : vector<3x96x96xbf16> to vector<1x94x96xbf16>
    %39 = vector.shape_cast %38 : vector<1x94x96xbf16> to vector<94x96xbf16>
    %c6 = arith.constant 6 : index
    %c0_21 = arith.constant 0 : index
    %c0_22 = arith.constant 0 : index
    %40 = vector.load %arg2[%c6, %c0_21, %c0_22] : memref<9x96x752xbf16, #tpu.memory_space<vmem>>, vector<1x96x752xbf16>
    %41 = vector.shape_cast %40 : vector<1x96x752xbf16> to vector<96x752xbf16>
    %cst_23 = arith.constant dense<0.000000e+00> : vector<94x752xf32>
    %42 = tpu.matmul %39, %41, %cst_23 {dimension_numbers = #tpu.dot_dimension_numbers<[1], [0], [0], [1], [0, 0, 1, 1], [], []>} : vector<94x96xbf16>, vector<96x752xbf16>, vector<94x752xf32> -> vector<94x752xf32>
    %43 = arith.addf %37, %42 : vector<94x752xf32>
    %44 = vector.extract_strided_slice %2 {offsets = [1, 2, 0], sizes = [1, 94, 96], strides = [1, 1, 1]} : vector<3x96x96xbf16> to vector<1x94x96xbf16>
    %45 = vector.shape_cast %44 : vector<1x94x96xbf16> to vector<94x96xbf16>
    %c7 = arith.constant 7 : index
    %c0_24 = arith.constant 0 : index
    %c0_25 = arith.constant 0 : index
    %46 = vector.load %arg2[%c7, %c0_24, %c0_25] : memref<9x96x752xbf16, #tpu.memory_space<vmem>>, vector<1x96x752xbf16>
    %47 = vector.shape_cast %46 : vector<1x96x752xbf16> to vector<96x752xbf16>
    %cst_26 = arith.constant dense<0.000000e+00> : vector<94x752xf32>
    %48 = tpu.matmul %45, %47, %cst_26 {dimension_numbers = #tpu.dot_dimension_numbers<[1], [0], [0], [1], [0, 0, 1, 1], [], []>} : vector<94x96xbf16>, vector<96x752xbf16>, vector<94x752xf32> -> vector<94x752xf32>
    %49 = arith.addf %43, %48 : vector<94x752xf32>
    %50 = vector.extract_strided_slice %2 {offsets = [2, 2, 0], sizes = [1, 94, 96], strides = [1, 1, 1]} : vector<3x96x96xbf16> to vector<1x94x96xbf16>
    %51 = vector.shape_cast %50 : vector<1x94x96xbf16> to vector<94x96xbf16>
    %c8 = arith.constant 8 : index
    %c0_27 = arith.constant 0 : index
    %c0_28 = arith.constant 0 : index
    %52 = vector.load %arg2[%c8, %c0_27, %c0_28] : memref<9x96x752xbf16, #tpu.memory_space<vmem>>, vector<1x96x752xbf16>
    %53 = vector.shape_cast %52 : vector<1x96x752xbf16> to vector<96x752xbf16>
    %cst_29 = arith.constant dense<0.000000e+00> : vector<94x752xf32>
    %54 = tpu.matmul %51, %53, %cst_29 {dimension_numbers = #tpu.dot_dimension_numbers<[1], [0], [0], [1], [0, 0, 1, 1], [], []>} : vector<94x96xbf16>, vector<96x752xbf16>, vector<94x752xf32> -> vector<94x752xf32>
    %55 = arith.addf %49, %54 : vector<94x752xf32>
    %c0_30 = arith.constant 0 : index
    %c0_31 = arith.constant 0 : index
    %56 = vector.load %arg3[%c0_30, %c0_31] : memref<1x752xf32, #tpu.memory_space<vmem>>, vector<1x752xf32>
    %57 = vector.broadcast %56 : vector<1x752xf32> to vector<94x752xf32>
    %58 = arith.addf %55, %57 : vector<94x752xf32>
    %cst_32 = arith.constant 0.000000e+00 : f32
    %59 = vector.broadcast %cst_32 : f32 to vector<94x752xf32>
    %60 = arith.maximumf %58, %59 : vector<94x752xf32>
    %61 = arith.truncf %60 : vector<94x752xf32> to vector<94x752xbf16>
    %c0_33 = arith.constant 0 : index
    %c0_34 = arith.constant 0 : index
    %c0_35 = arith.constant 0 : index
    %62 = vector.load %arg4[%c0_33, %c0_34, %c0_35] : memref<2x47x94xbf16, #tpu.memory_space<vmem>>, vector<1x47x94xbf16>
    %63 = vector.shape_cast %62 : vector<1x47x94xbf16> to vector<47x94xbf16>
    %cst_36 = arith.constant dense<0.000000e+00> : vector<47x752xf32>
    %64 = tpu.matmul %63, %61, %cst_36 {dimension_numbers = #tpu.dot_dimension_numbers<[1], [0], [0], [1], [0, 0, 1, 1], [], []>} : vector<47x94xbf16>, vector<94x752xbf16>, vector<47x752xf32> -> vector<47x752xf32>
    %c1_37 = arith.constant 1 : index
    %c0_38 = arith.constant 0 : index
    %c0_39 = arith.constant 0 : index
    %65 = vector.load %arg4[%c1_37, %c0_38, %c0_39] : memref<2x47x94xbf16, #tpu.memory_space<vmem>>, vector<1x47x94xbf16>
    %66 = vector.shape_cast %65 : vector<1x47x94xbf16> to vector<47x94xbf16>
    %cst_40 = arith.constant dense<0.000000e+00> : vector<47x752xf32>
    %67 = tpu.matmul %66, %61, %cst_40 {dimension_numbers = #tpu.dot_dimension_numbers<[1], [0], [0], [1], [0, 0, 1, 1], [], []>} : vector<47x94xbf16>, vector<94x752xbf16>, vector<47x752xf32> -> vector<47x752xf32>
    %68 = arith.maximumf %64, %67 : vector<47x752xf32>
    %69 = arith.truncf %68 : vector<47x752xf32> to vector<47x752xbf16>
    %c0_41 = arith.constant 0 : index
    %c0_42 = arith.constant 0 : index
    %c0_43 = arith.constant 0 : index
    %70 = vector.load %arg5[%c0_41, %c0_42, %c0_43] : memref<2x752x376xbf16, #tpu.memory_space<vmem>>, vector<1x752x376xbf16>
    %71 = vector.shape_cast %70 : vector<1x752x376xbf16> to vector<752x376xbf16>
    %cst_44 = arith.constant dense<0.000000e+00> : vector<47x376xf32>
    %72 = tpu.matmul %69, %71, %cst_44 {dimension_numbers = #tpu.dot_dimension_numbers<[1], [0], [0], [1], [0, 0, 1, 1], [], []>} : vector<47x752xbf16>, vector<752x376xbf16>, vector<47x376xf32> -> vector<47x376xf32>
    %c1_45 = arith.constant 1 : index
    %c0_46 = arith.constant 0 : index
    %c0_47 = arith.constant 0 : index
    %73 = vector.load %arg5[%c1_45, %c0_46, %c0_47] : memref<2x752x376xbf16, #tpu.memory_space<vmem>>, vector<1x752x376xbf16>
    %74 = vector.shape_cast %73 : vector<1x752x376xbf16> to vector<752x376xbf16>
    %cst_48 = arith.constant dense<0.000000e+00> : vector<47x376xf32>
    %75 = tpu.matmul %69, %74, %cst_48 {dimension_numbers = #tpu.dot_dimension_numbers<[1], [0], [0], [1], [0, 0, 1, 1], [], []>} : vector<47x752xbf16>, vector<752x376xbf16>, vector<47x376xf32> -> vector<47x376xf32>
    %76 = arith.maximumf %72, %75 : vector<47x376xf32>
    %77 = arith.truncf %76 : vector<47x376xf32> to vector<47x376xbf16>
    %78 = vector.extract_strided_slice %77 {offsets = [0, 0], sizes = [45, 376], strides = [1, 1]} : vector<47x376xbf16> to vector<45x376xbf16>
    %c0_49 = arith.constant 0 : index
    %c0_50 = arith.constant 0 : index
    %c0_51 = arith.constant 0 : index
    %79 = vector.load %arg6[%c0_49, %c0_50, %c0_51] : memref<3x376x360xbf16, #tpu.memory_space<vmem>>, vector<1x376x360xbf16>
    %80 = vector.shape_cast %79 : vector<1x376x360xbf16> to vector<376x360xbf16>
    %cst_52 = arith.constant dense<0.000000e+00> : vector<45x360xf32>
    %81 = tpu.matmul %78, %80, %cst_52 {dimension_numbers = #tpu.dot_dimension_numbers<[1], [0], [0], [1], [0, 0, 1, 1], [], []>} : vector<45x376xbf16>, vector<376x360xbf16>, vector<45x360xf32> -> vector<45x360xf32>
    %82 = vector.extract_strided_slice %77 {offsets = [1, 0], sizes = [45, 376], strides = [1, 1]} : vector<47x376xbf16> to vector<45x376xbf16>
    %c1_53 = arith.constant 1 : index
    %c0_54 = arith.constant 0 : index
    %c0_55 = arith.constant 0 : index
    %83 = vector.load %arg6[%c1_53, %c0_54, %c0_55] : memref<3x376x360xbf16, #tpu.memory_space<vmem>>, vector<1x376x360xbf16>
    %84 = vector.shape_cast %83 : vector<1x376x360xbf16> to vector<376x360xbf16>
    %cst_56 = arith.constant dense<0.000000e+00> : vector<45x360xf32>
    %85 = tpu.matmul %82, %84, %cst_56 {dimension_numbers = #tpu.dot_dimension_numbers<[1], [0], [0], [1], [0, 0, 1, 1], [], []>} : vector<45x376xbf16>, vector<376x360xbf16>, vector<45x360xf32> -> vector<45x360xf32>
    %86 = arith.addf %81, %85 : vector<45x360xf32>
    %87 = vector.extract_strided_slice %77 {offsets = [2, 0], sizes = [45, 376], strides = [1, 1]} : vector<47x376xbf16> to vector<45x376xbf16>
    %c2_57 = arith.constant 2 : index
    %c0_58 = arith.constant 0 : index
    %c0_59 = arith.constant 0 : index
    %88 = vector.load %arg6[%c2_57, %c0_58, %c0_59] : memref<3x376x360xbf16, #tpu.memory_space<vmem>>, vector<1x376x360xbf16>
    %89 = vector.shape_cast %88 : vector<1x376x360xbf16> to vector<376x360xbf16>
    %cst_60 = arith.constant dense<0.000000e+00> : vector<45x360xf32>
    %90 = tpu.matmul %87, %89, %cst_60 {dimension_numbers = #tpu.dot_dimension_numbers<[1], [0], [0], [1], [0, 0, 1, 1], [], []>} : vector<45x376xbf16>, vector<376x360xbf16>, vector<45x360xf32> -> vector<45x360xf32>
    %91 = arith.addf %86, %90 : vector<45x360xf32>
    %c0_61 = arith.constant 0 : index
    %c0_62 = arith.constant 0 : index
    %92 = vector.load %arg7[%c0_61, %c0_62] : memref<1x360xf32, #tpu.memory_space<vmem>>, vector<1x360xf32>
    %93 = vector.broadcast %92 : vector<1x360xf32> to vector<45x360xf32>
    %94 = arith.addf %91, %93 : vector<45x360xf32>
    %cst_63 = arith.constant 0.000000e+00 : f32
    %95 = vector.broadcast %cst_63 : f32 to vector<45x360xf32>
    %96 = arith.maximumf %94, %95 : vector<45x360xf32>
    %97 = arith.truncf %96 : vector<45x360xf32> to vector<45x360xbf16>
    %c0_64 = arith.constant 0 : index
    %c0_65 = arith.constant 0 : index
    %c0_66 = arith.constant 0 : index
    %98 = vector.load %arg8[%c0_64, %c0_65, %c0_66] : memref<2x22x45xbf16, #tpu.memory_space<vmem>>, vector<1x22x45xbf16>
    %99 = vector.shape_cast %98 : vector<1x22x45xbf16> to vector<22x45xbf16>
    %cst_67 = arith.constant dense<0.000000e+00> : vector<22x360xf32>
    %100 = tpu.matmul %99, %97, %cst_67 {dimension_numbers = #tpu.dot_dimension_numbers<[1], [0], [0], [1], [0, 0, 1, 1], [], []>} : vector<22x45xbf16>, vector<45x360xbf16>, vector<22x360xf32> -> vector<22x360xf32>
    %c1_68 = arith.constant 1 : index
    %c0_69 = arith.constant 0 : index
    %c0_70 = arith.constant 0 : index
    %101 = vector.load %arg8[%c1_68, %c0_69, %c0_70] : memref<2x22x45xbf16, #tpu.memory_space<vmem>>, vector<1x22x45xbf16>
    %102 = vector.shape_cast %101 : vector<1x22x45xbf16> to vector<22x45xbf16>
    %cst_71 = arith.constant dense<0.000000e+00> : vector<22x360xf32>
    %103 = tpu.matmul %102, %97, %cst_71 {dimension_numbers = #tpu.dot_dimension_numbers<[1], [0], [0], [1], [0, 0, 1, 1], [], []>} : vector<22x45xbf16>, vector<45x360xbf16>, vector<22x360xf32> -> vector<22x360xf32>
    %104 = arith.maximumf %100, %103 : vector<22x360xf32>
    %105 = arith.truncf %104 : vector<22x360xf32> to vector<22x360xbf16>
    %c0_72 = arith.constant 0 : index
    %c0_73 = arith.constant 0 : index
    %c0_74 = arith.constant 0 : index
    %106 = vector.load %arg9[%c0_72, %c0_73, %c0_74] : memref<2x360x176xbf16, #tpu.memory_space<vmem>>, vector<1x360x176xbf16>
    %107 = vector.shape_cast %106 : vector<1x360x176xbf16> to vector<360x176xbf16>
    %cst_75 = arith.constant dense<0.000000e+00> : vector<22x176xf32>
    %108 = tpu.matmul %105, %107, %cst_75 {dimension_numbers = #tpu.dot_dimension_numbers<[1], [0], [0], [1], [0, 0, 1, 1], [], []>} : vector<22x360xbf16>, vector<360x176xbf16>, vector<22x176xf32> -> vector<22x176xf32>
    %c1_76 = arith.constant 1 : index
    %c0_77 = arith.constant 0 : index
    %c0_78 = arith.constant 0 : index
    %109 = vector.load %arg9[%c1_76, %c0_77, %c0_78] : memref<2x360x176xbf16, #tpu.memory_space<vmem>>, vector<1x360x176xbf16>
    %110 = vector.shape_cast %109 : vector<1x360x176xbf16> to vector<360x176xbf16>
    %cst_79 = arith.constant dense<0.000000e+00> : vector<22x176xf32>
    %111 = tpu.matmul %105, %110, %cst_79 {dimension_numbers = #tpu.dot_dimension_numbers<[1], [0], [0], [1], [0, 0, 1, 1], [], []>} : vector<22x360xbf16>, vector<360x176xbf16>, vector<22x176xf32> -> vector<22x176xf32>
    %112 = arith.maximumf %108, %111 : vector<22x176xf32>
    %113 = arith.truncf %112 : vector<22x176xf32> to vector<22x176xbf16>
    %114 = vector.extract_strided_slice %113 {offsets = [0, 0], sizes = [20, 176], strides = [1, 1]} : vector<22x176xbf16> to vector<20x176xbf16>
    %c0_80 = arith.constant 0 : index
    %c0_81 = arith.constant 0 : index
    %c0_82 = arith.constant 0 : index
    %115 = vector.load %arg10[%c0_80, %c0_81, %c0_82] : memref<3x176x160xbf16, #tpu.memory_space<vmem>>, vector<1x176x160xbf16>
    %116 = vector.shape_cast %115 : vector<1x176x160xbf16> to vector<176x160xbf16>
    %cst_83 = arith.constant dense<0.000000e+00> : vector<20x160xf32>
    %117 = tpu.matmul %114, %116, %cst_83 {dimension_numbers = #tpu.dot_dimension_numbers<[1], [0], [0], [1], [0, 0, 1, 1], [], []>} : vector<20x176xbf16>, vector<176x160xbf16>, vector<20x160xf32> -> vector<20x160xf32>
    %118 = vector.extract_strided_slice %113 {offsets = [1, 0], sizes = [20, 176], strides = [1, 1]} : vector<22x176xbf16> to vector<20x176xbf16>
    %c1_84 = arith.constant 1 : index
    %c0_85 = arith.constant 0 : index
    %c0_86 = arith.constant 0 : index
    %119 = vector.load %arg10[%c1_84, %c0_85, %c0_86] : memref<3x176x160xbf16, #tpu.memory_space<vmem>>, vector<1x176x160xbf16>
    %120 = vector.shape_cast %119 : vector<1x176x160xbf16> to vector<176x160xbf16>
    %cst_87 = arith.constant dense<0.000000e+00> : vector<20x160xf32>
    %121 = tpu.matmul %118, %120, %cst_87 {dimension_numbers = #tpu.dot_dimension_numbers<[1], [0], [0], [1], [0, 0, 1, 1], [], []>} : vector<20x176xbf16>, vector<176x160xbf16>, vector<20x160xf32> -> vector<20x160xf32>
    %122 = arith.addf %117, %121 : vector<20x160xf32>
    %123 = vector.extract_strided_slice %113 {offsets = [2, 0], sizes = [20, 176], strides = [1, 1]} : vector<22x176xbf16> to vector<20x176xbf16>
    %c2_88 = arith.constant 2 : index
    %c0_89 = arith.constant 0 : index
    %c0_90 = arith.constant 0 : index
    %124 = vector.load %arg10[%c2_88, %c0_89, %c0_90] : memref<3x176x160xbf16, #tpu.memory_space<vmem>>, vector<1x176x160xbf16>
    %125 = vector.shape_cast %124 : vector<1x176x160xbf16> to vector<176x160xbf16>
    %cst_91 = arith.constant dense<0.000000e+00> : vector<20x160xf32>
    %126 = tpu.matmul %123, %125, %cst_91 {dimension_numbers = #tpu.dot_dimension_numbers<[1], [0], [0], [1], [0, 0, 1, 1], [], []>} : vector<20x176xbf16>, vector<176x160xbf16>, vector<20x160xf32> -> vector<20x160xf32>
    %127 = arith.addf %122, %126 : vector<20x160xf32>
    %c0_92 = arith.constant 0 : index
    %c0_93 = arith.constant 0 : index
    %128 = vector.load %arg11[%c0_92, %c0_93] : memref<1x160xf32, #tpu.memory_space<vmem>>, vector<1x160xf32>
    %129 = vector.broadcast %128 : vector<1x160xf32> to vector<20x160xf32>
    %130 = arith.addf %127, %129 : vector<20x160xf32>
    %cst_94 = arith.constant 0.000000e+00 : f32
    %131 = vector.broadcast %cst_94 : f32 to vector<20x160xf32>
    %132 = arith.maximumf %130, %131 : vector<20x160xf32>
    %133 = arith.truncf %132 : vector<20x160xf32> to vector<20x160xbf16>
    %c0_95 = arith.constant 0 : index
    %c0_96 = arith.constant 0 : index
    %c0_97 = arith.constant 0 : index
    %134 = vector.load %arg12[%c0_95, %c0_96, %c0_97] : memref<2x10x20xbf16, #tpu.memory_space<vmem>>, vector<1x10x20xbf16>
    %135 = vector.shape_cast %134 : vector<1x10x20xbf16> to vector<10x20xbf16>
    %cst_98 = arith.constant dense<0.000000e+00> : vector<10x160xf32>
    %136 = tpu.matmul %135, %133, %cst_98 {dimension_numbers = #tpu.dot_dimension_numbers<[1], [0], [0], [1], [0, 0, 1, 1], [], []>} : vector<10x20xbf16>, vector<20x160xbf16>, vector<10x160xf32> -> vector<10x160xf32>
    %c1_99 = arith.constant 1 : index
    %c0_100 = arith.constant 0 : index
    %c0_101 = arith.constant 0 : index
    %137 = vector.load %arg12[%c1_99, %c0_100, %c0_101] : memref<2x10x20xbf16, #tpu.memory_space<vmem>>, vector<1x10x20xbf16>
    %138 = vector.shape_cast %137 : vector<1x10x20xbf16> to vector<10x20xbf16>
    %cst_102 = arith.constant dense<0.000000e+00> : vector<10x160xf32>
    %139 = tpu.matmul %138, %133, %cst_102 {dimension_numbers = #tpu.dot_dimension_numbers<[1], [0], [0], [1], [0, 0, 1, 1], [], []>} : vector<10x20xbf16>, vector<20x160xbf16>, vector<10x160xf32> -> vector<10x160xf32>
    %140 = arith.maximumf %136, %139 : vector<10x160xf32>
    %141 = arith.truncf %140 : vector<10x160xf32> to vector<10x160xbf16>
    %c0_103 = arith.constant 0 : index
    %c0_104 = arith.constant 0 : index
    %c0_105 = arith.constant 0 : index
    %142 = vector.load %arg13[%c0_103, %c0_104, %c0_105] : memref<2x160x80xbf16, #tpu.memory_space<vmem>>, vector<1x160x80xbf16>
    %143 = vector.shape_cast %142 : vector<1x160x80xbf16> to vector<160x80xbf16>
    %cst_106 = arith.constant dense<0.000000e+00> : vector<10x80xf32>
    %144 = tpu.matmul %141, %143, %cst_106 {dimension_numbers = #tpu.dot_dimension_numbers<[1], [0], [0], [1], [0, 0, 1, 1], [], []>} : vector<10x160xbf16>, vector<160x80xbf16>, vector<10x80xf32> -> vector<10x80xf32>
    %c1_107 = arith.constant 1 : index
    %c0_108 = arith.constant 0 : index
    %c0_109 = arith.constant 0 : index
    %145 = vector.load %arg13[%c1_107, %c0_108, %c0_109] : memref<2x160x80xbf16, #tpu.memory_space<vmem>>, vector<1x160x80xbf16>
    %146 = vector.shape_cast %145 : vector<1x160x80xbf16> to vector<160x80xbf16>
    %cst_110 = arith.constant dense<0.000000e+00> : vector<10x80xf32>
    %147 = tpu.matmul %141, %146, %cst_110 {dimension_numbers = #tpu.dot_dimension_numbers<[1], [0], [0], [1], [0, 0, 1, 1], [], []>} : vector<10x160xbf16>, vector<160x80xbf16>, vector<10x80xf32> -> vector<10x80xf32>
    %148 = arith.maximumf %144, %147 : vector<10x80xf32>
    %149 = arith.truncf %148 : vector<10x80xf32> to vector<10x80xbf16>
    %150 = vector.extract_strided_slice %149 {offsets = [0, 0], sizes = [8, 80], strides = [1, 1]} : vector<10x80xbf16> to vector<8x80xbf16>
    %c0_111 = arith.constant 0 : index
    %c0_112 = arith.constant 0 : index
    %c0_113 = arith.constant 0 : index
    %151 = vector.load %arg14[%c0_111, %c0_112, %c0_113] : memref<3x80x64xbf16, #tpu.memory_space<vmem>>, vector<1x80x64xbf16>
    %152 = vector.shape_cast %151 : vector<1x80x64xbf16> to vector<80x64xbf16>
    %cst_114 = arith.constant dense<0.000000e+00> : vector<8x64xf32>
    %153 = tpu.matmul %150, %152, %cst_114 {dimension_numbers = #tpu.dot_dimension_numbers<[1], [0], [0], [1], [0, 0, 1, 1], [], []>} : vector<8x80xbf16>, vector<80x64xbf16>, vector<8x64xf32> -> vector<8x64xf32>
    %154 = vector.extract_strided_slice %149 {offsets = [1, 0], sizes = [8, 80], strides = [1, 1]} : vector<10x80xbf16> to vector<8x80xbf16>
    %c1_115 = arith.constant 1 : index
    %c0_116 = arith.constant 0 : index
    %c0_117 = arith.constant 0 : index
    %155 = vector.load %arg14[%c1_115, %c0_116, %c0_117] : memref<3x80x64xbf16, #tpu.memory_space<vmem>>, vector<1x80x64xbf16>
    %156 = vector.shape_cast %155 : vector<1x80x64xbf16> to vector<80x64xbf16>
    %cst_118 = arith.constant dense<0.000000e+00> : vector<8x64xf32>
    %157 = tpu.matmul %154, %156, %cst_118 {dimension_numbers = #tpu.dot_dimension_numbers<[1], [0], [0], [1], [0, 0, 1, 1], [], []>} : vector<8x80xbf16>, vector<80x64xbf16>, vector<8x64xf32> -> vector<8x64xf32>
    %158 = arith.addf %153, %157 : vector<8x64xf32>
    %159 = vector.extract_strided_slice %149 {offsets = [2, 0], sizes = [8, 80], strides = [1, 1]} : vector<10x80xbf16> to vector<8x80xbf16>
    %c2_119 = arith.constant 2 : index
    %c0_120 = arith.constant 0 : index
    %c0_121 = arith.constant 0 : index
    %160 = vector.load %arg14[%c2_119, %c0_120, %c0_121] : memref<3x80x64xbf16, #tpu.memory_space<vmem>>, vector<1x80x64xbf16>
    %161 = vector.shape_cast %160 : vector<1x80x64xbf16> to vector<80x64xbf16>
    %cst_122 = arith.constant dense<0.000000e+00> : vector<8x64xf32>
    %162 = tpu.matmul %159, %161, %cst_122 {dimension_numbers = #tpu.dot_dimension_numbers<[1], [0], [0], [1], [0, 0, 1, 1], [], []>} : vector<8x80xbf16>, vector<80x64xbf16>, vector<8x64xf32> -> vector<8x64xf32>
    %163 = arith.addf %158, %162 : vector<8x64xf32>
    %c0_123 = arith.constant 0 : index
    %c0_124 = arith.constant 0 : index
    %164 = vector.load %arg15[%c0_123, %c0_124] : memref<1x64xf32, #tpu.memory_space<vmem>>, vector<1x64xf32>
    %165 = vector.broadcast %164 : vector<1x64xf32> to vector<8x64xf32>
    %166 = arith.addf %163, %165 : vector<8x64xf32>
    %cst_125 = arith.constant 0.000000e+00 : f32
    %167 = vector.broadcast %cst_125 : f32 to vector<8x64xf32>
    %168 = arith.maximumf %166, %167 : vector<8x64xf32>
    %169 = arith.truncf %168 : vector<8x64xf32> to vector<8x64xbf16>
    %c0_126 = arith.constant 0 : index
    %c0_127 = arith.constant 0 : index
    %c0_128 = arith.constant 0 : index
    %170 = vector.load %arg16[%c0_126, %c0_127, %c0_128] : memref<2x4x8xbf16, #tpu.memory_space<vmem>>, vector<1x4x8xbf16>
    %171 = vector.shape_cast %170 : vector<1x4x8xbf16> to vector<4x8xbf16>
    %cst_129 = arith.constant dense<0.000000e+00> : vector<4x64xf32>
    %172 = tpu.matmul %171, %169, %cst_129 {dimension_numbers = #tpu.dot_dimension_numbers<[1], [0], [0], [1], [0, 0, 1, 1], [], []>} : vector<4x8xbf16>, vector<8x64xbf16>, vector<4x64xf32> -> vector<4x64xf32>
    %c1_130 = arith.constant 1 : index
    %c0_131 = arith.constant 0 : index
    %c0_132 = arith.constant 0 : index
    %173 = vector.load %arg16[%c1_130, %c0_131, %c0_132] : memref<2x4x8xbf16, #tpu.memory_space<vmem>>, vector<1x4x8xbf16>
    %174 = vector.shape_cast %173 : vector<1x4x8xbf16> to vector<4x8xbf16>
    %cst_133 = arith.constant dense<0.000000e+00> : vector<4x64xf32>
    %175 = tpu.matmul %174, %169, %cst_133 {dimension_numbers = #tpu.dot_dimension_numbers<[1], [0], [0], [1], [0, 0, 1, 1], [], []>} : vector<4x8xbf16>, vector<8x64xbf16>, vector<4x64xf32> -> vector<4x64xf32>
    %176 = arith.maximumf %172, %175 : vector<4x64xf32>
    %177 = arith.truncf %176 : vector<4x64xf32> to vector<4x64xbf16>
    %c0_134 = arith.constant 0 : index
    %c0_135 = arith.constant 0 : index
    %c0_136 = arith.constant 0 : index
    %178 = vector.load %arg17[%c0_134, %c0_135, %c0_136] : memref<2x64x32xbf16, #tpu.memory_space<vmem>>, vector<1x64x32xbf16>
    %179 = vector.shape_cast %178 : vector<1x64x32xbf16> to vector<64x32xbf16>
    %cst_137 = arith.constant dense<0.000000e+00> : vector<4x32xf32>
    %180 = tpu.matmul %177, %179, %cst_137 {dimension_numbers = #tpu.dot_dimension_numbers<[1], [0], [0], [1], [0, 0, 1, 1], [], []>} : vector<4x64xbf16>, vector<64x32xbf16>, vector<4x32xf32> -> vector<4x32xf32>
    %c1_138 = arith.constant 1 : index
    %c0_139 = arith.constant 0 : index
    %c0_140 = arith.constant 0 : index
    %181 = vector.load %arg17[%c1_138, %c0_139, %c0_140] : memref<2x64x32xbf16, #tpu.memory_space<vmem>>, vector<1x64x32xbf16>
    %182 = vector.shape_cast %181 : vector<1x64x32xbf16> to vector<64x32xbf16>
    %cst_141 = arith.constant dense<0.000000e+00> : vector<4x32xf32>
    %183 = tpu.matmul %177, %182, %cst_141 {dimension_numbers = #tpu.dot_dimension_numbers<[1], [0], [0], [1], [0, 0, 1, 1], [], []>} : vector<4x64xbf16>, vector<64x32xbf16>, vector<4x32xf32> -> vector<4x32xf32>
    %184 = arith.maximumf %180, %183 : vector<4x32xf32>
    %185 = arith.truncf %184 : vector<4x32xf32> to vector<4x32xbf16>
    %186 = vector.extract_strided_slice %185 {offsets = [0, 0], sizes = [2, 32], strides = [1, 1]} : vector<4x32xbf16> to vector<2x32xbf16>
    %c0_142 = arith.constant 0 : index
    %c0_143 = arith.constant 0 : index
    %c0_144 = arith.constant 0 : index
    %187 = vector.load %arg18[%c0_142, %c0_143, %c0_144] : memref<3x32x16xbf16, #tpu.memory_space<vmem>>, vector<1x32x16xbf16>
    %188 = vector.shape_cast %187 : vector<1x32x16xbf16> to vector<32x16xbf16>
    %cst_145 = arith.constant dense<0.000000e+00> : vector<2x16xf32>
    %189 = tpu.matmul %186, %188, %cst_145 {dimension_numbers = #tpu.dot_dimension_numbers<[1], [0], [0], [1], [0, 0, 1, 1], [], []>} : vector<2x32xbf16>, vector<32x16xbf16>, vector<2x16xf32> -> vector<2x16xf32>
    %190 = vector.extract_strided_slice %185 {offsets = [1, 0], sizes = [2, 32], strides = [1, 1]} : vector<4x32xbf16> to vector<2x32xbf16>
    %c1_146 = arith.constant 1 : index
    %c0_147 = arith.constant 0 : index
    %c0_148 = arith.constant 0 : index
    %191 = vector.load %arg18[%c1_146, %c0_147, %c0_148] : memref<3x32x16xbf16, #tpu.memory_space<vmem>>, vector<1x32x16xbf16>
    %192 = vector.shape_cast %191 : vector<1x32x16xbf16> to vector<32x16xbf16>
    %cst_149 = arith.constant dense<0.000000e+00> : vector<2x16xf32>
    %193 = tpu.matmul %190, %192, %cst_149 {dimension_numbers = #tpu.dot_dimension_numbers<[1], [0], [0], [1], [0, 0, 1, 1], [], []>} : vector<2x32xbf16>, vector<32x16xbf16>, vector<2x16xf32> -> vector<2x16xf32>
    %194 = arith.addf %189, %193 : vector<2x16xf32>
    %195 = vector.extract_strided_slice %185 {offsets = [2, 0], sizes = [2, 32], strides = [1, 1]} : vector<4x32xbf16> to vector<2x32xbf16>
    %c2_150 = arith.constant 2 : index
    %c0_151 = arith.constant 0 : index
    %c0_152 = arith.constant 0 : index
    %196 = vector.load %arg18[%c2_150, %c0_151, %c0_152] : memref<3x32x16xbf16, #tpu.memory_space<vmem>>, vector<1x32x16xbf16>
    %197 = vector.shape_cast %196 : vector<1x32x16xbf16> to vector<32x16xbf16>
    %cst_153 = arith.constant dense<0.000000e+00> : vector<2x16xf32>
    %198 = tpu.matmul %195, %197, %cst_153 {dimension_numbers = #tpu.dot_dimension_numbers<[1], [0], [0], [1], [0, 0, 1, 1], [], []>} : vector<2x32xbf16>, vector<32x16xbf16>, vector<2x16xf32> -> vector<2x16xf32>
    %199 = arith.addf %194, %198 : vector<2x16xf32>
    %c0_154 = arith.constant 0 : index
    %c0_155 = arith.constant 0 : index
    %200 = vector.load %arg19[%c0_154, %c0_155] : memref<1x16xf32, #tpu.memory_space<vmem>>, vector<1x16xf32>
    %201 = vector.broadcast %200 : vector<1x16xf32> to vector<2x16xf32>
    %202 = arith.addf %199, %201 : vector<2x16xf32>
    %cst_156 = arith.constant 0.000000e+00 : f32
    %203 = vector.broadcast %cst_156 : f32 to vector<2x16xf32>
    %204 = arith.maximumf %202, %203 : vector<2x16xf32>
    %205 = arith.truncf %204 : vector<2x16xf32> to vector<2x16xbf16>
    %c0_157 = arith.constant 0 : index
    %c0_158 = arith.constant 0 : index
    %c0_159 = arith.constant 0 : index
    %206 = vector.load %arg20[%c0_157, %c0_158, %c0_159] : memref<2x1x2xbf16, #tpu.memory_space<vmem>>, vector<1x1x2xbf16>
    %207 = vector.shape_cast %206 : vector<1x1x2xbf16> to vector<1x2xbf16>
    %cst_160 = arith.constant dense<0.000000e+00> : vector<1x16xf32>
    %208 = tpu.matmul %207, %205, %cst_160 {dimension_numbers = #tpu.dot_dimension_numbers<[1], [0], [0], [1], [0, 0, 1, 1], [], []>} : vector<1x2xbf16>, vector<2x16xbf16>, vector<1x16xf32> -> vector<1x16xf32>
    %c1_161 = arith.constant 1 : index
    %c0_162 = arith.constant 0 : index
    %c0_163 = arith.constant 0 : index
    %209 = vector.load %arg20[%c1_161, %c0_162, %c0_163] : memref<2x1x2xbf16, #tpu.memory_space<vmem>>, vector<1x1x2xbf16>
    %210 = vector.shape_cast %209 : vector<1x1x2xbf16> to vector<1x2xbf16>
    %cst_164 = arith.constant dense<0.000000e+00> : vector<1x16xf32>
    %211 = tpu.matmul %210, %205, %cst_164 {dimension_numbers = #tpu.dot_dimension_numbers<[1], [0], [0], [1], [0, 0, 1, 1], [], []>} : vector<1x2xbf16>, vector<2x16xbf16>, vector<1x16xf32> -> vector<1x16xf32>
    %212 = arith.maximumf %208, %211 : vector<1x16xf32>
    %213 = arith.truncf %212 : vector<1x16xf32> to vector<1x16xbf16>
    %c0_165 = arith.constant 0 : index
    %c0_166 = arith.constant 0 : index
    %c0_167 = arith.constant 0 : index
    %214 = vector.load %arg21[%c0_165, %c0_166, %c0_167] : memref<2x16x8xbf16, #tpu.memory_space<vmem>>, vector<1x16x8xbf16>
    %215 = vector.shape_cast %214 : vector<1x16x8xbf16> to vector<16x8xbf16>
    %cst_168 = arith.constant dense<0.000000e+00> : vector<1x8xf32>
    %216 = tpu.matmul %213, %215, %cst_168 {dimension_numbers = #tpu.dot_dimension_numbers<[1], [0], [0], [1], [0, 0, 1, 1], [], []>} : vector<1x16xbf16>, vector<16x8xbf16>, vector<1x8xf32> -> vector<1x8xf32>
    %c1_169 = arith.constant 1 : index
    %c0_170 = arith.constant 0 : index
    %c0_171 = arith.constant 0 : index
    %217 = vector.load %arg21[%c1_169, %c0_170, %c0_171] : memref<2x16x8xbf16, #tpu.memory_space<vmem>>, vector<1x16x8xbf16>
    %218 = vector.shape_cast %217 : vector<1x16x8xbf16> to vector<16x8xbf16>
    %cst_172 = arith.constant dense<0.000000e+00> : vector<1x8xf32>
    %219 = tpu.matmul %213, %218, %cst_172 {dimension_numbers = #tpu.dot_dimension_numbers<[1], [0], [0], [1], [0, 0, 1, 1], [], []>} : vector<1x16xbf16>, vector<16x8xbf16>, vector<1x8xf32> -> vector<1x8xf32>
    %220 = arith.maximumf %216, %219 : vector<1x8xf32>
    %221 = arith.truncf %220 : vector<1x8xf32> to vector<1x8xbf16>
    %222 = arith.extf %221 : vector<1x8xbf16> to vector<1x8xf32>
    %c0_173 = arith.constant 0 : index
    %c0_174 = arith.constant 0 : index
    %223 = vector.load %arg22[%c0_173, %c0_174] : memref<8x8xf32, #tpu.memory_space<vmem>>, vector<8x8xf32>
    %cst_175 = arith.constant dense<0.000000e+00> : vector<1x8xf32>
    %224 = tpu.matmul %222, %223, %cst_175 {dimension_numbers = #tpu.dot_dimension_numbers<[1], [0], [0], [1], [0, 0, 1, 1], [], []>} : vector<1x8xf32>, vector<8x8xf32>, vector<1x8xf32> -> vector<1x8xf32>
    %c0_176 = arith.constant 0 : index
    %c0_177 = arith.constant 0 : index
    %225 = vector.load %arg23[%c0_176, %c0_177] : memref<1x8xf32, #tpu.memory_space<vmem>>, vector<1x8xf32>
    %226 = arith.addf %224, %225 : vector<1x8xf32>
    %cst_178 = arith.constant 0.000000e+00 : f32
    %227 = vector.broadcast %cst_178 : f32 to vector<1x8xf32>
    %228 = arith.maximumf %226, %227 : vector<1x8xf32>
    %c0_179 = arith.constant 0 : index
    %c0_180 = arith.constant 0 : index
    %229 = vector.load %arg24[%c0_179, %c0_180] : memref<8x10xf32, #tpu.memory_space<vmem>>, vector<8x10xf32>
    %cst_181 = arith.constant dense<0.000000e+00> : vector<1x10xf32>
    %230 = tpu.matmul %228, %229, %cst_181 {dimension_numbers = #tpu.dot_dimension_numbers<[1], [0], [0], [1], [0, 0, 1, 1], [], []>} : vector<1x8xf32>, vector<8x10xf32>, vector<1x10xf32> -> vector<1x10xf32>
    %c0_182 = arith.constant 0 : index
    %c0_183 = arith.constant 0 : index
    %231 = vector.load %arg25[%c0_182, %c0_183] : memref<1x10xf32, #tpu.memory_space<vmem>>, vector<1x10xf32>
    %232 = arith.addf %230, %231 : vector<1x10xf32>
    %cst_184 = arith.constant dense<0xFF800000> : vector<1xf32>
    %233 = vector.multi_reduction <maximumf>, %232, %cst_184 [1] : vector<1x10xf32> to vector<1xf32>
    %234 = vector.shape_cast %233 : vector<1xf32> to vector<1x1xf32>
    %235 = vector.broadcast %234 : vector<1x1xf32> to vector<1x10xf32>
    %236 = arith.subf %232, %235 : vector<1x10xf32>
    %237 = math.exp %236 : vector<1x10xf32>
    %cst_185 = arith.constant dense<0.000000e+00> : vector<1xf32>
    %238 = vector.multi_reduction <add>, %237, %cst_185 [1] : vector<1x10xf32> to vector<1xf32>
    %239 = vector.shape_cast %238 : vector<1xf32> to vector<1x1xf32>
    %240 = math.log %239 : vector<1x1xf32>
    %241 = arith.addf %240, %234 : vector<1x1xf32>
    %242 = vector.broadcast %241 : vector<1x1xf32> to vector<1x10xf32>
    %243 = arith.subf %232, %242 : vector<1x10xf32>
    %c0_186 = arith.constant 0 : index
    %c0_187 = arith.constant 0 : index
    %c0_188 = arith.constant 0 : index
    %244 = vector.load %arg26[%c0_186, %c0_187, %c0_188] : memref<1x1x10xf32, #tpu.memory_space<vmem>>, vector<1x1x10xf32>
    %245 = vector.shape_cast %244 : vector<1x1x10xf32> to vector<1x10xf32>
    %246 = vector.shape_cast %243 : vector<1x10xf32> to vector<1x1x10xf32>
    tpu.vector_store %arg26[%c0_186, %c0_187, %c0_188], %246 {strides = array<i32>} : memref<1x1x10xf32, #tpu.memory_space<vmem>>, vector<1x1x10xf32>,
    return
  }
  func.func @transform_0(%arg0: i32) -> (i32, i32, i32, i32) {
    %c0_i32 = arith.constant 0 : i32
    %c0_i32_0 = arith.constant 0 : i32
    %c0_i32_1 = arith.constant 0 : i32
    %c0_i32_2 = arith.constant 0 : i32
    return %arg0, %c0_i32, %c0_i32_0, %c0_i32_1 : i32, i32, i32, i32
  }
  func.func @transform_1(%arg0: i32) -> (i32, i32, i32) {
    %c0_i32 = arith.constant 0 : i32
    %c0_i32_0 = arith.constant 0 : i32
    %c0_i32_1 = arith.constant 0 : i32
    %c0_i32_2 = arith.constant 0 : i32
    return %c0_i32, %c0_i32_0, %c0_i32_1 : i32, i32, i32
  }
  func.func @transform_2(%arg0: i32) -> (i32, i32) {
    %c0_i32 = arith.constant 0 : i32
    %c0_i32_0 = arith.constant 0 : i32
    %c0_i32_1 = arith.constant 0 : i32
    return %c0_i32, %c0_i32_0 : i32, i32
  }
  func.func @transform_3(%arg0: i32) -> (i32, i32, i32) {
    %c0_i32 = arith.constant 0 : i32
    %c0_i32_0 = arith.constant 0 : i32
    %c0_i32_1 = arith.constant 0 : i32
    %c0_i32_2 = arith.constant 0 : i32
    return %c0_i32, %c0_i32_0, %c0_i32_1 : i32, i32, i32
  }
  func.func @transform_4(%arg0: i32) -> (i32, i32, i32) {
    %c0_i32 = arith.constant 0 : i32
    %c0_i32_0 = arith.constant 0 : i32
    %c0_i32_1 = arith.constant 0 : i32
    %c0_i32_2 = arith.constant 0 : i32
    return %c0_i32, %c0_i32_0, %c0_i32_1 : i32, i32, i32
  }
  func.func @transform_5(%arg0: i32) -> (i32, i32, i32) {
    %c0_i32 = arith.constant 0 : i32
    %c0_i32_0 = arith.constant 0 : i32
    %c0_i32_1 = arith.constant 0 : i32
    %c0_i32_2 = arith.constant 0 : i32
    return %c0_i32, %c0_i32_0, %c0_i32_1 : i32, i32, i32
  }
  func.func @transform_6(%arg0: i32) -> (i32, i32) {
    %c0_i32 = arith.constant 0 : i32
    %c0_i32_0 = arith.constant 0 : i32
    %c0_i32_1 = arith.constant 0 : i32
    return %c0_i32, %c0_i32_0 : i32, i32
  }
  func.func @transform_7(%arg0: i32) -> (i32, i32, i32) {
    %c0_i32 = arith.constant 0 : i32
    %c0_i32_0 = arith.constant 0 : i32
    %c0_i32_1 = arith.constant 0 : i32
    %c0_i32_2 = arith.constant 0 : i32
    return %c0_i32, %c0_i32_0, %c0_i32_1 : i32, i32, i32
  }
  func.func @transform_8(%arg0: i32) -> (i32, i32, i32) {
    %c0_i32 = arith.constant 0 : i32
    %c0_i32_0 = arith.constant 0 : i32
    %c0_i32_1 = arith.constant 0 : i32
    %c0_i32_2 = arith.constant 0 : i32
    return %c0_i32, %c0_i32_0, %c0_i32_1 : i32, i32, i32
  }
  func.func @transform_9(%arg0: i32) -> (i32, i32, i32) {
    %c0_i32 = arith.constant 0 : i32
    %c0_i32_0 = arith.constant 0 : i32
    %c0_i32_1 = arith.constant 0 : i32
    %c0_i32_2 = arith.constant 0 : i32
    return %c0_i32, %c0_i32_0, %c0_i32_1 : i32, i32, i32
  }
  func.func @transform_10(%arg0: i32) -> (i32, i32) {
    %c0_i32 = arith.constant 0 : i32
    %c0_i32_0 = arith.constant 0 : i32
    %c0_i32_1 = arith.constant 0 : i32
    return %c0_i32, %c0_i32_0 : i32, i32
  }
  func.func @transform_11(%arg0: i32) -> (i32, i32, i32) {
    %c0_i32 = arith.constant 0 : i32
    %c0_i32_0 = arith.constant 0 : i32
    %c0_i32_1 = arith.constant 0 : i32
    %c0_i32_2 = arith.constant 0 : i32
    return %c0_i32, %c0_i32_0, %c0_i32_1 : i32, i32, i32
  }
  func.func @transform_12(%arg0: i32) -> (i32, i32, i32) {
    %c0_i32 = arith.constant 0 : i32
    %c0_i32_0 = arith.constant 0 : i32
    %c0_i32_1 = arith.constant 0 : i32
    %c0_i32_2 = arith.constant 0 : i32
    return %c0_i32, %c0_i32_0, %c0_i32_1 : i32, i32, i32
  }
  func.func @transform_13(%arg0: i32) -> (i32, i32, i32) {
    %c0_i32 = arith.constant 0 : i32
    %c0_i32_0 = arith.constant 0 : i32
    %c0_i32_1 = arith.constant 0 : i32
    %c0_i32_2 = arith.constant 0 : i32
    return %c0_i32, %c0_i32_0, %c0_i32_1 : i32, i32, i32
  }
  func.func @transform_14(%arg0: i32) -> (i32, i32) {
    %c0_i32 = arith.constant 0 : i32
    %c0_i32_0 = arith.constant 0 : i32
    %c0_i32_1 = arith.constant 0 : i32
    return %c0_i32, %c0_i32_0 : i32, i32
  }
  func.func @transform_15(%arg0: i32) -> (i32, i32, i32) {
    %c0_i32 = arith.constant 0 : i32
    %c0_i32_0 = arith.constant 0 : i32
    %c0_i32_1 = arith.constant 0 : i32
    %c0_i32_2 = arith.constant 0 : i32
    return %c0_i32, %c0_i32_0, %c0_i32_1 : i32, i32, i32
  }
  func.func @transform_16(%arg0: i32) -> (i32, i32, i32) {
    %c0_i32 = arith.constant 0 : i32
    %c0_i32_0 = arith.constant 0 : i32
    %c0_i32_1 = arith.constant 0 : i32
    %c0_i32_2 = arith.constant 0 : i32
    return %c0_i32, %c0_i32_0, %c0_i32_1 : i32, i32, i32
  }
  func.func @transform_17(%arg0: i32) -> (i32, i32, i32) {
    %c0_i32 = arith.constant 0 : i32
    %c0_i32_0 = arith.constant 0 : i32
    %c0_i32_1 = arith.constant 0 : i32
    %c0_i32_2 = arith.constant 0 : i32
    return %c0_i32, %c0_i32_0, %c0_i32_1 : i32, i32, i32
  }
  func.func @transform_18(%arg0: i32) -> (i32, i32) {
    %c0_i32 = arith.constant 0 : i32
    %c0_i32_0 = arith.constant 0 : i32
    %c0_i32_1 = arith.constant 0 : i32
    return %c0_i32, %c0_i32_0 : i32, i32
  }
  func.func @transform_19(%arg0: i32) -> (i32, i32, i32) {
    %c0_i32 = arith.constant 0 : i32
    %c0_i32_0 = arith.constant 0 : i32
    %c0_i32_1 = arith.constant 0 : i32
    %c0_i32_2 = arith.constant 0 : i32
    return %c0_i32, %c0_i32_0, %c0_i32_1 : i32, i32, i32
  }
  func.func @transform_20(%arg0: i32) -> (i32, i32, i32) {
    %c0_i32 = arith.constant 0 : i32
    %c0_i32_0 = arith.constant 0 : i32
    %c0_i32_1 = arith.constant 0 : i32
    %c0_i32_2 = arith.constant 0 : i32
    return %c0_i32, %c0_i32_0, %c0_i32_1 : i32, i32, i32
  }
  func.func @transform_21(%arg0: i32) -> (i32, i32) {
    %c0_i32 = arith.constant 0 : i32
    %c0_i32_0 = arith.constant 0 : i32
    %c0_i32_1 = arith.constant 0 : i32
    return %c0_i32, %c0_i32_0 : i32, i32
  }
  func.func @transform_22(%arg0: i32) -> (i32, i32) {
    %c0_i32 = arith.constant 0 : i32
    %c0_i32_0 = arith.constant 0 : i32
    %c0_i32_1 = arith.constant 0 : i32
    return %c0_i32, %c0_i32_0 : i32, i32
  }
  func.func @transform_23(%arg0: i32) -> (i32, i32) {
    %c0_i32 = arith.constant 0 : i32
    %c0_i32_0 = arith.constant 0 : i32
    %c0_i32_1 = arith.constant 0 : i32
    return %c0_i32, %c0_i32_0 : i32, i32
  }
  func.func @transform_24(%arg0: i32) -> (i32, i32) {
    %c0_i32 = arith.constant 0 : i32
    %c0_i32_0 = arith.constant 0 : i32
    %c0_i32_1 = arith.constant 0 : i32
    return %c0_i32, %c0_i32_0 : i32, i32
  }
  func.func @transform_25(%arg0: i32) -> (i32, i32, i32) {
    %c0_i32 = arith.constant 0 : i32
    %c0_i32_0 = arith.constant 0 : i32
    %c0_i32_1 = arith.constant 0 : i32
    return %arg0, %c0_i32, %c0_i32_0 : i32, i32, i32
  }
}

</mosaic_0001>

<bundles_post_ra>
// kernel: forward.1
= control target key start
LH: loop header
LB: loop body
LE: loop exit
PB: predicated region body
PF: predicated region fallthrough
CT: control target
= control target key end

     0   :  { %s25208_s0 = inlined_call_operand.vmem [shape: f32[2,3,96,96], index: 0, kind: input, shape index: {}]   ;;  %s25209_s1 = inlined_call_operand.vmem [shape: bf16[9,96,752], index: 1, kind: input, shape index: {}]   ;;  %s25210_s2 = inlined_call_operand.vmem [shape: f32[1,752], index: 2, kind: input, shape index: {}]   ;;  %s25211_s3 = inlined_call_operand.vmem [shape: bf16[2,47,94], index: 3, kind: input, shape index: {}]   ;;  %s25212_s4 = inlined_call_operand.vmem [shape: bf16[2,752,376], index: 4, kind: input, shape index: {}]   ;;  %s25213_s5 = inlined_call_operand.vmem [shape: bf16[3,376,360], index: 5, kind: input, shape index: {}]   ;;  %s25214_s6 = inlined_call_operand.vmem [shape: f32[1,360], index: 6, kind: input, shape index: {}]   ;;  %s25215_s7 = inlined_call_operand.vmem [shape: bf16[2,22,45], index: 7, kind: input, shape index: {}]   ;;  %s25216_s8 = inlined_call_operand.vmem [shape: bf16[2,360,176], index: 8, kind: input, shape index: {}]   ;;  %s25217_s9 = inlined_call_operand.vmem [shape: bf16[3,176,160], index: 9, kind: input, shape index: {}]   ;;  %s25218_s10 = inlined_call_operand.vmem [shape: f32[1,160], index: 10, kind: input, shape index: {}]   ;;  %s25219_s11 = inlined_call_operand.vmem [shape: bf16[2,10,20], index: 11, kind: input, shape index: {}]   ;;  %s25220_s12 = inlined_call_operand.vmem [shape: bf16[2,160,80], index: 12, kind: input, shape index: {}]   ;;  %s25221_s13 = inlined_call_operand.vmem [shape: bf16[3,80,64], index: 13, kind: input, shape index: {}]   ;;  %s25222_s14 = inlined_call_operand.vmem [shape: f32[1,64], index: 14, kind: input, shape index: {}]   ;;  %s25223_s15 = inlined_call_operand.vmem [shape: bf16[2,4,8], index: 15, kind: input, shape index: {}]   ;;  %s25224_s16 = inlined_call_operand.vmem [shape: bf16[2,64,32], index: 16, kind: input, shape index: {}]   ;;  %s25225_s17 = inlined_call_operand.vmem [shape: bf16[3,32,16], index: 17, kind: input, shape index: {}]   ;;  %s25226_s18 = inlined_call_operand.vmem [shape: f32[1,16], index: 18, kind: input, shape index: {}]   ;;  %s25227_s19 = inlined_call_operand.vmem [shape: bf16[2,1,2], index: 19, kind: input, shape index: {}]   ;;  %s25228_s20 = inlined_call_operand.vmem [shape: bf16[2,16,8], index: 20, kind: input, shape index: {}]   ;;  %s25229_s21 = inlined_call_operand.vmem [shape: f32[8,8], index: 21, kind: input, shape index: {}]   ;;  %s25230_s22 = inlined_call_operand.vmem [shape: f32[1,8], index: 22, kind: input, shape index: {}]   ;;  %s25231_s23 = inlined_call_operand.vmem [shape: f32[8,10], index: 23, kind: input, shape index: {}]   ;;  %s25232_s24 = inlined_call_operand.vmem [shape: f32[1,10], index: 24, kind: input, shape index: {}]   ;;  %s25233_s25 = inlined_call_operand.hbm [shape: f32[2,1,10], index: 25, kind: output, shape index: {}]  }
   0x1   :  { %25255 = sst [smem:[#allocation12_spill]] %s25208_s0 }
   0x2   :  { %25256 = sst [smem:[#allocation13_spill]] %s25209_s1 }
   0x3   :  { %25257 = sst [smem:[#allocation14_spill]] %s25210_s2 }
   0x4   :  { %25258 = sst [smem:[#allocation15_spill]] %s25211_s3 }
   0x5   :  { %25259 = sst [smem:[#allocation16_spill]] %s25212_s4 }
   0x6   :  { %25260 = sst [smem:[#allocation17_spill]] %s25213_s5 }
   0x7   :  { %25261 = sst [smem:[#allocation18_spill]] %s25214_s6 }
   0x8   :  { %25262 = sst [smem:[#allocation19_spill]] %s25215_s7 }
   0x9   :  { %25263 = sst [smem:[#allocation20_spill]] %s25216_s8 }
   0xa   :  { %25264 = sst [smem:[#allocation21_spill]] %s25217_s9 }
   0xb   :  { %25265 = sst [smem:[#allocation22_spill]] %s25218_s10 }
   0xc   :  { %25266 = sst [smem:[#allocation23_spill]] %s25219_s11 }
   0xd   :  { %25267 = sst [smem:[#allocation24_spill]] %s25233_s25 }
   0xe   :  { %30 = vsyncpa [#allocation3], 0 }
   0xf   :  { %32 = vsyncpa [#allocation3 + $0x1], 0  ;;  %s20169_s29 = smov 0   ;;  %s20171_s2 = smov 0  }
  0x10   :  { %s20173_s6 = smov 0   ;;  %s20175_s30 = smov 0  }
  0x11 LB: > { %25268 = sst [smem:[#allocation5_spill]] %s20020_s29  ;;  %s20190_s7 = sadd.s32 4294967295, %s20032_s30   ;;  %s20032_s30 = sphi %s20175_s30, %s25296_s30   ;;  %s20028_s6 = sphi %s20173_s6, %s25298_s6   ;;  %s20024_s2 = sphi %s20171_s2, %s25300_s2   ;;  %s20020_s29 = sphi %s20169_s29, %s25299_s29  }
  0x12   : > { %25269 = sst [smem:[#allocation6_spill]] %s20028_s6  ;;  %s15057_s3 = sadd.s32 4294967294, %s20032_s30  }
  0x13   : > { %25270 = sst [smem:[#allocation7_spill]] %s20032_s30  ;;  %s20194_s26 = sadd.s32 1, %s20032_s30  }
  0x14   : > { %25271 = sst [smem:[#allocation8_spill]] %s20194_s26  ;;  %s575_s1 = sadd.s32 1, %s20028_s6 }
  0x15   : > { %s572_s8 = ssub.s32 %s20032_s30, %s20194_s26  ;;  %p585_p0 = scmp.ne.s32.totalorder %s20028_s6, %s20024_s2 }
  0x16   : > { %p573_p1 = scmp.eq.s32.totalorder %s572_s8, 0  ;;  %p586_p2 = scmp.eq.s32.totalorder %s20190_s7, 1 }
  0x17   : > { %p591_p3 = scmp.ne.s32.totalorder %s20024_s2, %s20020_s29  ;;  %p592_p4 = scmp.eq.s32.totalorder %s15057_s3, 1 }
  0x18   : > { %s20205_s27 = scalar_select %p573_p1, %s20028_s6, %s575_s1  }
  0x19   : > { %p20207_p5 = por %p586_p2, %p585_p0  ;;  %p20211_p6 = por %p592_p4, %p591_p3 }
  0x1a   : > { %25272 = sst [smem:[#allocation9_spill]] %s20205_s27  ;;  %p15060_p7 = scmp.ge.s32.totalorder %s20032_s30, 1 }
  0x1b   : > { %s25273_s4 = scalar_select %p20207_p5, 1, 0 }
  0x1c   : > { %s25275_s28 = scalar_select %p20211_p6, 1, 0 }
  0x1d   : > { %25274 = sst [smem:[#allocation10_spill]] %s25273_s4  ;;  %p690_p8 = scmp.lt.s32.totalorder %s20032_s30, 3 }
  0x1e   : > { %25276 = sst [smem:[#allocation11_spill]] %s25275_s28 }
  0x1f   : > { %p691_p9 = pnand %p15060_p7, %p690_p8 }
  0x20   : > { %s25277_s0 = sld [smem:[#allocation13_spill]] (!%p691_p9)  ;;  %v20034_v2 = vmov (!%p691_p9), 0   ;;  %p757_p10 = scmp.lt.s32.totalorder (!%p691_p9), %s20190_s7, 1  ;;  %vm1070_vm0 = vcmask (!%p691_p9), 785408   ;;  %vm2468_vm1 = vsmask.f32 (!%p691_p9), 7424 }
  0x21   : > { %694 = sbr.rel (%p691_p9) target bundleno = 5856 (0x16e0), region = 120  ;;  %1121 = vmatprep.mubr.bf16.mxu0 (!%p691_p9), %v20034_v2  ;;  %1214 = vmatprep.mubr.bf16.mxu1 (!%p691_p9), %v20034_v2  ;;  %s25278_s28 = sld [smem:[#allocation12_spill]] (!%p691_p9)  ;;  %vm4356_vm2 = vcmask (!%p691_p9), 1046528   ;;  %vm6356_vm3 = vcmask (!%p691_p9), 769024   ;;  %vm7788_vm4 = vcmask (!%p691_p9), 916480   ;;  %vm10136_vm5 = vcmask (!%p691_p9), 1043456  }
  0x22   : > { %s25279_s5 = sld [smem:[#allocation14_spill]] (!%p691_p9)  ;;  %s25280_s1 = sld [smem:[#allocation15_spill]] (!%p691_p9)  ;;  %vm20036_vm6 = vmmov (!%p691_p9), 0   ;;  %vm10126_vm7 = vcmask (!%p691_p9), 982016   ;;  %vm11874_vm8 = vcmask (!%p691_p9), 1045504   ;;  %vm11867_vm9 = vcmask (!%p691_p9), 367616  }
  0x23   : > { %s25282_s3 = sld [smem:[#allocation17_spill]] (!%p691_p9)  ;;  %s25284_s6 = sld [smem:[#allocation20_spill]] (!%p691_p9)  ;;  %vm12387_vm10 = vcmask (!%p691_p9), 850944   ;;  %vm13078_vm11 = vcmask (!%p691_p9), 392192   ;;  %vm13548_vm12 = vcmask (!%p691_p9), 1041408   ;;  %vm13544_vm13 = vcmask (!%p691_p9), 162816  }
  0x24   : > { %s25286_s26 = sld [smem:[#allocation19_spill]] (!%p691_p9)  ;;  %s25288_s10 = sld [smem:[#allocation22_spill]] (!%p691_p9)  ;;  %vm13738_vm14 = vcmask (!%p691_p9), 261120   ;;  %vm13966_vm15 = vcmask (!%p691_p9), 654336  }
  0x25   : > { %s25289_s11 = sld [smem:[#allocation23_spill]] (!%p691_p9)  ;;  %s755_s25 = sand.u32 (!%p691_p9), 1, %s20024_s2  }
  0x26   : > { %v18521_v0 = vld [vmem:[%s25277_s0 + $0x124] ss:$24 sps:$4 sm:$0xff] (!%p691_p9)   ;;  %v18523_v1 = vld [vmem:[%s25277_s0 + $0x120] ss:$24 sps:$4 sm:$0xff] (!%p691_p9)   ;;  %v18524_v3 = vld [vmem:[%s25277_s0 + $0x154] ss:$24 sps:$4 sm:$0xff] (!%p691_p9)  }
  0x27   : > { %1089 = vmatprep.subr.bf16.mxu0 (!%p691_p9), %v18521_v0  ;;  %v18526_v4 = vld [vmem:[%s25277_s0 + $0x150] ss:$24 sps:$4 sm:$0xff] (!%p691_p9)   ;;  %v18527_v5 = vld [vmem:[%s25277_s0 + $0x184] ss:$24 sps:$4 sm:$0xff] (!%p691_p9)   ;;  %v18529_v6 = vld [vmem:[%s25277_s0 + $0x180] ss:$24 sps:$4 sm:$0xff] (!%p691_p9)  }
  0x28   : > { %1090 = vmatpush1.bf16.msra.mxu0 %v18523_v1  ;;  %v18530_v7 = vld [vmem:[%s25277_s0 + $0x1b4] ss:$24 sps:$4 sm:$0xff]   ;;  %s758_s27 = scalar_select %p757_p10, %s20190_s7, 1  ;;  %v18532_v9 = vld [vmem:[%s25277_s0 + $0x1b0] ss:$24 sps:$4 sm:$0xff]  }
  0x29   : > { %1091 = vmatprep.subr.bf16.mxu0 %v18524_v3  ;;  %v18539_v8 = vld [vmem:[%s25277_s0 + $0x12c] ss:$24 sps:$4 sm:$0xff]   ;;  %v18541_v10 = vld [vmem:[%s25277_s0 + $0x128] ss:$24 sps:$4 sm:$0xff]   ;;  %v18542_v11 = vld [vmem:[%s25277_s0 + $0x15c] ss:$24 sps:$4 sm:$0xff]   ;;  %s25285_s9 = smov %s25284_s6 }
  0x2a   : > { %1182 = vmatprep.subr.bf16.mxu1 %v18539_v8  ;;  %s18477_s29 = smul.u32 288, %s758_s27  ;;  %v18544_v12 = vld [vmem:[%s25277_s0 + $0x158] ss:$24 sps:$4 sm:$0xff]   ;;  %v18533_v13 = vld [vmem:[%s25277_s0 + $0x1e4] ss:$24 sps:$4 sm:$0xff]  }
  0x2b   : > { %1183 = vmatpush1.bf16.msra.mxu1 %v18541_v10  ;;  %v18548_v14 = vld [vmem:[%s25277_s0 + $0x18c] ss:$24 sps:$4 sm:$0xff]   ;;  %v18535_v15 = vld [vmem:[%s25277_s0 + $0x1e0] ss:$24 sps:$4 sm:$0xff]   ;;  %v18551_v18 = vld [vmem:[%s25277_s0 + $0x1bc] ss:$24 sps:$4 sm:$0xff]  }
  0x2c   : > { %1092 = vmatpush1.bf16.msra.mxu0 %v18526_v4  ;;  %1184 = vmatprep.subr.bf16.mxu1 %v18542_v11  ;;  %v18536_v16 = vld [vmem:[%s25277_s0 + $0x214] ss:$24 sps:$4 sm:$0xff]   ;;  %s20272_s4 = scalar_lea.vmem %s25278_s28, %s18477_s29  ;;  %v18550_v17 = vld [vmem:[%s25277_s0 + $0x188] ss:$24 sps:$4 sm:$0xff]   ;;  %v18553_v22 = vld [vmem:[%s25277_s0 + $0x1b8] ss:$24 sps:$4 sm:$0xff]  }
  0x2d   : > { %1093 = vmatprep.subr.bf16.mxu0 %v18527_v5  ;;  %v18538_v19 = vld [vmem:[%s25277_s0 + $0x210] ss:$24 sps:$4 sm:$0xff]   ;;  %v775_v20 = vld [vmem:[%s20272_s4 + $0x60] sm:$0xff]  ;;  %v18547_v23 = vld [vmem:[%s25277_s0 + $0x134] ss:$24 sps:$4 sm:$0xff]   ;;  %s25281_s28 = sld [smem:[#allocation16_spill]] }
  0x2e   : > { %v776_v21 = vld [vmem:[%s20272_s4 + $0x68] sm:$0xff]  ;;  %v18556_v27 = vld [vmem:[%s25277_s0 + $0x164] ss:$24 sps:$4 sm:$0xff]   ;;  %v777_v30 = vld [vmem:[%s20272_s4 + $0x70] sm:$0xff] }
  0x2f   : > { %1185 = vmatpush1.bf16.msra.mxu1 %v18544_v12  ;;  %v18557_v24 = vld [vmem:[%s25277_s0 + $0x1ec] ss:$24 sps:$4 sm:$0xff]   ;;  %v20294_v25 = vpack.c.bf16 %v776_v21, %v775_v20  ;;  %v18545_v26 = vld [vmem:[%s25277_s0 + $0x130] ss:$24 sps:$4 sm:$0xff]   ;;  %v18560_v29 = vld [vmem:[%s25277_s0 + $0x21c] ss:$24 sps:$4 sm:$0xff]  }
  0x30   : > { %1094 = vmatpush1.bf16.msra.mxu0 %v18529_v6  ;;  %1186 = vmatprep.subr.bf16.mxu1 %v18548_v14  ;;  %v18559_v28 = vld [vmem:[%s25277_s0 + $0x1e8] ss:$24 sps:$4 sm:$0xff]   ;;  %v778_v31 = vld [vmem:[%s20272_s4 + $0x78] sm:$0xff]  ;;  %v18565_v34 = vld [vmem:[%s25277_s0 + $0x194] ss:$24 sps:$4 sm:$0xff]  }
  0x31   : > { %1095 = vmatprep.subr.bf16.mxu0 %v18530_v7  ;;  %v18554_v32 = vld [vmem:[%s25277_s0 + $0x160] ss:$24 sps:$4 sm:$0xff]   ;;  %v18577_v35 = vld [vmem:[%s25277_s0 + $0xc] ss:$24 sps:$4 sm:$0xff]   ;;  %v20325_v36 = vpack.c.bf16 %v778_v31, %v777_v30  ;;  %v18563_v37 = vld [vmem:[%s25277_s0 + $0x190] ss:$24 sps:$4 sm:$0xff]  }
  0x32   : > { %v18562_v33 = vld [vmem:[%s25277_s0 + $0x218] ss:$24 sps:$4 sm:$0xff]   ;;  %v18568_v38 = vld [vmem:[%s25277_s0 + $0x1c4] ss:$24 sps:$4 sm:$0xff]   ;;  %v18575_v39 = vld [vmem:[%s25277_s0 + $0x8] ss:$24 sps:$4 sm:$0xff]  }
  0x33   : > { %1187 = vmatpush1.bf16.msra.mxu1 %v18550_v17  ;;  %v779_v40 = vld [vmem:[%s20272_s4 + $0x80] sm:$0xff]  ;;  %v18580_v41 = vld [vmem:[%s25277_s0 + $0x3c] ss:$24 sps:$4 sm:$0xff]   ;;  %v780_v42 = vld [vmem:[%s20272_s4 + $0x88] sm:$0xff] }
  0x34   : > { %1096 = vmatpush1.bf16.msra.mxu0 %v18532_v9  ;;  %1188 = vmatprep.subr.bf16.mxu1 %v18551_v18  ;;  %v18566_v43 = vld [vmem:[%s25277_s0 + $0x1c0] ss:$24 sps:$4 sm:$0xff]   ;;  %v18571_v44 = vld [vmem:[%s25277_s0 + $0x1f4] ss:$24 sps:$4 sm:$0xff]   ;;  %v20356_v46 = vpack.c.bf16 %v780_v42, %v779_v40  ;;  %v18569_v48 = vld [vmem:[%s25277_s0 + $0x1f0] ss:$24 sps:$4 sm:$0xff]  }
  0x35   : > { %1097 = vmatprep.subr.bf16.mxu0 %v18533_v13  ;;  %v18578_v45 = vld [vmem:[%s25277_s0 + $0x38] ss:$24 sps:$4 sm:$0xff]   ;;  %v18586_v47 = vld [vmem:[%s25277_s0 + $0x6c] ss:$24 sps:$4 sm:$0xff]   ;;  %v18584_v50 = vld [vmem:[%s25277_s0 + $0x68] ss:$24 sps:$4 sm:$0xff]  }
  0x36   : > { %v18574_v49 = vld [vmem:[%s25277_s0 + $0x224] ss:$24 sps:$4 sm:$0xff]   ;;  %v781_v52 = vld [vmem:[%s20272_s4 + $0x90] sm:$0xff]  ;;  %v18572_v54 = vld [vmem:[%s25277_s0 + $0x220] ss:$24 sps:$4 sm:$0xff]  }
  0x37   : > { %1189 = vmatpush1.bf16.msra.mxu1 %v18553_v22  ;;  %v18589_v51 = vld [vmem:[%s25277_s0 + $0x9c] ss:$24 sps:$4 sm:$0xff]   ;;  %v18587_v56 = vld [vmem:[%s25277_s0 + $0x98] ss:$24 sps:$4 sm:$0xff]   ;;  %v18595_v58 = vld [vmem:[%s25277_s0 + $0xcc] ss:$24 sps:$4 sm:$0xff]  }
  0x38   : > { %1098 = vmatpush1.bf16.msra.mxu0 %v18535_v15  ;;  %1190 = vmatprep.subr.bf16.mxu1 %v18557_v24  ;;  %v782_v53 = vld [vmem:[%s20272_s4 + $0x98] sm:$0xff]  ;;  %v18593_v59 = vld [vmem:[%s25277_s0 + $0xc8] ss:$24 sps:$4 sm:$0xff]   ;;  %v18613_v1 = vld [vmem:[%s25277_s0 + $0x24c] ss:$24 sps:$4 sm:$0xff]  }
  0x39   : > { %1099 = vmatprep.subr.bf16.mxu0 %v18536_v16  ;;  %v18583_v55 = vld [vmem:[%s25277_s0 + $0x4] ss:$24 sps:$4 sm:$0xff]   ;;  %v20390_v57 = vpack.c.bf16 %v782_v53, %v781_v52  ;;  %v784_v62 = vld [vmem:[%s20272_s4 + $0xa8] sm:$0xff]  ;;  %v18596_v63 = vld [vmem:[%s25277_s0 + $0xf8] ss:$24 sps:$4 sm:$0xff]  }
  0x3a   : > { %v783_v60 = vld [vmem:[%s20272_s4 + $0xa0] sm:$0xff]  ;;  %v18598_v61 = vld [vmem:[%s25277_s0 + $0xfc] ss:$24 sps:$4 sm:$0xff]   ;;  %v18590_v8 = vld [vmem:[%s25277_s0 + $0x30] ss:$24 sps:$4 sm:$0xff]  }
  0x3b   : > { %1191 = vmatpush1.bf16.msra.mxu1 %v18559_v28  ;;  %v20412_v0 = vpack.c.bf16 %v784_v62, %v783_v60  ;;  %v785_v3 = vld [vmem:[%s20272_s4 + $0xb0] sm:$0xff]  ;;  %v786_v4 = vld [vmem:[%s20272_s4 + $0xb8] sm:$0xff]  ;;  %v763_v10 = vld [vmem:[%s20272_s4] sm:$0xff] }
  0x3c   : > { %1100 = vmatpush1.bf16.msra.mxu0 %v18538_v19  ;;  %1192 = vmatprep.subr.bf16.mxu1 %v18560_v29  ;;  %v20425_v5 = vpack.c.bf16 %v786_v4, %v785_v3  ;;  %v18581_v6 = vld [vmem:[%s25277_s0] ss:$24 sps:$4 sm:$0xff]   ;;  %v18592_v7 = vld [vmem:[%s25277_s0 + $0x34] ss:$24 sps:$4 sm:$0xff]   ;;  %v18601_v9 = vld [vmem:[%s25277_s0 + $0x64] ss:$24 sps:$4 sm:$0xff]  }
  0x3d   : > { %1275 = vmatprep.subr.bf16.mxu0 %v18547_v23  ;;  %v764_v11 = vld [vmem:[%s20272_s4 + $0x8] sm:$0xff]  ;;  %v18599_v12 = vld [vmem:[%s25277_s0 + $0x60] ss:$24 sps:$4 sm:$0xff]   ;;  %v18616_v17 = vld [vmem:[%s25277_s0 + $0x27c] ss:$24 sps:$4 sm:$0xff]  }
  0x3e   : > { %v20456_v13 = vpack.c.bf16 %v764_v11, %v763_v10  ;;  %v18604_v14 = vld [vmem:[%s25277_s0 + $0x94] ss:$24 sps:$4 sm:$0xff]   ;;  %v18611_v15 = vld [vmem:[%s25277_s0 + $0x248] ss:$24 sps:$4 sm:$0xff]   ;;  %v766_v19 = vld [vmem:[%s20272_s4 + $0x18] sm:$0xff] }
  0x3f   : > { %15134 = vmatmul.mubr.msk.bf16.vlgmr.msra.gmra.mrb[0].mxu0 %vm1070_vm0, %v20294_v25  ;;  %1193 = vmatpush1.bf16.msra.mxu1 %v18562_v33  ;;  %v18602_v16 = vld [vmem:[%s25277_s0 + $0x90] ss:$24 sps:$4 sm:$0xff]   ;;  %v18607_v20 = vld [vmem:[%s25277_s0 + $0xc4] ss:$24 sps:$4 sm:$0xff]   ;;  %v18605_v22 = vld [vmem:[%s25277_s0 + $0xc0] ss:$24 sps:$4 sm:$0xff]  }
  0x40   : > { %1276 = vmatpush1.bf16.msra.mxu0 %v18545_v26  ;;  %1131 = vmatprep.mubr.bf16.mxu0 %v20034_v2  ;;  %v765_v18 = vld [vmem:[%s20272_s4 + $0x10] sm:$0xff]  ;;  %v18622_v23 = vld [vmem:[%s25277_s0 + $0x2ac] ss:$24 sps:$4 sm:$0xff]   ;;  %v770_v40 = vld [vmem:[%s20272_s4 + $0x38] sm:$0xff] }
  0x41   : > { %1277 = vmatprep.subr.bf16.mxu0 %v18556_v27  ;;  %1659 = vmatprep.subr.bf16.mxu1 %v18577_v35  ;;  %v18614_v21 = vld [vmem:[%s25277_s0 + $0x278] ss:$24 sps:$4 sm:$0xff]   ;;  %v18610_v24 = vld [vmem:[%s25277_s0 + $0xf4] ss:$24 sps:$4 sm:$0xff]   ;;  %v20493_v26 = vpack.c.bf16 %v766_v19, %v765_v18  ;;  %v18620_v27 = vld [vmem:[%s25277_s0 + $0x2a8] ss:$24 sps:$4 sm:$0xff]  }
  0x42   : > { %15140 = vmatmul.mubr.msk.bf16.vlgmr.msra.gmra.mrb[0].mxu1 %vm1070_vm0, %v20294_v25  ;;  %v18625_v28 = vld [vmem:[%s25277_s0 + $0x2dc] ss:$24 sps:$4 sm:$0xff]   ;;  %v767_v29 = vld [vmem:[%s20272_s4 + $0x20] sm:$0xff]  ;;  %v768_v30 = vld [vmem:[%s20272_s4 + $0x28] sm:$0xff] }
  0x43   : > { %1224 = vmatprep.mubr.bf16.mxu1 %v20034_v2  ;;  %1660 = vmatpush1.bf16.msra.mxu1 %v18575_v39  ;;  %v18608_v31 = vld [vmem:[%s25277_s0 + $0xf0] ss:$24 sps:$4 sm:$0xff]   ;;  %v20521_v35 = vpack.c.bf16 %v768_v30, %v767_v29  ;;  %v18649_v42 = vld [vmem:[%s25277_s0 + $0x36c] ss:$24 sps:$4 sm:$0xff]   ;;  %v18626_v53 = vld [vmem:[%s25277_s0 + $0x40] ss:$24 sps:$4 sm:$0xff]  }
  0x44   : > { %1278 = vmatpush1.bf16.msra.mxu0 %v18554_v32  ;;  %1661 = vmatprep.subr.bf16.mxu1 %v18580_v41  ;;  %v18619_v32 = vld [vmem:[%s25277_s0 + $0x14] ss:$24 sps:$4 sm:$0xff]   ;;  %v18623_v33 = vld [vmem:[%s25277_s0 + $0x2d8] ss:$24 sps:$4 sm:$0xff]   ;;  %v18647_v60 = vld [vmem:[%s25277_s0 + $0x368] ss:$24 sps:$4 sm:$0xff]  }
  0x45   : > { %1279 = vmatprep.subr.bf16.mxu0 %v18565_v34  ;;  %v18631_v34 = vld [vmem:[%s25277_s0 + $0x30c] ss:$24 sps:$4 sm:$0xff]   ;;  %v769_v39 = vld [vmem:[%s20272_s4 + $0x30] sm:$0xff]  ;;  %v18638_v62 = vld [vmem:[%s25277_s0 + $0xa0] ss:$24 sps:$4 sm:$0xff]  }
  0x46   : > { %v18632_v41 = vld [vmem:[%s25277_s0 + $0x338] ss:$24 sps:$4 sm:$0xff]   ;;  %v18643_v4 = vld [vmem:[%s25277_s0 + $0xd4] ss:$24 sps:$4 sm:$0xff]   ;;  %v18656_v11 = vld [vmem:[%s25277_s0 + $0x3c8] ss:$24 sps:$4 sm:$0xff]  }
  0x47   : > { %15135 = vmatmul.mubr.msk.bf16.gmra.mrb[4].mxu0 %vm1070_vm0, %v20325_v36  ;;  %1662 = vmatpush1.bf16.msra.mxu1 %v18578_v45  ;;  %v772_v45 = vld [vmem:[%s20272_s4 + $0x48] sm:$0xff]  ;;  %v790_v3 = vld [vmem:[%s20272_s4 + $0xd8] sm:$0xff]  ;;  %v795_v30 = vld [vmem:[%s20272_s4 + $0x100] sm:$0xff] }
  0x48   : > { %1141 = vmatprep.mubr.bf16.mxu0 %v20034_v2  ;;  %1280 = vmatpush1.bf16.msra.mxu0 %v18563_v37  ;;  %v18629_v37 = vld [vmem:[%s25277_s0 + $0x308] ss:$24 sps:$4 sm:$0xff]   ;;  %v18659_v18 = vld [vmem:[%s25277_s0 + $0x3f8] ss:$24 sps:$4 sm:$0xff]   ;;  %v18667_v19 = vld [vmem:[%s25277_s0 + $0x42c] ss:$24 sps:$4 sm:$0xff]  }
  0x49   : > { %1281 = vmatprep.subr.bf16.mxu0 %v18568_v38  ;;  %1663 = vmatprep.subr.bf16.mxu1 %v18586_v47  ;;  %v18634_v38 = vld [vmem:[%s25277_s0 + $0x33c] ss:$24 sps:$4 sm:$0xff]  }
  0x4a   : > { %15141 = vmatmul.mubr.msk.bf16.gmra.mrb[4].mxu1 %vm1070_vm0, %v20325_v36 }
  0x4b   : > { %1234 = vmatprep.mubr.bf16.mxu1 %v20034_v2  ;;  %1664 = vmatpush1.bf16.msra.mxu1 %v18584_v50  ;;  %v18617_v50 = vld [vmem:[%s25277_s0 + $0x10] ss:$24 sps:$4 sm:$0xff]  }
  0x4c   : > { %1282 = vmatpush1.bf16.msra.mxu0 %v18566_v43  ;;  %1665 = vmatprep.subr.bf16.mxu1 %v18589_v51  ;;  %v20543_v43 = vpack.c.bf16 %v770_v40, %v769_v39  ;;  %v18628_v51 = vld [vmem:[%s25277_s0 + $0x44] ss:$24 sps:$4 sm:$0xff]   ;;  %v18664_v39 = vld [vmem:[%s25277_s0 + $0x274] ss:$24 sps:$4 sm:$0xff]  }
  0x4d   : > { %1283 = vmatprep.subr.bf16.mxu0 %v18571_v44  ;;  %v771_v44 = vld [vmem:[%s20272_s4 + $0x40] sm:$0xff] }
  0x4e   : > { %v20553_v47 = vpack.c.bf16 %v772_v45, %v771_v44  ;;  %v2475_v44 = vshll.u32 %v20493_v26, 16  ;;  %v18662_v45 = vld [vmem:[%s25277_s0 + $0x270] ss:$24 sps:$4 sm:$0xff]  }
  0x4f   : > { %15136 = vmatmul.mubr.msk.bf16.gmra.mrb[8].mxu0 %vm1070_vm0, %v20356_v46  ;;  %1666 = vmatpush1.bf16.msra.mxu1 %v18587_v56  ;;  %v788_v56 = vld [vmem:[%s20272_s4 + $0xc8] sm:$0xff] }
  0x50   : > { %1151 = vmatprep.mubr.bf16.mxu0 %v20034_v2  ;;  %1284 = vmatpush1.bf16.msra.mxu0 %v18569_v48  ;;  %v773_v48 = vld [vmem:[%s20272_s4 + $0x50] sm:$0xff] }
  0x51   : > { %1285 = vmatprep.subr.bf16.mxu0 %v18574_v49  ;;  %1667 = vmatprep.subr.bf16.mxu1 %v18595_v58  ;;  %v774_v49 = vld [vmem:[%s20272_s4 + $0x58] sm:$0xff]  ;;  %v18635_v58 = vld [vmem:[%s25277_s0 + $0x70] ss:$24 sps:$4 sm:$0xff]  }
  0x52   : > { %15142 = vmatmul.mubr.msk.bf16.gmra.mrb[8].mxu1 %vm1070_vm0, %v20356_v46  ;;  %v20569_v52 = vpack.c.bf16 %v774_v49, %v773_v48  ;;  %v18673_v48 = vld [vmem:[%s25277_s0 + $0x2a4] ss:$24 sps:$4 sm:$0xff]   ;;  %v18671_v49 = vld [vmem:[%s25277_s0 + $0x2a0] ss:$24 sps:$4 sm:$0xff]  }
  0x53   : > { %1244 = vmatprep.mubr.bf16.mxu1 %v20034_v2  ;;  %1668 = vmatpush1.bf16.msra.mxu1 %v18593_v59  ;;  %v18640_v59 = vld [vmem:[%s25277_s0 + $0xa4] ss:$24 sps:$4 sm:$0xff]  }
  0x54   : > { %1286 = vmatpush1.bf16.msra.mxu0 %v18572_v54  ;;  %1669 = vmatprep.subr.bf16.mxu1 %v18598_v61  ;;  %v18637_v54 = vld [vmem:[%s25277_s0 + $0x74] ss:$24 sps:$4 sm:$0xff]  }
  0x55   : > { %1566 = vmatprep.subr.bf16.mxu0 %v18583_v55  ;;  %v787_v55 = vld [vmem:[%s20272_s4 + $0xc0] sm:$0xff] }
  0x56   : > { %v20594_v61 = vpack.c.bf16 %v788_v56, %v787_v55  ;;  %v18683_v55 = vld [vmem:[%s25277_s0 + $0x488] ss:$24 sps:$4 sm:$0xff]  }
  0x57   : > { %15137 = vmatmul.mubr.msk.bf16.gmra.mrb[12].mxu0 %vm1070_vm0, %v20390_v57  ;;  %1670 = vmatpush1.bf16.msra.mxu1 %v18596_v63  ;;  %v18652_v63 = vld [vmem:[%s25277_s0 + $0x39c] ss:$24 sps:$4 sm:$0xff]  }
  0x58   : > { %1161 = vmatprep.mubr.bf16.mxu0 %v20034_v2  ;;  %2173 = vmatprep.subr.bf16.mxu1 %v18613_v1  ;;  %v789_v1 = vld [vmem:[%s20272_s4 + $0xd0] sm:$0xff] }
  0x59   : > { %v20625_v10 = vpack.c.bf16 %v790_v3, %v789_v1  ;;  %v18694_v1 = vld [vmem:[%s25277_s0 + $0x4ec] ss:$24 sps:$4 sm:$0xff]  }
  0x5a   : > { %15143 = vmatmul.mubr.msk.bf16.gmra.mrb[12].mxu1 %vm1070_vm0, %v20390_v57 }
  0x5b   : > { %1254 = vmatprep.mubr.bf16.mxu1 %v20034_v2 }
  0x5f   : > { %15138 = vmatmul.mubr.msk.bf16.gmra.mrb[16].mxu0 %vm1070_vm0, %v20412_v0 }
  0x60   : > { %1171 = vmatprep.mubr.bf16.mxu0 %v20034_v2 }
  0x62   : > { %15144 = vmatmul.mubr.msk.bf16.gmra.mrb[16].mxu1 %vm1070_vm0, %v20412_v0 }
  0x63   : > { %1264 = vmatprep.mubr.bf16.mxu1 %v20034_v2 }
  0x67   : > { %15139 = vmatmul.mubr.msk.bf16.gmra.mrb[20].mxu0 %vm1070_vm0, %v20425_v5 }
  0x68   : > { %1307 = vmatprep.mubr.bf16.mxu0 %v20034_v2 }
  0x6a   : > { %15145 = vmatmul.mubr.msk.bf16.gmra.mrb[20].mxu1 %vm1070_vm0, %v20425_v5 }
  0x6b   : > { %1691 = vmatprep.mubr.bf16.mxu1 %v20034_v2 }
  0x6f   : > { %15146 = vmatmul.mubr.msk.bf16.vlgmr.msra.gmra.mrb[24].mxu0 %vm1070_vm0, %v20294_v25 }
  0x70   : > { %1567 = vmatpush1.bf16.msra.mxu0 %v18581_v6  ;;  %1317 = vmatprep.mubr.bf16.mxu0 %v20034_v2  ;;  %v18650_v6 = vld [vmem:[%s25277_s0 + $0x398] ss:$24 sps:$4 sm:$0xff]  }
  0x71   : > { %1568 = vmatprep.subr.bf16.mxu0 %v18592_v7  ;;  %v18658_v7 = vld [vmem:[%s25277_s0 + $0x3cc] ss:$24 sps:$4 sm:$0xff]  }
  0x72   : > { %15194 = vmatmul.mubr.msk.bf16.vlgmr.msra.gmra.mrb[0].mxu1 %vm1070_vm0, %v20456_v13 }
  0x73   : > { %1701 = vmatprep.mubr.bf16.mxu1 %v20034_v2  ;;  %2174 = vmatpush1.bf16.msra.mxu1 %v18611_v15  ;;  %v792_v15 = vld [vmem:[%s20272_s4 + $0xe8] sm:$0xff] }
  0x74   : > { %1569 = vmatpush1.bf16.msra.mxu0 %v18590_v8  ;;  %2175 = vmatprep.subr.bf16.mxu1 %v18616_v17  ;;  %v18641_v8 = vld [vmem:[%s25277_s0 + $0xd0] ss:$24 sps:$4 sm:$0xff]   ;;  %v18655_v17 = vld [vmem:[%s25277_s0 + $0x244] ss:$24 sps:$4 sm:$0xff]  }
  0x75   : > { %1570 = vmatprep.subr.bf16.mxu0 %v18601_v9  ;;  %v18646_v9 = vld [vmem:[%s25277_s0 + $0x104] ss:$24 sps:$4 sm:$0xff]  }
  0x77   : > { %15147 = vmatmul.mubr.msk.bf16.gmra.mrb[28].mxu0 %vm1070_vm0, %v20325_v36  ;;  %2176 = vmatpush1.bf16.msra.mxu1 %v18614_v21  ;;  %v18665_v21 = vld [vmem:[%s25277_s0 + $0x428] ss:$24 sps:$4 sm:$0xff]  }
  0x78   : > { %1327 = vmatprep.mubr.bf16.mxu0 %v20034_v2  ;;  %1571 = vmatpush1.bf16.msra.mxu0 %v18599_v12  ;;  %v18661_v12 = vld [vmem:[%s25277_s0 + $0x3fc] ss:$24 sps:$4 sm:$0xff]  }
  0x79   : > { %1572 = vmatprep.subr.bf16.mxu0 %v18604_v14  ;;  %2177 = vmatprep.subr.bf16.mxu1 %v18622_v23  ;;  %v791_v14 = vld [vmem:[%s20272_s4 + $0xe0] sm:$0xff]  ;;  %v793_v23 = vld [vmem:[%s20272_s4 + $0xf0] sm:$0xff] }
  0x7a   : > { %15195 = vmatmul.mubr.msk.bf16.gmra.mrb[4].mxu1 %vm1070_vm0, %v20493_v26 }
  0x7b   : > { %1711 = vmatprep.mubr.bf16.mxu1 %v20034_v2  ;;  %2178 = vmatpush1.bf16.msra.mxu1 %v18620_v27  ;;  %v18668_v27 = vld [vmem:[%s25277_s0 + $0x458] ss:$24 sps:$4 sm:$0xff]  }
  0x7c   : > { %1573 = vmatpush1.bf16.msra.mxu0 %v18602_v16  ;;  %2179 = vmatprep.subr.bf16.mxu1 %v18625_v28  ;;  %v18644_v16 = vld [vmem:[%s25277_s0 + $0x100] ss:$24 sps:$4 sm:$0xff]   ;;  %v18685_v28 = vld [vmem:[%s25277_s0 + $0x48c] ss:$24 sps:$4 sm:$0xff]  }
  0x7d   : > { %1574 = vmatprep.subr.bf16.mxu0 %v18607_v20  ;;  %v20653_v20 = vpack.c.bf16 %v792_v15, %v791_v14  ;;  %v18697_v14 = vld [vmem:[%s25277_s0 + $0x51c] ss:$24 sps:$4 sm:$0xff]   ;;  %v18680_v15 = vld [vmem:[%s25277_s0 + $0x330] ss:$24 sps:$4 sm:$0xff]  }
  0x7f   : > { %15148 = vmatmul.mubr.msk.bf16.gmra.mrb[32].mxu0 %vm1070_vm0, %v20356_v46  ;;  %2180 = vmatpush1.bf16.msra.mxu1 %v18623_v33  ;;  %v797_v33 = vld [vmem:[%s20272_s4 + $0x110] sm:$0xff] }
  0x80   : > { %1337 = vmatprep.mubr.bf16.mxu0 %v20034_v2  ;;  %1575 = vmatpush1.bf16.msra.mxu0 %v18605_v22  ;;  %v18670_v22 = vld [vmem:[%s25277_s0 + $0x45c] ss:$24 sps:$4 sm:$0xff]  }
  0x81   : > { %1576 = vmatprep.subr.bf16.mxu0 %v18610_v24  ;;  %2181 = vmatprep.subr.bf16.mxu1 %v18631_v34  ;;  %v794_v24 = vld [vmem:[%s20272_s4 + $0xf8] sm:$0xff] }
  0x82   : > { %15196 = vmatmul.mubr.msk.bf16.gmra.mrb[8].mxu1 %vm1070_vm0, %v20521_v35  ;;  %v20675_v29 = vpack.c.bf16 %v794_v24, %v793_v23  ;;  %v798_v34 = vld [vmem:[%s20272_s4 + $0x118] sm:$0xff]  ;;  %v2493_v23 = vshrl.u32 %v20543_v43, 16  ;;  %v2496_v24 = vshll.u32 %v20553_v47, 16 }
  0x83   : > { %1721 = vmatprep.mubr.bf16.mxu1 %v20034_v2  ;;  %2182 = vmatpush1.bf16.msra.mxu1 %v18629_v37  ;;  %v18653_v37 = vld [vmem:[%s25277_s0 + $0x240] ss:$24 sps:$4 sm:$0xff]   ;;  %v20702_v40 = vpack.c.bf16 %v798_v34, %v797_v33 }
  0x84   : > { %1577 = vmatpush1.bf16.msra.mxu0 %v18608_v31  ;;  %2183 = vmatprep.subr.bf16.mxu1 %v18634_v38  ;;  %v796_v31 = vld [vmem:[%s20272_s4 + $0x108] sm:$0xff]  ;;  %v2471_v38 = vshll.u32 %v20456_v13, 16  ;;  %v2498_v34 = vrot.slane %v2496_v24, 1  ;;  %v3116_v24 = vshll.u32 %v20390_v57, 16  ;;  %s25283_s4 = sld [smem:[#allocation18_spill]] }
  0x85   : > { %1752 = vmatprep.subr.bf16.mxu0 %v18619_v32  ;;  %v20685_v32 = vpack.c.bf16 %v796_v31, %v795_v30  ;;  %v18704_v30 = vld [vmem:[%s25277_s0 + $0x578] ss:$24 sps:$4 sm:$0xff]   ;;  %v18721_v31 = vld [vmem:[%s25277_s0 + $0x5ac] ss:$24 sps:$4 sm:$0xff]  }
  0x87   : > { %15149 = vmatmul.mubr.msk.bf16.gmra.mrb[36].mxu0 %vm1070_vm0, %v20390_v57  ;;  %2184 = vmatpush1.bf16.msra.mxu1 %v18632_v41  ;;  %v2469_v41 = vshrl.u32 %v20456_v13, 16 }
  0x88   : > { %1347 = vmatprep.mubr.bf16.mxu0 %v20034_v2  ;;  %2801 = vmatprep.subr.bf16.mxu1 %v18649_v42  ;;  %v2473_v42 = vrot.slane %v2471_v38, 1  ;;  %v2500_v38 = vshrl.u32 %v20553_v47, 16 }
  0x8a   : > { %15197 = vmatmul.mubr.msk.bf16.gmra.mrb[12].mxu1 %vm1070_vm0, %v20543_v43 }
  0x8b   : > { %1731 = vmatprep.mubr.bf16.mxu1 %v20034_v2 }
  0x8f   : > { %15150 = vmatmul.mubr.msk.bf16.gmra.mrb[40].mxu0 %vm1070_vm0, %v20412_v0 }
  0x90   : > { %1357 = vmatprep.mubr.bf16.mxu0 %v20034_v2 }
  0x92   : > { %15198 = vmatmul.mubr.msk.bf16.gmra.mrb[16].mxu1 %vm1070_vm0, %v20553_v47 }
  0x93   : > { %1741 = vmatprep.mubr.bf16.mxu1 %v20034_v2 }
  0x97   : > { %15151 = vmatmul.mubr.msk.bf16.gmra.mrb[44].mxu0 %vm1070_vm0, %v20425_v5 }
  0x98   : > { %1598 = vmatprep.mubr.bf16.mxu0 %v20034_v2 }
  0x9a   : > { %15199 = vmatmul.mubr.msk.bf16.gmra.mrb[20].mxu1 %vm1070_vm0, %v20569_v52 }
  0x9b   : > { %2205 = vmatprep.mubr.bf16.mxu1 %v20034_v2 }
  0x9f   : > { %15188 = vmatmul.mubr.msk.bf16.vlgmr.msra.gmra.mrb[0].mxu0 %vm1070_vm0, %v20456_v13 }
  0xa0   : > { %1753 = vmatpush1.bf16.msra.mxu0 %v18617_v50  ;;  %1608 = vmatprep.mubr.bf16.mxu0 %v20034_v2  ;;  %v2474_v50 = vor.u32 %v2473_v42, %v2469_v41  ;;  %v2502_v41 = vor.u32 %v2500_v38, %v2498_v34 }
  0xa1   : > { %1754 = vmatprep.subr.bf16.mxu0 %v18628_v51  ;;  %v2477_v51 = vrot.slane %v2475_v44, 1 }
  0xa2   : > { %15284 = vmatmul.mubr.msk.bf16.vlgmr.msra.gmra.mrb[0].mxu1 %vm1070_vm0, %v20594_v61 }
  0xa3   : > { %2215 = vmatprep.mubr.bf16.mxu1 %v20034_v2  ;;  %2802 = vmatpush1.bf16.msra.mxu1 %v18647_v60  ;;  %v20729_v56 = vsel %vm2468_vm1, %v2474_v50, %v2477_v51  ;;  %v18688_v60 = vld [vmem:[%s25277_s0 + $0x4bc] ss:$24 sps:$4 sm:$0xff]  }
  0xa4   : > { %1755 = vmatpush1.bf16.msra.mxu0 %v18626_v53  ;;  %2803 = vmatprep.subr.bf16.mxu1 %v18652_v63  ;;  %v2479_v53 = vshrl.u32 %v20493_v26, 16  ;;  %v18686_v63 = vld [vmem:[%s25277_s0 + $0x4b8] ss:$24 sps:$4 sm:$0xff]   ;;  %v18700_v50 = vld [vmem:[%s25277_s0 + $0x284] ss:$24 sps:$4 sm:$0xff]  }
  0xa5   : > { %1756 = vmatprep.subr.bf16.mxu0 %v18637_v54  ;;  %v18676_v54 = vld [vmem:[%s25277_s0 + $0x2d4] ss:$24 sps:$4 sm:$0xff]  }
  0xa6   : > { %v2481_v3 = vor.u32 %v2479_v53, %v2477_v51  ;;  %v3096_v53 = vshrl.u32 %v20294_v25, 16 }
  0xa7   : > { %15189 = vmatmul.mubr.msk.bf16.gmra.mrb[4].mxu0 %vm1070_vm0, %v20493_v26  ;;  %2804 = vmatpush1.bf16.msra.mxu1 %v18650_v6  ;;  %v18677_v6 = vld [vmem:[%s25277_s0 + $0x300] ss:$24 sps:$4 sm:$0xff]  }
  0xa8   : > { %1618 = vmatprep.mubr.bf16.mxu0 %v20034_v2  ;;  %1757 = vmatpush1.bf16.msra.mxu0 %v18635_v58  ;;  %v2482_v58 = vshll.u32 %v20521_v35, 16 }
  0xa9   : > { %1758 = vmatprep.subr.bf16.mxu0 %v18640_v59  ;;  %2805 = vmatprep.subr.bf16.mxu1 %v18658_v7  ;;  %v18674_v59 = vld [vmem:[%s25277_s0 + $0x2d0] ss:$24 sps:$4 sm:$0xff]   ;;  %v18682_v7 = vld [vmem:[%s25277_s0 + $0x334] ss:$24 sps:$4 sm:$0xff]  }
  0xaa   : > { %15285 = vmatmul.mubr.msk.bf16.gmra.mrb[4].mxu1 %vm1070_vm0, %v20625_v10 }
  0xab   : > { %2225 = vmatprep.mubr.bf16.mxu1 %v20034_v2  ;;  %2806 = vmatpush1.bf16.msra.mxu1 %v18656_v11  ;;  %v2489_v11 = vshll.u32 %v20543_v43, 16 }
  0xac   : > { %1759 = vmatpush1.bf16.msra.mxu0 %v18638_v62  ;;  %2807 = vmatprep.subr.bf16.mxu1 %v18661_v12  ;;  %v18679_v62 = vld [vmem:[%s25277_s0 + $0x304] ss:$24 sps:$4 sm:$0xff]   ;;  %v18692_v12 = vld [vmem:[%s25277_s0 + $0x4e8] ss:$24 sps:$4 sm:$0xff]  }
  0xad   : > { %1760 = vmatprep.subr.bf16.mxu0 %v18643_v4  ;;  %v2484_v4 = vrot.slane %v2482_v58, 1  ;;  %v18698_v58 = vld [vmem:[%s25277_s0 + $0x280] ss:$24 sps:$4 sm:$0xff]  }
  0xaf   : > { %15190 = vmatmul.mubr.msk.bf16.gmra.mrb[8].mxu0 %vm1070_vm0, %v20521_v35  ;;  %2808 = vmatpush1.bf16.msra.mxu1 %v18659_v18  ;;  %v18703_v18 = vld [vmem:[%s25277_s0 + $0x54c] ss:$24 sps:$4 sm:$0xff]  }
  0xb0   : > { %1628 = vmatprep.mubr.bf16.mxu0 %v20034_v2  ;;  %1761 = vmatpush1.bf16.msra.mxu0 %v18641_v8  ;;  %v20760_v8 = vsel %vm2468_vm1, %v2481_v3, %v2484_v4  ;;  %v18719_v3 = vld [vmem:[%s25277_s0 + $0x5a8] ss:$24 sps:$4 sm:$0xff]  }
  0xb1   : > { %1762 = vmatprep.subr.bf16.mxu0 %v18646_v9  ;;  %2809 = vmatprep.subr.bf16.mxu1 %v18667_v19  ;;  %v2486_v9 = vshrl.u32 %v20521_v35, 16 }
  0xb2   : > { %15286 = vmatmul.mubr.msk.bf16.gmra.mrb[8].mxu1 %vm1070_vm0, %v20653_v20 }
  0xb3   : > { %2235 = vmatprep.mubr.bf16.mxu1 %v20034_v2  ;;  %2810 = vmatpush1.bf16.msra.mxu1 %v18665_v21  ;;  %v2488_v19 = vor.u32 %v2486_v9, %v2484_v4  ;;  %v2491_v21 = vrot.slane %v2489_v11, 1  ;;  %v18710_v9 = vld [vmem:[%s25277_s0 + $0x2e0] ss:$24 sps:$4 sm:$0xff]   ;;  %v18724_v11 = vld [vmem:[%s25277_s0 + $0x5dc] ss:$24 sps:$4 sm:$0xff]  }
  0xb4   : > { %1763 = vmatpush1.bf16.msra.mxu0 %v18644_v16  ;;  %2811 = vmatprep.subr.bf16.mxu1 %v18670_v22  ;;  %v18691_v16 = vld [vmem:[%s25277_s0 + $0x254] ss:$24 sps:$4 sm:$0xff]  }
  0xb5   : > { %2080 = vmatprep.subr.bf16.mxu0 %v18655_v17  ;;  %v18695_v17 = vld [vmem:[%s25277_s0 + $0x518] ss:$24 sps:$4 sm:$0xff]   ;;  %v20789_v22 = vsel %vm2468_vm1, %v2488_v19, %v2491_v21  ;;  %v2495_v33 = vor.u32 %v2493_v23, %v2491_v21  ;;  %v18718_v19 = vld [vmem:[%s25277_s0 + $0x344] ss:$24 sps:$4 sm:$0xff]   ;;  %v3113_v23 = vshrl.u32 %v20356_v46, 16 }
  0xb7   : > { %15191 = vmatmul.mubr.msk.bf16.gmra.mrb[12].mxu0 %vm1070_vm0, %v20543_v43  ;;  %2812 = vmatpush1.bf16.msra.mxu1 %v18668_v27  ;;  %v18701_v27 = vld [vmem:[%s25277_s0 + $0x548] ss:$24 sps:$4 sm:$0xff]  }
  0xb8   : > { %1638 = vmatprep.mubr.bf16.mxu0 %v20034_v2  ;;  %3428 = vmatprep.subr.bf16.mxu1 %v18685_v28  ;;  %v18706_v28 = vld [vmem:[%s25277_s0 + $0x57c] ss:$24 sps:$4 sm:$0xff]  }
  0xba   : > { %15287 = vmatmul.mubr.msk.bf16.gmra.mrb[12].mxu1 %vm1070_vm0, %v20675_v29 }
  0xbb   : > { %2245 = vmatprep.mubr.bf16.mxu1 %v20034_v2 }
  0xbf   : > { %15192 = vmatmul.mubr.msk.bf16.gmra.mrb[16].mxu0 %vm1070_vm0, %v20553_v47 }
  0xc0   : > { %1648 = vmatprep.mubr.bf16.mxu0 %v20034_v2 }
  0xc2   : > { %15288 = vmatmul.mubr.msk.bf16.gmra.mrb[16].mxu1 %vm1070_vm0, %v20685_v32 }
  0xc3   : > { %2255 = vmatprep.mubr.bf16.mxu1 %v20034_v2 }
  0xc7   : > { %15193 = vmatmul.mubr.msk.bf16.gmra.mrb[20].mxu0 %vm1070_vm0, %v20569_v52 }
  0xc8   : > { %1784 = vmatprep.mubr.bf16.mxu0 %v20034_v2 }
  0xca   : > { %15289 = vmatmul.mubr.msk.bf16.gmra.mrb[20].mxu1 %vm1070_vm0, %v20702_v40 }
  0xcb   : > { %2833 = vmatprep.mubr.bf16.mxu1 %v20034_v2 }
  0xcf   : > { %15200 = vmatmul.mubr.msk.bf16.vlgmr.msra.gmra.mrb[24].mxu0 %vm1070_vm0, %v20456_v13 }
  0xd0   : > { %2081 = vmatpush1.bf16.msra.mxu0 %v18653_v37  ;;  %1794 = vmatprep.mubr.bf16.mxu0 %v20034_v2  ;;  %v20812_v37 = vsel %vm2468_vm1, %v2495_v33, %v2498_v34  ;;  %v18731_v33 = vld [vmem:[%s25277_s0 + $0x638] ss:$24 sps:$4 sm:$0xff]   ;;  %v18739_v34 = vld [vmem:[%s25277_s0 + $0x66c] ss:$24 sps:$4 sm:$0xff]  }
  0xd1   : > { %2082 = vmatprep.subr.bf16.mxu0 %v18664_v39  ;;  %v2503_v39 = vshll.u32 %v20569_v52, 16 }
  0xd2   : > { %15374 = vmatmul.mubr.msk.bf16.vlgmr.msra.gmra.mrb[0].mxu1 %vm1070_vm0, %v20729_v56 }
  0xd3   : > { %2843 = vmatprep.mubr.bf16.mxu1 %v20034_v2  ;;  %3429 = vmatpush1.bf16.msra.mxu1 %v18683_v55  ;;  %v2505_v42 = vrot.slane %v2503_v39, 1  ;;  %v3102_v55 = vshll.u32 %v20325_v36, 16  ;;  %v3118_v39 = vrot.slane %v3116_v24, 1  ;;  %v18743_v24 = vld [vmem:[%s25277_s0 + $0x3c0] ss:$24 sps:$4 sm:$0xff]  }
  0xd4   : > { %2083 = vmatpush1.bf16.msra.mxu0 %v18662_v45  ;;  %3430 = vmatprep.subr.bf16.mxu1 %v18688_v60  ;;  %v2507_v45 = vshrl.u32 %v20569_v52, 16  ;;  %v18707_v60 = vld [vmem:[%s25277_s0 + $0x2b0] ss:$24 sps:$4 sm:$0xff]  }
  0xd5   : > { %2084 = vmatprep.subr.bf16.mxu0 %v18673_v48  ;;  %v20823_v44 = vsel %vm2468_vm1, %v2502_v41, %v2505_v42  ;;  %v18689_v48 = vld [vmem:[%s25277_s0 + $0x250] ss:$24 sps:$4 sm:$0xff]  }
  0xd6   : > { %v20839_v51 = vor.u32 %v2507_v45, %v2505_v42  ;;  %v3120_v42 = vshrl.u32 %v20390_v57, 16  ;;  %v3123_v45 = vshll.u32 %v20412_v0, 16 }
  0xd7   : > { %15201 = vmatmul.mubr.msk.bf16.gmra.mrb[28].mxu0 %vm1070_vm0, %v20493_v26  ;;  %3431 = vmatpush1.bf16.msra.mxu1 %v18686_v63  ;;  %v3104_v63 = vrot.slane %v3102_v55, 1 }
  0xd8   : > { %1804 = vmatprep.mubr.bf16.mxu0 %v20034_v2  ;;  %2085 = vmatpush1.bf16.msra.mxu0 %v18671_v49  ;;  %v3098_v49 = vshll.u32 %v20294_v25, 16  ;;  %v3125_v55 = vrot.slane %v3123_v45, 1  ;;  %v3743_v45 = vshll.u32 %v20675_v29, 16 }
  0xd9   : > { %2086 = vmatprep.subr.bf16.mxu0 %v18676_v54  ;;  %3432 = vmatprep.subr.bf16.mxu1 %v18694_v1  ;;  %v18712_v1 = vld [vmem:[%s25277_s0 + $0x2e4] ss:$24 sps:$4 sm:$0xff]  }
  0xda   : > { %15375 = vmatmul.mubr.msk.bf16.gmra.mrb[4].mxu1 %vm1070_vm0, %v20760_v8  ;;  %v3100_v54 = vrot.slane %v3098_v49, 1  ;;  %v18742_v49 = vld [vmem:[%s25277_s0 + $0x69c] ss:$24 sps:$4 sm:$0xff]  }
  0xdb   : > { %2853 = vmatprep.mubr.bf16.mxu1 %v20034_v2  ;;  %3433 = vmatpush1.bf16.msra.mxu1 %v18692_v12  ;;  %v18715_v12 = vld [vmem:[%s25277_s0 + $0x314] ss:$24 sps:$4 sm:$0xff]  }
  0xdc   : > { %2087 = vmatpush1.bf16.msra.mxu0 %v18674_v59  ;;  %3434 = vmatprep.subr.bf16.mxu1 %v18697_v14  ;;  %v18709_v59 = vld [vmem:[%s25277_s0 + $0x2b4] ss:$24 sps:$4 sm:$0xff]   ;;  %v18722_v14 = vld [vmem:[%s25277_s0 + $0x5d8] ss:$24 sps:$4 sm:$0xff]  }
  0xdd   : > { %2088 = vmatprep.subr.bf16.mxu0 %v18679_v62  ;;  %v3101_v62 = vor.u32 %v3100_v54, %v3096_v53  ;;  %v18757_v53 = vld [vmem:[%s25277_s0 + $0x6cc] ss:$24 sps:$4 sm:$0xff]   ;;  %v3122_v54 = vor.u32 %v3120_v42, %v3118_v39  ;;  %v3740_v42 = vshrl.u32 %v20653_v20, 16 }
  0xdf   : > { %15202 = vmatmul.mubr.msk.bf16.gmra.mrb[32].mxu0 %vm1070_vm0, %v20521_v35  ;;  %3435 = vmatpush1.bf16.msra.mxu1 %v18695_v17  ;;  %v20865_v4 = vsel %vm2468_vm1, %v3101_v62, %v3104_v63 }
  0xe0   : > { %1814 = vmatprep.mubr.bf16.mxu0 %v20034_v2  ;;  %2089 = vmatpush1.bf16.msra.mxu0 %v18677_v6  ;;  %v3106_v6 = vshrl.u32 %v20325_v36, 16 }
  0xe1   : > { %2090 = vmatprep.subr.bf16.mxu0 %v18682_v7  ;;  %3436 = vmatprep.subr.bf16.mxu1 %v18703_v18  ;;  %v3109_v7 = vshll.u32 %v20356_v46, 16  ;;  %v18713_v18 = vld [vmem:[%s25277_s0 + $0x310] ss:$24 sps:$4 sm:$0xff]  }
  0xe2   : > { %15376 = vmatmul.mubr.msk.bf16.gmra.mrb[8].mxu1 %vm1070_vm0, %v20789_v22 }
  0xe3   : > { %2863 = vmatprep.mubr.bf16.mxu1 %v20034_v2  ;;  %3437 = vmatpush1.bf16.msra.mxu1 %v18701_v27  ;;  %v3111_v17 = vrot.slane %v3109_v7, 1  ;;  %v18728_v27 = vld [vmem:[%s25277_s0 + $0x608] ss:$24 sps:$4 sm:$0xff]   ;;  %v3723_v7 = vshrl.u32 %v20594_v61, 16 }
  0xe4   : > { %2091 = vmatpush1.bf16.msra.mxu0 %v18680_v15  ;;  %3438 = vmatprep.subr.bf16.mxu1 %v18706_v28  ;;  %v18730_v15 = vld [vmem:[%s25277_s0 + $0x60c] ss:$24 sps:$4 sm:$0xff]   ;;  %v18716_v28 = vld [vmem:[%s25277_s0 + $0x340] ss:$24 sps:$4 sm:$0xff]  }
  0xe5   : > { %2266 = vmatprep.subr.bf16.mxu0 %v18691_v16  ;;  %v3108_v16 = vor.u32 %v3106_v6, %v3104_v63  ;;  %v3115_v38 = vor.u32 %v3113_v23, %v3111_v17  ;;  %v3134_v6 = vshrl.u32 %v20425_v5, 16  ;;  %v3736_v23 = vshll.u32 %v20653_v20, 16 }
  0xe7   : > { %15203 = vmatmul.mubr.msk.bf16.gmra.mrb[36].mxu0 %vm1070_vm0, %v20543_v43  ;;  %3439 = vmatpush1.bf16.msra.mxu1 %v18704_v30  ;;  %v20897_v21 = vsel %vm2468_vm1, %v3108_v16, %v3111_v17  ;;  %v18733_v30 = vld [vmem:[%s25277_s0 + $0x63c] ss:$24 sps:$4 sm:$0xff]   ;;  %v20926_v41 = vsel %vm2468_vm1, %v3115_v38, %v3118_v39  ;;  %v18734_v16 = vld [vmem:[%s25277_s0 + $0x390] ss:$24 sps:$4 sm:$0xff]  }
  0xe8   : > { %1824 = vmatprep.mubr.bf16.mxu0 %v20034_v2  ;;  %4055 = vmatprep.subr.bf16.mxu1 %v18721_v31  ;;  %v18727_v31 = vld [vmem:[%s25277_s0 + $0x364] ss:$24 sps:$4 sm:$0xff]  }
  0xe9   : > { %v18745_v17 = vld [vmem:[%s25277_s0 + $0x3c4] ss:$24 sps:$4 sm:$0xff]  }
  0xea   : > { %15377 = vmatmul.mubr.msk.bf16.gmra.mrb[12].mxu1 %vm1070_vm0, %v20812_v37  ;;  %v18751_v38 = vld [vmem:[%s25277_s0 + $0x424] ss:$24 sps:$4 sm:$0xff]  }
  0xeb   : > { %2873 = vmatprep.mubr.bf16.mxu1 %v20034_v2  ;;  %v18760_v39 = vld [vmem:[%s25277_s0 + $0x6fc] ss:$24 sps:$4 sm:$0xff]  }
  0xef   : > { %15204 = vmatmul.mubr.msk.bf16.gmra.mrb[40].mxu0 %vm1070_vm0, %v20553_v47 }
  0xf0   : > { %1834 = vmatprep.mubr.bf16.mxu0 %v20034_v2 }
  0xf2   : > { %15378 = vmatmul.mubr.msk.bf16.gmra.mrb[16].mxu1 %vm1070_vm0, %v20823_v44 }
  0xf3   : > { %2883 = vmatprep.mubr.bf16.mxu1 %v20034_v2 }
  0xf7   : > { %15205 = vmatmul.mubr.msk.bf16.gmra.mrb[44].mxu0 %vm1070_vm0, %v20569_v52 }
  0xf8   : > { %2112 = vmatprep.mubr.bf16.mxu0 %v20034_v2 }
  0xfa   : > { %15379 = vmatmul.mubr.msk.bf16.gmra.mrb[20].mxu1 %vm1070_vm0, %v20839_v51 }
  0xfb   : > { %3460 = vmatprep.mubr.bf16.mxu1 %v20034_v2 }
  0xff   : > { %15278 = vmatmul.mubr.msk.bf16.vlgmr.msra.gmra.mrb[0].mxu0 %vm1070_vm0, %v20594_v61 }
 0x100   : > { %2267 = vmatpush1.bf16.msra.mxu0 %v18689_v48  ;;  %2122 = vmatprep.mubr.bf16.mxu0 %v20034_v2  ;;  %v18737_v48 = vld [vmem:[%s25277_s0 + $0x668] ss:$24 sps:$4 sm:$0xff]  }
 0x101   : > { %2268 = vmatprep.subr.bf16.mxu0 %v18700_v50  ;;  %v18740_v50 = vld [vmem:[%s25277_s0 + $0x698] ss:$24 sps:$4 sm:$0xff]  }
 0x102   : > { %15464 = vmatmul.mubr.msk.bf16.vlgmr.msra.gmra.mrb[0].mxu1 %vm1070_vm0, %v20865_v4 }
 0x103   : > { %3470 = vmatprep.mubr.bf16.mxu1 %v20034_v2  ;;  %4056 = vmatpush1.bf16.msra.mxu1 %v18719_v3 }
 0x104   : > { %2269 = vmatpush1.bf16.msra.mxu0 %v18698_v58  ;;  %4057 = vmatprep.subr.bf16.mxu1 %v18724_v11  ;;  %v20949_v58 = vsel %vm2468_vm1, %v3122_v54, %v3125_v55  ;;  %v3729_v11 = vshll.u32 %v20625_v10, 16  ;;  %v18754_v54 = vld [vmem:[%s25277_s0 + $0x454] ss:$24 sps:$4 sm:$0xff]  }
 0x105   : > { %2270 = vmatprep.subr.bf16.mxu0 %v18709_v59  ;;  %v3127_v59 = vshrl.u32 %v20412_v0, 16 }
 0x107   : > { %15279 = vmatmul.mubr.msk.bf16.gmra.mrb[4].mxu0 %vm1070_vm0, %v20625_v10  ;;  %4058 = vmatpush1.bf16.msra.mxu1 %v18722_v14  ;;  %v3129_v62 = vor.u32 %v3127_v59, %v3125_v55  ;;  %v18736_v14 = vld [vmem:[%s25277_s0 + $0x394] ss:$24 sps:$4 sm:$0xff]   ;;  %v18764_v59 = vld [vmem:[%s25277_s0 + $0x728] ss:$24 sps:$4 sm:$0xff]  }
 0x108   : > { %2132 = vmatprep.mubr.bf16.mxu0 %v20034_v2  ;;  %2271 = vmatpush1.bf16.msra.mxu0 %v18707_v60  ;;  %v3130_v60 = vshll.u32 %v20425_v5, 16 }
 0x109   : > { %2272 = vmatprep.subr.bf16.mxu0 %v18712_v1  ;;  %4059 = vmatprep.subr.bf16.mxu1 %v18730_v15  ;;  %v3725_v1 = vshll.u32 %v20594_v61, 16 }
 0x10a   : > { %15465 = vmatmul.mubr.msk.bf16.gmra.mrb[4].mxu1 %vm1070_vm0, %v20897_v21  ;;  %v3132_v63 = vrot.slane %v3130_v60, 1  ;;  %v3745_v60 = vrot.slane %v3743_v45, 1  ;;  %v18772_v45 = vld [vmem:[%s25277_s0 + $0x3a4] ss:$24 sps:$4 sm:$0xff]  }
 0x10b   : > { %3480 = vmatprep.mubr.bf16.mxu1 %v20034_v2  ;;  %4060 = vmatpush1.bf16.msra.mxu1 %v18728_v27 }
 0x10c   : > { %2273 = vmatpush1.bf16.msra.mxu0 %v18710_v9  ;;  %4061 = vmatprep.subr.bf16.mxu1 %v18733_v30  ;;  %v20961_v3 = vsel %vm2468_vm1, %v3129_v62, %v3132_v63  ;;  %v3727_v9 = vrot.slane %v3725_v1, 1  ;;  %v20978_v15 = vor.u32 %v3134_v6, %v3132_v63  ;;  %v18755_v30 = vld [vmem:[%s25277_s0 + $0x6c8] ss:$24 sps:$4 sm:$0xff]   ;;  %v3747_v63 = vshrl.u32 %v20675_v29, 16  ;;  %v18769_v1 = vld [vmem:[%s25277_s0 + $0x75c] ss:$24 sps:$4 sm:$0xff]  }
 0x10d   : > { %2274 = vmatprep.subr.bf16.mxu0 %v18715_v12  ;;  %v18725_v12 = vld [vmem:[%s25277_s0 + $0x360] ss:$24 sps:$4 sm:$0xff]   ;;  %v18752_v62 = vld [vmem:[%s25277_s0 + $0x450] ss:$24 sps:$4 sm:$0xff]   ;;  %v3750_v6 = vshll.u32 %v20685_v32, 16 }
 0x10e   : > { %v3728_v27 = vor.u32 %v3727_v9, %v3723_v7  ;;  %v18763_v7 = vld [vmem:[%s25277_s0 + $0x374] ss:$24 sps:$4 sm:$0xff]   ;;  %v18767_v9 = vld [vmem:[%s25277_s0 + $0x758] ss:$24 sps:$4 sm:$0xff]  }
 0x10f   : > { %15280 = vmatmul.mubr.msk.bf16.gmra.mrb[8].mxu0 %vm1070_vm0, %v20653_v20  ;;  %4062 = vmatpush1.bf16.msra.mxu1 %v18731_v33  ;;  %v18746_v33 = vld [vmem:[%s25277_s0 + $0x3f0] ss:$24 sps:$4 sm:$0xff]  }
 0x110   : > { %2142 = vmatprep.mubr.bf16.mxu0 %v20034_v2  ;;  %2275 = vmatpush1.bf16.msra.mxu0 %v18713_v18  ;;  %v3731_v18 = vrot.slane %v3729_v11, 1  ;;  %v18775_v11 = vld [vmem:[%s25277_s0 + $0x78c] ss:$24 sps:$4 sm:$0xff]  }
 0x111   : > { %2276 = vmatprep.subr.bf16.mxu0 %v18718_v19  ;;  %4063 = vmatprep.subr.bf16.mxu1 %v18739_v34  ;;  %v3733_v19 = vshrl.u32 %v20625_v10, 16  ;;  %v3738_v34 = vrot.slane %v3736_v23, 1  ;;  %v18776_v23 = vld [vmem:[%s25277_s0 + $0x7b8] ss:$24 sps:$4 sm:$0xff]  }
 0x112   : > { %15466 = vmatmul.mubr.msk.bf16.gmra.mrb[8].mxu1 %vm1070_vm0, %v20926_v41 }
 0x113   : > { %3490 = vmatprep.mubr.bf16.mxu1 %v20034_v2  ;;  %4064 = vmatpush1.bf16.msra.mxu1 %v18737_v48  ;;  %v18758_v48 = vld [vmem:[%s25277_s0 + $0x6f8] ss:$24 sps:$4 sm:$0xff]  }
 0x114   : > { %2277 = vmatpush1.bf16.msra.mxu0 %v18716_v28  ;;  %4065 = vmatprep.subr.bf16.mxu1 %v18742_v49  ;;  %v18748_v28 = vld [vmem:[%s25277_s0 + $0x3f4] ss:$24 sps:$4 sm:$0xff]  }
 0x115   : > { %2708 = vmatprep.subr.bf16.mxu0 %v18727_v31  ;;  %v21004_v31 = vsel %vm2468_vm1, %v3728_v27, %v3731_v18  ;;  %v18766_v49 = vld [vmem:[%s25277_s0 + $0x72c] ss:$24 sps:$4 sm:$0xff]   ;;  %v3749_v27 = vor.u32 %v3747_v63, %v3745_v60  ;;  %v4360_v63 = vrot.slane %v20521_v35, 1 }
 0x116   : > { %v18802_v35 = vld [vmem:[%s25277_s0 + $0x84c] ss:$24 sps:$4 sm:$0xff]  }
 0x117   : > { %15281 = vmatmul.mubr.msk.bf16.gmra.mrb[12].mxu0 %vm1070_vm0, %v20675_v29  ;;  %4066 = vmatpush1.bf16.msra.mxu1 %v18740_v50  ;;  %v3735_v50 = vor.u32 %v3733_v19, %v3731_v18  ;;  %v3752_v18 = vrot.slane %v3750_v6, 1  ;;  %v3757_v19 = vshll.u32 %v20702_v40, 16  ;;  %v18796_v6 = vld [vmem:[%s25277_s0 + $0x81c] ss:$24 sps:$4 sm:$0xff]  }
 0x118   : > { %2152 = vmatprep.mubr.bf16.mxu0 %v20034_v2  ;;  %4659 = vmatprep.subr.bf16.mxu1 %v18757_v53  ;;  %v18749_v53 = vld [vmem:[%s25277_s0 + $0x420] ss:$24 sps:$4 sm:$0xff]  }
 0x119   : > { %v21036_v55 = vsel %vm2468_vm1, %v3735_v50, %v3738_v34  ;;  %v18781_v50 = vld [vmem:[%s25277_s0 + $0x3d4] ss:$24 sps:$4 sm:$0xff]  }
 0x11a   : > { %15467 = vmatmul.mubr.msk.bf16.gmra.mrb[12].mxu1 %vm1070_vm0, %v20949_v58 }
 0x11b   : > { %3500 = vmatprep.mubr.bf16.mxu1 %v20034_v2 }
 0x11f   : > { %15282 = vmatmul.mubr.msk.bf16.gmra.mrb[16].mxu0 %vm1070_vm0, %v20685_v32 }
 0x120   : > { %2162 = vmatprep.mubr.bf16.mxu0 %v20034_v2 }
 0x122   : > { %15468 = vmatmul.mubr.msk.bf16.gmra.mrb[16].mxu1 %vm1070_vm0, %v20961_v3 }
 0x123   : > { %3510 = vmatprep.mubr.bf16.mxu1 %v20034_v2 }
 0x127   : > { %15283 = vmatmul.mubr.msk.bf16.gmra.mrb[20].mxu0 %vm1070_vm0, %v20702_v40 }
 0x128   : > { %2298 = vmatprep.mubr.bf16.mxu0 %v20034_v2 }
 0x12a   : > { %15469 = vmatmul.mubr.msk.bf16.gmra.mrb[20].mxu1 %vm1070_vm0, %v20978_v15 }
 0x12b   : > { %4087 = vmatprep.mubr.bf16.mxu1 %v20034_v2 }
 0x12f   : > { %15290 = vmatmul.mubr.msk.bf16.vlgmr.msra.gmra.mrb[24].mxu0 %vm1070_vm0, %v20594_v61 }
 0x130   : > { %2709 = vmatpush1.bf16.msra.mxu0 %v18725_v12  ;;  %2308 = vmatprep.mubr.bf16.mxu0 %v20034_v2  ;;  %v3742_v12 = vor.u32 %v3740_v42, %v3738_v34  ;;  %v18761_v42 = vld [vmem:[%s25277_s0 + $0x370] ss:$24 sps:$4 sm:$0xff]  }
 0x131   : > { %2710 = vmatprep.subr.bf16.mxu0 %v18736_v14 }
 0x132   : > { %15554 = vmatmul.mubr.msk.bf16.vlgmr.msra.gmra.mrb[0].mxu1 %vm1070_vm0, %v21004_v31  ;;  %v21065_v14 = vsel %vm2468_vm1, %v3742_v12, %v3745_v60  ;;  %v18784_v60 = vld [vmem:[%s25277_s0 + $0x404] ss:$24 sps:$4 sm:$0xff]   ;;  %v18800_v12 = vld [vmem:[%s25277_s0 + $0x848] ss:$24 sps:$4 sm:$0xff]  }
 0x133   : > { %4097 = vmatprep.mubr.bf16.mxu1 %v20034_v2  ;;  %4660 = vmatpush1.bf16.msra.mxu1 %v18755_v30  ;;  %v3754_v30 = vshrl.u32 %v20685_v32, 16 }
 0x134   : > { %2711 = vmatpush1.bf16.msra.mxu0 %v18734_v16  ;;  %4661 = vmatprep.subr.bf16.mxu1 %v18760_v39  ;;  %v18773_v16 = vld [vmem:[%s25277_s0 + $0x788] ss:$24 sps:$4 sm:$0xff]   ;;  %v3761_v39 = vshrl.u32 %v20702_v40, 16 }
 0x135   : > { %2712 = vmatprep.subr.bf16.mxu0 %v18745_v17  ;;  %v18778_v17 = vld [vmem:[%s25277_s0 + $0x7bc] ss:$24 sps:$4 sm:$0xff]   ;;  %v3756_v34 = vor.u32 %v3754_v30, %v3752_v18 }
 0x137   : > { %15291 = vmatmul.mubr.msk.bf16.gmra.mrb[28].mxu0 %vm1070_vm0, %v20625_v10  ;;  %4662 = vmatpush1.bf16.msra.mxu1 %v18758_v48 }
 0x138   : > { %2318 = vmatprep.mubr.bf16.mxu0 %v20034_v2  ;;  %2713 = vmatpush1.bf16.msra.mxu0 %v18743_v24  ;;  %v18793_v24 = vld [vmem:[%s25277_s0 + $0x7ec] ss:$24 sps:$4 sm:$0xff]  }
 0x139   : > { %2714 = vmatprep.subr.bf16.mxu0 %v18748_v28  ;;  %4663 = vmatprep.subr.bf16.mxu1 %v18766_v49  ;;  %v21087_v28 = vsel %vm2468_vm1, %v3749_v27, %v3752_v18  ;;  %v18770_v49 = vld [vmem:[%s25277_s0 + $0x3a0] ss:$24 sps:$4 sm:$0xff]   ;;  %v18799_v18 = vld [vmem:[%s25277_s0 + $0x484] ss:$24 sps:$4 sm:$0xff]  }
 0x13a   : > { %15555 = vmatmul.mubr.msk.bf16.gmra.mrb[4].mxu1 %vm1070_vm0, %v21036_v55  ;;  %v18811_v27 = vld [vmem:[%s25277_s0 + $0x8ac] ss:$24 sps:$4 sm:$0xff]  }
 0x13b   : > { %4107 = vmatprep.mubr.bf16.mxu1 %v20034_v2  ;;  %4664 = vmatpush1.bf16.msra.mxu1 %v18764_v59  ;;  %v18779_v59 = vld [vmem:[%s25277_s0 + $0x3d0] ss:$24 sps:$4 sm:$0xff]  }
 0x13c   : > { %2715 = vmatpush1.bf16.msra.mxu0 %v18746_v33  ;;  %4665 = vmatprep.subr.bf16.mxu1 %v18769_v1  ;;  %v3759_v33 = vrot.slane %v3757_v19, 1  ;;  %v18787_v1 = vld [vmem:[%s25277_s0 + $0x434] ss:$24 sps:$4 sm:$0xff]  }
 0x13d   : > { %2716 = vmatprep.subr.bf16.mxu0 %v18751_v38  ;;  %v18805_v19 = vld [vmem:[%s25277_s0 + $0x87c] ss:$24 sps:$4 sm:$0xff]  }
 0x13e   : > { %v21097_v38 = vsel %vm2468_vm1, %v3756_v34, %v3759_v33  ;;  %v21112_v48 = vor.u32 %v3761_v39, %v3759_v33  ;;  %v4364_v33 = vrot.slane %v20553_v47, 1  ;;  %v18814_v34 = vld [vmem:[%s25277_s0 + $0x8dc] ss:$24 sps:$4 sm:$0xff]   ;;  %v18812_v39 = vld [vmem:[%s25277_s0 + $0x8d8] ss:$24 sps:$4 sm:$0xff]  }
 0x13f   : > { %15292 = vmatmul.mubr.msk.bf16.gmra.mrb[32].mxu0 %vm1070_vm0, %v20653_v20  ;;  %4666 = vmatpush1.bf16.msra.mxu1 %v18767_v9  ;;  %v18785_v9 = vld [vmem:[%s25277_s0 + $0x430] ss:$24 sps:$4 sm:$0xff]  }
 0x140   : > { %2328 = vmatprep.mubr.bf16.mxu0 %v20034_v2  ;;  %2717 = vmatpush1.bf16.msra.mxu0 %v18749_v53  ;;  %v4357_v53 = vrot.slane %v20456_v13, 1  ;;  %v18791_v13 = vld [vmem:[%s25277_s0 + $0x7e8] ss:$24 sps:$4 sm:$0xff]  }
 0x141   : > { %2718 = vmatprep.subr.bf16.mxu0 %v18754_v54  ;;  %4667 = vmatprep.subr.bf16.mxu1 %v18775_v11  ;;  %v4358_v54 = vrot.slane %v20493_v26, 1  ;;  %v18790_v11 = vld [vmem:[%s25277_s0 + $0x464] ss:$24 sps:$4 sm:$0xff]  }
 0x142   : > { %15556 = vmatmul.mubr.msk.bf16.gmra.mrb[8].mxu1 %vm1070_vm0, %v21065_v14 }
 0x143   : > { %4117 = vmatprep.mubr.bf16.mxu1 %v20034_v2  ;;  %4668 = vmatpush1.bf16.msra.mxu1 %v18773_v16  ;;  %v21138_v26 = vsel %vm4356_vm2, %v4357_v53, %v4358_v54  ;;  %v21172_v16 = vsel %vm4356_vm2, %v4358_v54, %v4360_v63  ;;  %v18806_v53 = vld [vmem:[%s25277_s0 + $0x4b0] ss:$24 sps:$4 sm:$0xff]   ;;  %v18817_v54 = vld [vmem:[%s25277_s0 + $0x4e4] ss:$24 sps:$4 sm:$0xff]  }
 0x144   : > { %2719 = vmatpush1.bf16.msra.mxu0 %v18752_v62  ;;  %4669 = vmatprep.subr.bf16.mxu1 %v18778_v17  ;;  %v18782_v62 = vld [vmem:[%s25277_s0 + $0x400] ss:$24 sps:$4 sm:$0xff]  }
 0x145   : > { %2894 = vmatprep.subr.bf16.mxu0 %v18763_v7  ;;  %v18794_v7 = vld [vmem:[%s25277_s0 + $0x818] ss:$24 sps:$4 sm:$0xff]  }
 0x146   : > { %v18788_v17 = vld [vmem:[%s25277_s0 + $0x460] ss:$24 sps:$4 sm:$0xff]  }
 0x147   : > { %15293 = vmatmul.mubr.msk.bf16.gmra.mrb[36].mxu0 %vm1070_vm0, %v20675_v29  ;;  %4670 = vmatpush1.bf16.msra.mxu1 %v18776_v23  ;;  %v4362_v23 = vrot.slane %v20543_v43, 1  ;;  %v18809_v43 = vld [vmem:[%s25277_s0 + $0x8a8] ss:$24 sps:$4 sm:$0xff]  }
 0x148   : > { %2338 = vmatprep.mubr.bf16.mxu0 %v20034_v2  ;;  %5262 = vmatprep.subr.bf16.mxu1 %v18793_v24  ;;  %v18803_v24 = vld [vmem:[%s25277_s0 + $0x878] ss:$24 sps:$4 sm:$0xff]  }
 0x149   : > { %v21200_v30 = vsel %vm4356_vm2, %v4360_v63, %v4362_v23  ;;  %v21219_v47 = vsel %vm4356_vm2, %v4362_v23, %v4364_v33  ;;  %v4965_v23 = vrot.slane %v20390_v57, 1  ;;  %v18850_v57 = vld [vmem:[%s25277_s0 + $0x9fc] ss:$24 sps:$4 sm:$0xff]  }
 0x14a   : > { %15557 = vmatmul.mubr.msk.bf16.gmra.mrb[12].mxu1 %vm1070_vm0, %v21087_v28 }
 0x14b   : > { %4127 = vmatprep.mubr.bf16.mxu1 %v20034_v2 }
 0x14f   : > { %15294 = vmatmul.mubr.msk.bf16.gmra.mrb[40].mxu0 %vm1070_vm0, %v20685_v32 }
 0x150   : > { %2348 = vmatprep.mubr.bf16.mxu0 %v20034_v2 }
 0x152   : > { %15558 = vmatmul.mubr.msk.bf16.gmra.mrb[16].mxu1 %vm1070_vm0, %v21097_v38 }
 0x153   : > { %4137 = vmatprep.mubr.bf16.mxu1 %v20034_v2 }
 0x157   : > { %15295 = vmatmul.mubr.msk.bf16.gmra.mrb[44].mxu0 %vm1070_vm0, %v20702_v40 }
 0x158   : > { %2740 = vmatprep.mubr.bf16.mxu0 %v20034_v2 }
 0x15a   : > { %15559 = vmatmul.mubr.msk.bf16.gmra.mrb[20].mxu1 %vm1070_vm0, %v21112_v48 }
 0x15b   : > { %4691 = vmatprep.mubr.bf16.mxu1 %v20034_v2 }
 0x15f   : > { %15368 = vmatmul.mubr.msk.bf16.vlgmr.msra.gmra.mrb[0].mxu0 %vm1070_vm0, %v20729_v56 }
 0x160   : > { %2895 = vmatpush1.bf16.msra.mxu0 %v18761_v42  ;;  %2750 = vmatprep.mubr.bf16.mxu0 %v20034_v2  ;;  %v18829_v42 = vld [vmem:[%s25277_s0 + $0x90c] ss:$24 sps:$4 sm:$0xff]  }
 0x161   : > { %2896 = vmatprep.subr.bf16.mxu0 %v18772_v45  ;;  %v21228_v45 = vrot.slane %v20569_v52, 1  ;;  %v18808_v52 = vld [vmem:[%s25277_s0 + $0x4b4] ss:$24 sps:$4 sm:$0xff]  }
 0x162   : > { %15644 = vmatmul.mubr.msk.bf16.vlgmr.msra.gmra.mrb[0].mxu1 %vm1070_vm0, %v21138_v26 }
 0x163   : > { %4701 = vmatprep.mubr.bf16.mxu1 %v20034_v2  ;;  %5263 = vmatpush1.bf16.msra.mxu1 %v18791_v13  ;;  %v18820_v13 = vld [vmem:[%s25277_s0 + $0x514] ss:$24 sps:$4 sm:$0xff]  }
 0x164   : > { %2897 = vmatpush1.bf16.msra.mxu0 %v18770_v49  ;;  %5264 = vmatprep.subr.bf16.mxu1 %v18796_v6  ;;  %v21232_v49 = vsel %vm4356_vm2, %v4364_v33, %v21228_v45  ;;  %v18830_v6 = vld [vmem:[%s25277_s0 + $0x938] ss:$24 sps:$4 sm:$0xff]   ;;  %v4967_v33 = vrot.slane %v20412_v0, 1 }
 0x165   : > { %2898 = vmatprep.subr.bf16.mxu0 %v18781_v50  ;;  %v18797_v50 = vld [vmem:[%s25277_s0 + $0x480] ss:$24 sps:$4 sm:$0xff]  }
 0x167   : > { %15369 = vmatmul.mubr.msk.bf16.gmra.mrb[4].mxu0 %vm1070_vm0, %v20760_v8  ;;  %5265 = vmatpush1.bf16.msra.mxu1 %v18794_v7  ;;  %v4963_v7 = vrot.slane %v20356_v46, 1  ;;  %v18824_v46 = vld [vmem:[%s25277_s0 + $0x570] ss:$24 sps:$4 sm:$0xff]  }
 0x168   : > { %2760 = vmatprep.mubr.bf16.mxu0 %v20034_v2  ;;  %2899 = vmatpush1.bf16.msra.mxu0 %v18779_v59  ;;  %v18815_v59 = vld [vmem:[%s25277_s0 + $0x4e0] ss:$24 sps:$4 sm:$0xff]  }
 0x169   : > { %2900 = vmatprep.subr.bf16.mxu0 %v18784_v60  ;;  %5266 = vmatprep.subr.bf16.mxu1 %v18802_v35  ;;  %v4961_v60 = vrot.slane %v20325_v36, 1  ;;  %v18832_v36 = vld [vmem:[%s25277_s0 + $0x93c] ss:$24 sps:$4 sm:$0xff]   ;;  %v18821_v35 = vld [vmem:[%s25277_s0 + $0x540] ss:$24 sps:$4 sm:$0xff]  }
 0x16a   : > { %15645 = vmatmul.mubr.msk.bf16.gmra.mrb[4].mxu1 %vm1070_vm0, %v21172_v16 }
 0x16b   : > { %4711 = vmatprep.mubr.bf16.mxu1 %v20034_v2  ;;  %5267 = vmatpush1.bf16.msra.mxu1 %v18800_v12  ;;  %v21304_v12 = vsel %vm4356_vm2, %v4961_v60, %v4963_v7 }
 0x16c   : > { %2901 = vmatpush1.bf16.msra.mxu0 %v18782_v62  ;;  %5268 = vmatprep.subr.bf16.mxu1 %v18805_v19  ;;  %v18827_v62 = vld [vmem:[%s25277_s0 + $0x908] ss:$24 sps:$4 sm:$0xff]   ;;  %v18839_v19 = vld [vmem:[%s25277_s0 + $0x998] ss:$24 sps:$4 sm:$0xff]  }
 0x16d   : > { %2902 = vmatprep.subr.bf16.mxu0 %v18787_v1  ;;  %v18818_v1 = vld [vmem:[%s25277_s0 + $0x510] ss:$24 sps:$4 sm:$0xff]  }
 0x16f   : > { %15370 = vmatmul.mubr.msk.bf16.gmra.mrb[8].mxu0 %vm1070_vm0, %v20789_v22  ;;  %5269 = vmatpush1.bf16.msra.mxu1 %v18803_v24  ;;  %v18845_v24 = vld [vmem:[%s25277_s0 + $0x9c8] ss:$24 sps:$4 sm:$0xff]  }
 0x170   : > { %2770 = vmatprep.mubr.bf16.mxu0 %v20034_v2  ;;  %2903 = vmatpush1.bf16.msra.mxu0 %v18785_v9  ;;  %v18826_v9 = vld [vmem:[%s25277_s0 + $0x574] ss:$24 sps:$4 sm:$0xff]  }
 0x171   : > { %2904 = vmatprep.subr.bf16.mxu0 %v18790_v11  ;;  %5270 = vmatprep.subr.bf16.mxu1 %v18811_v27  ;;  %v18836_v11 = vld [vmem:[%s25277_s0 + $0x968] ss:$24 sps:$4 sm:$0xff]   ;;  %v21332_v27 = vsel %vm4356_vm2, %v4963_v7, %v4965_v23 }
 0x172   : > { %15646 = vmatmul.mubr.msk.bf16.gmra.mrb[8].mxu1 %vm1070_vm0, %v21200_v30  ;;  %v18866_v7 = vld [vmem:[%s25277_s0 + $0x5d0] ss:$24 sps:$4 sm:$0xff]  }
 0x173   : > { %4721 = vmatprep.mubr.bf16.mxu1 %v20034_v2  ;;  %5271 = vmatpush1.bf16.msra.mxu1 %v18809_v43  ;;  %v18848_v43 = vld [vmem:[%s25277_s0 + $0x9f8] ss:$24 sps:$4 sm:$0xff]  }
 0x174   : > { %2905 = vmatpush1.bf16.msra.mxu0 %v18788_v17  ;;  %5272 = vmatprep.subr.bf16.mxu1 %v18814_v34  ;;  %v18835_v17 = vld [vmem:[%s25277_s0 + $0x494] ss:$24 sps:$4 sm:$0xff]   ;;  %v21356_v34 = vrot.slane %v20425_v5, 1  ;;  %v18844_v5 = vld [vmem:[%s25277_s0 + $0x4c4] ss:$24 sps:$4 sm:$0xff]  }
 0x175   : > { %3335 = vmatprep.subr.bf16.mxu0 %v18799_v18  ;;  %v18841_v18 = vld [vmem:[%s25277_s0 + $0x99c] ss:$24 sps:$4 sm:$0xff]  }
 0x176   : > { %v21361_v0 = vsel %vm4356_vm2, %v4967_v33, %v21356_v34 }
 0x177   : > { %15371 = vmatmul.mubr.msk.bf16.gmra.mrb[12].mxu0 %vm1070_vm0, %v20812_v37  ;;  %5273 = vmatpush1.bf16.msra.mxu1 %v18812_v39  ;;  %v18853_v39 = vld [vmem:[%s25277_s0 + $0x4f4] ss:$24 sps:$4 sm:$0xff]  }
 0x178   : > { %2780 = vmatprep.mubr.bf16.mxu0 %v20034_v2  ;;  %5865 = vmatprep.subr.bf16.mxu1 %v18829_v42  ;;  %v5563_v42 = vrot.slane %v20594_v61, 1  ;;  %v18854_v61 = vld [vmem:[%s25277_s0 + $0x520] ss:$24 sps:$4 sm:$0xff]  }
 0x17a   : > { %15647 = vmatmul.mubr.msk.bf16.gmra.mrb[12].mxu1 %vm1070_vm0, %v21219_v47 }
 0x17b   : > { %4731 = vmatprep.mubr.bf16.mxu1 %v20034_v2 }
 0x17f   : > { %15372 = vmatmul.mubr.msk.bf16.gmra.mrb[16].mxu0 %vm1070_vm0, %v20823_v44 }
 0x180   : > { %2790 = vmatprep.mubr.bf16.mxu0 %v20034_v2 }
 0x182   : > { %15648 = vmatmul.mubr.msk.bf16.gmra.mrb[16].mxu1 %vm1070_vm0, %v21232_v49 }
 0x183   : > { %4741 = vmatprep.mubr.bf16.mxu1 %v20034_v2 }
 0x187   : > { %15373 = vmatmul.mubr.msk.bf16.gmra.mrb[20].mxu0 %vm1070_vm0, %v20839_v51 }
 0x188   : > { %2926 = vmatprep.mubr.bf16.mxu0 %v20034_v2 }
 0x18a   : > { %15649 = vmatmul.mubr.msk.bf16.gmra.mrb[20].mxu1 %vm1070_vm0, %v21228_v45 }
 0x18b   : > { %5294 = vmatprep.mubr.bf16.mxu1 %v20034_v2 }
 0x18f   : > { %15380 = vmatmul.mubr.msk.bf16.vlgmr.msra.gmra.mrb[24].mxu0 %vm1070_vm0, %v20729_v56  ;;  %v4960_v56 = vrot.slane %v20294_v25, 1  ;;  %v18823_v25 = vld [vmem:[%s25277_s0 + $0x544] ss:$24 sps:$4 sm:$0xff]  }
 0x190   : > { %3336 = vmatpush1.bf16.msra.mxu0 %v18797_v50  ;;  %2936 = vmatprep.mubr.bf16.mxu0 %v20034_v2  ;;  %v18851_v50 = vld [vmem:[%s25277_s0 + $0x4f0] ss:$24 sps:$4 sm:$0xff]  }
 0x191   : > { %3337 = vmatprep.subr.bf16.mxu0 %v18808_v52  ;;  %v21270_v63 = vsel %vm4356_vm2, %v4960_v56, %v4961_v60  ;;  %v5564_v52 = vrot.slane %v20625_v10, 1  ;;  %v18859_v10 = vld [vmem:[%s25277_s0 + $0x554] ss:$24 sps:$4 sm:$0xff]   ;;  %v18857_v56 = vld [vmem:[%s25277_s0 + $0x550] ss:$24 sps:$4 sm:$0xff]  }
 0x192   : > { %15734 = vmatmul.mubr.msk.bf16.vlgmr.msra.gmra.mrb[0].mxu1 %vm1070_vm0, %v21270_v63  ;;  %v18862_v60 = vld [vmem:[%s25277_s0 + $0x584] ss:$24 sps:$4 sm:$0xff]  }
 0x193   : > { %5304 = vmatprep.mubr.bf16.mxu1 %v20034_v2  ;;  %5866 = vmatpush1.bf16.msra.mxu1 %v18827_v62  ;;  %v18865_v62 = vld [vmem:[%s25277_s0 + $0x5a4] ss:$24 sps:$4 sm:$0xff]  }
 0x194   : > { %3338 = vmatpush1.bf16.msra.mxu0 %v18806_v53  ;;  %5867 = vmatprep.subr.bf16.mxu1 %v18832_v36  ;;  %v18856_v53 = vld [vmem:[%s25277_s0 + $0x524] ss:$24 sps:$4 sm:$0xff]   ;;  %v5570_v36 = vrot.slane %v20685_v32, 1  ;;  %v18863_v32 = vld [vmem:[%s25277_s0 + $0x5a0] ss:$24 sps:$4 sm:$0xff]  }
 0x195   : > { %3339 = vmatprep.subr.bf16.mxu0 %v18817_v54  ;;  %v21396_v54 = vsel %vm4356_vm2, %v5563_v42, %v5564_v52  ;;  %v18902_v42 = vld [vmem:[%s25277_s0 + $0x6f0] ss:$24 sps:$4 sm:$0xff]  }
 0x197   : > { %15381 = vmatmul.mubr.msk.bf16.gmra.mrb[28].mxu0 %vm1070_vm0, %v20760_v8  ;;  %v18838_v8 = vld [vmem:[%s25277_s0 + $0x96c] ss:$24 sps:$4 sm:$0xff]   ;;  %5868 = vmatpush1.bf16.msra.mxu1 %v18830_v6 }
 0x198   : > { %2946 = vmatprep.mubr.bf16.mxu0 %v20034_v2  ;;  %3340 = vmatpush1.bf16.msra.mxu0 %v18815_v59  ;;  %v5566_v59 = vrot.slane %v20653_v20, 1  ;;  %v18860_v20 = vld [vmem:[%s25277_s0 + $0x580] ss:$24 sps:$4 sm:$0xff]  }
 0x199   : > { %3341 = vmatprep.subr.bf16.mxu0 %v18820_v13  ;;  %5869 = vmatprep.subr.bf16.mxu1 %v18838_v8 }
 0x19a   : > { %15735 = vmatmul.mubr.msk.bf16.gmra.mrb[4].mxu1 %vm1070_vm0, %v21304_v12  ;;  %v21418_v13 = vsel %vm4356_vm2, %v5564_v52, %v5566_v59  ;;  %v18905_v52 = vld [vmem:[%s25277_s0 + $0x720] ss:$24 sps:$4 sm:$0xff]  }
 0x19b   : > { %5314 = vmatprep.mubr.bf16.mxu1 %v20034_v2  ;;  %5870 = vmatpush1.bf16.msra.mxu1 %v18836_v11  ;;  %v18872_v11 = vld [vmem:[%s25277_s0 + $0x630] ss:$24 sps:$4 sm:$0xff]  }
 0x19c   : > { %3342 = vmatpush1.bf16.msra.mxu0 %v18818_v1  ;;  %5871 = vmatprep.subr.bf16.mxu1 %v18841_v18  ;;  %v5568_v1 = vrot.slane %v20675_v29, 1  ;;  %v21453_v29 = vrot.slane %v20702_v40, 1  ;;  %v18868_v40 = vld [vmem:[%s25277_s0 + $0x5d4] ss:$24 sps:$4 sm:$0xff]   ;;  %v18878_v18 = vld [vmem:[%s25277_s0 + $0x690] ss:$24 sps:$4 sm:$0xff]  }
 0x19d   : > { %3343 = vmatprep.subr.bf16.mxu0 %v18823_v25 }
 0x19e   : > { %v21434_v25 = vsel %vm4356_vm2, %v5566_v59, %v5568_v1  ;;  %v21444_v6 = vsel %vm4356_vm2, %v5568_v1, %v5570_v36  ;;  %v21457_v8 = vsel %vm4356_vm2, %v5570_v36, %v21453_v29  ;;  %v18914_v59 = vld [vmem:[%s25277_s0 + $0x7b0] ss:$24 sps:$4 sm:$0xff]   ;;  %v18931_v1 = vld [vmem:[%s25277_s0 + $0x794] ss:$24 sps:$4 sm:$0xff]  }
 0x19f   : > { %15382 = vmatmul.mubr.msk.bf16.gmra.mrb[32].mxu0 %vm1070_vm0, %v20789_v22  ;;  %v18847_v22 = vld [vmem:[%s25277_s0 + $0x9cc] ss:$24 sps:$4 sm:$0xff]   ;;  %5872 = vmatpush1.bf16.msra.mxu1 %v18839_v19  ;;  %v18929_v36 = vld [vmem:[%s25277_s0 + $0x790] ss:$24 sps:$4 sm:$0xff]  }
 0x1a0   : > { %2956 = vmatprep.mubr.bf16.mxu0 %v20034_v2  ;;  %3344 = vmatpush1.bf16.msra.mxu0 %v18821_v35  ;;  %v18871_v35 = vld [vmem:[%s25277_s0 + $0x604] ss:$24 sps:$4 sm:$0xff]   ;;  %v18883_v19 = vld [vmem:[%s25277_s0 + $0x5b4] ss:$24 sps:$4 sm:$0xff]  }
 0x1a1   : > { %3345 = vmatprep.subr.bf16.mxu0 %v18826_v9  ;;  %5873 = vmatprep.subr.bf16.mxu1 %v18847_v22  ;;  %v18869_v9 = vld [vmem:[%s25277_s0 + $0x600] ss:$24 sps:$4 sm:$0xff]   ;;  %v18887_v22 = vld [vmem:[%s25277_s0 + $0x610] ss:$24 sps:$4 sm:$0xff]  }
 0x1a2   : > { %15736 = vmatmul.mubr.msk.bf16.gmra.mrb[8].mxu1 %vm1070_vm0, %v21332_v27 }
 0x1a3   : > { %5324 = vmatprep.mubr.bf16.mxu1 %v20034_v2  ;;  %5874 = vmatpush1.bf16.msra.mxu1 %v18845_v24  ;;  %v18890_v24 = vld [vmem:[%s25277_s0 + $0x640] ss:$24 sps:$4 sm:$0xff]  }
 0x1a4   : > { %3346 = vmatpush1.bf16.msra.mxu0 %v18824_v46  ;;  %5875 = vmatprep.subr.bf16.mxu1 %v18850_v57  ;;  %v18877_v46 = vld [vmem:[%s25277_s0 + $0x664] ss:$24 sps:$4 sm:$0xff]   ;;  %v18895_v57 = vld [vmem:[%s25277_s0 + $0x674] ss:$24 sps:$4 sm:$0xff]  }
 0x1a5   : > { %3521 = vmatprep.subr.bf16.mxu0 %v18835_v17  ;;  %v18875_v17 = vld [vmem:[%s25277_s0 + $0x660] ss:$24 sps:$4 sm:$0xff]  }
 0x1a7   : > { %15383 = vmatmul.mubr.msk.bf16.gmra.mrb[36].mxu0 %vm1070_vm0, %v20812_v37  ;;  %v21348_v37 = vsel %vm4356_vm2, %v4965_v23, %v4967_v33  ;;  %5876 = vmatpush1.bf16.msra.mxu1 %v18848_v43  ;;  %v18892_v23 = vld [vmem:[%s25277_s0 + $0x644] ss:$24 sps:$4 sm:$0xff]   ;;  %v18893_v43 = vld [vmem:[%s25277_s0 + $0x670] ss:$24 sps:$4 sm:$0xff]  }
 0x1a8   : > { %2966 = vmatprep.mubr.bf16.mxu0 %v20034_v2  ;;  %v18898_v33 = vld [vmem:[%s25277_s0 + $0x6a4] ss:$24 sps:$4 sm:$0xff]  }
 0x1aa   : > { %15737 = vmatmul.mubr.msk.bf16.gmra.mrb[12].mxu1 %vm1070_vm0, %v21348_v37 }
 0x1ab   : > { %5334 = vmatprep.mubr.bf16.mxu1 %v20034_v2 }
 0x1af   : > { %15384 = vmatmul.mubr.msk.bf16.gmra.mrb[40].mxu0 %vm1070_vm0, %v20823_v44  ;;  %v18833_v44 = vld [vmem:[%s25277_s0 + $0x490] ss:$24 sps:$4 sm:$0xff]  }
 0x1b0   : > { %2976 = vmatprep.mubr.bf16.mxu0 %v20034_v2 }
 0x1b2   : > { %15738 = vmatmul.mubr.msk.bf16.gmra.mrb[16].mxu1 %vm1070_vm0, %v21361_v0 }
 0x1b3   : > { %5344 = vmatprep.mubr.bf16.mxu1 %v20034_v2 }
 0x1b7   : > { %15385 = vmatmul.mubr.msk.bf16.gmra.mrb[44].mxu0 %vm1070_vm0, %v20839_v51  ;;  %v18842_v51 = vld [vmem:[%s25277_s0 + $0x4c0] ss:$24 sps:$4 sm:$0xff]  }
 0x1b8   : > { %3367 = vmatprep.mubr.bf16.mxu0 %v20034_v2 }
 0x1ba   : > { %15739 = vmatmul.mubr.msk.bf16.gmra.mrb[20].mxu1 %vm1070_vm0, %v21356_v34 }
 0x1bb   : > { %5897 = vmatprep.mubr.bf16.mxu1 %v20034_v2 }
 0x1bf   : > { %15458 = vmatmul.mubr.msk.bf16.vlgmr.msra.gmra.mrb[0].mxu0 %vm1070_vm0, %v20865_v4 }
 0x1c0   : > { %3522 = vmatpush1.bf16.msra.mxu0 %v18833_v44  ;;  %3377 = vmatprep.mubr.bf16.mxu0 %v20034_v2  ;;  %v18896_v44 = vld [vmem:[%s25277_s0 + $0x6a0] ss:$24 sps:$4 sm:$0xff]  }
 0x1c1   : > { %3523 = vmatprep.subr.bf16.mxu0 %v18844_v5  ;;  %v18901_v5 = vld [vmem:[%s25277_s0 + $0x6c4] ss:$24 sps:$4 sm:$0xff]  }
 0x1c2   : > { %15824 = vmatmul.mubr.msk.bf16.vlgmr.msra.gmra.mrb[0].mxu1 %vm1070_vm0, %v21396_v54 }
 0x1c3   : > { %5907 = vmatprep.mubr.bf16.mxu1 %v20034_v2 }
 0x1c4   : > { %3524 = vmatpush1.bf16.msra.mxu0 %v18842_v51  ;;  %v18899_v51 = vld [vmem:[%s25277_s0 + $0x6c0] ss:$24 sps:$4 sm:$0xff]  }
 0x1c5   : > { %3525 = vmatprep.subr.bf16.mxu0 %v18853_v39  ;;  %v18904_v39 = vld [vmem:[%s25277_s0 + $0x6f4] ss:$24 sps:$4 sm:$0xff]  }
 0x1c7   : > { %15459 = vmatmul.mubr.msk.bf16.gmra.mrb[4].mxu0 %vm1070_vm0, %v20897_v21 }
 0x1c8   : > { %3387 = vmatprep.mubr.bf16.mxu0 %v20034_v2  ;;  %3526 = vmatpush1.bf16.msra.mxu0 %v18851_v50  ;;  %v18907_v50 = vld [vmem:[%s25277_s0 + $0x724] ss:$24 sps:$4 sm:$0xff]  }
 0x1c9   : > { %3527 = vmatprep.subr.bf16.mxu0 %v18856_v53  ;;  %v18908_v53 = vld [vmem:[%s25277_s0 + $0x750] ss:$24 sps:$4 sm:$0xff]  }
 0x1ca   : > { %15825 = vmatmul.mubr.msk.bf16.gmra.mrb[4].mxu1 %vm1070_vm0, %v21418_v13 }
 0x1cb   : > { %5917 = vmatprep.mubr.bf16.mxu1 %v20034_v2 }
 0x1cc   : > { %3528 = vmatpush1.bf16.msra.mxu0 %v18854_v61  ;;  %v18913_v61 = vld [vmem:[%s25277_s0 + $0x784] ss:$24 sps:$4 sm:$0xff]  }
 0x1cd   : > { %3529 = vmatprep.subr.bf16.mxu0 %v18859_v10  ;;  %v18911_v10 = vld [vmem:[%s25277_s0 + $0x780] ss:$24 sps:$4 sm:$0xff]  }
 0x1cf   : > { %15460 = vmatmul.mubr.msk.bf16.gmra.mrb[8].mxu0 %vm1070_vm0, %v20926_v41 }
 0x1d0   : > { %3397 = vmatprep.mubr.bf16.mxu0 %v20034_v2  ;;  %3530 = vmatpush1.bf16.msra.mxu0 %v18857_v56  ;;  %v18919_v56 = vld [vmem:[%s25277_s0 + $0x6d4] ss:$24 sps:$4 sm:$0xff]  }
 0x1d1   : > { %3531 = vmatprep.subr.bf16.mxu0 %v18862_v60  ;;  %v18923_v60 = vld [vmem:[%s25277_s0 + $0x730] ss:$24 sps:$4 sm:$0xff]  }
 0x1d2   : > { %15826 = vmatmul.mubr.msk.bf16.gmra.mrb[8].mxu1 %vm1070_vm0, %v21434_v25 }
 0x1d3   : > { %5927 = vmatprep.mubr.bf16.mxu1 %v20034_v2 }
 0x1d4   : > { %3532 = vmatpush1.bf16.msra.mxu0 %v18860_v20  ;;  %v18928_v20 = vld [vmem:[%s25277_s0 + $0x764] ss:$24 sps:$4 sm:$0xff]  }
 0x1d5   : > { %3962 = vmatprep.subr.bf16.mxu0 %v18865_v62  ;;  %v18926_v62 = vld [vmem:[%s25277_s0 + $0x760] ss:$24 sps:$4 sm:$0xff]  }
 0x1d7   : > { %15461 = vmatmul.mubr.msk.bf16.gmra.mrb[12].mxu0 %vm1070_vm0, %v20949_v58 }
 0x1d8   : > { %3407 = vmatprep.mubr.bf16.mxu0 %v20034_v2 }
 0x1da   : > { %15827 = vmatmul.mubr.msk.bf16.gmra.mrb[12].mxu1 %vm1070_vm0, %v21444_v6 }
 0x1db   : > { %5937 = vmatprep.mubr.bf16.mxu1 %v20034_v2 }
 0x1df   : > { %15462 = vmatmul.mubr.msk.bf16.gmra.mrb[16].mxu0 %vm1070_vm0, %v20961_v3 }
 0x1e0   : > { %3417 = vmatprep.mubr.bf16.mxu0 %v20034_v2 }
 0x1e2   : > { %15828 = vmatmul.mubr.msk.bf16.gmra.mrb[16].mxu1 %vm1070_vm0, %v21457_v8 }
 0x1e3   : > { %5947 = vmatprep.mubr.bf16.mxu1 %v20034_v2 }
 0x1e7   : > { %15463 = vmatmul.mubr.msk.bf16.gmra.mrb[20].mxu0 %vm1070_vm0, %v20978_v15 }
 0x1e8   : > { %3553 = vmatprep.mubr.bf16.mxu0 %v20034_v2 }
 0x1ea   : > { %15829 = vmatmul.mubr.msk.bf16.gmra.mrb[20].mxu1 %vm1070_vm0, %v21453_v29 }
 0x1eb   : > { %6417 = vmatprep.mubr.bf16.mxu1 %v20034_v2 }
 0x1ef   : > { %15470 = vmatmul.mubr.msk.bf16.vlgmr.msra.gmra.mrb[24].mxu0 %vm1070_vm0, %v20865_v4  ;;  %v18874_v4 = vld [vmem:[%s25277_s0 + $0x634] ss:$24 sps:$4 sm:$0xff]  }
 0x1f0   : > { %3963 = vmatpush1.bf16.msra.mxu0 %v18863_v32  ;;  %3563 = vmatprep.mubr.bf16.mxu0 %v20034_v2  ;;  %v6125_v32 = vlaneseq }
 0x1f1   : > { %3964 = vmatprep.subr.bf16.mxu0 %v18868_v40  ;;  %v18934_v40 = vld [vmem:[%s25277_s0 + $0x7c4] ss:$24 sps:$4 sm:$0xff]  }
 0x1f4   : > { %3965 = vmatpush1.bf16.msra.mxu0 %v18866_v7  ;;  %v18932_v7 = vld [vmem:[%s25277_s0 + $0x7c0] ss:$24 sps:$4 sm:$0xff]  }
 0x1f5   : > { %3966 = vmatprep.subr.bf16.mxu0 %v18871_v35  ;;  %v21672_v35 = vshrl.u32 %v6125_v32, 7 }
 0x1f7   : > { %15471 = vmatmul.mubr.msk.bf16.gmra.mrb[28].mxu0 %vm1070_vm0, %v20897_v21  ;;  %v18880_v21 = vld [vmem:[%s25277_s0 + $0x694] ss:$24 sps:$4 sm:$0xff]  }
 0x1f8   : > { %3573 = vmatprep.mubr.bf16.mxu0 %v20034_v2  ;;  %3967 = vmatpush1.bf16.msra.mxu0 %v18869_v9  ;;  %v18937_v9 = vld [vmem:[%s25277_s0 + $0x7e4] ss:$24 sps:$4 sm:$0xff]  }
 0x1f9   : > { %3968 = vmatprep.subr.bf16.mxu0 %v18874_v4  ;;  %v6135_v4 = vsub.s32 2, %v21672_v35 }
 0x1fc   : > { %3969 = vmatpush1.bf16.msra.mxu0 %v18872_v11  ;;  %v21681_v11 = vld [vmem:[%s25279_s5] sm:$0x3f] }
 0x1fd   : > { %3970 = vmatprep.subr.bf16.mxu0 %v18877_v46  ;;  %v6139_v46 = vsub.s32 3, %v21672_v35 }
 0x1ff   : > { %15472 = vmatmul.mubr.msk.bf16.gmra.mrb[32].mxu0 %vm1070_vm0, %v20926_v41  ;;  %v18881_v41 = vld [vmem:[%s25277_s0 + $0x5b0] ss:$24 sps:$4 sm:$0xff]  }
 0x200   : > { %3583 = vmatprep.mubr.bf16.mxu0 %v20034_v2  ;;  %3971 = vmatpush1.bf16.msra.mxu0 %v18875_v17  ;;  %v21690_v17 = vrot.slane %v21681_v11, %v6135_v4 }
 0x201   : > { %3972 = vmatprep.subr.bf16.mxu0 %v18880_v21  ;;  %v21693_v21 = vrot.slane %v21681_v11, %v6139_v46 }
 0x204   : > { %3973 = vmatpush1.bf16.msra.mxu0 %v18878_v18 }
 0x205   : > { %4148 = vmatprep.subr.bf16.mxu0 %v18883_v19 }
 0x207   : > { %15473 = vmatmul.mubr.msk.bf16.gmra.mrb[36].mxu0 %vm1070_vm0, %v20949_v58  ;;  %v18886_v58 = vld [vmem:[%s25277_s0 + $0x5e4] ss:$24 sps:$4 sm:$0xff]  }
 0x208   : > { %3593 = vmatprep.mubr.bf16.mxu0 %v20034_v2 }
 0x20f   : > { %15474 = vmatmul.mubr.msk.bf16.gmra.mrb[40].mxu0 %vm1070_vm0, %v20961_v3  ;;  %v18884_v3 = vld [vmem:[%s25277_s0 + $0x5e0] ss:$24 sps:$4 sm:$0xff]  }
 0x210   : > { %3603 = vmatprep.mubr.bf16.mxu0 %v20034_v2 }
 0x217   : > { %15475 = vmatmul.mubr.msk.bf16.gmra.mrb[44].mxu0 %vm1070_vm0, %v20978_v15  ;;  %v18889_v15 = vld [vmem:[%s25277_s0 + $0x614] ss:$24 sps:$4 sm:$0xff]  }
 0x218   : > { %3994 = vmatprep.mubr.bf16.mxu0 %v20034_v2 }
 0x21f   : > { %15548 = vmatmul.mubr.msk.bf16.vlgmr.msra.gmra.mrb[0].mxu0 %vm1070_vm0, %v21004_v31 }
 0x220   : > { %4149 = vmatpush1.bf16.msra.mxu0 %v18881_v41  ;;  %4004 = vmatprep.mubr.bf16.mxu0 %v20034_v2 }
 0x221   : > { %4150 = vmatprep.subr.bf16.mxu0 %v18886_v58 }
 0x224   : > { %4151 = vmatpush1.bf16.msra.mxu0 %v18884_v3 }
 0x225   : > { %4152 = vmatprep.subr.bf16.mxu0 %v18889_v15 }
 0x227   : > { %15549 = vmatmul.mubr.msk.bf16.gmra.mrb[4].mxu0 %vm1070_vm0, %v21036_v55 }
 0x228   : > { %4014 = vmatprep.mubr.bf16.mxu0 %v20034_v2  ;;  %4153 = vmatpush1.bf16.msra.mxu0 %v18887_v22 }
 0x229   : > { %4154 = vmatprep.subr.bf16.mxu0 %v18892_v23 }
 0x22c   : > { %4155 = vmatpush1.bf16.msra.mxu0 %v18890_v24 }
 0x22d   : > { %4156 = vmatprep.subr.bf16.mxu0 %v18895_v57 }
 0x22f   : > { %15550 = vmatmul.mubr.msk.bf16.gmra.mrb[8].mxu0 %vm1070_vm0, %v21065_v14 }
 0x230   : > { %4024 = vmatprep.mubr.bf16.mxu0 %v20034_v2  ;;  %4157 = vmatpush1.bf16.msra.mxu0 %v18893_v43 }
 0x231   : > { %4158 = vmatprep.subr.bf16.mxu0 %v18898_v33 }
 0x234   : > { %4159 = vmatpush1.bf16.msra.mxu0 %v18896_v44 }
 0x235   : > { %4566 = vmatprep.subr.bf16.mxu0 %v18901_v5 }
 0x237   : > { %15551 = vmatmul.mubr.msk.bf16.gmra.mrb[12].mxu0 %vm1070_vm0, %v21087_v28 }
 0x238   : > { %4034 = vmatprep.mubr.bf16.mxu0 %v20034_v2 }
 0x23f   : > { %15552 = vmatmul.mubr.msk.bf16.gmra.mrb[16].mxu0 %vm1070_vm0, %v21097_v38 }
 0x240   : > { %4044 = vmatprep.mubr.bf16.mxu0 %v20034_v2 }
 0x247   : > { %15553 = vmatmul.mubr.msk.bf16.gmra.mrb[20].mxu0 %vm1070_vm0, %v21112_v48 }
 0x248   : > { %4180 = vmatprep.mubr.bf16.mxu0 %v20034_v2 }
 0x24f   : > { %15560 = vmatmul.mubr.msk.bf16.vlgmr.msra.gmra.mrb[24].mxu0 %vm1070_vm0, %v21004_v31  ;;  %v18910_v31 = vld [vmem:[%s25277_s0 + $0x754] ss:$24 sps:$4 sm:$0xff]  }
 0x250   : > { %4567 = vmatpush1.bf16.msra.mxu0 %v18899_v51  ;;  %4190 = vmatprep.mubr.bf16.mxu0 %v20034_v2 }
 0x251   : > { %4568 = vmatprep.subr.bf16.mxu0 %v18904_v39 }
 0x254   : > { %4569 = vmatpush1.bf16.msra.mxu0 %v18902_v42 }
 0x255   : > { %4570 = vmatprep.subr.bf16.mxu0 %v18907_v50 }
 0x257   : > { %15561 = vmatmul.mubr.msk.bf16.gmra.mrb[28].mxu0 %vm1070_vm0, %v21036_v55  ;;  %v18916_v55 = vld [vmem:[%s25277_s0 + $0x7b4] ss:$24 sps:$4 sm:$0xff]  }
 0x258   : > { %4200 = vmatprep.mubr.bf16.mxu0 %v20034_v2  ;;  %4571 = vmatpush1.bf16.msra.mxu0 %v18905_v52 }
 0x259   : > { %4572 = vmatprep.subr.bf16.mxu0 %v18910_v31 }
 0x25c   : > { %4573 = vmatpush1.bf16.msra.mxu0 %v18908_v53 }
 0x25d   : > { %4574 = vmatprep.subr.bf16.mxu0 %v18913_v61 }
 0x25f   : > { %15562 = vmatmul.mubr.msk.bf16.gmra.mrb[32].mxu0 %vm1070_vm0, %v21065_v14  ;;  %v18917_v14 = vld [vmem:[%s25277_s0 + $0x6d0] ss:$24 sps:$4 sm:$0xff]  }
 0x260   : > { %4210 = vmatprep.mubr.bf16.mxu0 %v20034_v2  ;;  %4575 = vmatpush1.bf16.msra.mxu0 %v18911_v10 }
 0x261   : > { %4576 = vmatprep.subr.bf16.mxu0 %v18916_v55 }
 0x264   : > { %4577 = vmatpush1.bf16.msra.mxu0 %v18914_v59 }
 0x265   : > { %4752 = vmatprep.subr.bf16.mxu0 %v18919_v56 }
 0x267   : > { %15563 = vmatmul.mubr.msk.bf16.gmra.mrb[36].mxu0 %vm1070_vm0, %v21087_v28  ;;  %v18922_v28 = vld [vmem:[%s25277_s0 + $0x704] ss:$24 sps:$4 sm:$0xff]  }
 0x268   : > { %4220 = vmatprep.mubr.bf16.mxu0 %v20034_v2 }
 0x26f   : > { %15564 = vmatmul.mubr.msk.bf16.gmra.mrb[40].mxu0 %vm1070_vm0, %v21097_v38  ;;  %v18920_v38 = vld [vmem:[%s25277_s0 + $0x700] ss:$24 sps:$4 sm:$0xff]  }
 0x270   : > { %4230 = vmatprep.mubr.bf16.mxu0 %v20034_v2 }
 0x277   : > { %15565 = vmatmul.mubr.msk.bf16.gmra.mrb[44].mxu0 %vm1070_vm0, %v21112_v48  ;;  %v18925_v48 = vld [vmem:[%s25277_s0 + $0x734] ss:$24 sps:$4 sm:$0xff]  }
 0x278   : > { %4598 = vmatprep.mubr.bf16.mxu0 %v20034_v2 }
 0x27f   : > { %15638 = vmatmul.mubr.msk.bf16.vlgmr.msra.gmra.mrb[0].mxu0 %vm1070_vm0, %v21138_v26 }
 0x280   : > { %4753 = vmatpush1.bf16.msra.mxu0 %v18917_v14  ;;  %4608 = vmatprep.mubr.bf16.mxu0 %v20034_v2 }
 0x281   : > { %4754 = vmatprep.subr.bf16.mxu0 %v18922_v28 }
 0x284   : > { %4755 = vmatpush1.bf16.msra.mxu0 %v18920_v38  ;;  %v18935_v38 = vld [vmem:[%s25277_s0 + $0x7e0] ss:$24 sps:$4 sm:$0xff]  }
 0x285   : > { %4756 = vmatprep.subr.bf16.mxu0 %v18925_v48 }
 0x287   : > { %15639 = vmatmul.mubr.msk.bf16.gmra.mrb[4].mxu0 %vm1070_vm0, %v21172_v16 }
 0x288   : > { %4618 = vmatprep.mubr.bf16.mxu0 %v20034_v2  ;;  %4757 = vmatpush1.bf16.msra.mxu0 %v18923_v60 }
 0x289   : > { %4758 = vmatprep.subr.bf16.mxu0 %v18928_v20 }
 0x28c   : > { %4759 = vmatpush1.bf16.msra.mxu0 %v18926_v62  ;;  %v18940_v62 = vld [vmem:[%s25277_s0 + $0x814] ss:$24 sps:$4 sm:$0xff]  }
 0x28d   : > { %4760 = vmatprep.subr.bf16.mxu0 %v18931_v1 }
 0x28f   : > { %15640 = vmatmul.mubr.msk.bf16.gmra.mrb[8].mxu0 %vm1070_vm0, %v21200_v30 }
 0x290   : > { %4628 = vmatprep.mubr.bf16.mxu0 %v20034_v2  ;;  %4761 = vmatpush1.bf16.msra.mxu0 %v18929_v36 }
 0x291   : > { %4762 = vmatprep.subr.bf16.mxu0 %v18934_v40 }
 0x294   : > { %4763 = vmatpush1.bf16.msra.mxu0 %v18932_v7 }
 0x295   : > { %5169 = vmatprep.subr.bf16.mxu0 %v18937_v9  ;;  %v5899_v18 = vpop.f32.mrb[0].mxu1 }
 0x296   : > { %v6157_v19 = vadd.f32 %v21690_v17, %v5899_v18  ;;  %v5901_v41 = vpop.f32.mrb[1].mxu1  ;;  %v18938_v18 = vld [vmem:[%s25277_s0 + $0x810] ss:$24 sps:$4 sm:$0xff]  }
 0x297   : > { %15641 = vmatmul.mubr.msk.bf16.gmra.mrb[12].mxu0 %vm1070_vm0, %v21219_v47  ;;  %v6158_v58 = vadd.f32 %v21693_v21, %v5901_v41  ;;  %v5903_v3 = vpop.f32.mrb[2].mxu1 }
 0x298   : > { %4638 = vmatprep.mubr.bf16.mxu0 %v20034_v2  ;;  %v6229_v15 = vmax.f32 %v6157_v19, 0.0  ;;  %v6163_v22 = vadd.f32 %v21690_v17, %v5903_v3  ;;  %v5905_v23 = vpop.f32.mrb[3].mxu1 }
 0x299   : > { %v6230_v24 = vmax.f32 %v6158_v58, 0.0  ;;  %v6164_v57 = vadd.f32 %v21693_v21, %v5905_v23 }
 0x29a   : > { %v6235_v43 = vmax.f32 %v6163_v22, 0.0  ;;  %v18941_v22 = vld [vmem:[%s25277_s0 + $0x840] ss:$24 sps:$4 sm:$0xff]  }
 0x29b   : > { %v6236_v33 = vmax.f32 %v6164_v57, 0.0  ;;  %v18946_v57 = vld [vmem:[%s25277_s0 + $0x874] ss:$24 sps:$4 sm:$0xff]  }
 0x29c   : > { %v21702_v44 = vpack.c.bf16 %v6235_v43, %v6229_v15 }
 0x29d   : > { %v21704_v5 = vpack.c.bf16 %v6236_v33, %v6230_v24  ;;  %v5909_v51 = vpop.f32.mrb[4].mxu1 }
 0x29e   : > { %v6169_v39 = vadd.f32 %v21690_v17, %v5909_v51  ;;  %v5911_v42 = vpop.f32.mrb[5].mxu1 }
 0x29f   : > { %15642 = vmatmul.mubr.msk.bf16.gmra.mrb[16].mxu0 %vm1070_vm0, %v21232_v49  ;;  %v6170_v50 = vadd.f32 %v21693_v21, %v5911_v42  ;;  %v5913_v52 = vpop.f32.mrb[6].mxu1 }
 0x2a0   : > { %4648 = vmatprep.mubr.bf16.mxu0 %v20034_v2  ;;  %v6241_v31 = vmax.f32 %v6169_v39, 0.0  ;;  %v6175_v53 = vadd.f32 %v21690_v17, %v5913_v52  ;;  %v5915_v61 = vpop.f32.mrb[7].mxu1 }
 0x2a1   : > { %v6242_v10 = vmax.f32 %v6170_v50, 0.0  ;;  %v6176_v55 = vadd.f32 %v21693_v21, %v5915_v61 }
 0x2a2   : > { %v6247_v59 = vmax.f32 %v6175_v53, 0.0 }
 0x2a3   : > { %v6248_v56 = vmax.f32 %v6176_v55, 0.0 }
 0x2a4   : > { %v21713_v14 = vpack.c.bf16 %v6247_v59, %v6241_v31  ;;  %v18944_v31 = vld [vmem:[%s25277_s0 + $0x870] ss:$24 sps:$4 sm:$0xff]  }
 0x2a5   : > { %v21715_v28 = vpack.c.bf16 %v6248_v56, %v6242_v10  ;;  %v5919_v48 = vpop.f32.mrb[8].mxu1  ;;  %v18947_v56 = vld [vmem:[%s25277_s0 + $0x8a0] ss:$24 sps:$4 sm:$0xff]  }
 0x2a6   : > { %v6181_v60 = vadd.f32 %v21690_v17, %v5919_v48  ;;  %v5921_v20 = vpop.f32.mrb[9].mxu1 }
 0x2a7   : > { %15643 = vmatmul.mubr.msk.bf16.gmra.mrb[20].mxu0 %vm1070_vm0, %v21228_v45  ;;  %v6182_v1 = vadd.f32 %v21693_v21, %v5921_v20  ;;  %v5923_v36 = vpop.f32.mrb[10].mxu1 }
 0x2a8   : > { %4784 = vmatprep.mubr.bf16.mxu0 %v20034_v2  ;;  %v6253_v32 = vmax.f32 %v6181_v60, 0.0  ;;  %v6187_v40 = vadd.f32 %v21690_v17, %v5923_v36  ;;  %v5925_v7 = vpop.f32.mrb[11].mxu1  ;;  %v18952_v60 = vld [vmem:[%s25277_s0 + $0x8d4] ss:$24 sps:$4 sm:$0xff]  }
 0x2a9   : > { %v6254_v9 = vmax.f32 %v6182_v1, 0.0  ;;  %v6188_v46 = vadd.f32 %v21693_v21, %v5925_v7 }
 0x2aa   : > { %v6259_v19 = vmax.f32 %v6187_v40, 0.0 }
 0x2ab   : > { %v6260_v41 = vmax.f32 %v6188_v46, 0.0 }
 0x2ac   : > { %v21736_v58 = vpack.c.bf16 %v6259_v19, %v6253_v32 }
 0x2ad   : > { %v21738_v3 = vpack.c.bf16 %v6260_v41, %v6254_v9  ;;  %v5929_v15 = vpop.f32.mrb[12].mxu1  ;;  %v18950_v9 = vld [vmem:[%s25277_s0 + $0x8d0] ss:$24 sps:$4 sm:$0xff]  }
 0x2ae   : > { %v6193_v23 = vadd.f32 %v21690_v17, %v5929_v15  ;;  %v5931_v24 = vpop.f32.mrb[13].mxu1 }
 0x2af   : > { %15650 = vmatmul.mubr.msk.bf16.vlgmr.msra.gmra.mrb[24].mxu0 %vm1070_vm0, %v21138_v26  ;;  %v18943_v26 = vld [vmem:[%s25277_s0 + $0x844] ss:$24 sps:$4 sm:$0xff]   ;;  %v6194_v43 = vadd.f32 %v21693_v21, %v5931_v24  ;;  %v5933_v33 = vpop.f32.mrb[14].mxu1 }
 0x2b0   : > { %5170 = vmatpush1.bf16.msra.mxu0 %v18935_v38  ;;  %4794 = vmatprep.mubr.bf16.mxu0 %v20034_v2  ;;  %v6265_v51 = vmax.f32 %v6193_v23, 0.0  ;;  %v6199_v39 = vadd.f32 %v21690_v17, %v5933_v33  ;;  %v5935_v42 = vpop.f32.mrb[15].mxu1 }
 0x2b1   : > { %5171 = vmatprep.subr.bf16.mxu0 %v18940_v62  ;;  %v6266_v50 = vmax.f32 %v6194_v43, 0.0  ;;  %v6200_v52 = vadd.f32 %v21693_v21, %v5935_v42 }
 0x2b2   : > { %v6271_v53 = vmax.f32 %v6199_v39, 0.0 }
 0x2b3   : > { %v6272_v61 = vmax.f32 %v6200_v52, 0.0 }
 0x2b4   : > { %5172 = vmatpush1.bf16.msra.mxu0 %v18938_v18  ;;  %v21759_v10 = vpack.c.bf16 %v6271_v53, %v6265_v51  ;;  %v18964_v53 = vld [vmem:[%s25277_s0 + $0x884] ss:$24 sps:$4 sm:$0xff]  }
 0x2b5   : > { %5173 = vmatprep.subr.bf16.mxu0 %v18943_v26  ;;  %v21761_v55 = vpack.c.bf16 %v6272_v61, %v6266_v50  ;;  %v5939_v59 = vpop.f32.mrb[16].mxu1  ;;  %v18967_v61 = vld [vmem:[%s25277_s0 + $0x8b4] ss:$24 sps:$4 sm:$0xff]  }
 0x2b6   : > { %v6205_v38 = vadd.f32 %v21690_v17, %v5939_v59  ;;  %v5941_v48 = vpop.f32.mrb[17].mxu1  ;;  %v18965_v59 = vld [vmem:[%s25277_s0 + $0x8b0] ss:$24 sps:$4 sm:$0xff]  }
 0x2b7   : > { %15651 = vmatmul.mubr.msk.bf16.gmra.mrb[28].mxu0 %vm1070_vm0, %v21172_v16  ;;  %v18949_v16 = vld [vmem:[%s25277_s0 + $0x8a4] ss:$24 sps:$4 sm:$0xff]   ;;  %v6206_v20 = vadd.f32 %v21693_v21, %v5941_v48  ;;  %v5943_v62 = vpop.f32.mrb[18].mxu1 }
 0x2b8   : > { %4804 = vmatprep.mubr.bf16.mxu0 %v20034_v2  ;;  %5174 = vmatpush1.bf16.msra.mxu0 %v18941_v22  ;;  %v6277_v1 = vmax.f32 %v6205_v38, 0.0  ;;  %v6211_v36 = vadd.f32 %v21690_v17, %v5943_v62  ;;  %v5945_v32 = vpop.f32.mrb[19].mxu1  ;;  %v18968_v38 = vld [vmem:[%s25277_s0 + $0x8e0] ss:$24 sps:$4 sm:$0xff]   ;;  %v18973_v48 = vld [vmem:[%s25277_s0 + $0x904] ss:$24 sps:$4 sm:$0xff]  }
 0x2b9   : > { %5175 = vmatprep.subr.bf16.mxu0 %v18946_v57  ;;  %v6278_v40 = vmax.f32 %v6206_v20, 0.0  ;;  %v6212_v7 = vadd.f32 %v21693_v21, %v5945_v32  ;;  %v18976_v20 = vld [vmem:[%s25277_s0 + $0x934] ss:$24 sps:$4 sm:$0xff]   ;;  %v18974_v62 = vld [vmem:[%s25277_s0 + $0x930] ss:$24 sps:$4 sm:$0xff]  }
 0x2ba   : > { %v6283_v46 = vmax.f32 %v6211_v36, 0.0  ;;  %v18977_v36 = vld [vmem:[%s25277_s0 + $0x960] ss:$24 sps:$4 sm:$0xff]   ;;  %v18980_v32 = vld [vmem:[%s25277_s0 + $0x990] ss:$24 sps:$4 sm:$0xff]  }
 0x2bb   : > { %v6284_v18 = vmax.f32 %v6212_v7, 0.0  ;;  %v18983_v7 = vld [vmem:[%s25277_s0 + $0x9c0] ss:$24 sps:$4 sm:$0xff]  }
 0x2bc   : > { %5176 = vmatpush1.bf16.msra.mxu0 %v18944_v31  ;;  %v21782_v19 = vpack.c.bf16 %v6283_v46, %v6277_v1  ;;  %v18979_v1 = vld [vmem:[%s25277_s0 + $0x964] ss:$24 sps:$4 sm:$0xff]   ;;  %v18991_v46 = vld [vmem:[%s25277_s0 + $0x914] ss:$24 sps:$4 sm:$0xff]  }
 0x2bd   : > { %5177 = vmatprep.subr.bf16.mxu0 %v18949_v16  ;;  %v21784_v26 = vpack.c.bf16 %v6284_v18, %v6278_v40  ;;  %v5949_v41 = vpop.f32.mrb[20].mxu1  ;;  %v18962_v16 = vld [vmem:[%s25277_s0 + $0x880] ss:$24 sps:$4 sm:$0xff]   ;;  %v18985_v40 = vld [vmem:[%s25277_s0 + $0x9c4] ss:$24 sps:$4 sm:$0xff]  }
 0x2be   : > { %v6217_v15 = vadd.f32 %v21690_v17, %v5949_v41  ;;  %v5951_v22 = vpop.f32.mrb[21].mxu1  ;;  %v19000_v18 = vld [vmem:[%s25277_s0 + $0x9a4] ss:$24 sps:$4 sm:$0xff]   ;;  %v18998_v41 = vld [vmem:[%s25277_s0 + $0x9a0] ss:$24 sps:$4 sm:$0xff]  }
 0x2bf   : > { %15652 = vmatmul.mubr.msk.bf16.gmra.mrb[32].mxu0 %vm1070_vm0, %v21200_v30  ;;  %v18955_v30 = vld [vmem:[%s25277_s0 + $0x7f4] ss:$24 sps:$4 sm:$0xff]   ;;  %v6218_v23 = vadd.f32 %v21693_v21, %v5951_v22  ;;  %v5953_v24 = vpop.f32.mrb[22].mxu1  ;;  %v19001_v22 = vld [vmem:[%s25277_s0 + $0x9d0] ss:$24 sps:$4 sm:$0xff]  }
 0x2c0   : > { %4814 = vmatprep.mubr.bf16.mxu0 %v20034_v2  ;;  %5178 = vmatpush1.bf16.msra.mxu0 %v18947_v56  ;;  %v6289_v57 = vmax.f32 %v6217_v15, 0.0  ;;  %v6223_v43 = vadd.f32 %v21690_v17, %v5953_v24  ;;  %v5955_v33 = vpop.f32.mrb[23].mxu1  ;;  %v18958_v17 = vld [vmem:[%s25277_s0 + $0x824] ss:$24 sps:$4 sm:$0xff]   ;;  %v19003_v15 = vld [vmem:[%s25277_s0 + $0x9d4] ss:$24 sps:$4 sm:$0xff]  }
 0x2c1   : > { %5179 = vmatprep.subr.bf16.mxu0 %v18952_v60  ;;  %v6290_v51 = vmax.f32 %v6218_v23, 0.0  ;;  %v6224_v39 = vadd.f32 %v21693_v21, %v5955_v33  ;;  %v18959_v21 = vld [vmem:[%s25277_s0 + $0x850] ss:$24 sps:$4 sm:$0xff]   ;;  %v18970_v56 = vld [vmem:[%s25277_s0 + $0x8e4] ss:$24 sps:$4 sm:$0xff]  }
 0x2c2   : > { %v6295_v42 = vmax.f32 %v6223_v43, 0.0  ;;  %v18971_v60 = vld [vmem:[%s25277_s0 + $0x900] ss:$24 sps:$4 sm:$0xff]   ;;  %v19006_v23 = vld [vmem:[%s25277_s0 + $0xa04] ss:$24 sps:$4 sm:$0xff]  }
 0x2c3   : > { %v6296_v50 = vmax.f32 %v6224_v39, 0.0  ;;  %v19004_v24 = vld [vmem:[%s25277_s0 + $0xa00] ss:$24 sps:$4 sm:$0xff]  }
 0x2c4   : > { %5180 = vmatpush1.bf16.msra.mxu0 %v18950_v9  ;;  %v21793_v52 = vpack.c.bf16 %v6295_v42, %v6289_v57  ;;  %v18986_v9 = vld [vmem:[%s25277_s0 + $0x9f0] ss:$24 sps:$4 sm:$0xff]  }
 0x2c5   : > { %5355 = vmatprep.subr.bf16.mxu0 %v18955_v30  ;;  %v21795_v31 = vpack.c.bf16 %v6296_v50, %v6290_v51  ;;  %v18995_v30 = vld [vmem:[%s25277_s0 + $0x970] ss:$24 sps:$4 sm:$0xff]  }
 0x2c7   : > { %15653 = vmatmul.mubr.msk.bf16.gmra.mrb[36].mxu0 %vm1070_vm0, %v21219_v47  ;;  %v18953_v47 = vld [vmem:[%s25277_s0 + $0x7f0] ss:$24 sps:$4 sm:$0xff]  }
 0x2c8   : > { %4824 = vmatprep.mubr.bf16.mxu0 %v20034_v2 }
 0x2cf   : > { %15654 = vmatmul.mubr.msk.bf16.gmra.mrb[40].mxu0 %vm1070_vm0, %v21232_v49  ;;  %v18961_v49 = vld [vmem:[%s25277_s0 + $0x854] ss:$24 sps:$4 sm:$0xff]  }
 0x2d0   : > { %4834 = vmatprep.mubr.bf16.mxu0 %v20034_v2 }
 0x2d7   : > { %15655 = vmatmul.mubr.msk.bf16.gmra.mrb[44].mxu0 %vm1070_vm0, %v21228_v45  ;;  %v18956_v45 = vld [vmem:[%s25277_s0 + $0x820] ss:$24 sps:$4 sm:$0xff]  }
 0x2d8   : > { %5201 = vmatprep.mubr.bf16.mxu0 %v20034_v2 }
 0x2df   : > { %15728 = vmatmul.mubr.msk.bf16.vlgmr.msra.gmra.mrb[0].mxu0 %vm1070_vm0, %v21270_v63 }
 0x2e0   : > { %5356 = vmatpush1.bf16.msra.mxu0 %v18953_v47  ;;  %5211 = vmatprep.mubr.bf16.mxu0 %v20034_v2 }
 0x2e1   : > { %5357 = vmatprep.subr.bf16.mxu0 %v18958_v17 }
 0x2e4   : > { %5358 = vmatpush1.bf16.msra.mxu0 %v18956_v45 }
 0x2e5   : > { %5359 = vmatprep.subr.bf16.mxu0 %v18961_v49 }
 0x2e7   : > { %15729 = vmatmul.mubr.msk.bf16.gmra.mrb[4].mxu0 %vm1070_vm0, %v21304_v12 }
 0x2e8   : > { %5221 = vmatprep.mubr.bf16.mxu0 %v20034_v2  ;;  %5360 = vmatpush1.bf16.msra.mxu0 %v18959_v21 }
 0x2e9   : > { %5361 = vmatprep.subr.bf16.mxu0 %v18964_v53 }
 0x2ec   : > { %5362 = vmatpush1.bf16.msra.mxu0 %v18962_v16 }
 0x2ed   : > { %5363 = vmatprep.subr.bf16.mxu0 %v18967_v61 }
 0x2ef   : > { %15730 = vmatmul.mubr.msk.bf16.gmra.mrb[8].mxu0 %vm1070_vm0, %v21332_v27 }
 0x2f0   : > { %5231 = vmatprep.mubr.bf16.mxu0 %v20034_v2  ;;  %5364 = vmatpush1.bf16.msra.mxu0 %v18965_v59 }
 0x2f1   : > { %5365 = vmatprep.subr.bf16.mxu0 %v18970_v56 }
 0x2f4   : > { %5366 = vmatpush1.bf16.msra.mxu0 %v18968_v38 }
 0x2f5   : > { %5772 = vmatprep.subr.bf16.mxu0 %v18973_v48 }
 0x2f7   : > { %15731 = vmatmul.mubr.msk.bf16.gmra.mrb[12].mxu0 %vm1070_vm0, %v21348_v37 }
 0x2f8   : > { %5241 = vmatprep.mubr.bf16.mxu0 %v20034_v2 }
 0x2ff   : > { %15732 = vmatmul.mubr.msk.bf16.gmra.mrb[16].mxu0 %vm1070_vm0, %v21361_v0 }
 0x300   : > { %5251 = vmatprep.mubr.bf16.mxu0 %v20034_v2 }
 0x307   : > { %15733 = vmatmul.mubr.msk.bf16.gmra.mrb[20].mxu0 %vm1070_vm0, %v21356_v34 }
 0x308   : > { %5387 = vmatprep.mubr.bf16.mxu0 %v20034_v2 }
 0x30f   : > { %15740 = vmatmul.mubr.msk.bf16.vlgmr.msra.gmra.mrb[24].mxu0 %vm1070_vm0, %v21270_v63  ;;  %v18982_v63 = vld [vmem:[%s25277_s0 + $0x994] ss:$24 sps:$4 sm:$0xff]  }
 0x310   : > { %5773 = vmatpush1.bf16.msra.mxu0 %v18971_v60  ;;  %5397 = vmatprep.mubr.bf16.mxu0 %v20034_v2 }
 0x311   : > { %5774 = vmatprep.subr.bf16.mxu0 %v18976_v20 }
 0x314   : > { %5775 = vmatpush1.bf16.msra.mxu0 %v18974_v62 }
 0x315   : > { %5776 = vmatprep.subr.bf16.mxu0 %v18979_v1 }
 0x317   : > { %15741 = vmatmul.mubr.msk.bf16.gmra.mrb[28].mxu0 %vm1070_vm0, %v21304_v12  ;;  %v18988_v12 = vld [vmem:[%s25277_s0 + $0x9f4] ss:$24 sps:$4 sm:$0xff]  }
 0x318   : > { %5407 = vmatprep.mubr.bf16.mxu0 %v20034_v2  ;;  %5777 = vmatpush1.bf16.msra.mxu0 %v18977_v36 }
 0x319   : > { %5778 = vmatprep.subr.bf16.mxu0 %v18982_v63 }
 0x31c   : > { %5779 = vmatpush1.bf16.msra.mxu0 %v18980_v32 }
 0x31d   : > { %5780 = vmatprep.subr.bf16.mxu0 %v18985_v40 }
 0x31f   : > { %15742 = vmatmul.mubr.msk.bf16.gmra.mrb[32].mxu0 %vm1070_vm0, %v21332_v27  ;;  %v18989_v27 = vld [vmem:[%s25277_s0 + $0x910] ss:$24 sps:$4 sm:$0xff]  }
 0x320   : > { %5417 = vmatprep.mubr.bf16.mxu0 %v20034_v2  ;;  %5781 = vmatpush1.bf16.msra.mxu0 %v18983_v7 }
 0x321   : > { %5782 = vmatprep.subr.bf16.mxu0 %v18988_v12 }
 0x324   : > { %5783 = vmatpush1.bf16.msra.mxu0 %v18986_v9 }
 0x325   : > { %5958 = vmatprep.subr.bf16.mxu0 %v18991_v46 }
 0x327   : > { %15743 = vmatmul.mubr.msk.bf16.gmra.mrb[36].mxu0 %vm1070_vm0, %v21348_v37  ;;  %v18994_v37 = vld [vmem:[%s25277_s0 + $0x944] ss:$24 sps:$4 sm:$0xff]  }
 0x328   : > { %5427 = vmatprep.mubr.bf16.mxu0 %v20034_v2 }
 0x32f   : > { %15744 = vmatmul.mubr.msk.bf16.gmra.mrb[40].mxu0 %vm1070_vm0, %v21361_v0  ;;  %v18997_v0 = vld [vmem:[%s25277_s0 + $0x974] ss:$24 sps:$4 sm:$0xff]  }
 0x330   : > { %5437 = vmatprep.mubr.bf16.mxu0 %v20034_v2 }
 0x337   : > { %15745 = vmatmul.mubr.msk.bf16.gmra.mrb[44].mxu0 %vm1070_vm0, %v21356_v34  ;;  %v18992_v34 = vld [vmem:[%s25277_s0 + $0x940] ss:$24 sps:$4 sm:$0xff]   ;;  %s25287_s0 = sld [smem:[#allocation21_spill]] }
 0x338   : > { %5804 = vmatprep.mubr.bf16.mxu0 %v20034_v2 }
 0x33f   : > { %15818 = vmatmul.mubr.msk.bf16.vlgmr.msra.gmra.mrb[0].mxu0 %vm1070_vm0, %v21396_v54 }
 0x340   : > { %5959 = vmatpush1.bf16.msra.mxu0 %v18989_v27  ;;  %5814 = vmatprep.mubr.bf16.mxu0 %v20034_v2 }
 0x341   : > { %5960 = vmatprep.subr.bf16.mxu0 %v18994_v37 }
 0x344   : > { %5961 = vmatpush1.bf16.msra.mxu0 %v18992_v34 }
 0x345   : > { %5962 = vmatprep.subr.bf16.mxu0 %v18997_v0 }
 0x347   : > { %15819 = vmatmul.mubr.msk.bf16.gmra.mrb[4].mxu0 %vm1070_vm0, %v21418_v13 }
 0x348   : > { %5824 = vmatprep.mubr.bf16.mxu0 %v20034_v2  ;;  %5963 = vmatpush1.bf16.msra.mxu0 %v18995_v30 }
 0x349   : > { %5964 = vmatprep.subr.bf16.mxu0 %v19000_v18 }
 0x34c   : > { %5965 = vmatpush1.bf16.msra.mxu0 %v18998_v41 }
 0x34d   : > { %5966 = vmatprep.subr.bf16.mxu0 %v19003_v15 }
 0x34f   : > { %15820 = vmatmul.mubr.msk.bf16.gmra.mrb[8].mxu0 %vm1070_vm0, %v21434_v25 }
 0x350   : > { %5834 = vmatprep.mubr.bf16.mxu0 %v20034_v2  ;;  %5967 = vmatpush1.bf16.msra.mxu0 %v19001_v22 }
 0x351   : > { %5968 = vmatprep.subr.bf16.mxu0 %v19006_v23 }
 0x354   : > { %5969 = vmatpush1.bf16.msra.mxu0 %v19004_v24 }
 0x357   : > { %15821 = vmatmul.mubr.msk.bf16.gmra.mrb[12].mxu0 %vm1070_vm0, %v21444_v6 }
 0x358   : > { %5844 = vmatprep.mubr.bf16.mxu0 %v20034_v2 }
 0x35f   : > { %15822 = vmatmul.mubr.msk.bf16.gmra.mrb[16].mxu0 %vm1070_vm0, %v21457_v8 }
 0x360   : > { %5854 = vmatprep.mubr.bf16.mxu0 %v20034_v2 }
 0x367   : > { %15823 = vmatmul.mubr.msk.bf16.gmra.mrb[20].mxu0 %vm1070_vm0, %v21453_v29 }
 0x368   : > { %5990 = vmatprep.mubr.bf16.mxu0 %v20034_v2 }
 0x36f   : > { %15830 = vmatmul.mubr.msk.bf16.vlgmr.msra.gmra.mrb[24].mxu0 %vm1070_vm0, %v21396_v54  ;;  %v21980_v54 = vsub.s32 0, %v21672_v35 }
 0x370   : > { %6000 = vmatprep.mubr.bf16.mxu0 %v20034_v2 }
 0x377   : > { %15831 = vmatmul.mubr.msk.bf16.gmra.mrb[28].mxu0 %vm1070_vm0, %v21418_v13  ;;  %v21983_v13 = vsub.s32 1, %v21672_v35 }
 0x378   : > { %6010 = vmatprep.mubr.bf16.mxu0 %v20034_v2 }
 0x37f   : > { %15832 = vmatmul.mubr.msk.bf16.gmra.mrb[32].mxu0 %vm1070_vm0, %v21434_v25  ;;  %v21987_v25 = vrot.slane %v21681_v11, %v21980_v54 }
 0x380   : > { %6020 = vmatprep.mubr.bf16.mxu0 %v20034_v2 }
 0x387   : > { %15833 = vmatmul.mubr.msk.bf16.gmra.mrb[36].mxu0 %vm1070_vm0, %v21444_v6  ;;  %v21991_v6 = vrot.slane %v21681_v11, %v21983_v13 }
 0x388   : > { %6030 = vmatprep.mubr.bf16.mxu0 %v20034_v2 }
 0x38f   : > { %15834 = vmatmul.mubr.msk.bf16.gmra.mrb[40].mxu0 %vm1070_vm0, %v21457_v8 }
 0x390   : > { %6040 = vmatprep.mubr.bf16.mxu0 %v20034_v2 }
 0x397   : > { %15835 = vmatmul.mubr.msk.bf16.gmra.mrb[44].mxu0 %vm1070_vm0, %v21453_v29  ;;  %vm14180_vm0 = vcmask 64512  }
 0x412   : > { %v5806_v8 = vpop.f32.mrb[0].mxu0 }
 0x413   : > { %v6155_v57 = vadd.f32 %v21987_v25, %v5806_v8  ;;  %v5808_v43 = vpop.f32.mrb[1].mxu0 }
 0x414   : > { %v6156_v29 = vadd.f32 %v21991_v6, %v5808_v43  ;;  %v5810_v33 = vpop.f32.mrb[2].mxu0 }
 0x415   : > { %v6161_v51 = vadd.f32 %v21987_v25, %v5810_v33  ;;  %v5812_v39 = vpop.f32.mrb[3].mxu0  ;;  %v6227_v50 = vmax.f32 %v6155_v57, 0.0 }
 0x416   : > { %v6162_v42 = vadd.f32 %v21991_v6, %v5812_v39  ;;  %v6228_v17 = vmax.f32 %v6156_v29, 0.0 }
 0x417   : > { %v6233_v47 = vmax.f32 %v6161_v51, 0.0 }
 0x418   : > { %v6234_v45 = vmax.f32 %v6162_v42, 0.0 }
 0x419   : > { %v21997_v49 = vpack.c.bf16 %v6233_v47, %v6227_v50 }
 0x41a   : > { %v21999_v21 = vpack.c.bf16 %v6234_v45, %v6228_v17  ;;  %v5816_v53 = vpop.f32.mrb[4].mxu0 }
 0x41b   : > { %v6167_v16 = vadd.f32 %v21987_v25, %v5816_v53  ;;  %v5818_v61 = vpop.f32.mrb[5].mxu0 }
 0x41c   : > { %v6168_v59 = vadd.f32 %v21991_v6, %v5818_v61  ;;  %v5820_v56 = vpop.f32.mrb[6].mxu0  ;;  %6385 = vmatprep.subr.bf16.mxu1 %v21999_v21 }
 0x41d   : > { %v6173_v38 = vadd.f32 %v21987_v25, %v5820_v56  ;;  %v5822_v48 = vpop.f32.mrb[7].mxu0  ;;  %6386 = vmatpush1.bf16.msra.mxu1 %v21997_v49  ;;  %v6239_v20 = vmax.f32 %v6167_v16, 0.0 }
 0x41e   : > { %v6174_v60 = vadd.f32 %v21991_v6, %v5822_v48  ;;  %v6240_v1 = vmax.f32 %v6168_v59, 0.0 }
 0x41f   : > { %v6245_v62 = vmax.f32 %v6173_v38, 0.0 }
 0x420   : > { %v6246_v36 = vmax.f32 %v6174_v60, 0.0 }
 0x421   : > { %v22007_v63 = vpack.c.bf16 %v6245_v62, %v6239_v20 }
 0x422   : > { %v22009_v32 = vpack.c.bf16 %v6246_v36, %v6240_v1  ;;  %v5826_v40 = vpop.f32.mrb[8].mxu0 }
 0x423   : > { %v6179_v7 = vadd.f32 %v21987_v25, %v5826_v40  ;;  %v5828_v12 = vpop.f32.mrb[9].mxu0 }
 0x424   : > { %v6180_v9 = vadd.f32 %v21991_v6, %v5828_v12  ;;  %v5830_v46 = vpop.f32.mrb[10].mxu0  ;;  %6387 = vmatprep.subr.bf16.mxu1 %v22009_v32 }
 0x425   : > { %v6185_v27 = vadd.f32 %v21987_v25, %v5830_v46  ;;  %v5832_v37 = vpop.f32.mrb[11].mxu0  ;;  %6388 = vmatpush1.bf16.msra.mxu1 %v22007_v63  ;;  %v6251_v0 = vmax.f32 %v6179_v7, 0.0 }
 0x426   : > { %v6186_v34 = vadd.f32 %v21991_v6, %v5832_v37  ;;  %v6252_v18 = vmax.f32 %v6180_v9, 0.0 }
 0x427   : > { %v6257_v30 = vmax.f32 %v6185_v27, 0.0  ;;  %v6143_v27 = vsub.s32 4, %v21672_v35 }
 0x428   : > { %v6258_v41 = vmax.f32 %v6186_v34, 0.0 }
 0x429   : > { %v22017_v15 = vpack.c.bf16 %v6257_v30, %v6251_v0  ;;  %v6147_v0 = vsub.s32 5, %v21672_v35 }
 0x42a   : > { %v22019_v22 = vpack.c.bf16 %v6258_v41, %v6252_v18  ;;  %v5836_v23 = vpop.f32.mrb[12].mxu0 }
 0x42b   : > { %v6191_v24 = vadd.f32 %v21987_v25, %v5836_v23  ;;  %v5838_v8 = vpop.f32.mrb[13].mxu0 }
 0x42c   : > { %v6192_v57 = vadd.f32 %v21991_v6, %v5838_v8  ;;  %v5840_v43 = vpop.f32.mrb[14].mxu0  ;;  %6389 = vmatprep.subr.bf16.mxu1 %v22019_v22  ;;  %v22050_v8 = vrot.slane %v21681_v11, %v6143_v27 }
 0x42d   : > { %v6197_v29 = vadd.f32 %v21987_v25, %v5840_v43  ;;  %v5842_v33 = vpop.f32.mrb[15].mxu0  ;;  %6390 = vmatpush1.bf16.msra.mxu1 %v22017_v15  ;;  %v6263_v39 = vmax.f32 %v6191_v24, 0.0 }
 0x42e   : > { %v6198_v51 = vadd.f32 %v21991_v6, %v5842_v33  ;;  %v6264_v50 = vmax.f32 %v6192_v57, 0.0 }
 0x42f   : > { %v6269_v42 = vmax.f32 %v6197_v29, 0.0  ;;  %v22053_v29 = vrot.slane %v21681_v11, %v6147_v0  ;;  %v22067_v11 = vld [vmem:[%s25280_s1] sm:$0xff]  }
 0x430   : > { %v6270_v47 = vmax.f32 %v6198_v51, 0.0 }
 0x431   : > { %v22027_v17 = vpack.c.bf16 %v6269_v42, %v6263_v39 }
 0x432   : > { %v22029_v45 = vpack.c.bf16 %v6270_v47, %v6264_v50  ;;  %v5846_v53 = vpop.f32.mrb[16].mxu0 }
 0x433   : > { %v6203_v16 = vadd.f32 %v21987_v25, %v5846_v53  ;;  %v5848_v61 = vpop.f32.mrb[17].mxu0 }
 0x434   : > { %v6204_v59 = vadd.f32 %v21991_v6, %v5848_v61  ;;  %v5850_v56 = vpop.f32.mrb[18].mxu0  ;;  %6391 = vmatprep.subr.bf16.mxu1 %v22029_v45 }
 0x435   : > { %v6209_v38 = vadd.f32 %v21987_v25, %v5850_v56  ;;  %v5852_v48 = vpop.f32.mrb[19].mxu0  ;;  %6392 = vmatpush1.bf16.msra.mxu1 %v22027_v17  ;;  %v6275_v20 = vmax.f32 %v6203_v16, 0.0 }
 0x436   : > { %v6210_v60 = vadd.f32 %v21991_v6, %v5852_v48  ;;  %v6276_v1 = vmax.f32 %v6204_v59, 0.0 }
 0x437   : > { %v6281_v62 = vmax.f32 %v6209_v38, 0.0 }
 0x438   : > { %v6282_v36 = vmax.f32 %v6210_v60, 0.0 }
 0x439   : > { %v22037_v40 = vpack.c.bf16 %v6281_v62, %v6275_v20 }
 0x43a   : > { %v22039_v7 = vpack.c.bf16 %v6282_v36, %v6276_v1  ;;  %v5856_v12 = vpop.f32.mrb[20].mxu0 }
 0x43b   : > { %v6215_v9 = vadd.f32 %v21987_v25, %v5856_v12  ;;  %v5858_v46 = vpop.f32.mrb[21].mxu0 }
 0x43c   : > { %v6216_v37 = vadd.f32 %v21991_v6, %v5858_v46  ;;  %v5860_v34 = vpop.f32.mrb[22].mxu0  ;;  %6393 = vmatprep.subr.bf16.mxu1 %v22039_v7  ;;  %v22087_v46 = vld [vmem:[%s25280_s1 + $0x8] sm:$0xff]  }
 0x43d   : > { %v6221_v30 = vadd.f32 %v21987_v25, %v5860_v34  ;;  %v5862_v18 = vpop.f32.mrb[23].mxu0  ;;  %6394 = vmatpush1.bf16.msra.mxu1 %v22037_v40  ;;  %v6287_v23 = vmax.f32 %v6215_v9, 0.0 }
 0x43e   : > { %v6222_v41 = vadd.f32 %v21991_v6, %v5862_v18  ;;  %v6288_v57 = vmax.f32 %v6216_v37, 0.0 }
 0x43f   : > { %v6293_v24 = vmax.f32 %v6221_v30, 0.0 }
 0x440   : > { %v6294_v43 = vmax.f32 %v6222_v41, 0.0 }
 0x441   : > { %v6329_v33 = vpack.c.bf16 %v6293_v24, %v6287_v23 }
 0x442   : > { %v22055_v51 = vpack.c.bf16 %v6294_v43, %v6288_v57  ;;  %v5992_v39 = vpop.f32.mrb[24].mxu0 }
 0x443   : > { %v6159_v25 = vadd.f32 %v22050_v8, %v5992_v39  ;;  %v5994_v42 = vpop.f32.mrb[25].mxu0  ;;  %v22059_v50 = vsel %vm4356_vm2, %v6329_v33, 0 }
 0x444   : > { %v6160_v6 = vadd.f32 %v22053_v29, %v5994_v42  ;;  %v5996_v47 = vpop.f32.mrb[26].mxu0  ;;  %15839 = vmatprep.subr.msk.bf16.mxu1 %vm4356_vm2, %v22055_v51  ;;  %v22107_v42 = vld [vmem:[%s25280_s1 + $0x10] sm:$0xff]  }
 0x445   : > { %v6165_v53 = vadd.f32 %v22050_v8, %v5996_v47  ;;  %v5998_v16 = vpop.f32.mrb[27].mxu0  ;;  %6396 = vmatpush1.bf16.msra.mxu1 %v22059_v50  ;;  %v6231_v59 = vmax.f32 %v6159_v25, 0.0 }
 0x446   : > { %v6166_v61 = vadd.f32 %v22053_v29, %v5998_v16  ;;  %6448 = vmatprep.subr.bf16.mxu1 %v21704_v5  ;;  %v6232_v38 = vmax.f32 %v6160_v6, 0.0 }
 0x447   : > { %v6237_v56 = vmax.f32 %v6165_v53, 0.0 }
 0x448   : > { %v6238_v48 = vmax.f32 %v6166_v61, 0.0  ;;  %15840 = vmatmul.mubr.msk.bf16.vlgmr.msra.gmra.mrb[24].mxu1 %vm6356_vm3, %v22067_v11 }
 0x449   : > { %v22075_v60 = vpack.c.bf16 %v6237_v56, %v6231_v59  ;;  %6449 = vmatpush1.bf16.msra.mxu1 %v21702_v44  ;;  %6427 = vmatprep.mubr.bf16.mxu1 %v20034_v2 }
 0x44a   : > { %v22079_v20 = vpack.c.bf16 %v6238_v48, %v6232_v38  ;;  %v6002_v62 = vpop.f32.mrb[28].mxu0  ;;  %6450 = vmatprep.subr.bf16.mxu1 %v21715_v28 }
 0x44b   : > { %v6171_v1 = vadd.f32 %v22050_v8, %v6002_v62  ;;  %v6004_v36 = vpop.f32.mrb[29].mxu0 }
 0x44c   : > { %v6172_v12 = vadd.f32 %v22053_v29, %v6004_v36  ;;  %v6006_v9 = vpop.f32.mrb[30].mxu0 }
 0x44d   : > { %v6177_v27 = vadd.f32 %v22050_v8, %v6006_v9  ;;  %v6008_v37 = vpop.f32.mrb[31].mxu0  ;;  %6451 = vmatpush1.bf16.msra.mxu1 %v21713_v14  ;;  %v6243_v0 = vmax.f32 %v6171_v1, 0.0 }
 0x44e   : > { %v6178_v34 = vadd.f32 %v22053_v29, %v6008_v37  ;;  %6452 = vmatprep.subr.bf16.mxu1 %v21738_v3  ;;  %v6244_v18 = vmax.f32 %v6172_v12, 0.0 }
 0x44f   : > { %v6249_v30 = vmax.f32 %v6177_v27, 0.0  ;;  %v22127_v27 = vsel %vm4356_vm2, %v21793_v52, 0 }
 0x450   : > { %v6250_v41 = vmax.f32 %v6178_v34, 0.0  ;;  %15841 = vmatmul.mubr.msk.bf16.gmra.mrb[28].mxu1 %vm6356_vm3, %v22087_v46 }
 0x451   : > { %v22095_v23 = vpack.c.bf16 %v6249_v30, %v6243_v0  ;;  %6453 = vmatpush1.bf16.msra.mxu1 %v21736_v58  ;;  %6437 = vmatprep.mubr.bf16.mxu1 %v20034_v2 }
 0x452   : > { %v22099_v24 = vpack.c.bf16 %v6250_v41, %v6244_v18  ;;  %v6012_v57 = vpop.f32.mrb[32].mxu0  ;;  %6454 = vmatprep.subr.bf16.mxu1 %v21761_v55 }
 0x453   : > { %v6183_v43 = vadd.f32 %v22050_v8, %v6012_v57  ;;  %v6014_v33 = vpop.f32.mrb[33].mxu0 }
 0x454   : > { %v6184_v39 = vadd.f32 %v22053_v29, %v6014_v33  ;;  %v6016_v25 = vpop.f32.mrb[34].mxu0 }
 0x455   : > { %v6189_v6 = vadd.f32 %v22050_v8, %v6016_v25  ;;  %v6018_v47 = vpop.f32.mrb[35].mxu0  ;;  %6455 = vmatpush1.bf16.msra.mxu1 %v21759_v10  ;;  %v6255_v16 = vmax.f32 %v6183_v43, 0.0 }
 0x456   : > { %v6190_v53 = vadd.f32 %v22053_v29, %v6018_v47  ;;  %6456 = vmatprep.subr.bf16.mxu1 %v21784_v26  ;;  %v6256_v59 = vmax.f32 %v6184_v39, 0.0 }
 0x457   : > { %v6261_v61 = vmax.f32 %v6189_v6, 0.0 }
 0x458   : > { %v6262_v56 = vmax.f32 %v6190_v53, 0.0  ;;  %15842 = vmatmul.mubr.msk.bf16.gmra.mrb[32].mxu1 %vm6356_vm3, %v22107_v42 }
 0x459   : > { %v22115_v38 = vpack.c.bf16 %v6261_v61, %v6255_v16  ;;  %6457 = vmatpush1.bf16.msra.mxu1 %v21782_v19  ;;  %6480 = vmatprep.mubr.bf16.mxu1 %v20034_v2 }
 0x45a   : > { %v22119_v48 = vpack.c.bf16 %v6262_v56, %v6256_v59  ;;  %v6022_v62 = vpop.f32.mrb[36].mxu0  ;;  %15843 = vmatprep.subr.msk.bf16.mxu1 %vm4356_vm2, %v21795_v31 }
 0x45b   : > { %v6195_v1 = vadd.f32 %v22050_v8, %v6022_v62  ;;  %v6024_v36 = vpop.f32.mrb[37].mxu0 }
 0x45c   : > { %v6196_v12 = vadd.f32 %v22053_v29, %v6024_v36  ;;  %v6026_v9 = vpop.f32.mrb[38].mxu0 }
 0x45d   : > { %v6201_v37 = vadd.f32 %v22050_v8, %v6026_v9  ;;  %v6028_v34 = vpop.f32.mrb[39].mxu0  ;;  %6459 = vmatpush1.bf16.msra.mxu1 %v22127_v27  ;;  %v6267_v30 = vmax.f32 %v6195_v1, 0.0 }
 0x45e   : > { %v6202_v0 = vadd.f32 %v22053_v29, %v6028_v34  ;;  %6511 = vmatprep.subr.bf16.mxu1 %v22079_v20  ;;  %v6268_v41 = vmax.f32 %v6196_v12, 0.0 }
 0x45f   : > { %v6273_v18 = vmax.f32 %v6201_v37, 0.0 }
 0x460   : > { %v6274_v57 = vmax.f32 %v6202_v0, 0.0  ;;  %15844 = vmatmul.mubr.msk.bf16.vlgmr.msra.gmra.mrb[36].mxu1 %vm6356_vm3, %v22067_v11 }
 0x461   : > { %v22135_v43 = vpack.c.bf16 %v6273_v18, %v6267_v30  ;;  %6512 = vmatpush1.bf16.msra.mxu1 %v22075_v60  ;;  %6490 = vmatprep.mubr.bf16.mxu1 %v20034_v2 }
 0x462   : > { %v22139_v52 = vpack.c.bf16 %v6274_v57, %v6268_v41  ;;  %v6032_v33 = vpop.f32.mrb[40].mxu0  ;;  %6513 = vmatprep.subr.bf16.mxu1 %v22099_v24 }
 0x463   : > { %v6207_v39 = vadd.f32 %v22050_v8, %v6032_v33  ;;  %v6034_v25 = vpop.f32.mrb[41].mxu0 }
 0x464   : > { %v6208_v6 = vadd.f32 %v22053_v29, %v6034_v25  ;;  %v6036_v47 = vpop.f32.mrb[42].mxu0 }
 0x465   : > { %v6213_v53 = vadd.f32 %v22050_v8, %v6036_v47  ;;  %v6038_v16 = vpop.f32.mrb[43].mxu0  ;;  %6514 = vmatpush1.bf16.msra.mxu1 %v22095_v23  ;;  %v6279_v59 = vmax.f32 %v6207_v39, 0.0 }
 0x466   : > { %v6214_v61 = vadd.f32 %v22053_v29, %v6038_v16  ;;  %6515 = vmatprep.subr.bf16.mxu1 %v22119_v48  ;;  %v6280_v62 = vmax.f32 %v6208_v6, 0.0  ;;  %v19051_v16 = vld [vmem:[%s25281_s28 + $0x94] ss:$12 sps:$4 sm:$0xff]  }
 0x467   : > { %v6285_v56 = vmax.f32 %v6213_v53, 0.0 }
 0x468   : > { %v6286_v1 = vmax.f32 %v6214_v61, 0.0  ;;  %15845 = vmatmul.mubr.msk.bf16.gmra.mrb[40].mxu1 %vm6356_vm3, %v22087_v46  ;;  %v19076_v61 = vld [vmem:[%s25281_s28 + $0x558] ss:$12 sps:$4 sm:$0xff]  }
 0x469   : > { %v22150_v36 = vpack.c.bf16 %v6285_v56, %v6279_v59  ;;  %6516 = vmatpush1.bf16.msra.mxu1 %v22115_v38  ;;  %6500 = vmatprep.mubr.bf16.mxu1 %v20034_v2  ;;  %v19049_v59 = vld [vmem:[%s25281_s28 + $0x90] ss:$12 sps:$4 sm:$0xff]   ;;  %v19084_v56 = vld [vmem:[%s25281_s28 + $0x574] ss:$12 sps:$4 sm:$0xff]  }
 0x46a   : > { %v22154_v12 = vpack.c.bf16 %v6286_v1, %v6280_v62  ;;  %v6042_v9 = vpop.f32.mrb[44].mxu0  ;;  %6517 = vmatprep.subr.bf16.mxu1 %v22139_v52  ;;  %v19057_v62 = vld [vmem:[%s25281_s28 + $0xac] ss:$12 sps:$4 sm:$0xff]   ;;  %v19082_v1 = vld [vmem:[%s25281_s28 + $0x570] ss:$12 sps:$4 sm:$0xff]  }
 0x46b   : > { %v6219_v37 = vadd.f32 %v22050_v8, %v6042_v9  ;;  %v6044_v34 = vpop.f32.mrb[45].mxu0  ;;  %v19063_v9 = vld [vmem:[%s25281_s28 + $0xc4] ss:$12 sps:$4 sm:$0xff]  }
 0x46c   : > { %v6220_v0 = vadd.f32 %v22053_v29, %v6044_v34  ;;  %v6046_v30 = vpop.f32.mrb[46].mxu0  ;;  %v19061_v34 = vld [vmem:[%s25281_s28 + $0xc0] ss:$12 sps:$4 sm:$0xff]  }
 0x46d   : > { %v6225_v18 = vadd.f32 %v22050_v8, %v6046_v30  ;;  %v6048_v41 = vpop.f32.mrb[47].mxu0  ;;  %6518 = vmatpush1.bf16.msra.mxu1 %v22135_v43  ;;  %v6291_v33 = vmax.f32 %v6219_v37, 0.0  ;;  %v19088_v37 = vld [vmem:[%s25281_s28 + $0x588] ss:$12 sps:$4 sm:$0xff]  }
 0x46e   : > { %v6226_v57 = vadd.f32 %v22053_v29, %v6048_v41  ;;  %6519 = vmatprep.subr.bf16.mxu1 %v22154_v12  ;;  %v6292_v25 = vmax.f32 %v6220_v0, 0.0  ;;  %v19052_v29 = vld [vmem:[%s25281_s28 + $0x4f8] ss:$12 sps:$4 sm:$0xff]   ;;  %v19069_v30 = vld [vmem:[%s25281_s28 + $0xdc] ss:$12 sps:$4 sm:$0xff]  }
 0x46f   : > { %v6297_v39 = vmax.f32 %v6225_v18, 0.0  ;;  %v19096_v0 = vld [vmem:[%s25281_s28 + $0x5a4] ss:$12 sps:$4 sm:$0xff]   ;;  %v19094_v18 = vld [vmem:[%s25281_s28 + $0x5a0] ss:$12 sps:$4 sm:$0xff]  }
 0x470   : > { %v6298_v6 = vmax.f32 %v6226_v57, 0.0  ;;  %15846 = vmatmul.mubr.msk.bf16.gmra.mrb[44].mxu1 %vm6356_vm3, %v22107_v42  ;;  %v19067_v41 = vld [vmem:[%s25281_s28 + $0xd8] ss:$12 sps:$4 sm:$0xff]   ;;  %v19102_v57 = vld [vmem:[%s25281_s28 + $0x5bc] ss:$12 sps:$4 sm:$0xff]  }
 0x471   : > { %v6333_v47 = vpack.c.bf16 %v6297_v39, %v6291_v33  ;;  %6520 = vmatpush1.bf16.msra.mxu1 %v22150_v36  ;;  %6543 = vmatprep.mubr.bf16.mxu1 %v20034_v2  ;;  %v19075_v33 = vld [vmem:[%s25281_s28 + $0xf4] ss:$12 sps:$4 sm:$0xff]   ;;  %v19100_v39 = vld [vmem:[%s25281_s28 + $0x5b8] ss:$12 sps:$4 sm:$0xff]  }
 0x472   : > { %v22167_v8 = vpack.c.bf16 %v6298_v6, %v6292_v25  ;;  %v19073_v25 = vld [vmem:[%s25281_s28 + $0xf0] ss:$12 sps:$4 sm:$0xff]   ;;  %v19108_v6 = vld [vmem:[%s25281_s28 + $0x5d4] ss:$12 sps:$4 sm:$0xff]  }
 0x473   : > { %v22170_v53 = vsel %vm4356_vm2, %v6333_v47, 0  ;;  %v19081_v47 = vld [vmem:[%s25281_s28 + $0x10c] ss:$12 sps:$4 sm:$0xff]  }
 0x474   : > { %15847 = vmatprep.subr.msk.bf16.mxu1 %vm4356_vm2, %v22167_v8 }
 0x475   : > { %6522 = vmatpush1.bf16.msra.mxu1 %v22170_v53 }
 0x476   : > { %6605 = vmatprep.subr.bf16.mxu1 %v21999_v21  ;;  %v22211_v21 = vld [vmem:[%s25280_s1 + $0x20] sm:$0xff]  }
 0x478   : > { %15848 = vmatmul.mubr.msk.bf16.vlgmr.msra.gmra.mrb[48].mxu1 %vm6356_vm3, %v22067_v11  ;;  %v19033_v11 = vld [vmem:[%s25281_s28 + $0x4c] ss:$12 sps:$4 sm:$0xff]  }
 0x479   : > { %6606 = vmatpush1.bf16.msra.mxu1 %v21997_v49  ;;  %6553 = vmatprep.mubr.bf16.mxu1 %v20034_v2  ;;  %v22199_v49 = vld [vmem:[%s25280_s1 + $0x18] sm:$0xff]  }
 0x47a   : > { %6607 = vmatprep.subr.bf16.mxu1 %v22009_v32  ;;  %v19013_v32 = vld [vmem:[%s25281_s28] ss:$12 sps:$4 sm:$0xff]  }
 0x47d   : > { %6608 = vmatpush1.bf16.msra.mxu1 %v22007_v63  ;;  %v19040_v63 = vld [vmem:[%s25281_s28 + $0x4c8] ss:$12 sps:$4 sm:$0xff]  }
 0x47e   : > { %6609 = vmatprep.subr.bf16.mxu1 %v22019_v22  ;;  %v19021_v22 = vld [vmem:[%s25281_s28 + $0x1c] ss:$12 sps:$4 sm:$0xff]  }
 0x480   : > { %15849 = vmatmul.mubr.msk.bf16.gmra.mrb[52].mxu1 %vm6356_vm3, %v22087_v46  ;;  %v19066_v46 = vld [vmem:[%s25281_s28 + $0x52c] ss:$12 sps:$4 sm:$0xff]  }
 0x481   : > { %6610 = vmatpush1.bf16.msra.mxu1 %v22017_v15  ;;  %6563 = vmatprep.mubr.bf16.mxu1 %v20034_v2  ;;  %v19048_v15 = vld [vmem:[%s25281_s28 + $0x4e4] ss:$12 sps:$4 sm:$0xff]  }
 0x482   : > { %6611 = vmatprep.subr.bf16.mxu1 %v22029_v45  ;;  %v19019_v45 = vld [vmem:[%s25281_s28 + $0x18] ss:$12 sps:$4 sm:$0xff]  }
 0x485   : > { %6612 = vmatpush1.bf16.msra.mxu1 %v22027_v17  ;;  %v19046_v17 = vld [vmem:[%s25281_s28 + $0x4e0] ss:$12 sps:$4 sm:$0xff]  }
 0x486   : > { %6613 = vmatprep.subr.bf16.mxu1 %v22039_v7  ;;  %v19027_v7 = vld [vmem:[%s25281_s28 + $0x34] ss:$12 sps:$4 sm:$0xff]  }
 0x488   : > { %15850 = vmatmul.mubr.msk.bf16.gmra.mrb[56].mxu1 %vm6356_vm3, %v22107_v42  ;;  %v19037_v42 = vld [vmem:[%s25281_s28 + $0x60] ss:$12 sps:$4 sm:$0xff]  }
 0x489   : > { %6614 = vmatpush1.bf16.msra.mxu1 %v22037_v40  ;;  %6637 = vmatprep.mubr.bf16.mxu1 %v20034_v2  ;;  %v19054_v40 = vld [vmem:[%s25281_s28 + $0x4fc] ss:$12 sps:$4 sm:$0xff]  }
 0x48a   : > { %15860 = vmatprep.subr.msk.bf16.mxu1 %vm4356_vm2, %v22055_v51  ;;  %v19025_v51 = vld [vmem:[%s25281_s28 + $0x30] ss:$12 sps:$4 sm:$0xff]  }
 0x48d   : > { %6616 = vmatpush1.bf16.msra.mxu1 %v22059_v50  ;;  %v19060_v50 = vld [vmem:[%s25281_s28 + $0x514] ss:$12 sps:$4 sm:$0xff]  }
 0x48e   : > { %6668 = vmatprep.subr.bf16.mxu1 %v21704_v5  ;;  %v19018_v5 = vld [vmem:[%s25281_s28 + $0x46c] ss:$12 sps:$4 sm:$0xff]  }
 0x48f   : > { %9099 = vmatprep.subr.bf16.mxu0 %v19018_v5  ;;  %v19093_v5 = vld [vmem:[%s25281_s28 + $0x13c] ss:$12 sps:$4 sm:$0xff]  }
 0x490   : > { %15861 = vmatmul.mubr.msk.bf16.vlgmr.msra.gmra.mrb[60].mxu1 %vm6356_vm3, %v22199_v49 }
 0x491   : > { %6669 = vmatpush1.bf16.msra.mxu1 %v21702_v44  ;;  %6647 = vmatprep.mubr.bf16.mxu1 %v20034_v2  ;;  %v22223_v44 = vld [vmem:[%s25280_s1 + $0x28] sm:$0xff]  }
 0x492   : > { %6670 = vmatprep.subr.bf16.mxu1 %v21715_v28  ;;  %v19024_v28 = vld [vmem:[%s25281_s28 + $0x484] ss:$12 sps:$4 sm:$0xff]  }
 0x495   : > { %6671 = vmatpush1.bf16.msra.mxu1 %v21713_v14  ;;  %v19016_v14 = vld [vmem:[%s25281_s28 + $0x468] ss:$12 sps:$4 sm:$0xff]  }
 0x496   : > { %6672 = vmatprep.subr.bf16.mxu1 %v21738_v3  ;;  %9100 = vmatpush1.bf16.msra.mxu0 %v19016_v14  ;;  %v19030_v3 = vld [vmem:[%s25281_s28 + $0x49c] ss:$12 sps:$4 sm:$0xff]   ;;  %v19091_v14 = vld [vmem:[%s25281_s28 + $0x138] ss:$12 sps:$4 sm:$0xff]  }
 0x497   : > { %9101 = vmatprep.subr.bf16.mxu0 %v19024_v28  ;;  %v19099_v28 = vld [vmem:[%s25281_s28 + $0x154] ss:$12 sps:$4 sm:$0xff]  }
 0x498   : > { %15862 = vmatmul.mubr.msk.bf16.gmra.mrb[64].mxu1 %vm6356_vm3, %v22211_v21 }
 0x499   : > { %6673 = vmatpush1.bf16.msra.mxu1 %v21736_v58  ;;  %6657 = vmatprep.mubr.bf16.mxu1 %v20034_v2  ;;  %v19022_v58 = vld [vmem:[%s25281_s28 + $0x480] ss:$12 sps:$4 sm:$0xff]  }
 0x49a   : > { %6674 = vmatprep.subr.bf16.mxu1 %v21761_v55  ;;  %9102 = vmatpush1.bf16.msra.mxu0 %v19022_v58  ;;  %v19036_v55 = vld [vmem:[%s25281_s28 + $0x4b4] ss:$12 sps:$4 sm:$0xff]   ;;  %v19097_v58 = vld [vmem:[%s25281_s28 + $0x150] ss:$12 sps:$4 sm:$0xff]  }
 0x49b   : > { %9103 = vmatprep.subr.bf16.mxu0 %v19030_v3  ;;  %v19105_v3 = vld [vmem:[%s25281_s28 + $0x16c] ss:$12 sps:$4 sm:$0xff]  }
 0x49d   : > { %6675 = vmatpush1.bf16.msra.mxu1 %v21759_v10  ;;  %v19028_v10 = vld [vmem:[%s25281_s28 + $0x498] ss:$12 sps:$4 sm:$0xff]  }
 0x49e   : > { %6676 = vmatprep.subr.bf16.mxu1 %v21784_v26  ;;  %9104 = vmatpush1.bf16.msra.mxu0 %v19028_v10  ;;  %v19042_v26 = vld [vmem:[%s25281_s28 + $0x4cc] ss:$12 sps:$4 sm:$0xff]   ;;  %v19103_v10 = vld [vmem:[%s25281_s28 + $0x168] ss:$12 sps:$4 sm:$0xff]  }
 0x49f   : > { %9105 = vmatprep.subr.bf16.mxu0 %v19036_v55  ;;  %v19111_v55 = vld [vmem:[%s25281_s28 + $0x184] ss:$12 sps:$4 sm:$0xff]  }
 0x4a0   : > { %15863 = vmatmul.mubr.msk.bf16.gmra.mrb[68].mxu1 %vm6356_vm3, %v22223_v44 }
 0x4a1   : > { %6677 = vmatpush1.bf16.msra.mxu1 %v21782_v19  ;;  %6700 = vmatprep.mubr.bf16.mxu1 %v20034_v2  ;;  %v19034_v19 = vld [vmem:[%s25281_s28 + $0x4b0] ss:$12 sps:$4 sm:$0xff]  }
 0x4a2   : > { %15864 = vmatprep.subr.msk.bf16.mxu1 %vm4356_vm2, %v21795_v31  ;;  %9106 = vmatpush1.bf16.msra.mxu0 %v19034_v19  ;;  %v19015_v31 = vld [vmem:[%s25281_s28 + $0x4] ss:$12 sps:$4 sm:$0xff]  }
 0x4a3   : > { %9107 = vmatprep.subr.bf16.mxu0 %v19042_v26 }
 0x4a5   : > { %6679 = vmatpush1.bf16.msra.mxu1 %v22127_v27  ;;  %v19070_v27 = vld [vmem:[%s25281_s28 + $0x540] ss:$12 sps:$4 sm:$0xff]  }
 0x4a6   : > { %6731 = vmatprep.subr.bf16.mxu1 %v22079_v20  ;;  %9108 = vmatpush1.bf16.msra.mxu0 %v19040_v63  ;;  %v19031_v20 = vld [vmem:[%s25281_s28 + $0x48] ss:$12 sps:$4 sm:$0xff]  }
 0x4a7   : > { %9109 = vmatprep.subr.bf16.mxu0 %v19048_v15 }
 0x4a8   : > { %15865 = vmatmul.mubr.msk.bf16.vlgmr.msra.gmra.mrb[72].mxu1 %vm6356_vm3, %v22199_v49 }
 0x4a9   : > { %6732 = vmatpush1.bf16.msra.mxu1 %v22075_v60  ;;  %6710 = vmatprep.mubr.bf16.mxu1 %v20034_v2  ;;  %v19058_v60 = vld [vmem:[%s25281_s28 + $0x510] ss:$12 sps:$4 sm:$0xff]  }
 0x4aa   : > { %6733 = vmatprep.subr.bf16.mxu1 %v22099_v24  ;;  %9110 = vmatpush1.bf16.msra.mxu0 %v19046_v17  ;;  %v19064_v24 = vld [vmem:[%s25281_s28 + $0x528] ss:$12 sps:$4 sm:$0xff]  }
 0x4ab   : > { %9111 = vmatprep.subr.bf16.mxu0 %v19054_v40 }
 0x4ad   : > { %6734 = vmatpush1.bf16.msra.mxu1 %v22095_v23  ;;  %v19039_v23 = vld [vmem:[%s25281_s28 + $0x64] ss:$12 sps:$4 sm:$0xff]  }
 0x4ae   : > { %6735 = vmatprep.subr.bf16.mxu1 %v22119_v48  ;;  %9112 = vmatpush1.bf16.msra.mxu0 %v19052_v29  ;;  %v19045_v48 = vld [vmem:[%s25281_s28 + $0x7c] ss:$12 sps:$4 sm:$0xff]  }
 0x4af   : > { %9113 = vmatprep.subr.bf16.mxu0 %v19060_v50 }
 0x4b0   : > { %15866 = vmatmul.mubr.msk.bf16.gmra.mrb[76].mxu1 %vm6356_vm3, %v22211_v21 }
 0x4b1   : > { %6736 = vmatpush1.bf16.msra.mxu1 %v22115_v38  ;;  %6720 = vmatprep.mubr.bf16.mxu1 %v20034_v2  ;;  %v19072_v38 = vld [vmem:[%s25281_s28 + $0x544] ss:$12 sps:$4 sm:$0xff]  }
 0x4b2   : > { %6737 = vmatprep.subr.bf16.mxu1 %v22139_v52  ;;  %9114 = vmatpush1.bf16.msra.mxu0 %v19058_v60  ;;  %v19078_v52 = vld [vmem:[%s25281_s28 + $0x55c] ss:$12 sps:$4 sm:$0xff]  }
 0x4b3   : > { %9115 = vmatprep.subr.bf16.mxu0 %v19066_v46 }
 0x4b5   : > { %6738 = vmatpush1.bf16.msra.mxu1 %v22135_v43  ;;  %v19043_v43 = vld [vmem:[%s25281_s28 + $0x78] ss:$12 sps:$4 sm:$0xff]  }
 0x4b6   : > { %6739 = vmatprep.subr.bf16.mxu1 %v22154_v12  ;;  %9116 = vmatpush1.bf16.msra.mxu0 %v19064_v24  ;;  %v19090_v12 = vld [vmem:[%s25281_s28 + $0x58c] ss:$12 sps:$4 sm:$0xff]  }
 0x4b7   : > { %9117 = vmatprep.subr.bf16.mxu0 %v19072_v38 }
 0x4b8   : > { %15867 = vmatmul.mubr.msk.bf16.gmra.mrb[80].mxu1 %vm6356_vm3, %v22223_v44 }
 0x4b9   : > { %6740 = vmatpush1.bf16.msra.mxu1 %v22150_v36  ;;  %6763 = vmatprep.mubr.bf16.mxu1 %v20034_v2  ;;  %v19055_v36 = vld [vmem:[%s25281_s28 + $0xa8] ss:$12 sps:$4 sm:$0xff]  }
 0x4ba   : > { %15868 = vmatprep.subr.msk.bf16.mxu1 %vm4356_vm2, %v22167_v8  ;;  %9118 = vmatpush1.bf16.msra.mxu0 %v19070_v27  ;;  %v19106_v8 = vld [vmem:[%s25281_s28 + $0x5d0] ss:$12 sps:$4 sm:$0xff]  }
 0x4bb   : > { %9119 = vmatprep.subr.bf16.mxu0 %v19078_v52 }
 0x4bd   : > { %6742 = vmatpush1.bf16.msra.mxu1 %v22170_v53  ;;  %v19079_v53 = vld [vmem:[%s25281_s28 + $0x108] ss:$12 sps:$4 sm:$0xff]  }
 0x4be   : > { %7798 = vmatprep.subr.bf16.mxu1 %v19015_v31  ;;  %9120 = vmatpush1.bf16.msra.mxu0 %v19076_v61 }
 0x4bf   : > { %9121 = vmatprep.subr.bf16.mxu0 %v19084_v56 }
 0x4c0   : > { %15869 = vmatmul.mubr.msk.bf16.vlgmr.msra.gmra.mrb[84].mxu1 %vm6356_vm3, %v22199_v49  ;;  %v19114_v49 = vld [vmem:[%s25281_s28 + $0x5ec] ss:$12 sps:$4 sm:$0xff]  }
 0x4c1   : > { %6773 = vmatprep.mubr.bf16.mxu1 %v20034_v2  ;;  %7799 = vmatpush1.bf16.msra.mxu1 %v19013_v32 }
 0x4c2   : > { %7800 = vmatprep.subr.bf16.mxu1 %v19021_v22  ;;  %9122 = vmatpush1.bf16.msra.mxu0 %v19082_v1 }
 0x4c3   : > { %9123 = vmatprep.subr.bf16.mxu0 %v19090_v12 }
 0x4c5   : > { %7801 = vmatpush1.bf16.msra.mxu1 %v19019_v45 }
 0x4c6   : > { %7802 = vmatprep.subr.bf16.mxu1 %v19027_v7  ;;  %9124 = vmatpush1.bf16.msra.mxu0 %v19088_v37 }
 0x4c7   : > { %9125 = vmatprep.subr.bf16.mxu0 %v19096_v0 }
 0x4c8   : > { %15870 = vmatmul.mubr.msk.bf16.gmra.mrb[88].mxu1 %vm6356_vm3, %v22211_v21  ;;  %v19087_v21 = vld [vmem:[%s25281_s28 + $0x124] ss:$12 sps:$4 sm:$0xff]  }
 0x4c9   : > { %6783 = vmatprep.mubr.bf16.mxu1 %v20034_v2  ;;  %7803 = vmatpush1.bf16.msra.mxu1 %v19025_v51 }
 0x4ca   : > { %7804 = vmatprep.subr.bf16.mxu1 %v19033_v11  ;;  %9126 = vmatpush1.bf16.msra.mxu0 %v19094_v18 }
 0x4cb   : > { %9127 = vmatprep.subr.bf16.mxu0 %v19102_v57 }
 0x4cd   : > { %7805 = vmatpush1.bf16.msra.mxu1 %v19031_v20 }
 0x4ce   : > { %7806 = vmatprep.subr.bf16.mxu1 %v19039_v23  ;;  %9128 = vmatpush1.bf16.msra.mxu0 %v19100_v39 }
 0x4cf   : > { %9129 = vmatprep.subr.bf16.mxu0 %v19108_v6 }
 0x4d0   : > { %15871 = vmatmul.mubr.msk.bf16.gmra.mrb[92].mxu1 %vm6356_vm3, %v22223_v44  ;;  %v19085_v44 = vld [vmem:[%s25281_s28 + $0x120] ss:$12 sps:$4 sm:$0xff]   ;;  %vm14624_vm3 = vcmask 15360  }
 0x4d1   : > { %7807 = vmatpush1.bf16.msra.mxu1 %v19037_v42 }
 0x4d2   : > { %7808 = vmatprep.subr.bf16.mxu1 %v19045_v48  ;;  %9130 = vmatpush1.bf16.msra.mxu0 %v19106_v8  ;;  %v19112_v8 = vld [vmem:[%s25281_s28 + $0x5e8] ss:$12 sps:$4 sm:$0xff]  }
 0x4d3   : > { %9162 = vmatprep.subr.bf16.mxu0 %v19114_v49  ;;  %v19120_v49 = vld [vmem:[%s25281_s28 + $0x604] ss:$12 sps:$4 sm:$0xff]  }
 0x4d5   : > { %7809 = vmatpush1.bf16.msra.mxu1 %v19043_v43 }
 0x4d6   : > { %7810 = vmatprep.subr.bf16.mxu1 %v19051_v16 }
 0x4d9   : > { %7811 = vmatpush1.bf16.msra.mxu1 %v19049_v59 }
 0x4da   : > { %7812 = vmatprep.subr.bf16.mxu1 %v19057_v62 }
 0x4dd   : > { %7813 = vmatpush1.bf16.msra.mxu1 %v19055_v36 }
 0x4de   : > { %7814 = vmatprep.subr.bf16.mxu1 %v19063_v9 }
 0x4e1   : > { %7815 = vmatpush1.bf16.msra.mxu1 %v19061_v34 }
 0x4e2   : > { %7816 = vmatprep.subr.bf16.mxu1 %v19069_v30 }
 0x4e5   : > { %7817 = vmatpush1.bf16.msra.mxu1 %v19067_v41 }
 0x4e6   : > { %7818 = vmatprep.subr.bf16.mxu1 %v19075_v33 }
 0x4e9   : > { %7819 = vmatpush1.bf16.msra.mxu1 %v19073_v25 }
 0x4ea   : > { %7820 = vmatprep.subr.bf16.mxu1 %v19081_v47  ;;  %v19109_v47 = vld [vmem:[%s25281_s28 + $0x180] ss:$12 sps:$4 sm:$0xff]  }
 0x4ed   : > { %7821 = vmatpush1.bf16.msra.mxu1 %v19079_v53  ;;  %v19117_v53 = vld [vmem:[%s25281_s28 + $0x19c] ss:$12 sps:$4 sm:$0xff]  }
 0x4ee   : > { %7822 = vmatprep.subr.bf16.mxu1 %v19087_v21 }
 0x4f1   : > { %7823 = vmatpush1.bf16.msra.mxu1 %v19085_v44 }
 0x4f2   : > { %7824 = vmatprep.subr.bf16.mxu1 %v19093_v5 }
 0x4f5   : > { %7825 = vmatpush1.bf16.msra.mxu1 %v19091_v14 }
 0x4f6   : > { %7826 = vmatprep.subr.bf16.mxu1 %v19099_v28 }
 0x4f9   : > { %7827 = vmatpush1.bf16.msra.mxu1 %v19097_v58  ;;  %v19115_v58 = vld [vmem:[%s25281_s28 + $0x198] ss:$12 sps:$4 sm:$0xff]  }
 0x4fa   : > { %7828 = vmatprep.subr.bf16.mxu1 %v19105_v3  ;;  %v19118_v3 = vld [vmem:[%s25281_s28 + $0x600] ss:$12 sps:$4 sm:$0xff]  }
 0x4fd   : > { %7829 = vmatpush1.bf16.msra.mxu1 %v19103_v10 }
 0x4fe   : > { %7861 = vmatprep.subr.bf16.mxu1 %v19111_v55 }
 0x51b   : > { %v6419_v19 = vpop.f32.mrb[24].mxu1 }
 0x51c   : > { %v6421_v26 = vpop.f32.mrb[25].mxu1 }
 0x51d   : > { %v6423_v31 = vpop.f32.mrb[26].mxu1 }
 0x51e   : > { %v6425_v63 = vpop.f32.mrb[27].mxu1 }
 0x523   : > { %v22462_v32 = vpop.f32.mrb[28].mxu1 }
 0x524   : > { %v22464_v15 = vpop.f32.mrb[29].mxu1 }
 0x525   : > { %v22466_v22 = vpop.f32.mrb[30].mxu1 }
 0x526   : > { %v22468_v17 = vpop.f32.mrb[31].mxu1 }
 0x52b   : > { %v22470_v45 = vpop.f32.mrb[32].mxu1 }
 0x52c   : > { %v22472_v40 = vpop.f32.mrb[33].mxu1 }
 0x52d   : > { %v22474_v7 = vpop.f32.mrb[34].mxu1 }
 0x52e   : > { %v22476_v29 = vpop.f32.mrb[35].mxu1 }
 0x533   : > { %v22478_v51 = vpop.f32.mrb[36].mxu1 }
 0x534   : > { %v22480_v50 = vpop.f32.mrb[37].mxu1 }
 0x535   : > { %v22482_v11 = vpop.f32.mrb[38].mxu1 }
 0x536   : > { %v22484_v60 = vpop.f32.mrb[39].mxu1 }
 0x53b   : > { %v22486_v20 = vpop.f32.mrb[40].mxu1 }
 0x53c   : > { %v22488_v46 = vpop.f32.mrb[41].mxu1 }
 0x53d   : > { %v22490_v23 = vpop.f32.mrb[42].mxu1 }
 0x53e   : > { %v22492_v24 = vpop.f32.mrb[43].mxu1 }
 0x543   : > { %v22494_v42 = vpop.f32.mrb[44].mxu1 }
 0x544   : > { %v22496_v38 = vpop.f32.mrb[45].mxu1 }
 0x545   : > { %v22498_v48 = vpop.f32.mrb[46].mxu1 }
 0x546   : > { %v22500_v27 = vpop.f32.mrb[47].mxu1 }
 0x54b   : > { %v22502_v43 = vpop.f32.mrb[48].mxu1 }
 0x54c   : > { %v22504_v52 = vpop.f32.mrb[49].mxu1 }
 0x54d   : > { %v22506_v16 = vpop.f32.mrb[50].mxu1 }
 0x54e   : > { %v22508_v61 = vpop.f32.mrb[51].mxu1 }
 0x553   : > { %v22510_v59 = vpop.f32.mrb[52].mxu1 }
 0x554   : > { %v22512_v56 = vpop.f32.mrb[53].mxu1 }
 0x555   : > { %v22514_v62 = vpop.f32.mrb[54].mxu1 }
 0x556   : > { %v22516_v1 = vpop.f32.mrb[55].mxu1 }
 0x55b   : > { %v22518_v36 = vpop.f32.mrb[56].mxu1 }
 0x55c   : > { %v22520_v12 = vpop.f32.mrb[57].mxu1 }
 0x55d   : > { %v22522_v9 = vpop.f32.mrb[58].mxu1 }
 0x55e   : > { %v22524_v37 = vpop.f32.mrb[59].mxu1 }
 0x563   : > { %v6639_v34 = vpop.f32.mrb[60].mxu1 }
 0x564   : > { %v6794_v0 = vmax.f32 %v6419_v19, %v6639_v34  ;;  %v6641_v30 = vpop.f32.mrb[61].mxu1  ;;  %v19123_v19 = vld [vmem:[%s25281_s28 + $0x1b4] ss:$12 sps:$4 sm:$0xff]  }
 0x565   : > { %v6795_v18 = vmax.f32 %v6421_v26, %v6641_v30  ;;  %v6643_v41 = vpop.f32.mrb[62].mxu1  ;;  %v19126_v26 = vld [vmem:[%s25281_s28 + $0x61c] ss:$12 sps:$4 sm:$0xff]   ;;  %v19132_v34 = vld [vmem:[%s25281_s28 + $0x634] ss:$12 sps:$4 sm:$0xff]  }
 0x566   : > { %v6800_v57 = vmax.f32 %v6423_v31, %v6643_v41  ;;  %v6645_v33 = vpop.f32.mrb[63].mxu1 }
 0x567   : > { %v6801_v39 = vmax.f32 %v6425_v63, %v6645_v33  ;;  %v19127_v33 = vld [vmem:[%s25281_s28 + $0x1c8] ss:$12 sps:$4 sm:$0xff]  }
 0x568   : > { %v22526_v25 = vpack.c.bf16 %v6800_v57, %v6794_v0 }
 0x569   : > { %v22528_v6 = vpack.c.bf16 %v6801_v39, %v6795_v18  ;;  %v19130_v39 = vld [vmem:[%s25281_s28 + $0x630] ss:$12 sps:$4 sm:$0xff]  }
 0x56b   : > { %v6649_v21 = vpop.f32.mrb[64].mxu1  ;;  %7830 = vmatprep.mubr.bf16.mxu1 %v22528_v6  ;;  %9131 = vmatprep.mubr.bf16.mxu0 %v22528_v6 }
 0x56c   : > { %v6806_v44 = vmax.f32 %v22462_v32, %v6649_v21  ;;  %v6651_v5 = vpop.f32.mrb[65].mxu1  ;;  %7831 = vmatmul.mubr.bf16.vlgmr.msra.gmra.mrb[96].mxu1 %v22526_v25  ;;  %9132 = vmatmul.mubr.bf16.vlgmr.msra.gmra.mrb[48].mxu0 %v22526_v25 }
 0x56d   : > { %v6807_v14 = vmax.f32 %v22464_v15, %v6651_v5  ;;  %7862 = vmatpush1.bf16.msra.mxu1 %v19109_v47  ;;  %9163 = vmatpush1.bf16.msra.mxu0 %v19112_v8  ;;  %v6653_v28 = vpop.f32.mrb[66].mxu1  ;;  %v19121_v15 = vld [vmem:[%s25281_s28 + $0x1b0] ss:$12 sps:$4 sm:$0xff]   ;;  %v19138_v8 = vld [vmem:[%s25281_s28 + $0x64c] ss:$12 sps:$4 sm:$0xff]  }
 0x56e   : > { %v6812_v10 = vmax.f32 %v22466_v22, %v6653_v28  ;;  %v6655_v55 = vpop.f32.mrb[67].mxu1  ;;  %7863 = vmatprep.subr.bf16.mxu1 %v19117_v53  ;;  %9164 = vmatprep.subr.bf16.mxu0 %v19120_v49  ;;  %v19124_v22 = vld [vmem:[%s25281_s28 + $0x618] ss:$12 sps:$4 sm:$0xff]  }
 0x56f   : > { %v6813_v31 = vmax.f32 %v22468_v17, %v6655_v55  ;;  %v19129_v17 = vld [vmem:[%s25281_s28 + $0x1cc] ss:$12 sps:$4 sm:$0xff]   ;;  %v19144_v5 = vld [vmem:[%s25281_s28 + $0x664] ss:$12 sps:$4 sm:$0xff]  }
 0x570   : > { %v22562_v63 = vpack.c.bf16 %v6812_v10, %v6806_v44  ;;  %v19136_v44 = vld [vmem:[%s25281_s28 + $0x648] ss:$12 sps:$4 sm:$0xff]   ;;  %v19139_v55 = vld [vmem:[%s25281_s28 + $0x1f8] ss:$12 sps:$4 sm:$0xff]  }
 0x571   : > { %v22564_v32 = vpack.c.bf16 %v6813_v31, %v6807_v14  ;;  %7864 = vmatpush1.bf16.msra.mxu1 %v19115_v58  ;;  %9165 = vmatpush1.bf16.msra.mxu0 %v19118_v3  ;;  %v19150_v31 = vld [vmem:[%s25281_s28 + $0x67c] ss:$12 sps:$4 sm:$0xff]  }
 0x572   : > { %7865 = vmatprep.subr.bf16.mxu1 %v19123_v19  ;;  %9166 = vmatprep.subr.bf16.mxu0 %v19126_v26  ;;  %v19142_v19 = vld [vmem:[%s25281_s28 + $0x660] ss:$12 sps:$4 sm:$0xff]  }
 0x573   : > { %v6659_v0 = vpop.f32.mrb[68].mxu1  ;;  %7840 = vmatprep.mubr.bf16.mxu1 %v22564_v32  ;;  %9141 = vmatprep.mubr.bf16.mxu0 %v22564_v32 }
 0x574   : > { %v6818_v30 = vmax.f32 %v22470_v45, %v6659_v0  ;;  %v6661_v18 = vpop.f32.mrb[69].mxu1  ;;  %7841 = vmatmul.mubr.bf16.gmra.mrb[100].mxu1 %v22562_v63  ;;  %9142 = vmatmul.mubr.bf16.gmra.mrb[52].mxu0 %v22562_v63  ;;  %v19156_v0 = vld [vmem:[%s25281_s28 + $0x694] ss:$12 sps:$4 sm:$0xff]  }
 0x575   : > { %v6819_v41 = vmax.f32 %v22472_v40, %v6661_v18  ;;  %7866 = vmatpush1.bf16.msra.mxu1 %v19121_v15  ;;  %9167 = vmatpush1.bf16.msra.mxu0 %v19124_v22  ;;  %v6663_v57 = vpop.f32.mrb[70].mxu1  ;;  %v19135_v40 = vld [vmem:[%s25281_s28 + $0x1e4] ss:$12 sps:$4 sm:$0xff]  }
 0x576   : > { %v6824_v45 = vmax.f32 %v22474_v7, %v6663_v57  ;;  %v6665_v47 = vpop.f32.mrb[71].mxu1  ;;  %7867 = vmatprep.subr.bf16.mxu1 %v19129_v17  ;;  %9168 = vmatprep.subr.bf16.mxu0 %v19132_v34  ;;  %v19133_v7 = vld [vmem:[%s25281_s28 + $0x1e0] ss:$12 sps:$4 sm:$0xff]   ;;  %v19148_v34 = vld [vmem:[%s25281_s28 + $0x678] ss:$12 sps:$4 sm:$0xff]  }
 0x577   : > { %v6825_v53 = vmax.f32 %v22476_v29, %v6665_v47  ;;  %v19141_v29 = vld [vmem:[%s25281_s28 + $0x1fc] ss:$12 sps:$4 sm:$0xff]  }
 0x578   : > { %v22598_v49 = vpack.c.bf16 %v6824_v45, %v6818_v30  ;;  %v19154_v45 = vld [vmem:[%s25281_s28 + $0x690] ss:$12 sps:$4 sm:$0xff]  }
 0x579   : > { %v22600_v21 = vpack.c.bf16 %v6825_v53, %v6819_v41  ;;  %7868 = vmatpush1.bf16.msra.mxu1 %v19127_v33  ;;  %9169 = vmatpush1.bf16.msra.mxu0 %v19130_v39  ;;  %v19151_v39 = vld [vmem:[%s25281_s28 + $0x228] ss:$12 sps:$4 sm:$0xff]  }
 0x57a   : > { %7869 = vmatprep.subr.bf16.mxu1 %v19135_v40  ;;  %9170 = vmatprep.subr.bf16.mxu0 %v19138_v8 }
 0x57b   : > { %v6702_v14 = vpop.f32.mrb[72].mxu1  ;;  %7850 = vmatprep.mubr.bf16.mxu1 %v22600_v21  ;;  %9151 = vmatprep.mubr.bf16.mxu0 %v22600_v21 }
 0x57c   : > { %v6796_v28 = vmax.f32 %v22478_v51, %v6702_v14  ;;  %v6704_v58 = vpop.f32.mrb[73].mxu1  ;;  %7851 = vmatmul.mubr.bf16.gmra.mrb[104].mxu1 %v22598_v49  ;;  %9152 = vmatmul.mubr.bf16.gmra.mrb[56].mxu0 %v22598_v49 }
 0x57d   : > { %v6797_v3 = vmax.f32 %v22480_v50, %v6704_v58  ;;  %7870 = vmatpush1.bf16.msra.mxu1 %v19133_v7  ;;  %9171 = vmatpush1.bf16.msra.mxu0 %v19136_v44  ;;  %v6706_v10 = vpop.f32.mrb[74].mxu1  ;;  %v19147_v50 = vld [vmem:[%s25281_s28 + $0x214] ss:$12 sps:$4 sm:$0xff]  }
 0x57e   : > { %v6802_v51 = vmax.f32 %v22482_v11, %v6706_v10  ;;  %v6708_v26 = vpop.f32.mrb[75].mxu1  ;;  %7871 = vmatprep.subr.bf16.mxu1 %v19141_v29  ;;  %9172 = vmatprep.subr.bf16.mxu0 %v19144_v5  ;;  %v19145_v11 = vld [vmem:[%s25281_s28 + $0x210] ss:$12 sps:$4 sm:$0xff]   ;;  %v19160_v44 = vld [vmem:[%s25281_s28 + $0x6a8] ss:$12 sps:$4 sm:$0xff]  }
 0x57f   : > { %v6803_v15 = vmax.f32 %v22484_v60, %v6708_v26  ;;  %v19153_v60 = vld [vmem:[%s25281_s28 + $0x22c] ss:$12 sps:$4 sm:$0xff]   ;;  %v19168_v29 = vld [vmem:[%s25281_s28 + $0x6c4] ss:$12 sps:$4 sm:$0xff]  }
 0x580   : > { %v22634_v22 = vpack.c.bf16 %v6802_v51, %v6796_v28  ;;  %v19163_v10 = vld [vmem:[%s25281_s28 + $0x258] ss:$12 sps:$4 sm:$0xff]  }
 0x581   : > { %v22636_v17 = vpack.c.bf16 %v6803_v15, %v6797_v3  ;;  %7872 = vmatpush1.bf16.msra.mxu1 %v19139_v55  ;;  %9173 = vmatpush1.bf16.msra.mxu0 %v19142_v19  ;;  %v19166_v55 = vld [vmem:[%s25281_s28 + $0x6c0] ss:$12 sps:$4 sm:$0xff]   ;;  %v19172_v15 = vld [vmem:[%s25281_s28 + $0x6d8] ss:$12 sps:$4 sm:$0xff]  }
 0x582   : > { %7873 = vmatprep.subr.bf16.mxu1 %v19147_v50  ;;  %9174 = vmatprep.subr.bf16.mxu0 %v19150_v31 }
 0x583   : > { %v6712_v30 = vpop.f32.mrb[76].mxu1  ;;  %7893 = vmatprep.mubr.bf16.mxu1 %v22636_v17  ;;  %9194 = vmatprep.mubr.bf16.mxu0 %v22636_v17 }
 0x584   : > { %v6808_v18 = vmax.f32 %v22486_v20, %v6712_v30  ;;  %v6714_v41 = vpop.f32.mrb[77].mxu1  ;;  %v19159_v20 = vld [vmem:[%s25281_s28 + $0x244] ss:$12 sps:$4 sm:$0xff]  }
 0x585   : > { %v6809_v57 = vmax.f32 %v22488_v46, %v6714_v41  ;;  %7874 = vmatpush1.bf16.msra.mxu1 %v19145_v11  ;;  %9175 = vmatpush1.bf16.msra.mxu0 %v19148_v34  ;;  %v6716_v33 = vpop.f32.mrb[78].mxu1  ;;  %v19162_v46 = vld [vmem:[%s25281_s28 + $0x6ac] ss:$12 sps:$4 sm:$0xff]   ;;  %v19180_v11 = vld [vmem:[%s25281_s28 + $0x6f4] ss:$12 sps:$4 sm:$0xff]  }
 0x586   : > { %v6814_v47 = vmax.f32 %v22490_v23, %v6716_v33  ;;  %v6718_v40 = vpop.f32.mrb[79].mxu1  ;;  %7875 = vmatprep.subr.bf16.mxu1 %v19153_v60  ;;  %9176 = vmatprep.subr.bf16.mxu0 %v19156_v0  ;;  %v19157_v23 = vld [vmem:[%s25281_s28 + $0x240] ss:$12 sps:$4 sm:$0xff]   ;;  %v19175_v41 = vld [vmem:[%s25281_s28 + $0x288] ss:$12 sps:$4 sm:$0xff]  }
 0x587   : > { %v6815_v8 = vmax.f32 %v22492_v24, %v6718_v40  ;;  %v19165_v24 = vld [vmem:[%s25281_s28 + $0x25c] ss:$12 sps:$4 sm:$0xff]  }
 0x588   : > { %v22668_v53 = vpack.c.bf16 %v6814_v47, %v6808_v18 }
 0x589   : > { %v22670_v7 = vpack.c.bf16 %v6815_v8, %v6809_v57  ;;  %7876 = vmatpush1.bf16.msra.mxu1 %v19151_v39  ;;  %9177 = vmatpush1.bf16.msra.mxu0 %v19154_v45  ;;  %v19178_v57 = vld [vmem:[%s25281_s28 + $0x6f0] ss:$12 sps:$4 sm:$0xff]  }
 0x58a   : > { %7877 = vmatprep.subr.bf16.mxu1 %v19159_v20  ;;  %9178 = vmatprep.subr.bf16.mxu0 %v19162_v46  ;;  %v19184_v20 = vld [vmem:[%s25281_s28 + $0x708] ss:$12 sps:$4 sm:$0xff]   ;;  %v19192_v46 = vld [vmem:[%s25281_s28 + $0x724] ss:$12 sps:$4 sm:$0xff]  }
 0x58b   : > { %v6722_v5 = vpop.f32.mrb[80].mxu1 }
 0x58c   : > { %v6820_v14 = vmax.f32 %v22494_v42, %v6722_v5  ;;  %v6724_v28 = vpop.f32.mrb[81].mxu1  ;;  %v19171_v42 = vld [vmem:[%s25281_s28 + $0x274] ss:$12 sps:$4 sm:$0xff]   ;;  %v19187_v5 = vld [vmem:[%s25281_s28 + $0x2b8] ss:$12 sps:$4 sm:$0xff]  }
 0x58d   : > { %v6821_v58 = vmax.f32 %v22496_v38, %v6724_v28  ;;  %7878 = vmatpush1.bf16.msra.mxu1 %v19157_v23  ;;  %9179 = vmatpush1.bf16.msra.mxu0 %v19160_v44  ;;  %v6726_v3 = vpop.f32.mrb[82].mxu1  ;;  %v19174_v38 = vld [vmem:[%s25281_s28 + $0x6dc] ss:$12 sps:$4 sm:$0xff]  }
 0x58e   : > { %v6826_v19 = vmax.f32 %v22498_v48, %v6726_v3  ;;  %v6728_v51 = vpop.f32.mrb[83].mxu1  ;;  %7879 = vmatprep.subr.bf16.mxu1 %v19165_v24  ;;  %9180 = vmatprep.subr.bf16.mxu0 %v19168_v29  ;;  %v19169_v48 = vld [vmem:[%s25281_s28 + $0x270] ss:$12 sps:$4 sm:$0xff]  }
 0x58f   : > { %v6827_v26 = vmax.f32 %v22500_v27, %v6728_v51  ;;  %v19177_v27 = vld [vmem:[%s25281_s28 + $0x28c] ss:$12 sps:$4 sm:$0xff]   ;;  %v19204_v51 = vld [vmem:[%s25281_s28 + $0x754] ss:$12 sps:$4 sm:$0xff]  }
 0x590   : > { %v22700_v50 = vpack.c.bf16 %v6826_v19, %v6820_v14  ;;  %v19190_v14 = vld [vmem:[%s25281_s28 + $0x720] ss:$12 sps:$4 sm:$0xff]   ;;  %v19196_v19 = vld [vmem:[%s25281_s28 + $0x738] ss:$12 sps:$4 sm:$0xff]  }
 0x591   : > { %v22702_v31 = vpack.c.bf16 %v6827_v26, %v6821_v58  ;;  %7880 = vmatpush1.bf16.msra.mxu1 %v19163_v10  ;;  %9181 = vmatpush1.bf16.msra.mxu0 %v19166_v55 }
 0x592   : > { %7881 = vmatprep.subr.bf16.mxu1 %v19171_v42  ;;  %9182 = vmatprep.subr.bf16.mxu0 %v19174_v38 }
 0x593   : > { %v6765_v34 = vpop.f32.mrb[84].mxu1 }
 0x594   : > { %v6798_v60 = vmax.f32 %v22502_v43, %v6765_v34  ;;  %v6767_v0 = vpop.f32.mrb[85].mxu1  ;;  %v19183_v43 = vld [vmem:[%s25281_s28 + $0x2a4] ss:$12 sps:$4 sm:$0xff]  }
 0x595   : > { %v6799_v30 = vmax.f32 %v22504_v52, %v6767_v0  ;;  %7882 = vmatpush1.bf16.msra.mxu1 %v19169_v48  ;;  %9183 = vmatpush1.bf16.msra.mxu0 %v19172_v15  ;;  %v6769_v18 = vpop.f32.mrb[86].mxu1  ;;  %v19186_v52 = vld [vmem:[%s25281_s28 + $0x70c] ss:$12 sps:$4 sm:$0xff]  }
 0x596   : > { %v6804_v33 = vmax.f32 %v22506_v16, %v6769_v18  ;;  %v6771_v39 = vpop.f32.mrb[87].mxu1  ;;  %7883 = vmatprep.subr.bf16.mxu1 %v19177_v27  ;;  %9184 = vmatprep.subr.bf16.mxu0 %v19180_v11  ;;  %v19181_v16 = vld [vmem:[%s25281_s28 + $0x2a0] ss:$12 sps:$4 sm:$0xff]   ;;  %v19199_v27 = vld [vmem:[%s25281_s28 + $0x2e8] ss:$12 sps:$4 sm:$0xff]  }
 0x597   : > { %v6805_v45 = vmax.f32 %v22508_v61, %v6771_v39  ;;  %v19189_v61 = vld [vmem:[%s25281_s28 + $0x2bc] ss:$12 sps:$4 sm:$0xff]   ;;  %v19214_v39 = vld [vmem:[%s25281_s28 + $0x780] ss:$12 sps:$4 sm:$0xff]  }
 0x598   : > { %v22732_v47 = vpack.c.bf16 %v6804_v33, %v6798_v60  ;;  %v19202_v11 = vld [vmem:[%s25281_s28 + $0x750] ss:$12 sps:$4 sm:$0xff]   ;;  %v19211_v33 = vld [vmem:[%s25281_s28 + $0x318] ss:$12 sps:$4 sm:$0xff]  }
 0x599   : > { %v22734_v40 = vpack.c.bf16 %v6805_v45, %v6799_v30  ;;  %7884 = vmatpush1.bf16.msra.mxu1 %v19175_v41  ;;  %9185 = vmatpush1.bf16.msra.mxu0 %v19178_v57  ;;  %v19208_v41 = vld [vmem:[%s25281_s28 + $0x768] ss:$12 sps:$4 sm:$0xff]   ;;  %v19216_v57 = vld [vmem:[%s25281_s28 + $0x784] ss:$12 sps:$4 sm:$0xff]  }
 0x59a   : > { %7885 = vmatprep.subr.bf16.mxu1 %v19183_v43  ;;  %9186 = vmatprep.subr.bf16.mxu0 %v19186_v52  ;;  %v19219_v43 = vld [vmem:[%s25281_s28 + $0x334] ss:$12 sps:$4 sm:$0xff]   ;;  %v19222_v52 = vld [vmem:[%s25281_s28 + $0x79c] ss:$12 sps:$4 sm:$0xff]  }
 0x59b   : > { %v6775_v8 = vpop.f32.mrb[88].mxu1  ;;  %v19217_v45 = vld [vmem:[%s25281_s28 + $0x330] ss:$12 sps:$4 sm:$0xff]  }
 0x59c   : > { %v6810_v23 = vmax.f32 %v22510_v59, %v6775_v8  ;;  %v6777_v44 = vpop.f32.mrb[89].mxu1  ;;  %v19195_v59 = vld [vmem:[%s25281_s28 + $0x2d4] ss:$12 sps:$4 sm:$0xff]   ;;  %v19226_v8 = vld [vmem:[%s25281_s28 + $0x7b0] ss:$12 sps:$4 sm:$0xff]  }
 0x59d   : > { %v6811_v24 = vmax.f32 %v22512_v56, %v6777_v44  ;;  %7886 = vmatpush1.bf16.msra.mxu1 %v19181_v16  ;;  %9187 = vmatpush1.bf16.msra.mxu0 %v19184_v20  ;;  %v6779_v29 = vpop.f32.mrb[90].mxu1  ;;  %v19198_v56 = vld [vmem:[%s25281_s28 + $0x73c] ss:$12 sps:$4 sm:$0xff]   ;;  %v19220_v16 = vld [vmem:[%s25281_s28 + $0x798] ss:$12 sps:$4 sm:$0xff]  }
 0x59e   : > { %v6816_v28 = vmax.f32 %v22514_v62, %v6779_v29  ;;  %v6781_v58 = vpop.f32.mrb[91].mxu1  ;;  %7887 = vmatprep.subr.bf16.mxu1 %v19189_v61  ;;  %9188 = vmatprep.subr.bf16.mxu0 %v19192_v46  ;;  %v19193_v62 = vld [vmem:[%s25281_s28 + $0x2d0] ss:$12 sps:$4 sm:$0xff]   ;;  %v19225_v20 = vld [vmem:[%s25281_s28 + $0x34c] ss:$12 sps:$4 sm:$0xff]  }
 0x59f   : > { %v6817_v3 = vmax.f32 %v22516_v1, %v6781_v58  ;;  %v19201_v1 = vld [vmem:[%s25281_s28 + $0x2ec] ss:$12 sps:$4 sm:$0xff]   ;;  %v19228_v61 = vld [vmem:[%s25281_s28 + $0x7b4] ss:$12 sps:$4 sm:$0xff]  }
 0x5a0   : > { %v22764_v10 = vpack.c.bf16 %v6816_v28, %v6810_v23  ;;  %v19223_v46 = vld [vmem:[%s25281_s28 + $0x348] ss:$12 sps:$4 sm:$0xff]   ;;  %v19231_v23 = vld [vmem:[%s25281_s28 + $0x364] ss:$12 sps:$4 sm:$0xff]   ;;  %v19234_v44 = vld [vmem:[%s25281_s28 + $0x7cc] ss:$12 sps:$4 sm:$0xff]  }
 0x5a1   : > { %v22766_v55 = vpack.c.bf16 %v6817_v3, %v6811_v24  ;;  %7888 = vmatpush1.bf16.msra.mxu1 %v19187_v5  ;;  %9189 = vmatpush1.bf16.msra.mxu0 %v19190_v14  ;;  %v19229_v24 = vld [vmem:[%s25281_s28 + $0x360] ss:$12 sps:$4 sm:$0xff]   ;;  %v19232_v29 = vld [vmem:[%s25281_s28 + $0x7c8] ss:$12 sps:$4 sm:$0xff]   ;;  %v19240_v14 = vld [vmem:[%s25281_s28 + $0x7e4] ss:$12 sps:$4 sm:$0xff]  }
 0x5a2   : > { %7889 = vmatprep.subr.bf16.mxu1 %v19195_v59  ;;  %9190 = vmatprep.subr.bf16.mxu0 %v19198_v56  ;;  %v19237_v5 = vld [vmem:[%s25281_s28 + $0x37c] ss:$12 sps:$4 sm:$0xff]   ;;  %v19235_v28 = vld [vmem:[%s25281_s28 + $0x378] ss:$12 sps:$4 sm:$0xff]   ;;  %v19238_v58 = vld [vmem:[%s25281_s28 + $0x7e0] ss:$12 sps:$4 sm:$0xff]  }
 0x5a3   : > { %v6785_v42 = vpop.f32.mrb[92].mxu1  ;;  %v19243_v59 = vld [vmem:[%s25281_s28 + $0x394] ss:$12 sps:$4 sm:$0xff]   ;;  %v19246_v56 = vld [vmem:[%s25281_s28 + $0x7fc] ss:$12 sps:$4 sm:$0xff]  }
 0x5a4   : > { %v6822_v38 = vmax.f32 %v22518_v36, %v6785_v42  ;;  %v6787_v26 = vpop.f32.mrb[93].mxu1  ;;  %v19207_v36 = vld [vmem:[%s25281_s28 + $0x304] ss:$12 sps:$4 sm:$0xff]  }
 0x5a5   : > { %v6823_v48 = vmax.f32 %v22520_v12, %v6787_v26  ;;  %7890 = vmatpush1.bf16.msra.mxu1 %v19193_v62  ;;  %9191 = vmatpush1.bf16.msra.mxu0 %v19196_v19  ;;  %v6789_v15 = vpop.f32.mrb[94].mxu1  ;;  %v19210_v12 = vld [vmem:[%s25281_s28 + $0x76c] ss:$12 sps:$4 sm:$0xff]   ;;  %v19241_v3 = vld [vmem:[%s25281_s28 + $0x390] ss:$12 sps:$4 sm:$0xff]  }
 0x5a6   : > { %v6828_v34 = vmax.f32 %v22522_v9, %v6789_v15  ;;  %v6791_v60 = vpop.f32.mrb[95].mxu1  ;;  %7891 = vmatprep.subr.bf16.mxu1 %v19201_v1  ;;  %9192 = vmatprep.subr.bf16.mxu0 %v19204_v51  ;;  %v19205_v9 = vld [vmem:[%s25281_s28 + $0x300] ss:$12 sps:$4 sm:$0xff]   ;;  %v19244_v62 = vld [vmem:[%s25281_s28 + $0x7f8] ss:$12 sps:$4 sm:$0xff]  }
 0x5a7   : > { %v6829_v0 = vmax.f32 %v22524_v37, %v6791_v60  ;;  %v19213_v37 = vld [vmem:[%s25281_s28 + $0x31c] ss:$12 sps:$4 sm:$0xff]   ;;  %v19249_v19 = vld [vmem:[%s25281_s28 + $0x3ac] ss:$12 sps:$4 sm:$0xff]   ;;  %v19252_v1 = vld [vmem:[%s25281_s28 + $0x814] ss:$12 sps:$4 sm:$0xff]  }
 0x5a8   : > { %v22796_v30 = vpack.c.bf16 %v6828_v34, %v6822_v38  ;;  %v19247_v51 = vld [vmem:[%s25281_s28 + $0x3a8] ss:$12 sps:$4 sm:$0xff]   ;;  %v19250_v42 = vld [vmem:[%s25281_s28 + $0x810] ss:$12 sps:$4 sm:$0xff]   ;;  %v19258_v26 = vld [vmem:[%s25281_s28 + $0x82c] ss:$12 sps:$4 sm:$0xff]  }
 0x5a9   : > { %v22798_v18 = vpack.c.bf16 %v6829_v0, %v6823_v48  ;;  %7892 = vmatpush1.bf16.msra.mxu1 %v19199_v27  ;;  %9193 = vmatpush1.bf16.msra.mxu0 %v19202_v11  ;;  %v19255_v38 = vld [vmem:[%s25281_s28 + $0x3c4] ss:$12 sps:$4 sm:$0xff]   ;;  %v19253_v48 = vld [vmem:[%s25281_s28 + $0x3c0] ss:$12 sps:$4 sm:$0xff]   ;;  %v19256_v15 = vld [vmem:[%s25281_s28 + $0x828] ss:$12 sps:$4 sm:$0xff]  }
 0x5aa   : > { %7924 = vmatprep.subr.bf16.mxu1 %v19207_v36  ;;  %9225 = vmatprep.subr.bf16.mxu0 %v19210_v12  ;;  %v19261_v27 = vld [vmem:[%s25281_s28 + $0x3dc] ss:$12 sps:$4 sm:$0xff]   ;;  %v19264_v11 = vld [vmem:[%s25281_s28 + $0x844] ss:$12 sps:$4 sm:$0xff]   ;;  %v19262_v60 = vld [vmem:[%s25281_s28 + $0x840] ss:$12 sps:$4 sm:$0xff]  }
 0x5ab   : > { %v19259_v34 = vld [vmem:[%s25281_s28 + $0x3d8] ss:$12 sps:$4 sm:$0xff]   ;;  %v19267_v36 = vld [vmem:[%s25281_s28 + $0x3f4] ss:$12 sps:$4 sm:$0xff]   ;;  %v19270_v12 = vld [vmem:[%s25281_s28 + $0x85c] ss:$12 sps:$4 sm:$0xff]  }
 0x5ac   : > { %7894 = vmatmul.mubr.bf16.vlgmr.msra.gmra.mrb[96].mxu1 %v22634_v22  ;;  %9195 = vmatmul.mubr.bf16.vlgmr.msra.gmra.mrb[48].mxu0 %v22634_v22  ;;  %v19265_v0 = vld [vmem:[%s25281_s28 + $0x3f0] ss:$12 sps:$4 sm:$0xff]  }
 0x5ad   : > { %7903 = vmatprep.mubr.bf16.mxu1 %v22670_v7  ;;  %7925 = vmatpush1.bf16.msra.mxu1 %v19205_v9  ;;  %v19268_v9 = vld [vmem:[%s25281_s28 + $0x858] ss:$12 sps:$4 sm:$0xff]  }
 0x5ae   : > { %9204 = vmatprep.mubr.bf16.mxu0 %v22670_v7  ;;  %9226 = vmatpush1.bf16.msra.mxu0 %v19208_v41  ;;  %v19273_v41 = vld [vmem:[%s25281_s28 + $0x40c] ss:$12 sps:$4 sm:$0xff]  }
 0x5af   : > { %7926 = vmatprep.subr.bf16.mxu1 %v19213_v37  ;;  %9227 = vmatprep.subr.bf16.mxu0 %v19216_v57  ;;  %v19276_v37 = vld [vmem:[%s25281_s28 + $0x874] ss:$12 sps:$4 sm:$0xff]  }
 0x5b0   : > { %v19271_v57 = vld [vmem:[%s25281_s28 + $0x408] ss:$12 sps:$4 sm:$0xff]  }
 0x5b1   : > { %7927 = vmatpush1.bf16.msra.mxu1 %v19211_v33  ;;  %v19274_v33 = vld [vmem:[%s25281_s28 + $0x870] ss:$12 sps:$4 sm:$0xff]  }
 0x5b2   : > { %9228 = vmatpush1.bf16.msra.mxu0 %v19214_v39  ;;  %7928 = vmatprep.subr.bf16.mxu1 %v19219_v43  ;;  %v19279_v39 = vld [vmem:[%s25281_s28 + $0x424] ss:$12 sps:$4 sm:$0xff]   ;;  %v19282_v43 = vld [vmem:[%s25281_s28 + $0x88c] ss:$12 sps:$4 sm:$0xff]  }
 0x5b3   : > { %9229 = vmatprep.subr.bf16.mxu0 %v19222_v52  ;;  %v19277_v52 = vld [vmem:[%s25281_s28 + $0x420] ss:$12 sps:$4 sm:$0xff]  }
 0x5b4   : > { %7904 = vmatmul.mubr.bf16.gmra.mrb[100].mxu1 %v22668_v53  ;;  %9205 = vmatmul.mubr.bf16.gmra.mrb[52].mxu0 %v22668_v53 }
 0x5b5   : > { %7913 = vmatprep.mubr.bf16.mxu1 %v22702_v31  ;;  %7929 = vmatpush1.bf16.msra.mxu1 %v19217_v45  ;;  %v19280_v45 = vld [vmem:[%s25281_s28 + $0x888] ss:$12 sps:$4 sm:$0xff]  }
 0x5b6   : > { %9214 = vmatprep.mubr.bf16.mxu0 %v22702_v31  ;;  %9230 = vmatpush1.bf16.msra.mxu0 %v19220_v16  ;;  %v19285_v16 = vld [vmem:[%s25281_s28 + $0x43c] ss:$12 sps:$4 sm:$0xff]  }
 0x5b7   : > { %7930 = vmatprep.subr.bf16.mxu1 %v19225_v20  ;;  %9231 = vmatprep.subr.bf16.mxu0 %v19228_v61  ;;  %v19288_v20 = vld [vmem:[%s25281_s28 + $0x8a4] ss:$12 sps:$4 sm:$0xff]  }
 0x5b8   : > { %v19283_v61 = vld [vmem:[%s25281_s28 + $0x438] ss:$12 sps:$4 sm:$0xff]  }
 0x5b9   : > { %7931 = vmatpush1.bf16.msra.mxu1 %v19223_v46  ;;  %v19286_v46 = vld [vmem:[%s25281_s28 + $0x8a0] ss:$12 sps:$4 sm:$0xff]  }
 0x5ba   : > { %9232 = vmatpush1.bf16.msra.mxu0 %v19226_v8  ;;  %7932 = vmatprep.subr.bf16.mxu1 %v19231_v23  ;;  %v19291_v8 = vld [vmem:[%s25281_s28 + $0x454] ss:$12 sps:$4 sm:$0xff]   ;;  %v19294_v23 = vld [vmem:[%s25281_s28 + $0x8bc] ss:$12 sps:$4 sm:$0xff]  }
 0x5bb   : > { %9233 = vmatprep.subr.bf16.mxu0 %v19234_v44  ;;  %v19289_v44 = vld [vmem:[%s25281_s28 + $0x450] ss:$12 sps:$4 sm:$0xff]  }
 0x5bc   : > { %7914 = vmatmul.mubr.bf16.gmra.mrb[104].mxu1 %v22700_v50  ;;  %9215 = vmatmul.mubr.bf16.gmra.mrb[56].mxu0 %v22700_v50 }
 0x5bd   : > { %7933 = vmatpush1.bf16.msra.mxu1 %v19229_v24  ;;  %16013 = vmatprep.mubr.msk.bf16.mxu1 %vm7788_vm4, %v22734_v40  ;;  %v19292_v24 = vld [vmem:[%s25281_s28 + $0x8b8] ss:$12 sps:$4 sm:$0xff]  }
 0x5be   : > { %9234 = vmatpush1.bf16.msra.mxu0 %v19232_v29  ;;  %16348 = vmatprep.mubr.msk.bf16.mxu0 %vm7788_vm4, %v22734_v40  ;;  %v19295_v29 = vld [vmem:[%s25281_s28 + $0xc8] ss:$12 sps:$4 sm:$0xff]  }
 0x5bf   : > { %7934 = vmatprep.subr.bf16.mxu1 %v19237_v5  ;;  %9235 = vmatprep.subr.bf16.mxu0 %v19240_v14  ;;  %v19296_v5 = vld [vmem:[%s25281_s28 + $0x8] ss:$12 sps:$4 sm:$0xff]   ;;  %v19297_v14 = vld [vmem:[%s25281_s28 + $0xe0] ss:$12 sps:$4 sm:$0xff]  }
 0x5c1   : > { %7935 = vmatpush1.bf16.msra.mxu1 %v19235_v28  ;;  %v19298_v28 = vld [vmem:[%s25281_s28 + $0x20] ss:$12 sps:$4 sm:$0xff]  }
 0x5c2   : > { %9236 = vmatpush1.bf16.msra.mxu0 %v19238_v58  ;;  %7936 = vmatprep.subr.bf16.mxu1 %v19243_v59  ;;  %v19299_v58 = vld [vmem:[%s25281_s28 + $0xf8] ss:$12 sps:$4 sm:$0xff]  }
 0x5c3   : > { %9237 = vmatprep.subr.bf16.mxu0 %v19246_v56  ;;  %v19300_v59 = vld [vmem:[%s25281_s28 + $0x38] ss:$12 sps:$4 sm:$0xff]   ;;  %v19301_v56 = vld [vmem:[%s25281_s28 + $0x110] ss:$12 sps:$4 sm:$0xff]  }
 0x5c5   : > { %7937 = vmatpush1.bf16.msra.mxu1 %v19241_v3  ;;  %v19302_v3 = vld [vmem:[%s25281_s28 + $0x50] ss:$12 sps:$4 sm:$0xff]  }
 0x5c6   : > { %9238 = vmatpush1.bf16.msra.mxu0 %v19244_v62  ;;  %7938 = vmatprep.subr.bf16.mxu1 %v19249_v19  ;;  %v19303_v62 = vld [vmem:[%s25281_s28 + $0x128] ss:$12 sps:$4 sm:$0xff]  }
 0x5c7   : > { %9239 = vmatprep.subr.bf16.mxu0 %v19252_v1  ;;  %v19304_v19 = vld [vmem:[%s25281_s28 + $0x68] ss:$12 sps:$4 sm:$0xff]   ;;  %v19305_v1 = vld [vmem:[%s25281_s28 + $0x140] ss:$12 sps:$4 sm:$0xff]  }
 0x5c9   : > { %7939 = vmatpush1.bf16.msra.mxu1 %v19247_v51  ;;  %v19306_v51 = vld [vmem:[%s25281_s28 + $0x80] ss:$12 sps:$4 sm:$0xff]  }
 0x5ca   : > { %9240 = vmatpush1.bf16.msra.mxu0 %v19250_v42  ;;  %7940 = vmatprep.subr.bf16.mxu1 %v19255_v38  ;;  %v19307_v42 = vld [vmem:[%s25281_s28 + $0x158] ss:$12 sps:$4 sm:$0xff]  }
 0x5cb   : > { %9241 = vmatprep.subr.bf16.mxu0 %v19258_v26  ;;  %v19308_v38 = vld [vmem:[%s25281_s28 + $0x98] ss:$12 sps:$4 sm:$0xff]   ;;  %v19309_v26 = vld [vmem:[%s25281_s28 + $0x170] ss:$12 sps:$4 sm:$0xff]  }
 0x5cd   : > { %7941 = vmatpush1.bf16.msra.mxu1 %v19253_v48  ;;  %v19310_v48 = vld [vmem:[%s25281_s28 + $0xb0] ss:$12 sps:$4 sm:$0xff]  }
 0x5ce   : > { %9242 = vmatpush1.bf16.msra.mxu0 %v19256_v15  ;;  %7942 = vmatprep.subr.bf16.mxu1 %v19261_v27  ;;  %v19311_v15 = vld [vmem:[%s25281_s28 + $0x248] ss:$12 sps:$4 sm:$0xff]  }
 0x5cf   : > { %9243 = vmatprep.subr.bf16.mxu0 %v19264_v11  ;;  %v19312_v27 = vld [vmem:[%s25281_s28 + $0x188] ss:$12 sps:$4 sm:$0xff]   ;;  %v19313_v11 = vld [vmem:[%s25281_s28 + $0x260] ss:$12 sps:$4 sm:$0xff]  }
 0x5d1   : > { %7943 = vmatpush1.bf16.msra.mxu1 %v19259_v34  ;;  %v19314_v34 = vld [vmem:[%s25281_s28 + $0x1a0] ss:$12 sps:$4 sm:$0xff]  }
 0x5d2   : > { %9244 = vmatpush1.bf16.msra.mxu0 %v19262_v60  ;;  %7944 = vmatprep.subr.bf16.mxu1 %v19267_v36  ;;  %v19315_v60 = vld [vmem:[%s25281_s28 + $0x278] ss:$12 sps:$4 sm:$0xff]  }
 0x5d3   : > { %9245 = vmatprep.subr.bf16.mxu0 %v19270_v12  ;;  %v19316_v36 = vld [vmem:[%s25281_s28 + $0x1b8] ss:$12 sps:$4 sm:$0xff]   ;;  %v19317_v12 = vld [vmem:[%s25281_s28 + $0x290] ss:$12 sps:$4 sm:$0xff]  }
 0x5d5   : > { %7945 = vmatpush1.bf16.msra.mxu1 %v19265_v0  ;;  %v19318_v0 = vld [vmem:[%s25281_s28 + $0x1d0] ss:$12 sps:$4 sm:$0xff]  }
 0x5d6   : > { %9246 = vmatpush1.bf16.msra.mxu0 %v19268_v9  ;;  %7946 = vmatprep.subr.bf16.mxu1 %v19273_v41  ;;  %v19319_v9 = vld [vmem:[%s25281_s28 + $0x2a8] ss:$12 sps:$4 sm:$0xff]  }
 0x5d7   : > { %9247 = vmatprep.subr.bf16.mxu0 %v19276_v37  ;;  %v19320_v41 = vld [vmem:[%s25281_s28 + $0x1e8] ss:$12 sps:$4 sm:$0xff]   ;;  %v19321_v37 = vld [vmem:[%s25281_s28 + $0x2c0] ss:$12 sps:$4 sm:$0xff]  }
 0x5d9   : > { %7947 = vmatpush1.bf16.msra.mxu1 %v19271_v57  ;;  %v19322_v57 = vld [vmem:[%s25281_s28 + $0x200] ss:$12 sps:$4 sm:$0xff]  }
 0x5da   : > { %9248 = vmatpush1.bf16.msra.mxu0 %v19274_v33  ;;  %7948 = vmatprep.subr.bf16.mxu1 %v19279_v39  ;;  %v19323_v33 = vld [vmem:[%s25281_s28 + $0x2d8] ss:$12 sps:$4 sm:$0xff]  }
 0x5db   : > { %9249 = vmatprep.subr.bf16.mxu0 %v19282_v43  ;;  %v19324_v39 = vld [vmem:[%s25281_s28 + $0x218] ss:$12 sps:$4 sm:$0xff]   ;;  %v19325_v43 = vld [vmem:[%s25281_s28 + $0x2f0] ss:$12 sps:$4 sm:$0xff]  }
 0x5dd   : > { %7949 = vmatpush1.bf16.msra.mxu1 %v19277_v52  ;;  %v19326_v52 = vld [vmem:[%s25281_s28 + $0x230] ss:$12 sps:$4 sm:$0xff]  }
 0x5de   : > { %9250 = vmatpush1.bf16.msra.mxu0 %v19280_v45  ;;  %7950 = vmatprep.subr.bf16.mxu1 %v19285_v16  ;;  %v19327_v45 = vld [vmem:[%s25281_s28 + $0x308] ss:$12 sps:$4 sm:$0xff]   ;;  %v19328_v16 = vld [vmem:[%s25281_s28 + $0x320] ss:$12 sps:$4 sm:$0xff]  }
 0x5df   : > { %9251 = vmatprep.subr.bf16.mxu0 %v19288_v20  ;;  %v19329_v20 = vld [vmem:[%s25281_s28 + $0x338] ss:$12 sps:$4 sm:$0xff]  }
 0x5e1   : > { %7951 = vmatpush1.bf16.msra.mxu1 %v19283_v61  ;;  %v19378_v61 = vld [vmem:[%s25282_s3 + $0x2fc] ss:$12 sps:$4 sm:$0xff]  }
 0x5e2   : > { %9252 = vmatpush1.bf16.msra.mxu0 %v19286_v46  ;;  %7952 = vmatprep.subr.bf16.mxu1 %v19291_v8  ;;  %v19379_v46 = vld [vmem:[%s25282_s3 + $0x23c] ss:$12 sps:$4 sm:$0xff]  }
 0x5e3   : > { %9253 = vmatprep.subr.bf16.mxu0 %v19294_v23  ;;  %v19330_v8 = vld [vmem:[%s25281_s28 + $0x350] ss:$12 sps:$4 sm:$0xff]   ;;  %v19381_v23 = vld [vmem:[%s25282_s3 + $0x314] ss:$12 sps:$4 sm:$0xff]  }
 0x5e5   : > { %7953 = vmatpush1.bf16.msra.mxu1 %v19289_v44  ;;  %v19382_v44 = vld [vmem:[%s25282_s3 + $0x254] ss:$12 sps:$4 sm:$0xff]  }
 0x5e6   : > { %9254 = vmatpush1.bf16.msra.mxu0 %v19292_v24  ;;  %17195 = vmatprep.subr.bf16.mxu1 %v19295_v29  ;;  %v19331_v24 = vld [vmem:[%s25281_s28 + $0x368] ss:$12 sps:$4 sm:$0xff]   ;;  %v19384_v29 = vld [vmem:[%s25282_s3 + $0x32c] ss:$12 sps:$4 sm:$0xff]  }
 0x5e7   : > { %17331 = vmatprep.subr.bf16.mxu0 %v19378_v61  ;;  %v19355_v61 = vld [vmem:[%s25281_s28 + $0x500] ss:$12 sps:$4 sm:$0xff]  }
 0x5e8   : > { %7957 = vmatmul.mubr.bf16.vlgmr.msra.gmra.mrb[96].mxu1 %v22732_v47 }
 0x5e9   : > { %9258 = vmatmul.mubr.bf16.vlgmr.msra.gmra.mrb[48].mxu0 %v22732_v47  ;;  %16014 = vmatprep.mubr.msk.bf16.mxu1 %vm7788_vm4, %v22766_v55 }
 0x5ea   : > { %17196 = vmatpush3.bf16.msra.mxu1 %v19296_v5  ;;  %16349 = vmatprep.mubr.msk.bf16.mxu0 %vm7788_vm4, %v22766_v55  ;;  %v19385_v5 = vld [vmem:[%s25282_s3 + $0x26c] ss:$12 sps:$4 sm:$0xff]  }
 0x5eb   : > { %17197 = vmatprep.subr.bf16.mxu1 %v19297_v14  ;;  %17332 = vmatpush3.bf16.msra.mxu0 %v19379_v46  ;;  %v19332_v14 = vld [vmem:[%s25281_s28 + $0x380] ss:$12 sps:$4 sm:$0xff]   ;;  %v19356_v46 = vld [vmem:[%s25281_s28 + $0x5d8] ss:$12 sps:$4 sm:$0xff]  }
 0x5ec   : > { %17333 = vmatprep.subr.bf16.mxu0 %v19381_v23  ;;  %v19359_v23 = vld [vmem:[%s25281_s28 + $0x5f0] ss:$12 sps:$4 sm:$0xff]  }
 0x5ee   : > { %17198 = vmatpush3.bf16.msra.mxu1 %v19298_v28  ;;  %v19387_v28 = vld [vmem:[%s25282_s3 + $0x344] ss:$12 sps:$4 sm:$0xff]  }
 0x5ef   : > { %17199 = vmatprep.subr.bf16.mxu1 %v19299_v58  ;;  %17334 = vmatpush3.bf16.msra.mxu0 %v19382_v44  ;;  %v19388_v58 = vld [vmem:[%s25282_s3 + $0x284] ss:$12 sps:$4 sm:$0xff]   ;;  %v19360_v44 = vld [vmem:[%s25281_s28 + $0x6c8] ss:$12 sps:$4 sm:$0xff]  }
 0x5f0   : > { %7967 = vmatmul.mubr.bf16.gmra.mrb[100].mxu1 %v22764_v10  ;;  %17335 = vmatprep.subr.bf16.mxu0 %v19384_v29  ;;  %v19362_v29 = vld [vmem:[%s25281_s28 + $0x6e0] ss:$12 sps:$4 sm:$0xff]  }
 0x5f1   : > { %9268 = vmatmul.mubr.bf16.gmra.mrb[52].mxu0 %v22764_v10  ;;  %16015 = vmatprep.mubr.msk.bf16.mxu1 %vm7788_vm4, %v22798_v18 }
 0x5f2   : > { %17200 = vmatpush3.bf16.msra.mxu1 %v19300_v59  ;;  %16350 = vmatprep.mubr.msk.bf16.mxu0 %vm7788_vm4, %v22798_v18  ;;  %v19333_v59 = vld [vmem:[%s25281_s28 + $0x398] ss:$12 sps:$4 sm:$0xff]  }
 0x5f3   : > { %17201 = vmatprep.subr.bf16.mxu1 %v19301_v56  ;;  %17336 = vmatpush3.bf16.msra.mxu0 %v19385_v5  ;;  %v19390_v56 = vld [vmem:[%s25282_s3 + $0x35c] ss:$12 sps:$4 sm:$0xff]   ;;  %v19363_v5 = vld [vmem:[%s25281_s28 + $0x620] ss:$12 sps:$4 sm:$0xff]  }
 0x5f4   : > { %17337 = vmatprep.subr.bf16.mxu0 %v19387_v28  ;;  %v19367_v28 = vld [vmem:[%s25281_s28 + $0x650] ss:$12 sps:$4 sm:$0xff]  }
 0x5f6   : > { %17202 = vmatpush3.bf16.msra.mxu1 %v19302_v3  ;;  %v19391_v3 = vld [vmem:[%s25282_s3 + $0x29c] ss:$12 sps:$4 sm:$0xff]  }
 0x5f7   : > { %17203 = vmatprep.subr.bf16.mxu1 %v19303_v62  ;;  %17338 = vmatpush3.bf16.msra.mxu0 %v19388_v58  ;;  %v19334_v62 = vld [vmem:[%s25281_s28 + $0x3b0] ss:$12 sps:$4 sm:$0xff]   ;;  %v19370_v58 = vld [vmem:[%s25281_s28 + $0x740] ss:$12 sps:$4 sm:$0xff]  }
 0x5f8   : > { %7977 = vmatmul.mubr.bf16.gmra.mrb[104].mxu1 %v22796_v30  ;;  %17339 = vmatprep.subr.bf16.mxu0 %v19390_v56  ;;  %v19374_v56 = vld [vmem:[%s25281_s28 + $0x770] ss:$12 sps:$4 sm:$0xff]  }
 0x5f9   : > { %9278 = vmatmul.mubr.bf16.gmra.mrb[56].mxu0 %v22796_v30  ;;  %8019 = vmatprep.mubr.bf16.mxu1 %v22528_v6 }
 0x5fa   : > { %17204 = vmatpush3.bf16.msra.mxu1 %v19304_v19  ;;  %v19393_v19 = vld [vmem:[%s25282_s3 + $0x374] ss:$12 sps:$4 sm:$0xff]  }
 0x5fb   : > { %17205 = vmatprep.subr.bf16.mxu1 %v19305_v1  ;;  %17340 = vmatpush3.bf16.msra.mxu0 %v19391_v3  ;;  %v19394_v1 = vld [vmem:[%s25282_s3 + $0x2b4] ss:$12 sps:$4 sm:$0xff]  }
 0x5fc   : > { %17341 = vmatprep.subr.bf16.mxu0 %v19393_v19  ;;  %v19375_v3 = vld [vmem:[%s25281_s28 + $0x788] ss:$12 sps:$4 sm:$0xff]  }
 0x5fe   : > { %17206 = vmatpush3.bf16.msra.mxu1 %v19306_v51  ;;  %v19335_v51 = vld [vmem:[%s25281_s28 + $0x3c8] ss:$12 sps:$4 sm:$0xff]  }
 0x5ff   : > { %17207 = vmatprep.subr.bf16.mxu1 %v19307_v42  ;;  %17342 = vmatpush3.bf16.msra.mxu0 %v19394_v1  ;;  %v19396_v42 = vld [vmem:[%s25282_s3 + $0x38c] ss:$12 sps:$4 sm:$0xff]  }
 0x600   : > { %17343 = vmatprep.subr.bf16.mxu0 %v19396_v42 }
 0x602   : > { %17208 = vmatpush3.bf16.msra.mxu1 %v19308_v38  ;;  %v19397_v38 = vld [vmem:[%s25282_s3 + $0x2cc] ss:$12 sps:$4 sm:$0xff]  }
 0x603   : > { %17209 = vmatprep.subr.bf16.mxu1 %v19309_v26  ;;  %v19336_v26 = vld [vmem:[%s25281_s28 + $0x3e0] ss:$12 sps:$4 sm:$0xff]   ;;  %17344 = vmatpush3.bf16.msra.mxu0 %v19397_v38 }
 0x606   : > { %17210 = vmatpush3.bf16.msra.mxu1 %v19310_v48  ;;  %v19399_v48 = vld [vmem:[%s25282_s3 + $0x3a4] ss:$12 sps:$4 sm:$0xff]  }
 0x607   : > { %17229 = vmatprep.subr.bf16.mxu1 %v19311_v15  ;;  %v19400_v15 = vld [vmem:[%s25282_s3 + $0x2e4] ss:$12 sps:$4 sm:$0xff]   ;;  %17345 = vmatprep.subr.bf16.mxu0 %v19399_v48 }
 0x608   : > { %17346 = vmatpush3.bf16.msra.mxu0 %v19400_v15  ;;  %v19389_v15 = vld [vmem:[%s25281_s28 + $0x818] ss:$12 sps:$4 sm:$0xff]  }
 0x609   : > { %8020 = vmatmul.mubr.bf16.vlgmr.msra.gmra.mrb[108].mxu1 %v22526_v25 }
 0x60a   : > { %8027 = vmatprep.mubr.bf16.mxu1 %v22564_v32  ;;  %17230 = vmatpush3.bf16.msra.mxu1 %v19312_v27  ;;  %v19337_v27 = vld [vmem:[%s25281_s28 + $0x3f8] ss:$12 sps:$4 sm:$0xff]  }
 0x60b   : > { %17231 = vmatprep.subr.bf16.mxu1 %v19313_v11  ;;  %v19338_v11 = vld [vmem:[%s25281_s28 + $0x410] ss:$12 sps:$4 sm:$0xff]  }
 0x60e   : > { %17232 = vmatpush3.bf16.msra.mxu1 %v19314_v34  ;;  %v19339_v34 = vld [vmem:[%s25281_s28 + $0x428] ss:$12 sps:$4 sm:$0xff]  }
 0x60f   : > { %17233 = vmatprep.subr.bf16.mxu1 %v19315_v60  ;;  %v19340_v60 = vld [vmem:[%s25281_s28 + $0x440] ss:$12 sps:$4 sm:$0xff]  }
 0x611   : > { %8028 = vmatmul.mubr.bf16.gmra.mrb[112].mxu1 %v22562_v63 }
 0x612   : > { %8035 = vmatprep.mubr.bf16.mxu1 %v22600_v21  ;;  %17234 = vmatpush3.bf16.msra.mxu1 %v19316_v36  ;;  %v19341_v36 = vld [vmem:[%s25281_s28 + $0x458] ss:$12 sps:$4 sm:$0xff]  }
 0x613   : > { %17235 = vmatprep.subr.bf16.mxu1 %v19317_v12  ;;  %v19342_v12 = vld [vmem:[%s25281_s28 + $0x530] ss:$12 sps:$4 sm:$0xff]  }
 0x616   : > { %17236 = vmatpush3.bf16.msra.mxu1 %v19318_v0  ;;  %v19343_v0 = vld [vmem:[%s25281_s28 + $0x470] ss:$12 sps:$4 sm:$0xff]  }
 0x617   : > { %17237 = vmatprep.subr.bf16.mxu1 %v19319_v9  ;;  %v19344_v9 = vld [vmem:[%s25281_s28 + $0x548] ss:$12 sps:$4 sm:$0xff]  }
 0x619   : > { %8036 = vmatmul.mubr.bf16.gmra.mrb[116].mxu1 %v22598_v49 }
 0x61a   : > { %17238 = vmatpush3.bf16.msra.mxu1 %v19320_v41  ;;  %8076 = vmatprep.mubr.bf16.mxu1 %v22636_v17  ;;  %v19345_v41 = vld [vmem:[%s25281_s28 + $0x488] ss:$12 sps:$4 sm:$0xff]  }
 0x61b   : > { %17239 = vmatprep.subr.bf16.mxu1 %v19321_v37  ;;  %v19346_v37 = vld [vmem:[%s25281_s28 + $0x560] ss:$12 sps:$4 sm:$0xff]  }
 0x61e   : > { %17240 = vmatpush3.bf16.msra.mxu1 %v19322_v57  ;;  %v19347_v57 = vld [vmem:[%s25281_s28 + $0x4a0] ss:$12 sps:$4 sm:$0xff]  }
 0x61f   : > { %17241 = vmatprep.subr.bf16.mxu1 %v19323_v33  ;;  %v19348_v33 = vld [vmem:[%s25281_s28 + $0x578] ss:$12 sps:$4 sm:$0xff]  }
 0x622   : > { %17242 = vmatpush3.bf16.msra.mxu1 %v19324_v39  ;;  %v19349_v39 = vld [vmem:[%s25281_s28 + $0x4b8] ss:$12 sps:$4 sm:$0xff]  }
 0x623   : > { %17243 = vmatprep.subr.bf16.mxu1 %v19325_v43  ;;  %v19350_v43 = vld [vmem:[%s25281_s28 + $0x590] ss:$12 sps:$4 sm:$0xff]  }
 0x626   : > { %17244 = vmatpush3.bf16.msra.mxu1 %v19326_v52  ;;  %v19351_v52 = vld [vmem:[%s25281_s28 + $0x4d0] ss:$12 sps:$4 sm:$0xff]  }
 0x627   : > { %8101 = vmatprep.subr.bf16.mxu1 %v20034_v2 }
 0x629   : > { %8077 = vmatmul.mubr.bf16.vlgmr.msra.gmra.mrb[120].mxu1 %v22634_v22 }
 0x62a   : > { %8084 = vmatprep.mubr.bf16.mxu1 %v22670_v7  ;;  %8102 = vmatpush1.bf16.msra.mxu1 %v19327_v45  ;;  %v19352_v45 = vld [vmem:[%s25281_s28 + $0x5a8] ss:$12 sps:$4 sm:$0xff]  }
 0x62b   : > { %8103 = vmatprep.subr.bf16.mxu1 %v20034_v2 }
 0x62e   : > { %8104 = vmatpush1.bf16.msra.mxu1 %v19328_v16  ;;  %v19353_v16 = vld [vmem:[%s25281_s28 + $0x4e8] ss:$12 sps:$4 sm:$0xff]  }
 0x62f   : > { %8105 = vmatprep.subr.bf16.mxu1 %v20034_v2 }
 0x631   : > { %8085 = vmatmul.mubr.bf16.gmra.mrb[124].mxu1 %v22668_v53 }
 0x632   : > { %8092 = vmatprep.mubr.bf16.mxu1 %v22702_v31  ;;  %8106 = vmatpush1.bf16.msra.mxu1 %v19329_v20  ;;  %v19354_v20 = vld [vmem:[%s25281_s28 + $0x5c0] ss:$12 sps:$4 sm:$0xff]  }
 0x633   : > { %8107 = vmatprep.subr.bf16.mxu1 %v20034_v2 }
 0x636   : > { %8108 = vmatpush1.bf16.msra.mxu1 %v19330_v8  ;;  %v19358_v8 = vld [vmem:[%s25281_s28 + $0x6b0] ss:$12 sps:$4 sm:$0xff]  }
 0x637   : > { %8109 = vmatprep.subr.bf16.mxu1 %v20034_v2 }
 0x639   : > { %8093 = vmatmul.mubr.bf16.gmra.mrb[128].mxu1 %v22700_v50 }
 0x63a   : > { %8110 = vmatpush1.bf16.msra.mxu1 %v19331_v24  ;;  %16016 = vmatprep.mubr.msk.bf16.mxu1 %vm7788_vm4, %v22734_v40  ;;  %v19361_v24 = vld [vmem:[%s25281_s28 + $0x608] ss:$12 sps:$4 sm:$0xff]  }
 0x63b   : > { %8111 = vmatprep.subr.bf16.mxu1 %v20034_v2 }
 0x63e   : > { %8112 = vmatpush1.bf16.msra.mxu1 %v19332_v14  ;;  %v19366_v14 = vld [vmem:[%s25281_s28 + $0x710] ss:$12 sps:$4 sm:$0xff]  }
 0x63f   : > { %8113 = vmatprep.subr.bf16.mxu1 %v20034_v2 }
 0x642   : > { %8114 = vmatpush1.bf16.msra.mxu1 %v19333_v59  ;;  %v19371_v59 = vld [vmem:[%s25281_s28 + $0x680] ss:$12 sps:$4 sm:$0xff]  }
 0x643   : > { %8115 = vmatprep.subr.bf16.mxu1 %v20034_v2 }
 0x646   : > { %8116 = vmatpush1.bf16.msra.mxu1 %v19334_v62  ;;  %v19376_v62 = vld [vmem:[%s25281_s28 + $0x7a0] ss:$12 sps:$4 sm:$0xff]  }
 0x647   : > { %8117 = vmatprep.subr.bf16.mxu1 %v20034_v2 }
 0x64a   : > { %8118 = vmatpush1.bf16.msra.mxu1 %v19335_v51 }
 0x64b   : > { %8119 = vmatprep.subr.bf16.mxu1 %v20034_v2 }
 0x64e   : > { %8120 = vmatpush1.bf16.msra.mxu1 %v19336_v26 }
 0x64f   : > { %8121 = vmatprep.subr.bf16.mxu1 %v20034_v2 }
 0x652   : > { %8122 = vmatpush1.bf16.msra.mxu1 %v19337_v27 }
 0x653   : > { %8123 = vmatprep.subr.bf16.mxu1 %v20034_v2 }
 0x656   : > { %8124 = vmatpush1.bf16.msra.mxu1 %v19338_v11 }
 0x657   : > { %8125 = vmatprep.subr.bf16.mxu1 %v20034_v2 }
 0x65a   : > { %8126 = vmatpush1.bf16.msra.mxu1 %v19339_v34 }
 0x65b   : > { %8127 = vmatprep.subr.bf16.mxu1 %v20034_v2 }
 0x65e   : > { %8128 = vmatpush1.bf16.msra.mxu1 %v19340_v60 }
 0x65f   : > { %8129 = vmatprep.subr.bf16.mxu1 %v20034_v2 }
 0x662   : > { %8130 = vmatpush1.bf16.msra.mxu1 %v19341_v36 }
 0x663   : > { %17263 = vmatprep.subr.bf16.mxu1 %v19342_v12  ;;  %v19392_v12 = vld [vmem:[%s25281_s28 + $0x830] ss:$12 sps:$4 sm:$0xff]  }
 0x665   : > { %8134 = vmatmul.mubr.bf16.vlgmr.msra.gmra.mrb[132].mxu1 %v22732_v47 }
 0x666   : > { %16017 = vmatprep.mubr.msk.bf16.mxu1 %vm7788_vm4, %v22766_v55  ;;  %17264 = vmatpush3.bf16.msra.mxu1 %v19343_v0 }
 0x667   : > { %17265 = vmatprep.subr.bf16.mxu1 %v19344_v9 }
 0x66a   : > { %17266 = vmatpush3.bf16.msra.mxu1 %v19345_v41 }
 0x66b   : > { %17267 = vmatprep.subr.bf16.mxu1 %v19346_v37 }
 0x66d   : > { %8142 = vmatmul.mubr.bf16.gmra.mrb[136].mxu1 %v22764_v10 }
 0x66e   : > { %16018 = vmatprep.mubr.msk.bf16.mxu1 %vm7788_vm4, %v22798_v18  ;;  %17268 = vmatpush3.bf16.msra.mxu1 %v19347_v57 }
 0x66f   : > { %17269 = vmatprep.subr.bf16.mxu1 %v19348_v33 }
 0x672   : > { %17270 = vmatpush3.bf16.msra.mxu1 %v19349_v39 }
 0x673   : > { %17271 = vmatprep.subr.bf16.mxu1 %v19350_v43 }
 0x675   : > { %8150 = vmatmul.mubr.bf16.gmra.mrb[140].mxu1 %v22796_v30 }
 0x676   : > { %17272 = vmatpush3.bf16.msra.mxu1 %v19351_v52  ;;  %9320 = vmatprep.mubr.bf16.mxu1 %v22528_v6  ;;  %v19357_v6 = vld [vmem:[%s25281_s28 + $0x518] ss:$12 sps:$4 sm:$0xff]  }
 0x677   : > { %17273 = vmatprep.subr.bf16.mxu1 %v19352_v45  ;;  %v19395_v45 = vld [vmem:[%s25281_s28 + $0x848] ss:$12 sps:$4 sm:$0xff]  }
 0x67a   : > { %17274 = vmatpush3.bf16.msra.mxu1 %v19353_v16 }
 0x67b   : > { %17275 = vmatprep.subr.bf16.mxu1 %v19354_v20 }
 0x67e   : > { %17276 = vmatpush3.bf16.msra.mxu1 %v19355_v61 }
 0x67f   : > { %17277 = vmatprep.subr.bf16.mxu1 %v19356_v46 }
 0x682   : > { %17278 = vmatpush3.bf16.msra.mxu1 %v19357_v6 }
 0x683   : > { %17297 = vmatprep.subr.bf16.mxu1 %v19358_v8 }
 0x685   : > { %9321 = vmatmul.mubr.bf16.vlgmr.msra.gmra.mrb[144].mxu1 %v22526_v25  ;;  %v19364_v25 = vld [vmem:[%s25281_s28 + $0x6f8] ss:$12 sps:$4 sm:$0xff]  }
 0x686   : > { %9328 = vmatprep.mubr.bf16.mxu1 %v22564_v32  ;;  %17298 = vmatpush3.bf16.msra.mxu1 %v19359_v23  ;;  %v19365_v32 = vld [vmem:[%s25281_s28 + $0x638] ss:$12 sps:$4 sm:$0xff]  }
 0x687   : > { %17299 = vmatprep.subr.bf16.mxu1 %v19360_v44  ;;  %v19398_v44 = vld [vmem:[%s25281_s28 + $0x860] ss:$12 sps:$4 sm:$0xff]  }
 0x68a   : > { %17300 = vmatpush3.bf16.msra.mxu1 %v19361_v24 }
 0x68b   : > { %17301 = vmatprep.subr.bf16.mxu1 %v19362_v29 }
 0x68d   : > { %9329 = vmatmul.mubr.bf16.gmra.mrb[148].mxu1 %v22562_v63  ;;  %v19368_v63 = vld [vmem:[%s25281_s28 + $0x728] ss:$12 sps:$4 sm:$0xff]  }
 0x68e   : > { %9336 = vmatprep.mubr.bf16.mxu1 %v22600_v21  ;;  %17302 = vmatpush3.bf16.msra.mxu1 %v19363_v5  ;;  %v19369_v21 = vld [vmem:[%s25281_s28 + $0x668] ss:$12 sps:$4 sm:$0xff]  }
 0x68f   : > { %17303 = vmatprep.subr.bf16.mxu1 %v19364_v25 }
 0x692   : > { %17304 = vmatpush3.bf16.msra.mxu1 %v19365_v32 }
 0x693   : > { %17305 = vmatprep.subr.bf16.mxu1 %v19366_v14 }
 0x695   : > { %9337 = vmatmul.mubr.bf16.gmra.mrb[152].mxu1 %v22598_v49  ;;  %v19372_v49 = vld [vmem:[%s25281_s28 + $0x758] ss:$12 sps:$4 sm:$0xff]  }
 0x696   : > { %17306 = vmatpush3.bf16.msra.mxu1 %v19367_v28  ;;  %9377 = vmatprep.mubr.bf16.mxu1 %v22636_v17  ;;  %v19373_v17 = vld [vmem:[%s25281_s28 + $0x698] ss:$12 sps:$4 sm:$0xff]  }
 0x697   : > { %17307 = vmatprep.subr.bf16.mxu1 %v19368_v63 }
 0x69a   : > { %17308 = vmatpush3.bf16.msra.mxu1 %v19369_v21 }
 0x69b   : > { %17309 = vmatprep.subr.bf16.mxu1 %v19370_v58 }
 0x69e   : > { %17310 = vmatpush3.bf16.msra.mxu1 %v19371_v59 }
 0x69f   : > { %17311 = vmatprep.subr.bf16.mxu1 %v19372_v49 }
 0x6a2   : > { %17312 = vmatpush3.bf16.msra.mxu1 %v19373_v17 }
 0x6a3   : > { %9402 = vmatprep.subr.bf16.mxu1 %v20034_v2 }
 0x6a5   : > { %9378 = vmatmul.mubr.bf16.vlgmr.msra.gmra.mrb[156].mxu1 %v22634_v22  ;;  %v19377_v22 = vld [vmem:[%s25281_s28 + $0x7b8] ss:$12 sps:$4 sm:$0xff]  }
 0x6a6   : > { %9385 = vmatprep.mubr.bf16.mxu1 %v22670_v7  ;;  %9403 = vmatpush1.bf16.msra.mxu1 %v19374_v56  ;;  %v19380_v7 = vld [vmem:[%s25281_s28 + $0x7d0] ss:$12 sps:$4 sm:$0xff]  }
 0x6a7   : > { %9404 = vmatprep.subr.bf16.mxu1 %v20034_v2 }
 0x6aa   : > { %9405 = vmatpush1.bf16.msra.mxu1 %v19375_v3 }
 0x6ab   : > { %9406 = vmatprep.subr.bf16.mxu1 %v20034_v2 }
 0x6ad   : > { %9386 = vmatmul.mubr.bf16.gmra.mrb[160].mxu1 %v22668_v53  ;;  %v19383_v53 = vld [vmem:[%s25281_s28 + $0x7e8] ss:$12 sps:$4 sm:$0xff]  }
 0x6ae   : > { %9393 = vmatprep.mubr.bf16.mxu1 %v22702_v31  ;;  %9407 = vmatpush1.bf16.msra.mxu1 %v19376_v62  ;;  %v19386_v31 = vld [vmem:[%s25281_s28 + $0x800] ss:$12 sps:$4 sm:$0xff]  }
 0x6af   : > { %9408 = vmatprep.subr.bf16.mxu1 %v20034_v2 }
 0x6b2   : > { %9409 = vmatpush1.bf16.msra.mxu1 %v19377_v22 }
 0x6b3   : > { %9410 = vmatprep.subr.bf16.mxu1 %v20034_v2 }
 0x6b5   : > { %9394 = vmatmul.mubr.bf16.gmra.mrb[164].mxu1 %v22700_v50 }
 0x6b6   : > { %9411 = vmatpush1.bf16.msra.mxu1 %v19380_v7  ;;  %16351 = vmatprep.mubr.msk.bf16.mxu1 %vm7788_vm4, %v22734_v40 }
 0x6b7   : > { %9412 = vmatprep.subr.bf16.mxu1 %v20034_v2 }
 0x6ba   : > { %9413 = vmatpush1.bf16.msra.mxu1 %v19383_v53  ;;  %v19401_v53 = vld [vmem:[%s25281_s28 + $0x878] ss:$12 sps:$4 sm:$0xff]  }
 0x6bb   : > { %v7958_v19 = vpop.f32.mrb[96].mxu1  ;;  %9414 = vmatprep.subr.bf16.mxu1 %v20034_v2 }
 0x6bc   : > { %v9259_v1 = vpop.f32.mrb[48].mxu0  ;;  %v7960_v50 = vpop.f32.mrb[97].mxu1 }
 0x6bd   : > { %v9459_v51 = vmax.f32 %v7958_v19, %v9259_v1  ;;  %v9261_v42 = vpop.f32.mrb[49].mxu0  ;;  %v7962_v38 = vpop.f32.mrb[98].mxu1 }
 0x6be   : > { %v9460_v40 = vmax.f32 %v7960_v50, %v9261_v42  ;;  %v9263_v26 = vpop.f32.mrb[50].mxu0  ;;  %9415 = vmatpush1.bf16.msra.mxu1 %v19386_v31  ;;  %v7964_v48 = vpop.f32.mrb[99].mxu1 }
 0x6bf   : > { %v9462_v27 = vmax.f32 %v7962_v38, %v9263_v26  ;;  %v9265_v11 = vpop.f32.mrb[51].mxu0  ;;  %9416 = vmatprep.subr.bf16.mxu1 %v20034_v2  ;;  %v19402_v26 = vld [vmem:[%s25281_s28 + $0x890] ss:$12 sps:$4 sm:$0xff]  }
 0x6c0   : > { %v9463_v34 = vmax.f32 %v7964_v48, %v9265_v11 }
 0x6c1   : > { %v23369_v60 = vpack.c.bf16 %v9462_v27, %v9459_v51 }
 0x6c2   : > { %v23371_v36 = vpack.c.bf16 %v9463_v34, %v9460_v40  ;;  %9417 = vmatpush1.bf16.msra.mxu1 %v19389_v15 }
 0x6c3   : > { %v7968_v0 = vpop.f32.mrb[100].mxu1  ;;  %9418 = vmatprep.subr.bf16.mxu1 %v20034_v2  ;;  %v9678_v46 = vshll.u32 %v23369_v60, 16  ;;  %v9676_v49 = vshrl.u32 %v23369_v60, 16 }
 0x6c4   : > { %v9269_v9 = vpop.f32.mrb[52].mxu0  ;;  %v7970_v41 = vpop.f32.mrb[101].mxu1  ;;  %v9690_v16 = vshll.u32 %v23371_v36, 16  ;;  %v9688_v28 = vshrl.u32 %v23371_v36, 16 }
 0x6c5   : > { %v9465_v37 = vmax.f32 %v7968_v0, %v9269_v9  ;;  %v9271_v57 = vpop.f32.mrb[53].mxu0  ;;  %v7972_v33 = vpop.f32.mrb[102].mxu1  ;;  %v9680_v5 = vrot.slane %v9678_v46, 1  ;;  %v19403_v9 = vld [vmem:[%s25281_s28 + $0x8a8] ss:$12 sps:$4 sm:$0xff]  }
 0x6c6   : > { %v9466_v39 = vmax.f32 %v7970_v41, %v9271_v57  ;;  %v9273_v43 = vpop.f32.mrb[54].mxu0  ;;  %9419 = vmatpush1.bf16.msra.mxu1 %v19392_v12  ;;  %v7974_v52 = vpop.f32.mrb[103].mxu1  ;;  %v9692_v24 = vrot.slane %v9690_v16, 1  ;;  %v19405_v46 = vld [vmem:[%s25282_s3 + $0x234] ss:$12 sps:$4 sm:$0xff]  }
 0x6c7   : > { %v9468_v20 = vmax.f32 %v7972_v33, %v9273_v43  ;;  %v9275_v61 = vpop.f32.mrb[55].mxu0  ;;  %9420 = vmatprep.subr.bf16.mxu1 %v20034_v2  ;;  %v9681_v1 = vor.u32 %v9680_v5, %v9676_v49  ;;  %v19404_v43 = vld [vmem:[%s25281_s28 + $0x8c0] ss:$12 sps:$4 sm:$0xff]   ;;  %v19414_v49 = vld [vmem:[%s25282_s3 + $0x27c] ss:$12 sps:$4 sm:$0xff]  }
 0x6c8   : > { %v9469_v6 = vmax.f32 %v7974_v52, %v9275_v61  ;;  %v9693_v22 = vor.u32 %v9692_v24, %v9688_v28  ;;  %v19407_v52 = vld [vmem:[%s25282_s3 + $0x238] ss:$12 sps:$4 sm:$0xff]   ;;  %v19410_v24 = vld [vmem:[%s25282_s3 + $0x250] ss:$12 sps:$4 sm:$0xff]  }
 0x6c9   : > { %v23383_v8 = vpack.c.bf16 %v9468_v20, %v9465_v37 }
 0x6ca   : > { %v23385_v23 = vpack.c.bf16 %v9469_v6, %v9466_v39  ;;  %9421 = vmatpush1.bf16.msra.mxu1 %v19395_v45 }
 0x6cb   : > { %v7978_v29 = vpop.f32.mrb[104].mxu1  ;;  %9422 = vmatprep.subr.bf16.mxu1 %v20034_v2  ;;  %v9683_v25 = vshll.u32 %v23383_v8, 16  ;;  %v9711_v11 = vshrl.u32 %v23383_v8, 16 }
 0x6cc   : > { %v9279_v32 = vpop.f32.mrb[56].mxu0  ;;  %v7980_v14 = vpop.f32.mrb[105].mxu1  ;;  %v9695_v63 = vshll.u32 %v23385_v23, 16  ;;  %v9719_v15 = vshrl.u32 %v23385_v23, 16 }
 0x6cd   : > { %v9471_v21 = vmax.f32 %v7978_v29, %v9279_v32  ;;  %v9281_v58 = vpop.f32.mrb[57].mxu0  ;;  %v7982_v59 = vpop.f32.mrb[106].mxu1  ;;  %v9685_v17 = vrot.slane %v9683_v25, 1  ;;  %v19408_v25 = vld [vmem:[%s25282_s3 + $0x24c] ss:$12 sps:$4 sm:$0xff]  }
 0x6ce   : > { %v9472_v56 = vmax.f32 %v7980_v14, %v9281_v58  ;;  %v9283_v3 = vpop.f32.mrb[58].mxu0  ;;  %9423 = vmatpush1.bf16.msra.mxu1 %v19398_v44  ;;  %v7984_v62 = vpop.f32.mrb[107].mxu1  ;;  %v9697_v7 = vrot.slane %v9695_v63, 1  ;;  %v19413_v32 = vld [vmem:[%s25282_s3 + $0x268] ss:$12 sps:$4 sm:$0xff]  }
 0x6cf   : > { %v9474_v31 = vmax.f32 %v7982_v59, %v9283_v3  ;;  %v9285_v19 = vpop.f32.mrb[59].mxu0  ;;  %9424 = vmatprep.subr.bf16.mxu1 %v20034_v2  ;;  %v23406_v38 = vsel %vm2468_vm1, %v9681_v1, %v9685_v17  ;;  %v9713_v37 = vor.u32 %v9711_v11, %v9685_v17  ;;  %v19416_v58 = vld [vmem:[%s25282_s3 + $0x280] ss:$12 sps:$4 sm:$0xff]   ;;  %v19419_v17 = vld [vmem:[%s25282_s3 + $0x298] ss:$12 sps:$4 sm:$0xff]  }
 0x6d0   : > { %v9475_v50 = vmax.f32 %v7984_v62, %v9285_v19  ;;  %v23400_v51 = vsel %vm2468_vm1, %v9693_v22, %v9697_v7  ;;  %v9721_v12 = vor.u32 %v9719_v15, %v9697_v7  ;;  %v19422_v7 = vld [vmem:[%s25282_s3 + $0x2b0] ss:$12 sps:$4 sm:$0xff]   ;;  %v19425_v19 = vld [vmem:[%s25282_s3 + $0x2c8] ss:$12 sps:$4 sm:$0xff]  }
 0x6d1   : > { %v23402_v42 = vpack.c.bf16 %v9474_v31, %v9471_v21  ;;  %10304 = vmatprep.mubr.bf16.mxu0 %v23400_v51  ;;  %v19420_v31 = vld [vmem:[%s25282_s3 + $0x2ac] ss:$12 sps:$4 sm:$0xff]   ;;  %v19423_v1 = vld [vmem:[%s25282_s3 + $0x2c4] ss:$12 sps:$4 sm:$0xff]   ;;  %v19429_v11 = vld [vmem:[%s25282_s3 + $0x2f4] ss:$12 sps:$4 sm:$0xff]  }
 0x6d2   : > { %v23408_v40 = vpack.c.bf16 %v9475_v50, %v9472_v56  ;;  %9425 = vmatpush1.bf16.msra.mxu1 %v19401_v53  ;;  %10305 = vmatmul.mubr.bf16.vlgmr.msra.gmra.mrb[60].mxu0 %v23406_v38  ;;  %v19426_v50 = vld [vmem:[%s25282_s3 + $0x2dc] ss:$12 sps:$4 sm:$0xff]  }
 0x6d3   : > { %9426 = vmatprep.subr.bf16.mxu1 %v20034_v2  ;;  %v9715_v48 = vshll.u32 %v23402_v42, 16  ;;  %v9735_v44 = vshrl.u32 %v23402_v42, 16 }
 0x6d4   : > { %v9723_v27 = vshll.u32 %v23408_v40, 16  ;;  %v9738_v41 = vshrl.u32 %v23408_v40, 16 }
 0x6d5   : > { %v9717_v34 = vrot.slane %v9715_v48, 1 }
 0x6d6   : > { %9427 = vmatpush1.bf16.msra.mxu1 %v19402_v26  ;;  %v9725_v0 = vrot.slane %v9723_v27, 1 }
 0x6d7   : > { %9428 = vmatprep.subr.bf16.mxu1 %v20034_v2  ;;  %v23431_v39 = vsel %vm2468_vm1, %v9713_v37, %v9717_v34  ;;  %v23452_v5 = vor.u32 %v9735_v44, %v9717_v34 }
 0x6d8   : > { %v23425_v57 = vsel %vm2468_vm1, %v9721_v12, %v9725_v0  ;;  %v23427_v33 = vor.u32 %v9738_v41, %v9725_v0  ;;  %v19434_v12 = vld [vmem:[%s25282_s3 + $0x310] ss:$12 sps:$4 sm:$0xff]   ;;  %v19432_v41 = vld [vmem:[%s25282_s3 + $0x30c] ss:$12 sps:$4 sm:$0xff]  }
 0x6d9   : > { %10312 = vmatprep.mubr.bf16.mxu0 %v23425_v57 }
 0x6da   : > { %9429 = vmatpush1.bf16.msra.mxu1 %v19403_v9  ;;  %10313 = vmatmul.mubr.bf16.gmra.mrb[64].mxu0 %v23431_v39 }
 0x6db   : > { %10320 = vmatprep.mubr.bf16.mxu0 %v23427_v33  ;;  %9430 = vmatprep.subr.bf16.mxu1 %v20034_v2 }
 0x6dc   : > { %v17211_v45 = vpop.f32.mrb[108].mxu1 }
 0x6dd   : > { %v17212_v16 = vpop.f32.mrb[109].mxu1 }
 0x6de   : > { %v23442_v20 = vadd.f32 %v17212_v16, %v17211_v45  ;;  %v17214_v61 = vpop.f32.mrb[110].mxu1  ;;  %9431 = vmatpush1.bf16.msra.mxu1 %v19404_v43  ;;  %v19437_v43 = vld [vmem:[%s25282_s3 + $0x328] ss:$12 sps:$4 sm:$0xff]  }
 0x6df   : > { %v17215_v6 = vpop.f32.mrb[111].mxu1  ;;  %10146 = vmatprep.subr.bf16.mxu1 %v19407_v52 }
 0x6e0   : > { %v17216_v29 = vadd.f32 %v17215_v6, %v17214_v61  ;;  %v19440_v6 = vld [vmem:[%s25282_s3 + $0x340] ss:$12 sps:$4 sm:$0xff]  }
 0x6e1   : > { %9435 = vmatmul.mubr.bf16.vlgmr.msra.gmra.mrb[168].mxu1 %v22732_v47 }
 0x6e2   : > { %16352 = vmatprep.mubr.msk.bf16.mxu1 %vm7788_vm4, %v22766_v55  ;;  %10147 = vmatpush1.bf16.msra.mxu1 %v19405_v46  ;;  %v19411_v55 = vld [vmem:[%s25282_s3 + $0x264] ss:$12 sps:$4 sm:$0xff]  }
 0x6e3   : > { %10321 = vmatmul.mubr.bf16.gmra.mrb[68].mxu0 %v23452_v5  ;;  %10148 = vmatprep.subr.bf16.mxu1 %v19410_v24 }
 0x6e4   : > { %v17217_v14 = vpop.f32.mrb[112].mxu1 }
 0x6e5   : > { %v17218_v28 = vpop.f32.mrb[113].mxu1 }
 0x6e6   : > { %v23463_v47 = vadd.f32 %v17218_v28, %v17217_v14  ;;  %v17220_v63 = vpop.f32.mrb[114].mxu1  ;;  %10149 = vmatpush1.bf16.msra.mxu1 %v19408_v25 }
 0x6e7   : > { %v17221_v21 = vpop.f32.mrb[115].mxu1  ;;  %10150 = vmatprep.subr.bf16.mxu1 %v19413_v32  ;;  %v19443_v32 = vld [vmem:[%s25282_s3 + $0x358] ss:$12 sps:$4 sm:$0xff]  }
 0x6e8   : > { %v17222_v59 = vadd.f32 %v17221_v21, %v17220_v63 }
 0x6e9   : > { %9443 = vmatmul.mubr.bf16.gmra.mrb[172].mxu1 %v22764_v10  ;;  %v19417_v10 = vld [vmem:[%s25282_s3 + $0x294] ss:$12 sps:$4 sm:$0xff]  }
 0x6ea   : > { %16353 = vmatprep.mubr.msk.bf16.mxu1 %vm7788_vm4, %v22798_v18  ;;  %10151 = vmatpush1.bf16.msra.mxu1 %v19411_v55  ;;  %vm14727_vm4 = vcmask 130048  }
 0x6eb   : > { %10152 = vmatprep.subr.bf16.mxu1 %v19416_v58  ;;  %v19446_v58 = vld [vmem:[%s25282_s3 + $0x370] ss:$12 sps:$4 sm:$0xff]  }
 0x6ec   : > { %v17223_v56 = vpop.f32.mrb[116].mxu1 }
 0x6ed   : > { %v17224_v3 = vpop.f32.mrb[117].mxu1 }
 0x6ee   : > { %v23480_v62 = vadd.f32 %v17224_v3, %v17223_v56  ;;  %v17226_v22 = vpop.f32.mrb[118].mxu1  ;;  %10153 = vmatpush1.bf16.msra.mxu1 %v19414_v49  ;;  %v19449_v3 = vld [vmem:[%s25282_s3 + $0x388] ss:$12 sps:$4 sm:$0xff]  }
 0x6ef   : > { %v17227_v18 = vpop.f32.mrb[119].mxu1  ;;  %10154 = vmatprep.subr.bf16.mxu1 %v19419_v17  ;;  %v19444_v17 = vld [vmem:[%s25282_s3 + $0x36c] ss:$12 sps:$4 sm:$0xff]  }
 0x6f0   : > { %v17228_v53 = vadd.f32 %v17227_v18, %v17226_v22  ;;  %v19447_v22 = vld [vmem:[%s25282_s3 + $0x384] ss:$12 sps:$4 sm:$0xff]  }
 0x6f1   : > { %9451 = vmatmul.mubr.bf16.gmra.mrb[176].mxu1 %v22796_v30  ;;  %v19428_v30 = vld [vmem:[%s25282_s3 + $0x2e0] ss:$12 sps:$4 sm:$0xff]   ;;  %v19455_v18 = vld [vmem:[%s25282_s3 + $0x3b8] ss:$12 sps:$4 sm:$0xff]  }
 0x6f2   : > { %10155 = vmatpush1.bf16.msra.mxu1 %v19417_v10  ;;  %10178 = vmatprep.mubr.bf16.mxu1 %v23400_v51  ;;  %v19431_v51 = vld [vmem:[%s25282_s3 + $0x2f8] ss:$12 sps:$4 sm:$0xff]   ;;  %v19450_v10 = vld [vmem:[%s25282_s3 + $0x39c] ss:$12 sps:$4 sm:$0xff]  }
 0x6f3   : > { %10156 = vmatprep.subr.bf16.mxu1 %v19422_v7  ;;  %v19453_v7 = vld [vmem:[%s25282_s3 + $0x3b4] ss:$12 sps:$4 sm:$0xff]  }
 0x6f6   : > { %10157 = vmatpush1.bf16.msra.mxu1 %v19420_v31  ;;  %v19463_v31 = vld [vmem:[%s25282_s3 + $0x3e8] ss:$12 sps:$4 sm:$0xff]  }
 0x6f7   : > { %10158 = vmatprep.subr.bf16.mxu1 %v19425_v19  ;;  %v19461_v19 = vld [vmem:[%s25282_s3 + $0x3e4] ss:$12 sps:$4 sm:$0xff]  }
 0x6fa   : > { %10159 = vmatpush1.bf16.msra.mxu1 %v19423_v1  ;;  %v19464_v1 = vld [vmem:[%s25282_s3 + $0x3ec] ss:$12 sps:$4 sm:$0xff]  }
 0x6fb   : > { %10160 = vmatprep.subr.bf16.mxu1 %v19428_v30  ;;  %v19467_v30 = vld [vmem:[%s25282_s3 + $0x400] ss:$12 sps:$4 sm:$0xff]  }
 0x6fc   : > { %v17245_v26 = vpop.f32.mrb[120].mxu1 }
 0x6fd   : > { %v17246_v48 = vpop.f32.mrb[121].mxu1 }
 0x6fe   : > { %v17247_v15 = vadd.f32 %v17246_v48, %v17245_v26  ;;  %v17248_v27 = vpop.f32.mrb[122].mxu1  ;;  %10161 = vmatpush1.bf16.msra.mxu1 %v19426_v50  ;;  %v19468_v50 = vld [vmem:[%s25282_s3 + $0x404] ss:$12 sps:$4 sm:$0xff]  }
 0x6ff   : > { %v17249_v34 = vpop.f32.mrb[123].mxu1  ;;  %10162 = vmatprep.subr.bf16.mxu1 %v19431_v51  ;;  %v19471_v26 = vld [vmem:[%s25282_s3 + $0x418] ss:$12 sps:$4 sm:$0xff]  }
 0x700   : > { %v17250_v0 = vadd.f32 %v17249_v34, %v17248_v27  ;;  %v23515_v9 = vadd.f32 %v17247_v15, %v23442_v20  ;;  %v19435_v20 = vld [vmem:[%s25282_s3 + $0x324] ss:$12 sps:$4 sm:$0xff]   ;;  %v19469_v27 = vld [vmem:[%s25282_s3 + $0x414] ss:$12 sps:$4 sm:$0xff]  }
 0x702   : > { %10163 = vmatpush1.bf16.msra.mxu1 %v19429_v11  ;;  %v23520_v37 = vadd.f32 %v17250_v0, %v17216_v29  ;;  %v19438_v29 = vld [vmem:[%s25282_s3 + $0x33c] ss:$12 sps:$4 sm:$0xff]  }
 0x703   : > { %10164 = vmatprep.subr.bf16.mxu1 %v19434_v12  ;;  %v19472_v11 = vld [vmem:[%s25282_s3 + $0x41c] ss:$12 sps:$4 sm:$0xff]  }
 0x704   : > { %v17251_v52 = vpop.f32.mrb[124].mxu1 }
 0x705   : > { %v17252_v45 = vpop.f32.mrb[125].mxu1 }
 0x706   : > { %v17253_v16 = vadd.f32 %v17252_v45, %v17251_v52  ;;  %v17254_v61 = vpop.f32.mrb[126].mxu1  ;;  %10165 = vmatpush1.bf16.msra.mxu1 %v19432_v41  ;;  %v19473_v41 = vld [vmem:[%s25282_s3 + $0x42c] ss:$12 sps:$4 sm:$0xff]   ;;  %v19479_v52 = vld [vmem:[%s25282_s3 + $0x448] ss:$12 sps:$4 sm:$0xff]  }
 0x707   : > { %v17255_v46 = vpop.f32.mrb[127].mxu1  ;;  %10166 = vmatprep.subr.bf16.mxu1 %v19437_v43  ;;  %v19476_v43 = vld [vmem:[%s25282_s3 + $0x434] ss:$12 sps:$4 sm:$0xff]  }
 0x708   : > { %v17256_v44 = vadd.f32 %v17255_v46, %v17254_v61  ;;  %v23532_v24 = vadd.f32 %v17253_v16, %v23463_v47  ;;  %v19441_v47 = vld [vmem:[%s25282_s3 + $0x354] ss:$12 sps:$4 sm:$0xff]   ;;  %v19477_v61 = vld [vmem:[%s25282_s3 + $0x444] ss:$12 sps:$4 sm:$0xff]  }
 0x70a   : > { %10167 = vmatpush1.bf16.msra.mxu1 %v19435_v20  ;;  %v23537_v25 = vadd.f32 %v17256_v44, %v17222_v59  ;;  %v19480_v20 = vld [vmem:[%s25282_s3 + $0x44c] ss:$12 sps:$4 sm:$0xff]  }
 0x70b   : > { %10168 = vmatprep.subr.bf16.mxu1 %v19440_v6 }
 0x70c   : > { %v17257_v14 = vpop.f32.mrb[128].mxu1 }
 0x70d   : > { %v17258_v28 = vpop.f32.mrb[129].mxu1 }
 0x70e   : > { %v17259_v63 = vadd.f32 %v17258_v28, %v17257_v14  ;;  %v17260_v55 = vpop.f32.mrb[130].mxu1  ;;  %10169 = vmatpush1.bf16.msra.mxu1 %v19438_v29  ;;  %v19483_v14 = vld [vmem:[%s25282_s3 + $0x464] ss:$0 sps:$4 sm:$0xff]  }
 0x70f   : > { %v17261_v21 = vpop.f32.mrb[131].mxu1  ;;  %10170 = vmatprep.subr.bf16.mxu1 %v19443_v32  ;;  %v10144_v28 = vsel %vm10136_vm5, %v19483_v14, 0 }
 0x710   : > { %v17262_v59 = vadd.f32 %v17261_v21, %v17260_v55  ;;  %v23549_v49 = vadd.f32 %v17259_v63, %v23480_v62  ;;  %v19452_v62 = vld [vmem:[%s25282_s3 + $0x3a0] ss:$12 sps:$4 sm:$0xff]   ;;  %v19486_v55 = vld [vmem:[%s25282_s3 + $0x4] ss:$12 sps:$4 sm:$0xff]  }
 0x712   : > { %10171 = vmatpush1.bf16.msra.mxu1 %v19441_v47  ;;  %v23554_v56 = vadd.f32 %v17262_v59, %v17228_v53  ;;  %v19456_v53 = vld [vmem:[%s25282_s3 + $0x3bc] ss:$12 sps:$4 sm:$0xff]  }
 0x713   : > { %10172 = vmatprep.subr.bf16.mxu1 %v19446_v58  ;;  %v19487_v47 = vld [vmem:[%s25282_s3 + $0xc8] ss:$12 sps:$4 sm:$0xff]  }
 0x716   : > { %10173 = vmatpush1.bf16.msra.mxu1 %v19444_v17 }
 0x717   : > { %10174 = vmatprep.subr.bf16.mxu1 %v19449_v3 }
 0x71a   : > { %10175 = vmatpush1.bf16.msra.mxu1 %v19447_v22 }
 0x71b   : > { %10176 = vmatprep.subr.bf16.mxu1 %v19452_v62 }
 0x71e   : > { %10177 = vmatpush1.bf16.msra.mxu1 %v19450_v10 }
 0x71f   : > { %10209 = vmatprep.subr.bf16.mxu1 %v19455_v18 }
 0x721   : > { %10179 = vmatmul.mubr.bf16.vlgmr.msra.gmra.mrb[180].mxu1 %v23406_v38  ;;  %v19459_v38 = vld [vmem:[%s25282_s3 + $0x3d0] ss:$12 sps:$4 sm:$0xff]  }
 0x722   : > { %10188 = vmatprep.mubr.bf16.mxu1 %v23425_v57  ;;  %v20035_v57 = vmov 0.0   ;;  %10210 = vmatpush1.bf16.msra.mxu1 %v19453_v7 }
 0x723   : > { %17529 = vmatprep.subr.bf16.mxu0 %v20035_v57  ;;  %10211 = vmatprep.subr.bf16.mxu1 %v19459_v38 }
 0x724   : > { %17530 = vmatpush3.bf16.msra.mxu0 %v19456_v53  ;;  %17545 = vmatprep.mubr.msk.bf16.mxu0 %vm20036_vm6, %v20035_v57 }
 0x725   : > { %17531 = vmatprep.subr.bf16.mxu0 %v20035_v57 }
 0x729   : > { %10189 = vmatmul.mubr.bf16.gmra.mrb[184].mxu1 %v23431_v39  ;;  %v19457_v39 = vld [vmem:[%s25282_s3 + $0x3cc] ss:$12 sps:$4 sm:$0xff]  }
 0x72a   : > { %10198 = vmatprep.mubr.bf16.mxu1 %v23427_v33  ;;  %v19460_v33 = vld [vmem:[%s25282_s3 + $0x3d4] ss:$12 sps:$4 sm:$0xff]   ;;  %10212 = vmatpush1.bf16.msra.mxu1 %v19457_v39 }
 0x72b   : > { %17532 = vmatpush3.bf16.msra.mxu0 %v19460_v33  ;;  %10213 = vmatprep.subr.bf16.mxu1 %v19463_v31 }
 0x72c   : > { %17533 = vmatprep.subr.bf16.mxu0 %v20035_v57 }
 0x72e   : > { %10214 = vmatpush1.bf16.msra.mxu1 %v19461_v19 }
 0x72f   : > { %17534 = vmatpush3.bf16.msra.mxu0 %v19464_v1  ;;  %10215 = vmatprep.subr.bf16.mxu1 %v19467_v30 }
 0x730   : > { %17535 = vmatprep.subr.bf16.mxu0 %v20035_v57 }
 0x731   : > { %10199 = vmatmul.mubr.bf16.gmra.mrb[188].mxu1 %v23452_v5  ;;  %v19465_v5 = vld [vmem:[%s25282_s3 + $0x3fc] ss:$12 sps:$4 sm:$0xff]  }
 0x732   : > { %10241 = vmatprep.mubr.bf16.mxu1 %v20034_v2  ;;  %10216 = vmatpush1.bf16.msra.mxu1 %v19465_v5 }
 0x733   : > { %17536 = vmatpush3.bf16.msra.mxu0 %v19468_v50  ;;  %10217 = vmatprep.subr.bf16.mxu1 %v19471_v26 }
 0x734   : > { %17537 = vmatprep.subr.bf16.mxu0 %v20035_v57 }
 0x736   : > { %10218 = vmatpush1.bf16.msra.mxu1 %v19469_v27 }
 0x737   : > { %17538 = vmatpush3.bf16.msra.mxu0 %v19472_v11 }
 0x738   : > { %v8135_v51 = vpop.f32.mrb[132].mxu1  ;;  %17539 = vmatprep.subr.bf16.mxu0 %v20035_v57 }
 0x739   : > { %v23618_v48 = vadd.f32 %v8135_v51, %v23515_v9  ;;  %v8137_v15 = vpop.f32.mrb[133].mxu1  ;;  %v19475_v9 = vld [vmem:[%s25282_s3 + $0x430] ss:$12 sps:$4 sm:$0xff]  }
 0x73a   : > { %v8138_v34 = vpop.f32.mrb[134].mxu1  ;;  %10219 = vmatprep.subr.bf16.mxu1 %v19475_v9 }
 0x73b   : > { %v23628_v12 = vadd.f32 %v8138_v34, %v23520_v37  ;;  %v8140_v0 = vpop.f32.mrb[135].mxu1  ;;  %10220 = vmatpush1.bf16.msra.mxu1 %v19473_v41  ;;  %17540 = vmatpush3.bf16.msra.mxu0 %v19476_v43 }
 0x73c   : > { %17541 = vmatprep.subr.bf16.mxu0 %v20035_v57  ;;  %10221 = vmatprep.subr.bf16.mxu1 %v19479_v52 }
 0x73f   : > { %10222 = vmatpush1.bf16.msra.mxu1 %v19477_v61  ;;  %17542 = vmatpush3.bf16.msra.mxu0 %v19480_v20 }
 0x740   : > { %v8143_v37 = vpop.f32.mrb[136].mxu1  ;;  %17543 = vmatprep.subr.bf16.mxu0 %v20035_v57 }
 0x741   : > { %v23644_v45 = vadd.f32 %v8143_v37, %v23532_v24  ;;  %v8145_v16 = vpop.f32.mrb[137].mxu1  ;;  %v16446_v24 = vld [vmem:[%s25282_s3 + $0x45c] sm:$0xff] }
 0x742   : > { %v8146_v46 = vpop.f32.mrb[138].mxu1  ;;  %v16518_v29 = vcombine.high %v16446_v24, %v16446_v24  ;;  %v16517_v32 = vcombine.low %v16446_v24, %v16446_v24 }
 0x743   : > { %v23654_v6 = vadd.f32 %v8146_v46, %v23537_v25  ;;  %v8148_v44 = vpop.f32.mrb[139].mxu1  ;;  %17544 = vmatpush3.bf16.msra.mxu0 %v10144_v28 }
 0x744   : > { %16520 = vmatprep.subr.msk.bf16.mxu1 %vm10136_vm5, %v16518_v29  ;;  %v10138_v25 = vsel %vm10136_vm5, %v16517_v32, 0  ;;  %17376 = vmatprep.subr.bf16.mxu0 %v19487_v47 }
 0x745   : > { %10224 = vmatpush1.bf16.msra.mxu1 %v10138_v25 }
 0x746   : > { %10777 = vmatprep.subr.bf16.mxu1 %v19486_v55 }
 0x748   : > { %v8151_v63 = vpop.f32.mrb[140].mxu1 }
 0x749   : > { %v23673_v21 = vadd.f32 %v8151_v63, %v23549_v49  ;;  %v8153_v58 = vpop.f32.mrb[141].mxu1 }
 0x74a   : > { %v8154_v59 = vpop.f32.mrb[142].mxu1 }
 0x74b   : > { %v23678_v17 = vadd.f32 %v8154_v59, %v23554_v56  ;;  %v8156_v3 = vpop.f32.mrb[143].mxu1 }
 0x758   : > { %v17279_v22 = vpop.f32.mrb[144].mxu1 }
 0x759   : > { %v17280_v62 = vpop.f32.mrb[145].mxu1 }
 0x75a   : > { %v17281_v10 = vadd.f32 %v17280_v62, %v17279_v22  ;;  %v17282_v18 = vpop.f32.mrb[146].mxu1 }
 0x75b   : > { %v17283_v7 = vpop.f32.mrb[147].mxu1 }
 0x75c   : > { %v17284_v53 = vadd.f32 %v17283_v7, %v17282_v18 }
 0x760   : > { %v17285_v49 = vpop.f32.mrb[148].mxu1 }
 0x761   : > { %v17286_v38 = vpop.f32.mrb[149].mxu1 }
 0x762   : > { %v17287_v39 = vadd.f32 %v17286_v38, %v17285_v49  ;;  %v17288_v33 = vpop.f32.mrb[150].mxu1 }
 0x763   : > { %v17289_v31 = vpop.f32.mrb[151].mxu1 }
 0x764   : > { %v17290_v19 = vadd.f32 %v17289_v31, %v17288_v33 }
 0x768   : > { %v17291_v1 = vpop.f32.mrb[152].mxu1 }
 0x769   : > { %v17292_v30 = vpop.f32.mrb[153].mxu1 }
 0x76a   : > { %v17293_v5 = vadd.f32 %v17292_v30, %v17291_v1  ;;  %v17294_v50 = vpop.f32.mrb[154].mxu1 }
 0x76b   : > { %v17295_v56 = vpop.f32.mrb[155].mxu1 }
 0x76c   : > { %v17296_v51 = vadd.f32 %v17295_v56, %v17294_v50 }
 0x778   : > { %v17313_v26 = vpop.f32.mrb[156].mxu1 }
 0x779   : > { %v17314_v15 = vpop.f32.mrb[157].mxu1 }
 0x77a   : > { %v17315_v27 = vadd.f32 %v17314_v15, %v17313_v26  ;;  %v17316_v11 = vpop.f32.mrb[158].mxu1 }
 0x77b   : > { %v17317_v34 = vpop.f32.mrb[159].mxu1 }
 0x77c   : > { %v17318_v0 = vadd.f32 %v17317_v34, %v17316_v11  ;;  %v9380_v9 = vadd.f32 %v17315_v27, %v17281_v10 }
 0x77e   : > { %v9383_v41 = vadd.f32 %v17318_v0, %v17284_v53 }
 0x780   : > { %v17319_v43 = vpop.f32.mrb[160].mxu1 }
 0x781   : > { %v17320_v37 = vpop.f32.mrb[161].mxu1 }
 0x782   : > { %v17321_v52 = vadd.f32 %v17320_v37, %v17319_v43  ;;  %v17322_v16 = vpop.f32.mrb[162].mxu1 }
 0x783   : > { %v17323_v61 = vpop.f32.mrb[163].mxu1 }
 0x784   : > { %v17324_v20 = vadd.f32 %v17323_v61, %v17322_v16  ;;  %v9388_v46 = vadd.f32 %v17321_v52, %v17287_v39 }
 0x786   : > { %v9391_v44 = vadd.f32 %v17324_v20, %v17290_v19 }
 0x788   : > { %v17325_v24 = vpop.f32.mrb[164].mxu1 }
 0x789   : > { %v17326_v29 = vpop.f32.mrb[165].mxu1 }
 0x78a   : > { %v17327_v32 = vadd.f32 %v17326_v29, %v17325_v24  ;;  %v17328_v14 = vpop.f32.mrb[166].mxu1 }
 0x78b   : > { %v17329_v25 = vpop.f32.mrb[167].mxu1 }
 0x78c   : > { %v17330_v28 = vadd.f32 %v17329_v25, %v17328_v14  ;;  %v9396_v63 = vadd.f32 %v17327_v32, %v17293_v5 }
 0x78e   : > { %v9399_v55 = vadd.f32 %v17330_v28, %v17296_v51 }
 0x7a5   : > { %v17347_v47 = vpop.f32.mrb[60].mxu0 }
 0x7a6   : > { %v17348_v58 = vpop.f32.mrb[61].mxu0 }
 0x7a7   : > { %v23680_v59 = vadd.f32 %v17348_v58, %v17347_v47  ;;  %v17350_v3 = vpop.f32.mrb[62].mxu0 }
 0x7a8   : > { %v17351_v22 = vpop.f32.mrb[63].mxu0 }
 0x7a9   : > { %v23682_v62 = vadd.f32 %v17351_v22, %v17350_v3  ;;  %v19491_v3 = vld [vmem:[%s25282_s3 + $0x1c] ss:$12 sps:$4 sm:$0xff]  }
 0x7ad   : > { %v17353_v10 = vpop.f32.mrb[64].mxu0 }
 0x7ae   : > { %v17354_v18 = vpop.f32.mrb[65].mxu0 }
 0x7af   : > { %v23684_v7 = vadd.f32 %v17354_v18, %v17353_v10  ;;  %v17356_v53 = vpop.f32.mrb[66].mxu0  ;;  %v19489_v18 = vld [vmem:[%s25282_s3 + $0x18] ss:$12 sps:$4 sm:$0xff]  }
 0x7b0   : > { %v17357_v49 = vpop.f32.mrb[67].mxu0 }
 0x7b1   : > { %v23686_v38 = vadd.f32 %v17357_v49, %v17356_v53  ;;  %v19493_v53 = vld [vmem:[%s25282_s3 + $0x20] ss:$12 sps:$4 sm:$0xff]   ;;  %v19497_v49 = vld [vmem:[%s25282_s3 + $0xf8] ss:$12 sps:$4 sm:$0xff]  }
 0x7b4   : > { %v9436_v39 = vpop.f32.mrb[168].mxu1 }
 0x7b5   : > { %v9437_v33 = vadd.f32 %v9436_v39, %v9380_v9  ;;  %v9438_v31 = vpop.f32.mrb[169].mxu1 }
 0x7b6   : > { %v17359_v19 = vpop.f32.mrb[68].mxu0  ;;  %v9439_v1 = vpop.f32.mrb[170].mxu1  ;;  %v19494_v31 = vld [vmem:[%s25282_s3 + $0x30] ss:$12 sps:$4 sm:$0xff]  }
 0x7b7   : > { %v9461_v30 = vmax.f32 %v23618_v48, %v9437_v33  ;;  %v9440_v5 = vadd.f32 %v9439_v1, %v9383_v41  ;;  %v17360_v50 = vpop.f32.mrb[69].mxu0  ;;  %v9441_v56 = vpop.f32.mrb[171].mxu1 }
 0x7b8   : > { %v23689_v51 = vadd.f32 %v17360_v50, %v17359_v19  ;;  %v17362_v26 = vpop.f32.mrb[70].mxu0  ;;  %v19502_v50 = vld [vmem:[%s25282_s3 + $0x110] ss:$12 sps:$4 sm:$0xff]  }
 0x7b9   : > { %v9464_v15 = vmax.f32 %v23628_v12, %v9440_v5  ;;  %v17363_v27 = vpop.f32.mrb[71].mxu0  ;;  %v19501_v5 = vld [vmem:[%s25282_s3 + $0x4c] ss:$12 sps:$4 sm:$0xff]  }
 0x7ba   : > { %v23692_v11 = vadd.f32 %v17363_v27, %v17362_v26  ;;  %v19499_v26 = vld [vmem:[%s25282_s3 + $0x48] ss:$12 sps:$4 sm:$0xff]   ;;  %v19506_v27 = vld [vmem:[%s25282_s3 + $0x64] ss:$12 sps:$4 sm:$0xff]  }
 0x7bb   : > { %v23694_v34 = vpack.c.bf16 %v9464_v15, %v9461_v30  ;;  %v19498_v30 = vld [vmem:[%s25282_s3 + $0x38] ss:$12 sps:$4 sm:$0xff]   ;;  %v19503_v15 = vld [vmem:[%s25282_s3 + $0x50] ss:$12 sps:$4 sm:$0xff]  }
 0x7bc   : > { %v9444_v0 = vpop.f32.mrb[172].mxu1 }
 0x7bd   : > { %v9445_v9 = vadd.f32 %v9444_v0, %v9388_v46  ;;  %v9446_v43 = vpop.f32.mrb[173].mxu1  ;;  %v9702_v16 = vshll.u32 %v23694_v34, 16  ;;  %v9700_v14 = vshrl.u32 %v23694_v34, 16  ;;  %v19507_v0 = vld [vmem:[%s25282_s3 + $0x128] ss:$12 sps:$4 sm:$0xff]  }
 0x7be   : > { %v9447_v37 = vpop.f32.mrb[174].mxu1  ;;  %v19504_v43 = vld [vmem:[%s25282_s3 + $0x60] ss:$12 sps:$4 sm:$0xff]  }
 0x7bf   : > { %v9467_v52 = vmax.f32 %v23644_v45, %v9445_v9  ;;  %v9448_v48 = vadd.f32 %v9447_v37, %v9391_v44  ;;  %v9449_v41 = vpop.f32.mrb[175].mxu1  ;;  %v9704_v12 = vrot.slane %v9702_v16, 1  ;;  %v19508_v37 = vld [vmem:[%s25282_s3 + $0x68] ss:$12 sps:$4 sm:$0xff]   ;;  %v19509_v16 = vld [vmem:[%s25282_s3 + $0x78] ss:$12 sps:$4 sm:$0xff]  }
 0x7c0   : > { %v19512_v41 = vld [vmem:[%s25282_s3 + $0x140] ss:$12 sps:$4 sm:$0xff]  }
 0x7c1   : > { %v9470_v61 = vmax.f32 %v23654_v6, %v9448_v48  ;;  %v19484_v6 = vld [vmem:[%s25282_s3] ss:$12 sps:$4 sm:$0xff]   ;;  %v9705_v47 = vor.u32 %v9704_v12, %v9700_v14  ;;  %v19511_v48 = vld [vmem:[%s25282_s3 + $0x7c] ss:$12 sps:$4 sm:$0xff]  }
 0x7c2   : > { %v19516_v12 = vld [vmem:[%s25282_s3 + $0x94] ss:$12 sps:$4 sm:$0xff]   ;;  %v19521_v14 = vld [vmem:[%s25282_s3 + $0xac] ss:$12 sps:$4 sm:$0xff]  }
 0x7c3   : > { %v23699_v20 = vpack.c.bf16 %v9470_v61, %v9467_v52  ;;  %v19513_v61 = vld [vmem:[%s25282_s3 + $0x80] ss:$12 sps:$4 sm:$0xff]  }
 0x7c4   : > { %v9452_v24 = vpop.f32.mrb[176].mxu1 }
 0x7c5   : > { %v9453_v29 = vadd.f32 %v9452_v24, %v9396_v63  ;;  %v9454_v32 = vpop.f32.mrb[177].mxu1  ;;  %v9707_v46 = vshll.u32 %v23699_v20, 16  ;;  %v19488_v63 = vld [vmem:[%s25282_s3 + $0x8] ss:$12 sps:$4 sm:$0xff]   ;;  %v9727_v39 = vshrl.u32 %v23699_v20, 16 }
 0x7c6   : > { %v9455_v25 = vpop.f32.mrb[178].mxu1  ;;  %v19517_v24 = vld [vmem:[%s25282_s3 + $0x158] ss:$12 sps:$4 sm:$0xff]  }
 0x7c7   : > { %v9473_v45 = vmax.f32 %v23673_v21, %v9453_v29  ;;  %v9456_v44 = vadd.f32 %v9455_v25, %v9399_v55  ;;  %v9457_v28 = vpop.f32.mrb[179].mxu1  ;;  %v9709_v58 = vrot.slane %v9707_v46, 1  ;;  %v19492_v21 = vld [vmem:[%s25282_s3 + $0xe0] ss:$12 sps:$4 sm:$0xff]   ;;  %v19514_v29 = vld [vmem:[%s25282_s3 + $0x90] ss:$12 sps:$4 sm:$0xff]  }
 0x7c8   : > { %v19518_v32 = vld [vmem:[%s25282_s3 + $0x98] ss:$12 sps:$4 sm:$0xff]   ;;  %v19522_v46 = vld [vmem:[%s25282_s3 + $0x170] ss:$12 sps:$4 sm:$0xff]   ;;  %v19519_v25 = vld [vmem:[%s25282_s3 + $0xa8] ss:$12 sps:$4 sm:$0xff]  }
 0x7c9   : > { %v9476_v55 = vmax.f32 %v23678_v17, %v9456_v44  ;;  %v9710_v22 = vsel %vm2468_vm1, %v9705_v47, %v9709_v58  ;;  %v19496_v17 = vld [vmem:[%s25282_s3 + $0x34] ss:$12 sps:$4 sm:$0xff]   ;;  %v9729_v19 = vor.u32 %v9727_v39, %v9709_v58  ;;  %v19526_v44 = vld [vmem:[%s25282_s3 + $0xc4] ss:$12 sps:$4 sm:$0xff]   ;;  %v19530_v47 = vld [vmem:[%s25282_s3 + $0xdc] ss:$12 sps:$4 sm:$0xff]  }
 0x7ca   : > { %16521 = vmatmul.mubr.msk.bf16.vlgmr.msra.gmra.mrb[180].mxu1 %vm10126_vm7, %v9710_v22  ;;  %17546 = vmatmul.mubr.msk.bf16.vlgmr.msra.gmra.mrb[72].mxu0 %vm10126_vm7, %v9710_v22  ;;  %v19524_v28 = vld [vmem:[%s25282_s3 + $0xc0] ss:$12 sps:$4 sm:$0xff]   ;;  %v19528_v58 = vld [vmem:[%s25282_s3 + $0xd8] ss:$12 sps:$4 sm:$0xff]   ;;  %v19543_v39 = vld [vmem:[%s25282_s3 + $0x1e8] ss:$12 sps:$4 sm:$0xff]  }
 0x7cb   : > { %v23720_v10 = vpack.c.bf16 %v9476_v55, %v9473_v45  ;;  %10778 = vmatpush1.bf16.msra.mxu1 %v19484_v6  ;;  %17377 = vmatpush3.bf16.msra.mxu0 %v19488_v63  ;;  %v19523_v45 = vld [vmem:[%s25282_s3 + $0xb0] ss:$12 sps:$4 sm:$0xff]   ;;  %v19527_v6 = vld [vmem:[%s25282_s3 + $0x188] ss:$12 sps:$4 sm:$0xff]   ;;  %v19531_v63 = vld [vmem:[%s25282_s3 + $0x1a0] ss:$12 sps:$4 sm:$0xff]  }
 0x7cc   : > { %10779 = vmatprep.subr.bf16.mxu1 %v19491_v3  ;;  %17378 = vmatprep.subr.bf16.mxu0 %v19492_v21  ;;  %v19534_v3 = vld [vmem:[%s25282_s3 + $0xf4] ss:$12 sps:$4 sm:$0xff]   ;;  %v19532_v21 = vld [vmem:[%s25282_s3 + $0xf0] ss:$12 sps:$4 sm:$0xff]   ;;  %v19535_v55 = vld [vmem:[%s25282_s3 + $0x1b8] ss:$12 sps:$4 sm:$0xff]  }
 0x7cd   : > { %10251 = vmatprep.mubr.bf16.mxu1 %v20034_v2  ;;  %17549 = vmatprep.mubr.msk.bf16.mxu0 %vm20036_vm6, %v20035_v57  ;;  %v9731_v33 = vshll.u32 %v23720_v10, 16  ;;  %v9741_v9 = vshrl.u32 %v23720_v10, 16  ;;  %v19538_v22 = vld [vmem:[%s25282_s3 + $0x10c] ss:$12 sps:$4 sm:$0xff]  }
 0x7cf   : > { %10780 = vmatpush1.bf16.msra.mxu1 %v19489_v18  ;;  %17379 = vmatpush3.bf16.msra.mxu0 %v19493_v53  ;;  %v9733_v1 = vrot.slane %v9731_v33, 1  ;;  %v19536_v18 = vld [vmem:[%s25282_s3 + $0x108] ss:$12 sps:$4 sm:$0xff]   ;;  %v19539_v53 = vld [vmem:[%s25282_s3 + $0x1d0] ss:$12 sps:$4 sm:$0xff]  }
 0x7d0   : > { %10781 = vmatprep.subr.bf16.mxu1 %v19496_v17  ;;  %17380 = vmatprep.subr.bf16.mxu0 %v19497_v49  ;;  %v19542_v17 = vld [vmem:[%s25282_s3 + $0x124] ss:$12 sps:$4 sm:$0xff]   ;;  %v19540_v49 = vld [vmem:[%s25282_s3 + $0x120] ss:$12 sps:$4 sm:$0xff]   ;;  %v19546_v33 = vld [vmem:[%s25282_s3 + $0x13c] ss:$12 sps:$4 sm:$0xff]  }
 0x7d1   : > { %v9734_v56 = vsel %vm2468_vm1, %v9729_v19, %v9733_v1  ;;  %v9743_v52 = vor.u32 %v9741_v9, %v9733_v1  ;;  %v19547_v19 = vld [vmem:[%s25282_s3 + $0x200] ss:$12 sps:$4 sm:$0xff]  }
 0x7d2   : > { %16522 = vmatmul.mubr.msk.bf16.gmra.mrb[184].mxu1 %vm10126_vm7, %v9734_v56  ;;  %17550 = vmatmul.mubr.msk.bf16.gmra.mrb[76].mxu0 %vm10126_vm7, %v9734_v56  ;;  %v19550_v1 = vld [vmem:[%s25282_s3 + $0x154] ss:$12 sps:$4 sm:$0xff]   ;;  %v19555_v56 = vld [vmem:[%s25282_s3 + $0x230] ss:$0 sps:$4 sm:$0xff]  }
 0x7d3   : > { %10782 = vmatpush1.bf16.msra.mxu1 %v19494_v31  ;;  %17381 = vmatpush3.bf16.msra.mxu0 %v19498_v30  ;;  %v19544_v31 = vld [vmem:[%s25282_s3 + $0x138] ss:$12 sps:$4 sm:$0xff]   ;;  %v19548_v30 = vld [vmem:[%s25282_s3 + $0x150] ss:$12 sps:$4 sm:$0xff]   ;;  %v19556_v9 = vld [vmem:[%s25282_s3 + $0x180] ss:$12 sps:$4 sm:$0xff]  }
 0x7d4   : > { %10783 = vmatprep.subr.bf16.mxu1 %v19501_v5  ;;  %17382 = vmatprep.subr.bf16.mxu0 %v19502_v50  ;;  %v19551_v5 = vld [vmem:[%s25282_s3 + $0x218] ss:$12 sps:$4 sm:$0xff]  }
 0x7d5   : > { %10261 = vmatprep.mubr.bf16.mxu1 %v20034_v2  ;;  %17553 = vmatprep.mubr.msk.bf16.mxu0 %vm20036_vm6, %v20035_v57  ;;  %v19554_v50 = vld [vmem:[%s25282_s3 + $0x16c] ss:$12 sps:$4 sm:$0xff]  }
 0x7d7   : > { %10784 = vmatpush1.bf16.msra.mxu1 %v19499_v26  ;;  %17383 = vmatpush3.bf16.msra.mxu0 %v19503_v15  ;;  %v19552_v26 = vld [vmem:[%s25282_s3 + $0x168] ss:$12 sps:$4 sm:$0xff]   ;;  %v19558_v15 = vld [vmem:[%s25282_s3 + $0x184] ss:$12 sps:$4 sm:$0xff]  }
 0x7d8   : > { %10785 = vmatprep.subr.bf16.mxu1 %v19506_v27  ;;  %17384 = vmatprep.subr.bf16.mxu0 %v19507_v0  ;;  %v10775_v27 = vsel %vm10136_vm5, %v19555_v56, 0  ;;  %v19559_v0 = vld [vmem:[%s25282_s3 + $0x530] ss:$12 sps:$4 sm:$0xff]  }
 0x7d9   : > { %v19598_v56 = vld [vmem:[%s25282_s3 + $0x5f0] ss:$12 sps:$4 sm:$0xff]  }
 0x7da   : > { %16523 = vmatmul.mubr.msk.bf16.gmra.mrb[188].mxu1 %vm10126_vm7, %v9743_v52  ;;  %17554 = vmatmul.mubr.msk.bf16.gmra.mrb[80].mxu0 %vm10126_vm7, %v9743_v52  ;;  %v19564_v52 = vld [vmem:[%s25282_s3 + $0x548] ss:$12 sps:$4 sm:$0xff]  }
 0x7db   : > { %10786 = vmatpush1.bf16.msra.mxu1 %v19504_v43  ;;  %17385 = vmatpush3.bf16.msra.mxu0 %v19508_v37  ;;  %v19560_v43 = vld [vmem:[%s25282_s3 + $0x470] ss:$12 sps:$4 sm:$0xff]  }
 0x7dc   : > { %10809 = vmatprep.mubr.bf16.mxu1 %v23371_v36  ;;  %10935 = vmatprep.mubr.bf16.mxu0 %v23371_v36  ;;  %v19563_v37 = vld [vmem:[%s25282_s3 + $0x19c] ss:$12 sps:$4 sm:$0xff]  }
 0x7dd   : > { %10787 = vmatprep.subr.bf16.mxu1 %v19511_v48  ;;  %17386 = vmatprep.subr.bf16.mxu0 %v19512_v41  ;;  %v19561_v48 = vld [vmem:[%s25282_s3 + $0x198] ss:$12 sps:$4 sm:$0xff]   ;;  %v19565_v41 = vld [vmem:[%s25282_s3 + $0x488] ss:$12 sps:$4 sm:$0xff]  }
 0x7df   : > { %10788 = vmatpush1.bf16.msra.mxu1 %v19509_v16  ;;  %17387 = vmatpush3.bf16.msra.mxu0 %v19513_v61  ;;  %v19568_v16 = vld [vmem:[%s25282_s3 + $0x1b4] ss:$12 sps:$4 sm:$0xff]  }
 0x7e0   : > { %10789 = vmatprep.subr.bf16.mxu1 %v19516_v12  ;;  %17388 = vmatprep.subr.bf16.mxu0 %v19517_v24  ;;  %v19569_v61 = vld [vmem:[%s25282_s3 + $0x560] ss:$12 sps:$4 sm:$0xff]   ;;  %v19566_v12 = vld [vmem:[%s25282_s3 + $0x1b0] ss:$12 sps:$4 sm:$0xff]  }
 0x7e1   : > { %v19570_v24 = vld [vmem:[%s25282_s3 + $0x4a0] ss:$12 sps:$4 sm:$0xff]  }
 0x7e3   : > { %10790 = vmatpush1.bf16.msra.mxu1 %v19514_v29  ;;  %17389 = vmatpush3.bf16.msra.mxu0 %v19518_v32  ;;  %v19573_v29 = vld [vmem:[%s25282_s3 + $0x1cc] ss:$12 sps:$4 sm:$0xff]  }
 0x7e4   : > { %10791 = vmatprep.subr.bf16.mxu1 %v19521_v14  ;;  %17390 = vmatprep.subr.bf16.mxu0 %v19522_v46  ;;  %v19574_v32 = vld [vmem:[%s25282_s3 + $0x578] ss:$12 sps:$4 sm:$0xff]   ;;  %v19571_v14 = vld [vmem:[%s25282_s3 + $0x1c8] ss:$12 sps:$4 sm:$0xff]  }
 0x7e5   : > { %v19575_v46 = vld [vmem:[%s25282_s3 + $0x4b8] ss:$12 sps:$4 sm:$0xff]  }
 0x7e7   : > { %10792 = vmatpush1.bf16.msra.mxu1 %v19519_v25  ;;  %17391 = vmatpush3.bf16.msra.mxu0 %v19523_v45  ;;  %v19578_v25 = vld [vmem:[%s25282_s3 + $0x1e4] ss:$12 sps:$4 sm:$0xff]  }
 0x7e8   : > { %10793 = vmatprep.subr.bf16.mxu1 %v19526_v44  ;;  %17557 = vmatprep.subr.bf16.mxu0 %v20035_v57  ;;  %v19579_v45 = vld [vmem:[%s25282_s3 + $0x590] ss:$12 sps:$4 sm:$0xff]   ;;  %v19576_v44 = vld [vmem:[%s25282_s3 + $0x1e0] ss:$12 sps:$4 sm:$0xff]  }
 0x7ea   : > { %10936 = vmatmul.mubr.bf16.vlgmr.msra.gmra.mrb[84].mxu0 %v23369_v60 }
 0x7eb   : > { %10794 = vmatpush1.bf16.msra.mxu1 %v19524_v28  ;;  %10943 = vmatprep.mubr.bf16.mxu0 %v23385_v23  ;;  %v19580_v28 = vld [vmem:[%s25282_s3 + $0x4d0] ss:$12 sps:$4 sm:$0xff]  }
 0x7ec   : > { %17558 = vmatpush3.bf16.msra.mxu0 %v19527_v6  ;;  %10795 = vmatprep.subr.bf16.mxu1 %v19530_v47  ;;  %v11125_v6 = vrot.slane %v23385_v23, 1  ;;  %v19583_v47 = vld [vmem:[%s25282_s3 + $0x1fc] ss:$12 sps:$4 sm:$0xff]  }
 0x7ed   : > { %17559 = vmatprep.subr.bf16.mxu0 %v20035_v57 }
 0x7ef   : > { %10796 = vmatpush1.bf16.msra.mxu1 %v19528_v58  ;;  %v11124_v58 = vrot.slane %v23371_v36, 1  ;;  %v19585_v36 = vld [vmem:[%s25282_s3 + $0x4e8] ss:$12 sps:$4 sm:$0xff]  }
 0x7f0   : > { %17560 = vmatpush3.bf16.msra.mxu0 %v19531_v63  ;;  %10797 = vmatprep.subr.bf16.mxu1 %v19534_v3  ;;  %v19584_v63 = vld [vmem:[%s25282_s3 + $0x5a8] ss:$12 sps:$4 sm:$0xff]   ;;  %v19581_v3 = vld [vmem:[%s25282_s3 + $0x1f8] ss:$12 sps:$4 sm:$0xff]  }
 0x7f1   : > { %17561 = vmatprep.subr.bf16.mxu0 %v20035_v57 }
 0x7f2   : > { %10944 = vmatmul.mubr.bf16.gmra.mrb[88].mxu0 %v23383_v8 }
 0x7f3   : > { %10798 = vmatpush1.bf16.msra.mxu1 %v19532_v21  ;;  %10951 = vmatprep.mubr.bf16.mxu0 %v23408_v40  ;;  %v19588_v21 = vld [vmem:[%s25282_s3 + $0x214] ss:$12 sps:$4 sm:$0xff]  }
 0x7f4   : > { %17562 = vmatpush3.bf16.msra.mxu0 %v19535_v55  ;;  %10799 = vmatprep.subr.bf16.mxu1 %v19538_v22  ;;  %v19589_v55 = vld [vmem:[%s25282_s3 + $0x5c0] ss:$12 sps:$4 sm:$0xff]  }
 0x7f5   : > { %17563 = vmatprep.subr.bf16.mxu0 %v20035_v57  ;;  %v9578_v22 = vld [vmem:[%s25282_s3 + $0x228] sm:$0xff] }
 0x7f7   : > { %10800 = vmatpush1.bf16.msra.mxu1 %v19536_v18  ;;  %v19586_v18 = vld [vmem:[%s25282_s3 + $0x210] ss:$12 sps:$4 sm:$0xff]  }
 0x7f8   : > { %17564 = vmatpush3.bf16.msra.mxu0 %v19539_v53  ;;  %10801 = vmatprep.subr.bf16.mxu1 %v19542_v17  ;;  %v19590_v53 = vld [vmem:[%s25282_s3 + $0x500] ss:$12 sps:$4 sm:$0xff]   ;;  %v16597_v17 = vcombine.high %v9578_v22, %v9578_v22 }
 0x7f9   : > { %17565 = vmatprep.subr.bf16.mxu0 %v20035_v57 }
 0x7fa   : > { %10952 = vmatmul.mubr.bf16.gmra.mrb[92].mxu0 %v23402_v42 }
 0x7fb   : > { %10802 = vmatpush1.bf16.msra.mxu1 %v19540_v49  ;;  %17573 = vmatprep.mubr.msk.bf16.mxu0 %vm20036_vm6, %v20035_v57  ;;  %v19592_v49 = vld [vmem:[%s25282_s3 + $0x5d8] ss:$12 sps:$4 sm:$0xff]  }
 0x7fc   : > { %17566 = vmatpush3.bf16.msra.mxu0 %v19543_v39  ;;  %10803 = vmatprep.subr.bf16.mxu1 %v19546_v33  ;;  %v16596_v39 = vcombine.low %v9578_v22, %v9578_v22  ;;  %v19594_v33 = vld [vmem:[%s25282_s3 + $0x518] ss:$12 sps:$4 sm:$0xff]  }
 0x7fd   : > { %17567 = vmatprep.subr.bf16.mxu0 %v20035_v57 }
 0x7ff   : > { %10804 = vmatpush1.bf16.msra.mxu1 %v19544_v31  ;;  %v10769_v31 = vsel %vm10136_vm5, %v16596_v39, 0  ;;  %v19647_v39 = vld [vmem:[%s25282_s3 + $0x5bc] ss:$12 sps:$4 sm:$0xff]  }
 0x800   : > { %17568 = vmatpush3.bf16.msra.mxu0 %v19547_v19  ;;  %10805 = vmatprep.subr.bf16.mxu1 %v19550_v1  ;;  %v19597_v19 = vld [vmem:[%s25282_s3 + $0x46c] ss:$12 sps:$4 sm:$0xff]   ;;  %v11122_v1 = vrot.slane %v23383_v8, 1 }
 0x801   : > { %17569 = vmatprep.subr.bf16.mxu0 %v20035_v57 }
 0x803   : > { %10806 = vmatpush1.bf16.msra.mxu1 %v19548_v30  ;;  %v24026_v30 = vrot.slane %v23408_v40, 1 }
 0x804   : > { %17570 = vmatpush3.bf16.msra.mxu0 %v19551_v5  ;;  %10807 = vmatprep.subr.bf16.mxu1 %v19554_v50  ;;  %v19595_v5 = vld [vmem:[%s25282_s3 + $0x468] ss:$12 sps:$4 sm:$0xff]   ;;  %v11121_v50 = vrot.slane %v23369_v60, 1 }
 0x805   : > { %17571 = vmatprep.subr.bf16.mxu0 %v20035_v57 }
 0x807   : > { %10808 = vmatpush1.bf16.msra.mxu1 %v19552_v26  ;;  %v19599_v26 = vld [vmem:[%s25282_s3 + $0x480] ss:$12 sps:$4 sm:$0xff]  }
 0x808   : > { %17572 = vmatpush3.bf16.msra.mxu0 %v10775_v27  ;;  %10840 = vmatprep.subr.bf16.mxu1 %v19558_v15  ;;  %v19602_v15 = vld [vmem:[%s25282_s3 + $0x608] ss:$12 sps:$4 sm:$0xff]  }
 0x809   : > { %17421 = vmatprep.subr.bf16.mxu0 %v19559_v0  ;;  %v19605_v27 = vld [vmem:[%s25282_s3 + $0x49c] ss:$12 sps:$4 sm:$0xff]   ;;  %v24062_v0 = vrot.slane %v23402_v42, 1 }
 0x80a   : > { %10810 = vmatmul.mubr.bf16.vlgmr.msra.gmra.mrb[180].mxu1 %v23369_v60  ;;  %v24047_v60 = vsel %vm4356_vm2, %v11125_v6, %v24026_v30 }
 0x80b   : > { %17574 = vmatmul.mubr.msk.bf16.vlgmr.msra.gmra.mrb[96].mxu0 %vm10126_vm7, %v23694_v34  ;;  %10819 = vmatprep.mubr.bf16.mxu1 %v23385_v23  ;;  %v23989_v23 = vsel %vm4356_vm2, %v11124_v58, %v11125_v6  ;;  %v19627_v58 = vld [vmem:[%s25282_s3 + $0x528] ss:$12 sps:$4 sm:$0xff]  }
 0x80c   : > { %10841 = vmatpush1.bf16.msra.mxu1 %v19556_v9  ;;  %17422 = vmatpush3.bf16.msra.mxu0 %v19560_v43  ;;  %v19603_v9 = vld [vmem:[%s25282_s3 + $0x498] ss:$12 sps:$4 sm:$0xff]   ;;  %v19606_v43 = vld [vmem:[%s25282_s3 + $0x620] ss:$12 sps:$4 sm:$0xff]  }
 0x80d   : > { %10842 = vmatprep.subr.bf16.mxu1 %v19563_v37  ;;  %17423 = vmatprep.subr.bf16.mxu0 %v19564_v52  ;;  %v19609_v37 = vld [vmem:[%s25282_s3 + $0x4b4] ss:$12 sps:$4 sm:$0xff]   ;;  %v24075_v52 = vsel %vm4356_vm2, %v11122_v1, %v24062_v0 }
 0x80e   : > { %17577 = vmatprep.mubr.msk.bf16.mxu0 %vm20036_vm6, %v20035_v57 }
 0x810   : > { %10843 = vmatpush1.bf16.msra.mxu1 %v19561_v48  ;;  %17424 = vmatpush3.bf16.msra.mxu0 %v19565_v41  ;;  %v19610_v48 = vld [vmem:[%s25282_s3 + $0x638] ss:$12 sps:$4 sm:$0xff]  }
 0x811   : > { %10844 = vmatprep.subr.bf16.mxu1 %v19568_v16  ;;  %17425 = vmatprep.subr.bf16.mxu0 %v19569_v61  ;;  %v19613_v41 = vld [vmem:[%s25282_s3 + $0x4cc] ss:$12 sps:$4 sm:$0xff]   ;;  %v19611_v16 = vld [vmem:[%s25282_s3 + $0x4c8] ss:$12 sps:$4 sm:$0xff]   ;;  %v19614_v61 = vld [vmem:[%s25282_s3 + $0x650] ss:$12 sps:$4 sm:$0xff]  }
 0x812   : > { %10820 = vmatmul.mubr.bf16.gmra.mrb[184].mxu1 %v23383_v8  ;;  %v19601_v8 = vld [vmem:[%s25282_s3 + $0x484] ss:$12 sps:$4 sm:$0xff]  }
 0x813   : > { %17578 = vmatmul.mubr.msk.bf16.gmra.mrb[100].mxu0 %vm10126_vm7, %v23699_v20  ;;  %10829 = vmatprep.mubr.bf16.mxu1 %v23408_v40  ;;  %v24040_v40 = vsel %vm4356_vm2, %v11121_v50, %v11122_v1  ;;  %v19653_v1 = vld [vmem:[%s25282_s3 + $0x5ec] ss:$12 sps:$4 sm:$0xff]   ;;  %v19656_v50 = vld [vmem:[%s25282_s3 + $0x604] ss:$12 sps:$4 sm:$0xff]  }
 0x814   : > { %10845 = vmatpush1.bf16.msra.mxu1 %v19566_v12  ;;  %17426 = vmatpush3.bf16.msra.mxu0 %v19570_v24  ;;  %v19617_v12 = vld [vmem:[%s25282_s3 + $0x4e4] ss:$12 sps:$4 sm:$0xff]   ;;  %v19615_v24 = vld [vmem:[%s25282_s3 + $0x4e0] ss:$12 sps:$4 sm:$0xff]  }
 0x815   : > { %10846 = vmatprep.subr.bf16.mxu1 %v19573_v29  ;;  %17427 = vmatprep.subr.bf16.mxu0 %v19574_v32  ;;  %v19618_v29 = vld [vmem:[%s25282_s3 + $0x668] ss:$12 sps:$4 sm:$0xff]  }
 0x816   : > { %17581 = vmatprep.mubr.msk.bf16.mxu0 %vm20036_vm6, %v20035_v57  ;;  %v19621_v32 = vld [vmem:[%s25282_s3 + $0x4fc] ss:$12 sps:$4 sm:$0xff]  }
 0x818   : > { %10847 = vmatpush1.bf16.msra.mxu1 %v19571_v14  ;;  %17428 = vmatpush3.bf16.msra.mxu0 %v19575_v46  ;;  %v19619_v14 = vld [vmem:[%s25282_s3 + $0x4f8] ss:$12 sps:$4 sm:$0xff]   ;;  %v19622_v46 = vld [vmem:[%s25282_s3 + $0x680] ss:$12 sps:$4 sm:$0xff]  }
 0x819   : > { %10848 = vmatprep.subr.bf16.mxu1 %v19578_v25  ;;  %17429 = vmatprep.subr.bf16.mxu0 %v19579_v45  ;;  %v19625_v25 = vld [vmem:[%s25282_s3 + $0x514] ss:$12 sps:$4 sm:$0xff]   ;;  %v19626_v45 = vld [vmem:[%s25282_s3 + $0x698] ss:$0 sps:$4 sm:$0xff]  }
 0x81a   : > { %10830 = vmatmul.mubr.bf16.gmra.mrb[188].mxu1 %v23402_v42  ;;  %v19607_v42 = vld [vmem:[%s25282_s3 + $0x4b0] ss:$12 sps:$4 sm:$0xff]   ;;  %v11534_v6 = vsel %vm10136_vm5, %v19626_v45, 0 }
 0x81b   : > { %17582 = vmatmul.mubr.msk.bf16.gmra.mrb[104].mxu0 %vm10126_vm7, %v23720_v10  ;;  %10872 = vmatprep.mubr.bf16.mxu1 %v20034_v2 }
 0x81c   : > { %10849 = vmatpush1.bf16.msra.mxu1 %v19576_v44  ;;  %17430 = vmatpush3.bf16.msra.mxu0 %v19580_v28  ;;  %v19623_v44 = vld [vmem:[%s25282_s3 + $0x510] ss:$12 sps:$4 sm:$0xff]   ;;  %v19629_v28 = vld [vmem:[%s25282_s3 + $0x52c] ss:$12 sps:$4 sm:$0xff]  }
 0x81d   : > { %11694 = vmatprep.mubr.bf16.mxu0 %v23989_v23  ;;  %10850 = vmatprep.subr.bf16.mxu1 %v19583_v47  ;;  %v11128_v47 = vrot.slane %v23699_v20, 1 }
 0x81e   : > { %17431 = vmatprep.subr.bf16.mxu0 %v19584_v63  ;;  %v11127_v63 = vrot.slane %v23694_v34, 1 }
 0x820   : > { %10851 = vmatpush1.bf16.msra.mxu1 %v19581_v3  ;;  %17432 = vmatpush3.bf16.msra.mxu0 %v19585_v36  ;;  %v24149_v3 = vsel %vm4356_vm2, %v11127_v63, %v11128_v47  ;;  %v24162_v36 = vrot.slane %v23720_v10, 1 }
 0x821   : > { %10852 = vmatprep.subr.bf16.mxu1 %v19588_v21  ;;  %17433 = vmatprep.subr.bf16.mxu0 %v19589_v55  ;;  %v19633_v21 = vld [vmem:[%s25282_s3 + $0x558] ss:$12 sps:$4 sm:$0xff]   ;;  %v19638_v55 = vld [vmem:[%s25282_s3 + $0x574] ss:$12 sps:$4 sm:$0xff]  }
 0x822   : > { %v24172_v22 = vsel %vm4356_vm2, %v11128_v47, %v24162_v36 }
 0x824   : > { %10853 = vmatpush1.bf16.msra.mxu1 %v19586_v18  ;;  %17434 = vmatpush3.bf16.msra.mxu0 %v19590_v53  ;;  %v19641_v18 = vld [vmem:[%s25282_s3 + $0x58c] ss:$12 sps:$4 sm:$0xff]   ;;  %v19639_v53 = vld [vmem:[%s25282_s3 + $0x588] ss:$12 sps:$4 sm:$0xff]  }
 0x825   : > { %16599 = vmatprep.subr.msk.bf16.mxu1 %vm10136_vm5, %v16597_v17  ;;  %17435 = vmatprep.subr.bf16.mxu0 %v19592_v49  ;;  %v19644_v17 = vld [vmem:[%s25282_s3 + $0x5a4] ss:$12 sps:$4 sm:$0xff]   ;;  %v19642_v49 = vld [vmem:[%s25282_s3 + $0x5a0] ss:$12 sps:$4 sm:$0xff]  }
 0x828   : > { %10855 = vmatpush1.bf16.msra.mxu1 %v10769_v31  ;;  %17436 = vmatpush3.bf16.msra.mxu0 %v19594_v33  ;;  %v19645_v33 = vld [vmem:[%s25282_s3 + $0x5b8] ss:$12 sps:$4 sm:$0xff]   ;;  %v19650_v31 = vld [vmem:[%s25282_s3 + $0x5d4] ss:$12 sps:$4 sm:$0xff]  }
 0x829   : > { %11536 = vmatprep.subr.bf16.mxu1 %v19597_v19  ;;  %17585 = vmatprep.subr.bf16.mxu0 %v20035_v57  ;;  %v19648_v19 = vld [vmem:[%s25282_s3 + $0x5d0] ss:$12 sps:$4 sm:$0xff]  }
 0x82b   : > { %16600 = vmatmul.mubr.msk.bf16.vlgmr.msra.gmra.mrb[180].mxu1 %vm10126_vm7, %v23694_v34  ;;  %11695 = vmatmul.mubr.bf16.vlgmr.msra.gmra.mrb[108].mxu0 %v24040_v40  ;;  %v19635_v34 = vld [vmem:[%s25282_s3 + $0x55c] ss:$12 sps:$4 sm:$0xff]  }
 0x82c   : > { %11537 = vmatpush1.bf16.msra.mxu1 %v19595_v5  ;;  %11702 = vmatprep.mubr.bf16.mxu0 %v24047_v60  ;;  %v19651_v5 = vld [vmem:[%s25282_s3 + $0x5e8] ss:$12 sps:$4 sm:$0xff]  }
 0x82d   : > { %17586 = vmatpush3.bf16.msra.mxu0 %v19598_v56  ;;  %11538 = vmatprep.subr.bf16.mxu1 %v19601_v8  ;;  %v19654_v56 = vld [vmem:[%s25282_s3 + $0x600] ss:$12 sps:$4 sm:$0xff]   ;;  %v19659_v8 = vld [vmem:[%s25282_s3 + $0x61c] ss:$12 sps:$4 sm:$0xff]  }
 0x82e   : > { %17587 = vmatprep.subr.bf16.mxu0 %v20035_v57  ;;  %10882 = vmatprep.mubr.bf16.mxu1 %v20034_v2 }
 0x830   : > { %11539 = vmatpush1.bf16.msra.mxu1 %v19599_v26  ;;  %v19657_v26 = vld [vmem:[%s25282_s3 + $0x618] ss:$12 sps:$4 sm:$0xff]  }
 0x831   : > { %17588 = vmatpush3.bf16.msra.mxu0 %v19602_v15  ;;  %11540 = vmatprep.subr.bf16.mxu1 %v19605_v27  ;;  %v19665_v15 = vld [vmem:[%s25282_s3 + $0x64c] ss:$12 sps:$4 sm:$0xff]   ;;  %v19663_v27 = vld [vmem:[%s25282_s3 + $0x648] ss:$12 sps:$4 sm:$0xff]  }
 0x832   : > { %17589 = vmatprep.subr.bf16.mxu0 %v20035_v57 }
 0x833   : > { %16601 = vmatmul.mubr.msk.bf16.gmra.mrb[184].mxu1 %vm10126_vm7, %v23699_v20  ;;  %11703 = vmatmul.mubr.bf16.gmra.mrb[112].mxu0 %v24075_v52  ;;  %v19630_v20 = vld [vmem:[%s25282_s3 + $0x540] ss:$12 sps:$4 sm:$0xff]  }
 0x834   : > { %11541 = vmatpush1.bf16.msra.mxu1 %v19603_v9  ;;  %11710 = vmatprep.mubr.bf16.mxu0 %v24026_v30  ;;  %v19666_v9 = vld [vmem:[%s25282_s3 + $0x660] ss:$12 sps:$4 sm:$0xff]  }
 0x835   : > { %17590 = vmatpush3.bf16.msra.mxu0 %v19606_v43  ;;  %11542 = vmatprep.subr.bf16.mxu1 %v19609_v37  ;;  %v19671_v43 = vld [vmem:[%s25282_s3 + $0x67c] ss:$12 sps:$4 sm:$0xff]   ;;  %v16698_v37 = vld [vmem:[%s25282_s3 + $0x690] sm:$0xff] }
 0x836   : > { %17591 = vmatprep.subr.bf16.mxu0 %v20035_v57  ;;  %10892 = vmatprep.mubr.bf16.mxu1 %v20034_v2 }
 0x838   : > { %11543 = vmatpush1.bf16.msra.mxu1 %v19607_v42  ;;  %v16769_v42 = vcombine.low %v16698_v37, %v16698_v37 }
 0x839   : > { %17592 = vmatpush3.bf16.msra.mxu0 %v19610_v48  ;;  %11544 = vmatprep.subr.bf16.mxu1 %v19613_v41 }
 0x83a   : > { %17593 = vmatprep.subr.bf16.mxu0 %v20035_v57  ;;  %v11528_v48 = vsel %vm10136_vm5, %v16769_v42, 0 }
 0x83b   : > { %16602 = vmatmul.mubr.msk.bf16.gmra.mrb[188].mxu1 %vm10126_vm7, %v23720_v10  ;;  %11711 = vmatmul.mubr.bf16.gmra.mrb[116].mxu0 %v24062_v0  ;;  %v19636_v10 = vld [vmem:[%s25282_s3 + $0x570] ss:$12 sps:$4 sm:$0xff]  }
 0x83c   : > { %11545 = vmatpush1.bf16.msra.mxu1 %v19611_v16  ;;  %11568 = vmatprep.mubr.bf16.mxu1 %v23989_v23  ;;  %v19632_v23 = vld [vmem:[%s25282_s3 + $0x544] ss:$12 sps:$4 sm:$0xff]  }
 0x83d   : > { %17594 = vmatpush3.bf16.msra.mxu0 %v19614_v61  ;;  %11546 = vmatprep.subr.bf16.mxu1 %v19617_v12 }
 0x83e   : > { %17595 = vmatprep.subr.bf16.mxu0 %v20035_v57  ;;  %17601 = vmatprep.mubr.msk.bf16.mxu0 %vm20036_vm6, %v20035_v57 }
 0x840   : > { %11547 = vmatpush1.bf16.msra.mxu1 %v19615_v24 }
 0x841   : > { %17596 = vmatpush3.bf16.msra.mxu0 %v19618_v29  ;;  %11548 = vmatprep.subr.bf16.mxu1 %v19621_v32 }
 0x842   : > { %17597 = vmatprep.subr.bf16.mxu0 %v20035_v57 }
 0x844   : > { %11549 = vmatpush1.bf16.msra.mxu1 %v19619_v14 }
 0x845   : > { %17598 = vmatpush3.bf16.msra.mxu0 %v19622_v46  ;;  %11550 = vmatprep.subr.bf16.mxu1 %v19625_v25 }
 0x846   : > { %17599 = vmatprep.subr.bf16.mxu0 %v20035_v57 }
 0x848   : > { %11551 = vmatpush1.bf16.msra.mxu1 %v19623_v44 }
 0x849   : > { %17600 = vmatpush3.bf16.msra.mxu0 %v11534_v6  ;;  %11552 = vmatprep.subr.bf16.mxu1 %v19629_v28 }
 0x84c   : > { %17602 = vmatmul.mubr.msk.bf16.vlgmr.msra.gmra.mrb[120].mxu0 %vm10126_vm7, %v24149_v3  ;;  %11553 = vmatpush1.bf16.msra.mxu1 %v19627_v58 }
 0x84d   : > { %11554 = vmatprep.subr.bf16.mxu1 %v19632_v23  ;;  %17605 = vmatprep.mubr.msk.bf16.mxu0 %vm20036_vm6, %v20035_v57 }
 0x850   : > { %11555 = vmatpush1.bf16.msra.mxu1 %v19630_v20 }
 0x851   : > { %11556 = vmatprep.subr.bf16.mxu1 %v19635_v34 }
 0x854   : > { %17606 = vmatmul.mubr.msk.bf16.gmra.mrb[124].mxu0 %vm10126_vm7, %v24172_v22  ;;  %11557 = vmatpush1.bf16.msra.mxu1 %v19633_v21 }
 0x855   : > { %11558 = vmatprep.subr.bf16.mxu1 %v19638_v55  ;;  %17609 = vmatprep.mubr.msk.bf16.mxu0 %vm20036_vm6, %v20035_v57 }
 0x858   : > { %11559 = vmatpush1.bf16.msra.mxu1 %v19636_v10 }
 0x859   : > { %11560 = vmatprep.subr.bf16.mxu1 %v19641_v18 }
 0x85c   : > { %17610 = vmatmul.mubr.msk.bf16.gmra.mrb[128].mxu0 %vm10126_vm7, %v24162_v36  ;;  %11561 = vmatpush1.bf16.msra.mxu1 %v19639_v53 }
 0x85d   : > { %11562 = vmatprep.subr.bf16.mxu1 %v19644_v17  ;;  %11918 = vmatprep.mubr.bf16.mxu0 %v20034_v2 }
 0x860   : > { %11563 = vmatpush1.bf16.msra.mxu1 %v19642_v49 }
 0x861   : > { %11564 = vmatprep.subr.bf16.mxu1 %v19647_v39 }
 0x864   : > { %11565 = vmatpush1.bf16.msra.mxu1 %v19645_v33 }
 0x865   : > { %11566 = vmatprep.subr.bf16.mxu1 %v19650_v31 }
 0x868   : > { %11567 = vmatpush1.bf16.msra.mxu1 %v19648_v19 }
 0x869   : > { %11599 = vmatprep.subr.bf16.mxu1 %v19653_v1 }
 0x86b   : > { %11569 = vmatmul.mubr.bf16.vlgmr.msra.gmra.mrb[180].mxu1 %v24040_v40  ;;  %v19662_v40 = vld [vmem:[%s25282_s3 + $0x634] ss:$12 sps:$4 sm:$0xff]  }
 0x86c   : > { %11578 = vmatprep.mubr.bf16.mxu1 %v24047_v60  ;;  %11600 = vmatpush1.bf16.msra.mxu1 %v19651_v5  ;;  %v19660_v60 = vld [vmem:[%s25282_s3 + $0x630] ss:$12 sps:$4 sm:$0xff]  }
 0x86d   : > { %11601 = vmatprep.subr.bf16.mxu1 %v19656_v50 }
 0x870   : > { %11602 = vmatpush1.bf16.msra.mxu1 %v19654_v56 }
 0x871   : > { %11603 = vmatprep.subr.bf16.mxu1 %v19659_v8 }
 0x873   : > { %11579 = vmatmul.mubr.bf16.gmra.mrb[184].mxu1 %v24075_v52  ;;  %v16770_v52 = vcombine.high %v16698_v37, %v16698_v37 }
 0x874   : > { %11588 = vmatprep.mubr.bf16.mxu1 %v24026_v30  ;;  %11604 = vmatpush1.bf16.msra.mxu1 %v19657_v26  ;;  %v19668_v30 = vld [vmem:[%s25282_s3 + $0x664] ss:$12 sps:$4 sm:$0xff]  }
 0x875   : > { %11605 = vmatprep.subr.bf16.mxu1 %v19662_v40 }
 0x878   : > { %11606 = vmatpush1.bf16.msra.mxu1 %v19660_v60 }
 0x879   : > { %11607 = vmatprep.subr.bf16.mxu1 %v19665_v15 }
 0x87b   : > { %11589 = vmatmul.mubr.bf16.gmra.mrb[188].mxu1 %v24062_v0  ;;  %v19669_v0 = vld [vmem:[%s25282_s3 + $0x678] ss:$12 sps:$4 sm:$0xff]   ;;  %s17192_s3 = sshll.u32 %s20190_s7, 4  ;;  %s20038_s7 = smov [#allocation2]  }
 0x87c   : > { %11608 = vmatpush1.bf16.msra.mxu1 %v19663_v27  ;;  %11631 = vmatprep.mubr.bf16.mxu1 %v20034_v2 }
 0x87d   : > { %11609 = vmatprep.subr.bf16.mxu1 %v19668_v30 }
 0x880   : > { %11610 = vmatpush1.bf16.msra.mxu1 %v19666_v9 }
 0x881   : > { %11611 = vmatprep.subr.bf16.mxu1 %v19671_v43 }
 0x884   : > { %11612 = vmatpush1.bf16.msra.mxu1 %v19669_v0 }
 0x885   : > { %16772 = vmatprep.subr.msk.bf16.mxu1 %vm10136_vm5, %v16770_v52 }
 0x888   : > { %11614 = vmatpush1.bf16.msra.mxu1 %v11528_v48 }
 0x88b   : > { %16773 = vmatmul.mubr.msk.bf16.vlgmr.msra.gmra.mrb[180].mxu1 %vm10126_vm7, %v24149_v3 }
 0x88c   : > { %11641 = vmatprep.mubr.bf16.mxu1 %v20034_v2 }
 0x893   : > { %16774 = vmatmul.mubr.msk.bf16.gmra.mrb[184].mxu1 %vm10126_vm7, %v24172_v22 }
 0x894   : > { %11651 = vmatprep.mubr.bf16.mxu1 %v20034_v2 }
 0x89b   : > { %16775 = vmatmul.mubr.msk.bf16.gmra.mrb[188].mxu1 %vm10126_vm7, %v24162_v36 }
 0x89d   : > { %v10363_v41 = vpop.f32.mrb[72].mxu0 }
 0x89e   : > { %v10364_v16 = vadd.f32 %v23680_v59, %v10363_v41  ;;  %v17547_v61 = vpop.f32.mrb[73].mxu0 }
 0x89f   : > { %v10366_v12 = vpop.f32.mrb[74].mxu0 }
 0x8a0   : > { %v10367_v24 = vadd.f32 %v23682_v62, %v10366_v12  ;;  %v17548_v29 = vpop.f32.mrb[75].mxu0 }
 0x8a5   : > { %v10371_v32 = vpop.f32.mrb[76].mxu0 }
 0x8a6   : > { %v10372_v14 = vadd.f32 %v23684_v7, %v10371_v32  ;;  %v17551_v46 = vpop.f32.mrb[77].mxu0 }
 0x8a7   : > { %v10374_v25 = vpop.f32.mrb[78].mxu0 }
 0x8a8   : > { %v10375_v45 = vadd.f32 %v23686_v38, %v10374_v25  ;;  %v17552_v44 = vpop.f32.mrb[79].mxu0 }
 0x8ad   : > { %v10379_v28 = vpop.f32.mrb[80].mxu0 }
 0x8ae   : > { %v10380_v6 = vadd.f32 %v23689_v51, %v10379_v28  ;;  %v17555_v47 = vpop.f32.mrb[81].mxu0 }
 0x8af   : > { %v10382_v58 = vpop.f32.mrb[82].mxu0 }
 0x8b0   : > { %v10383_v59 = vadd.f32 %v23692_v11, %v10382_v58  ;;  %v17556_v63 = vpop.f32.mrb[83].mxu0 }
 0x8bd   : > { %v17392_v23 = vpop.f32.mrb[84].mxu0 }
 0x8be   : > { %v17393_v3 = vpop.f32.mrb[85].mxu0 }
 0x8bf   : > { %v17394_v62 = vadd.f32 %v17393_v3, %v17392_v23  ;;  %v17395_v20 = vpop.f32.mrb[86].mxu0 }
 0x8c0   : > { %v17396_v34 = vpop.f32.mrb[87].mxu0 }
 0x8c1   : > { %v17397_v36 = vadd.f32 %v17396_v34, %v17395_v20  ;;  %v10938_v7 = vadd.f32 %v17394_v62, %v10364_v16  ;;  %v24282_v62 = vld [vmem:[%s25283_s4] sm:$0x7]  ;;  %s756_s4 = scalar_lea.vmem [#allocation2], %s755_s25 }
 0x8c2   : > { %s15002_s1 = sshll.u32 %s756_s4, 4  ;;  %s25167_s1 = int_to_ptr.vmem [resolvable:$true] %s15002_s1 }
 0x8c3   : > { %v10941_v21 = vadd.f32 %v17397_v36, %v10367_v24  ;;  %v11807_v36 = vrot.slane %v24282_v62, %v6135_v4  ;;  %v19681_v4 = vld [vmem:[%s25284_s6 + $0x168] ss:$8 sps:$4 sm:$0xff]   ;;  %s25291_s6 = sld [smem:[#allocation24_spill]] }
 0x8c5   : > { %v17398_v55 = vpop.f32.mrb[88].mxu0 }
 0x8c6   : > { %v17399_v22 = vpop.f32.mrb[89].mxu0 }
 0x8c7   : > { %v17400_v38 = vadd.f32 %v17399_v22, %v17398_v55  ;;  %v17401_v10 = vpop.f32.mrb[90].mxu0 }
 0x8c8   : > { %v17402_v18 = vpop.f32.mrb[91].mxu0 }
 0x8c9   : > { %v17403_v53 = vadd.f32 %v17402_v18, %v17401_v10  ;;  %v10946_v51 = vadd.f32 %v17400_v38, %v10372_v14  ;;  %s25292_s5 = smov %s25291_s6  ;;  %s25165_s29 = scalar_lea.hbm %s25291_s6, %s17192_s3 }
 0x8cb   : > { %v10949_v17 = vadd.f32 %v17403_v53, %v10375_v45 }
 0x8cd   : > { %v17404_v49 = vpop.f32.mrb[92].mxu0 }
 0x8ce   : > { %v17405_v39 = vpop.f32.mrb[93].mxu0 }
 0x8cf   : > { %v17406_v11 = vadd.f32 %v17405_v39, %v17404_v49  ;;  %v17407_v33 = vpop.f32.mrb[94].mxu0 }
 0x8d0   : > { %v17408_v31 = vpop.f32.mrb[95].mxu0 }
 0x8d1   : > { %v17409_v19 = vadd.f32 %v17408_v31, %v17407_v33  ;;  %v10954_v1 = vadd.f32 %v17406_v11, %v10380_v6 }
 0x8d3   : > { %v10957_v5 = vadd.f32 %v17409_v19, %v10383_v59 }
 0x8de   : > { %v10994_v50 = vpop.f32.mrb[96].mxu0 }
 0x8df   : > { %v10995_v56 = vadd.f32 %v10994_v50, %v10938_v7  ;;  %v17575_v8 = vpop.f32.mrb[97].mxu0 }
 0x8e0   : > { %v10997_v26 = vpop.f32.mrb[98].mxu0  ;;  %v19689_v8 = vld [vmem:[%s25285_s9 + $0x17c] ss:$8 sps:$4 sm:$0xff]  }
 0x8e1   : > { %v10998_v40 = vadd.f32 %v10997_v26, %v10941_v21  ;;  %v17576_v60 = vpop.f32.mrb[99].mxu0 }
 0x8e6   : > { %v11002_v15 = vpop.f32.mrb[100].mxu0 }
 0x8e7   : > { %v11003_v27 = vadd.f32 %v11002_v15, %v10946_v51  ;;  %v17579_v30 = vpop.f32.mrb[101].mxu0 }
 0x8e8   : > { %v11005_v9 = vpop.f32.mrb[102].mxu0 }
 0x8e9   : > { %v11006_v43 = vadd.f32 %v11005_v9, %v10949_v17  ;;  %v17580_v37 = vpop.f32.mrb[103].mxu0 }
 0x8ee   : > { %v11010_v0 = vpop.f32.mrb[104].mxu0 }
 0x8ef   : > { %v24275_v52 = vadd.f32 %v11010_v0, %v10954_v1  ;;  %v17583_v42 = vpop.f32.mrb[105].mxu0 }
 0x8f0   : > { %v11013_v48 = vpop.f32.mrb[106].mxu0 }
 0x8f1   : > { %v24277_v41 = vadd.f32 %v11013_v48, %v10957_v5  ;;  %v17584_v16 = vpop.f32.mrb[107].mxu0  ;;  %v19683_v5 = vld [vmem:[%s25285_s9 + $0x16c] ss:$8 sps:$4 sm:$0xff]  }
 0x8f2   : > { %12779 = vmatprep.subr.bf16.mxu1 %v19683_v5 }
 0x8f3   : > { %12780 = vmatpush1.bf16.msra.mxu1 %v19681_v4 }
 0x8f4   : > { %12781 = vmatprep.subr.bf16.mxu1 %v19689_v8 }
 0x8fe   : > { %v17437_v61 = vpop.f32.mrb[108].mxu0 }
 0x8ff   : > { %v17438_v12 = vpop.f32.mrb[109].mxu0 }
 0x900   : > { %v17439_v24 = vadd.f32 %v17438_v12, %v17437_v61  ;;  %v17440_v29 = vpop.f32.mrb[110].mxu0  ;;  %v19693_v61 = vld [vmem:[%s25285_s9 + $0x188] ss:$8 sps:$4 sm:$0xff]  }
 0x901   : > { %v17441_v32 = vpop.f32.mrb[111].mxu0 }
 0x902   : > { %v17442_v14 = vadd.f32 %v17441_v32, %v17440_v29  ;;  %v19701_v29 = vld [vmem:[%s25285_s9 + $0x19c] ss:$8 sps:$4 sm:$0xff]  }
 0x906   : > { %v17443_v46 = vpop.f32.mrb[112].mxu0 }
 0x907   : > { %v17444_v25 = vpop.f32.mrb[113].mxu0 }
 0x908   : > { %v17445_v45 = vadd.f32 %v17444_v25, %v17443_v46  ;;  %v17446_v44 = vpop.f32.mrb[114].mxu0  ;;  %v19707_v25 = vld [vmem:[%s25285_s9 + $0x1ac] ss:$8 sps:$4 sm:$0xff]  }
 0x909   : > { %v17447_v28 = vpop.f32.mrb[115].mxu0 }
 0x90a   : > { %v17448_v6 = vadd.f32 %v17447_v28, %v17446_v44  ;;  %v19713_v44 = vld [vmem:[%s25285_s9 + $0x1bc] ss:$8 sps:$4 sm:$0xff]   ;;  %v19711_v28 = vld [vmem:[%s25285_s9 + $0x1b8] ss:$8 sps:$4 sm:$0xff]  }
 0x90e   : > { %v17449_v47 = vpop.f32.mrb[116].mxu0 }
 0x90f   : > { %v17450_v58 = vpop.f32.mrb[117].mxu0 }
 0x910   : > { %v17451_v59 = vadd.f32 %v17450_v58, %v17449_v47  ;;  %v17452_v63 = vpop.f32.mrb[118].mxu0  ;;  %v19717_v47 = vld [vmem:[%s25285_s9 + $0x1c8] ss:$8 sps:$4 sm:$0xff]   ;;  %v19725_v58 = vld [vmem:[%s25285_s9 + $0x1dc] ss:$8 sps:$4 sm:$0xff]  }
 0x911   : > { %v17453_v23 = vpop.f32.mrb[119].mxu0 }
 0x912   : > { %v17454_v3 = vadd.f32 %v17453_v23, %v17452_v63  ;;  %v11799_v63 = vrot.slane %v24282_v62, %v21980_v54  ;;  %v11803_v23 = vrot.slane %v24282_v62, %v21983_v13 }
 0x91f   : > { %v11753_v20 = vpop.f32.mrb[120].mxu0 }
 0x920   : > { %v11754_v34 = vadd.f32 %v17439_v24, %v11753_v20  ;;  %v17603_v7 = vpop.f32.mrb[121].mxu0 }
 0x921   : > { %v11756_v21 = vpop.f32.mrb[122].mxu0 }
 0x922   : > { %v11778_v55 = vadd.f32 %v11754_v34, %v10995_v56  ;;  %v11757_v22 = vadd.f32 %v17442_v14, %v11756_v21  ;;  %v17604_v38 = vpop.f32.mrb[123].mxu0 }
 0x924   : > { %v11813_v10 = vadd.f32 %v11807_v36, %v11778_v55  ;;  %v11781_v18 = vadd.f32 %v11757_v22, %v10998_v40  ;;  %v19687_v40 = vld [vmem:[%s25285_s9 + $0x178] ss:$8 sps:$4 sm:$0xff]  }
 0x925   : > { %12782 = vmatpush1.bf16.msra.mxu1 %v19687_v40 }
 0x926   : > { %v11816_v53 = vadd.f32 %v11807_v36, %v11781_v18  ;;  %v11831_v17 = vmax.f32 %v11813_v10, 0.0 }
 0x927   : > { %v11761_v51 = vpop.f32.mrb[124].mxu0 }
 0x928   : > { %v11834_v49 = vmax.f32 %v11816_v53, 0.0  ;;  %v11762_v39 = vadd.f32 %v17445_v45, %v11761_v51  ;;  %v17607_v11 = vpop.f32.mrb[125].mxu0 }
 0x929   : > { %v11764_v33 = vpop.f32.mrb[126].mxu0 }
 0x92a   : > { %v24287_v31 = vpack.c.bf16 %v11834_v49, %v11831_v17  ;;  %v11784_v19 = vadd.f32 %v11762_v39, %v11003_v27  ;;  %v11765_v35 = vadd.f32 %v17448_v6, %v11764_v33  ;;  %v17608_v1 = vpop.f32.mrb[127].mxu0  ;;  %v19719_v6 = vld [vmem:[%s25285_s9 + $0x1cc] ss:$8 sps:$4 sm:$0xff]  }
 0x92c   : > { %v11819_v50 = vadd.f32 %v11807_v36, %v11784_v19  ;;  %v11787_v56 = vadd.f32 %v11765_v35, %v11006_v43  ;;  %v19695_v43 = vld [vmem:[%s25285_s9 + $0x18c] ss:$8 sps:$4 sm:$0xff]  }
 0x92d   : > { %12783 = vmatprep.subr.bf16.mxu1 %v19695_v43 }
 0x92e   : > { %v11822_v26 = vadd.f32 %v11807_v36, %v11787_v56  ;;  %v11837_v15 = vmax.f32 %v11819_v50, 0.0  ;;  %12784 = vmatpush1.bf16.msra.mxu1 %v19693_v61  ;;  %v20037_v61 = vmov 65535  }
 0x92f   : > { %v11769_v60 = vpop.f32.mrb[128].mxu0  ;;  %12785 = vmatprep.subr.bf16.mxu1 %v19701_v29 }
 0x930   : > { %v11840_v27 = vmax.f32 %v11822_v26, 0.0  ;;  %v11770_v30 = vadd.f32 %v17451_v59, %v11769_v60  ;;  %v17611_v9 = vpop.f32.mrb[129].mxu0  ;;  %v19723_v59 = vld [vmem:[%s25285_s9 + $0x1d8] ss:$8 sps:$4 sm:$0xff]  }
 0x931   : > { %v11772_v37 = vpop.f32.mrb[130].mxu0 }
 0x932   : > { %v24304_v0 = vpack.c.bf16 %v11840_v27, %v11837_v15  ;;  %v11790_v42 = vadd.f32 %v11770_v30, %v24275_v52  ;;  %v11773_v48 = vadd.f32 %v17454_v3, %v11772_v37  ;;  %v17612_v16 = vpop.f32.mrb[131].mxu0  ;;  %v19699_v52 = vld [vmem:[%s25285_s9 + $0x198] ss:$8 sps:$4 sm:$0xff]  }
 0x933   : > { %12786 = vmatpush1.bf16.msra.mxu1 %v19699_v52 }
 0x934   : > { %v11825_v12 = vadd.f32 %v11807_v36, %v11790_v42  ;;  %v11793_v24 = vadd.f32 %v11773_v48, %v24277_v41  ;;  %v19705_v41 = vld [vmem:[%s25285_s9 + $0x1a8] ss:$8 sps:$4 sm:$0xff]   ;;  %12787 = vmatprep.subr.bf16.mxu1 %v19707_v25  ;;  %v19674_v25 = vld [vmem:[%s25286_s26] sm:$0xff]  }
 0x936   : > { %v11828_v32 = vadd.f32 %v11807_v36, %v11793_v24  ;;  %v11843_v14 = vmax.f32 %v11825_v12, 0.0  ;;  %v11875_v12 = vsel %vm11874_vm8, 4294967295, %v20037_v61  ;;  %v19771_v61 = vld [vmem:[%s25285_s9 + $0x258] ss:$8 sps:$4 sm:$0xff]  }
 0x937   : > { %12788 = vmatpush1.bf16.msra.mxu1 %v19705_v41  ;;  %v11876_v52 = vsel %vm4356_vm2, %v11875_v12, 0  ;;  %v19776_v12 = vld [vmem:[%s25285_s9 + $0x104] ss:$8 sps:$4 sm:$0xff]  }
 0x938   : > { %v11846_v46 = vmax.f32 %v11828_v32, 0.0  ;;  %12789 = vmatprep.subr.bf16.mxu1 %v19713_v44  ;;  %v19675_v44 = vld [vmem:[%s25286_s26 + $0x8] ss:$0 sps:$4 sm:$0x77]  }
 0x93a   : > { %v24320_v45 = vpack.c.bf16 %v11846_v46, %v11843_v14 }
 0x93b   : > { %12790 = vmatpush1.bf16.msra.mxu1 %v19711_v28  ;;  %v19677_v28 = vld [vmem:[%s25286_s26 + $0x14] ss:$0 sps:$4 sm:$0x77]  }
 0x93c   : > { %12791 = vmatprep.subr.bf16.mxu1 %v19719_v6  ;;  %v11884_v41 = vand.u32 %v11876_v52, %v24320_v45  ;;  %v19676_v45 = vld [vmem:[%s25286_s26 + $0xc] sm:$0xff]  }
 0x93d   : > { %v19680_v6 = vld [vmem:[%s25285_s9 + $0x4] ss:$8 sps:$4 sm:$0xff]  }
 0x93f   : > { %12792 = vmatpush1.bf16.msra.mxu1 %v19717_v47  ;;  %v19686_v47 = vld [vmem:[%s25285_s9 + $0x14] ss:$8 sps:$4 sm:$0xff]  }
 0x940   : > { %12793 = vmatprep.subr.bf16.mxu1 %v19725_v58  ;;  %v19692_v58 = vld [vmem:[%s25285_s9 + $0x24] ss:$8 sps:$4 sm:$0xff]  }
 0x943   : > { %12794 = vmatpush1.bf16.msra.mxu1 %v19723_v59  ;;  %v19690_v59 = vld [vmem:[%s25285_s9 + $0x20] ss:$8 sps:$4 sm:$0xff]  }
 0x95e   : > { %v11633_v3 = vpop.f32.mrb[180].mxu1 }
 0x95f   : > { %v11811_v20 = vadd.f32 %v11799_v63, %v11633_v3  ;;  %v11635_v34 = vpop.f32.mrb[181].mxu1  ;;  %v19704_v3 = vld [vmem:[%s25285_s9 + $0x44] ss:$8 sps:$4 sm:$0xff]  }
 0x960   : > { %v11812_v36 = vadd.f32 %v11803_v23, %v11635_v34  ;;  %v11637_v7 = vpop.f32.mrb[182].mxu1  ;;  %v19710_v34 = vld [vmem:[%s25285_s9 + $0x54] ss:$8 sps:$4 sm:$0xff]  }
 0x961   : > { %v11814_v21 = vadd.f32 %v11799_v63, %v11637_v7  ;;  %v11639_v55 = vpop.f32.mrb[183].mxu1  ;;  %v11829_v38 = vmax.f32 %v11811_v20, 0.0  ;;  %v19702_v20 = vld [vmem:[%s25285_s9 + $0x40] ss:$8 sps:$4 sm:$0xff]   ;;  %v19716_v7 = vld [vmem:[%s25285_s9 + $0x64] ss:$8 sps:$4 sm:$0xff]  }
 0x962   : > { %v11815_v22 = vadd.f32 %v11803_v23, %v11639_v55  ;;  %v11830_v18 = vmax.f32 %v11812_v36, 0.0  ;;  %v19708_v36 = vld [vmem:[%s25285_s9 + $0x50] ss:$8 sps:$4 sm:$0xff]   ;;  %v19722_v55 = vld [vmem:[%s25285_s9 + $0x74] ss:$8 sps:$4 sm:$0xff]  }
 0x963   : > { %v11832_v10 = vmax.f32 %v11814_v21, 0.0  ;;  %v19714_v21 = vld [vmem:[%s25285_s9 + $0x60] ss:$8 sps:$4 sm:$0xff]  }
 0x964   : > { %v11833_v53 = vmax.f32 %v11815_v22, 0.0  ;;  %v19720_v22 = vld [vmem:[%s25285_s9 + $0x70] ss:$8 sps:$4 sm:$0xff]  }
 0x965   : > { %v11847_v51 = vpack.c.bf16 %v11832_v10, %v11829_v38  ;;  %v19728_v38 = vld [vmem:[%s25285_s9 + $0x84] ss:$8 sps:$4 sm:$0xff]  }
 0x966   : > { %v11848_v17 = vpack.c.bf16 %v11833_v53, %v11830_v18  ;;  %v11643_v49 = vpop.f32.mrb[184].mxu1  ;;  %v19731_v10 = vld [vmem:[%s25285_s9 + $0x1ec] ss:$8 sps:$4 sm:$0xff]   ;;  %v19726_v18 = vld [vmem:[%s25285_s9 + $0x80] ss:$8 sps:$4 sm:$0xff]  }
 0x967   : > { %v11817_v39 = vadd.f32 %v11799_v63, %v11643_v49  ;;  %v11645_v11 = vpop.f32.mrb[185].mxu1  ;;  %v19729_v53 = vld [vmem:[%s25285_s9 + $0x1e8] ss:$8 sps:$4 sm:$0xff]   ;;  %12795 = vmatprep.subr.bf16.mxu1 %v19731_v10 }
 0x968   : > { %v11818_v33 = vadd.f32 %v11803_v23, %v11645_v11  ;;  %v11647_v19 = vpop.f32.mrb[186].mxu1  ;;  %11886 = vmatprep.subr.bf16.mxu0 %v11848_v17  ;;  %12796 = vmatpush1.bf16.msra.mxu1 %v19729_v53  ;;  %v19732_v49 = vld [vmem:[%s25285_s9 + $0x90] ss:$8 sps:$4 sm:$0xff]   ;;  %v19740_v11 = vld [vmem:[%s25285_s9 + $0xa4] ss:$8 sps:$4 sm:$0xff]  }
 0x969   : > { %v11820_v62 = vadd.f32 %v11799_v63, %v11647_v19  ;;  %v11649_v35 = vpop.f32.mrb[187].mxu1  ;;  %11887 = vmatpush1.bf16.msra.mxu0 %v11847_v51  ;;  %v11835_v4 = vmax.f32 %v11817_v39, 0.0  ;;  %v19735_v39 = vld [vmem:[%s25285_s9 + $0x1f8] ss:$8 sps:$4 sm:$0xff]  }
 0x96a   : > { %v11821_v1 = vadd.f32 %v11803_v23, %v11649_v35  ;;  %v11836_v50 = vmax.f32 %v11818_v33, 0.0  ;;  %v19743_v33 = vld [vmem:[%s25285_s9 + $0x20c] ss:$8 sps:$4 sm:$0xff]   ;;  %v19738_v19 = vld [vmem:[%s25285_s9 + $0xa0] ss:$8 sps:$4 sm:$0xff]  }
 0x96b   : > { %v11838_v5 = vmax.f32 %v11820_v62, 0.0  ;;  %v19741_v62 = vld [vmem:[%s25285_s9 + $0x208] ss:$8 sps:$4 sm:$0xff]   ;;  %v19746_v35 = vld [vmem:[%s25285_s9 + $0xb4] ss:$8 sps:$4 sm:$0xff]  }
 0x96c   : > { %v11839_v56 = vmax.f32 %v11821_v1, 0.0  ;;  %v19749_v1 = vld [vmem:[%s25285_s9 + $0x21c] ss:$8 sps:$4 sm:$0xff]  }
 0x96d   : > { %v11850_v8 = vpack.c.bf16 %v11838_v5, %v11835_v4  ;;  %v19744_v4 = vld [vmem:[%s25285_s9 + $0xb0] ss:$8 sps:$4 sm:$0xff]  }
 0x96e   : > { %v11851_v26 = vpack.c.bf16 %v11839_v56, %v11836_v50  ;;  %v11653_v40 = vpop.f32.mrb[188].mxu1  ;;  %v19747_v5 = vld [vmem:[%s25285_s9 + $0x218] ss:$8 sps:$4 sm:$0xff]   ;;  %v19752_v50 = vld [vmem:[%s25285_s9 + $0xc4] ss:$8 sps:$4 sm:$0xff]  }
 0x96f   : > { %v11823_v60 = vadd.f32 %v11799_v63, %v11653_v40  ;;  %v11655_v15 = vpop.f32.mrb[189].mxu1  ;;  %v19755_v56 = vld [vmem:[%s25285_s9 + $0x22c] ss:$8 sps:$4 sm:$0xff]  }
 0x970   : > { %v11824_v27 = vadd.f32 %v11803_v23, %v11655_v15  ;;  %v11657_v30 = vpop.f32.mrb[190].mxu1  ;;  %11888 = vmatprep.subr.bf16.mxu0 %v11851_v26  ;;  %v19758_v40 = vld [vmem:[%s25285_s9 + $0xd4] ss:$8 sps:$4 sm:$0xff]   ;;  %v19756_v15 = vld [vmem:[%s25285_s9 + $0xd0] ss:$8 sps:$4 sm:$0xff]  }
 0x971   : > { %v11826_v9 = vadd.f32 %v11799_v63, %v11657_v30  ;;  %v11659_v43 = vpop.f32.mrb[191].mxu1  ;;  %11889 = vmatpush1.bf16.msra.mxu0 %v11850_v8  ;;  %v11841_v42 = vmax.f32 %v11823_v60, 0.0  ;;  %v19698_v63 = vld [vmem:[%s25285_s9 + $0x34] ss:$8 sps:$4 sm:$0xff]   ;;  %v19764_v30 = vld [vmem:[%s25285_s9 + $0xe4] ss:$8 sps:$4 sm:$0xff]  }
 0x972   : > { %v11827_v37 = vadd.f32 %v11803_v23, %v11659_v43  ;;  %v11842_v16 = vmax.f32 %v11824_v27, 0.0  ;;  %v19696_v23 = vld [vmem:[%s25285_s9 + $0x30] ss:$8 sps:$4 sm:$0xff]   ;;  %v19761_v60 = vld [vmem:[%s25285_s9 + $0x23c] ss:$8 sps:$4 sm:$0xff]  }
 0x973   : > { %v11844_v48 = vmax.f32 %v11826_v9, 0.0  ;;  %v19759_v27 = vld [vmem:[%s25285_s9 + $0x238] ss:$8 sps:$4 sm:$0xff]   ;;  %v19767_v9 = vld [vmem:[%s25285_s9 + $0x24c] ss:$8 sps:$4 sm:$0xff]  }
 0x974   : > { %v11845_v24 = vmax.f32 %v11827_v37, 0.0  ;;  %v19762_v43 = vld [vmem:[%s25285_s9 + $0xe0] ss:$8 sps:$4 sm:$0xff]  }
 0x975   : > { %v11853_v29 = vpack.c.bf16 %v11844_v48, %v11841_v42  ;;  %v19765_v37 = vld [vmem:[%s25285_s9 + $0x248] ss:$8 sps:$4 sm:$0xff]   ;;  %v19770_v42 = vld [vmem:[%s25285_s9 + $0xf4] ss:$8 sps:$4 sm:$0xff]  }
 0x976   : > { %v11854_v32 = vpack.c.bf16 %v11845_v24, %v11842_v16  ;;  %v19773_v48 = vld [vmem:[%s25285_s9 + $0x25c] ss:$8 sps:$4 sm:$0xff]   ;;  %v19768_v16 = vld [vmem:[%s25285_s9 + $0xf0] ss:$8 sps:$4 sm:$0xff]   ;;  %v19779_v24 = vld [vmem:[%s25285_s9 + $0x26c] ss:$8 sps:$4 sm:$0xff]  }
 0x977   : > { %v11878_v46 = vand.u32 %v11876_v52, %v11853_v29 }
 0x978   : > { %v11881_v14 = vand.u32 %v11876_v52, %v11854_v32 }
 0x97a   : > { %11890 = vmatprep.subr.bf16.mxu0 %v11881_v14 }
 0x97b   : > { %11891 = vmatpush1.bf16.msra.mxu0 %v11878_v46 }
 0x97c   : > { %17613 = vmatprep.subr.bf16.mxu0 %v24287_v31 }
 0x97e   : > { %16781 = vmatmul.mubr.msk.bf16.vlgmr.msra.gmra.mrb[132].mxu0 %vm11867_vm9, %v19674_v25 }
 0x97f   : > { %17614 = vmatpush3.bf16.msra.mxu0 %v24287_v31  ;;  %11928 = vmatprep.mubr.bf16.mxu0 %v20034_v2 }
 0x980   : > { %17615 = vmatprep.subr.bf16.mxu0 %v24304_v0 }
 0x983   : > { %17616 = vmatpush3.bf16.msra.mxu0 %v24304_v0 }
 0x984   : > { %17617 = vmatprep.subr.bf16.mxu0 %v11884_v41 }
 0x986   : > { %16782 = vmatmul.mubr.msk.bf16.gmra.mrb[136].mxu0 %vm11867_vm9, %v19675_v44 }
 0x987   : > { %17618 = vmatpush3.bf16.msra.mxu0 %v11884_v41  ;;  %17619 = vmatprep.mubr.msk.bf16.mxu0 %vm11867_vm9, %v19674_v25 }
 0x988   : > { %12003 = vmatprep.subr.bf16.mxu0 %v11848_v17  ;;  %v19737_v17 = vld [vmem:[%s25285_s9 + $0x1fc] ss:$8 sps:$4 sm:$0xff]  }
 0x989   : > { %12797 = vmatprep.subr.bf16.mxu1 %v19737_v17  ;;  %v19783_v17 = vld [vmem:[%s25285_s9 + $0x278] ss:$8 sps:$4 sm:$0xff]  }
 0x98a   : > { %12798 = vmatpush1.bf16.msra.mxu1 %v19735_v39 }
 0x98b   : > { %12799 = vmatprep.subr.bf16.mxu1 %v19743_v33  ;;  %v19788_v33 = vld [vmem:[%s25285_s9 + $0x124] ss:$8 sps:$4 sm:$0xff]  }
 0x98e   : > { %17620 = vmatmul.mubr.msk.bf16.vlgmr.msra.gmra.mrb[140].mxu0 %vm11867_vm9, %v19675_v44  ;;  %12800 = vmatpush1.bf16.msra.mxu1 %v19741_v62  ;;  %v19786_v62 = vld [vmem:[%s25285_s9 + $0x120] ss:$8 sps:$4 sm:$0xff]  }
 0x98f   : > { %12004 = vmatpush1.bf16.msra.mxu0 %v11847_v51  ;;  %12035 = vmatprep.mubr.bf16.mxu0 %v20034_v2  ;;  %v19734_v51 = vld [vmem:[%s25285_s9 + $0x94] ss:$8 sps:$4 sm:$0xff]  }
 0x990   : > { %12005 = vmatprep.subr.bf16.mxu0 %v11851_v26  ;;  %12801 = vmatprep.subr.bf16.mxu1 %v19749_v1  ;;  %v19753_v26 = vld [vmem:[%s25285_s9 + $0x228] ss:$8 sps:$4 sm:$0xff]  }
 0x992   : > { %12802 = vmatpush1.bf16.msra.mxu1 %v19747_v5  ;;  %v19797_v5 = vld [vmem:[%s25285_s9 + $0x29c] ss:$8 sps:$4 sm:$0xff]  }
 0x993   : > { %12006 = vmatpush1.bf16.msra.mxu0 %v11850_v8  ;;  %v19750_v8 = vld [vmem:[%s25285_s9 + $0xc0] ss:$8 sps:$4 sm:$0xff]   ;;  %12803 = vmatprep.subr.bf16.mxu1 %v19755_v56 }
 0x994   : > { %12007 = vmatprep.subr.bf16.mxu0 %v11881_v14 }
 0x996   : > { %12804 = vmatpush1.bf16.msra.mxu1 %v19753_v26 }
 0x997   : > { %12008 = vmatpush1.bf16.msra.mxu0 %v11878_v46  ;;  %12805 = vmatprep.subr.bf16.mxu1 %v19761_v60  ;;  %v19792_v60 = vld [vmem:[%s25285_s9 + $0x130] ss:$8 sps:$4 sm:$0xff]  }
 0x998   : > { %17623 = vmatprep.subr.bf16.mxu0 %v24287_v31 }
 0x99a   : > { %16790 = vmatmul.mubr.msk.bf16.vlgmr.msra.gmra.mrb[144].mxu0 %vm11867_vm9, %v19676_v45  ;;  %12806 = vmatpush1.bf16.msra.mxu1 %v19759_v27 }
 0x99b   : > { %17624 = vmatpush3.bf16.msra.mxu0 %v24287_v31  ;;  %12045 = vmatprep.mubr.bf16.mxu0 %v20034_v2  ;;  %v19678_v31 = vld [vmem:[%s25285_s9] ss:$8 sps:$4 sm:$0xff]  }
 0x99c   : > { %17625 = vmatprep.subr.bf16.mxu0 %v24304_v0  ;;  %12807 = vmatprep.subr.bf16.mxu1 %v19767_v9  ;;  %v19803_v9 = vld [vmem:[%s25285_s9 + $0x2ac] ss:$8 sps:$4 sm:$0xff]  }
 0x99e   : > { %12808 = vmatpush1.bf16.msra.mxu1 %v19765_v37 }
 0x99f   : > { %17626 = vmatpush3.bf16.msra.mxu0 %v24304_v0  ;;  %v19684_v0 = vld [vmem:[%s25285_s9 + $0x10] ss:$8 sps:$4 sm:$0xff]   ;;  %12809 = vmatprep.subr.bf16.mxu1 %v19773_v48 }
 0x9a0   : > { %17627 = vmatprep.subr.bf16.mxu0 %v11884_v41  ;;  %v19801_v48 = vld [vmem:[%s25285_s9 + $0x2a8] ss:$8 sps:$4 sm:$0xff]  }
 0x9a2   : > { %16791 = vmatmul.mubr.msk.bf16.gmra.mrb[148].mxu0 %vm11867_vm9, %v19677_v28  ;;  %12810 = vmatpush1.bf16.msra.mxu1 %v19771_v61  ;;  %v19809_v61 = vld [vmem:[%s25285_s9 + $0x2bc] ss:$8 sps:$4 sm:$0xff]  }
 0x9a3   : > { %17628 = vmatpush3.bf16.msra.mxu0 %v11884_v41  ;;  %17629 = vmatprep.mubr.msk.bf16.mxu0 %vm11867_vm9, %v19676_v45 }
 0x9a4   : > { %12400 = vmatprep.subr.bf16.mxu0 %v19680_v6  ;;  %12830 = vmatprep.subr.bf16.mxu1 %v19779_v24  ;;  %v16887_v24 = vld [vmem:[%s25285_s9 + $0x2c8] sm:$0xff] }
 0x9aa   : > { %17630 = vmatmul.mubr.msk.bf16.vlgmr.msra.gmra.mrb[152].mxu0 %vm11867_vm9, %v19677_v28 }
 0x9ab   : > { %12401 = vmatpush1.bf16.msra.mxu0 %v19678_v31 }
 0x9ac   : > { %12402 = vmatprep.subr.bf16.mxu0 %v19686_v47 }
 0x9af   : > { %12403 = vmatpush1.bf16.msra.mxu0 %v19684_v0 }
 0x9b0   : > { %12404 = vmatprep.subr.bf16.mxu0 %v19692_v58 }
 0x9b3   : > { %12405 = vmatpush1.bf16.msra.mxu0 %v19690_v59 }
 0x9b4   : > { %12406 = vmatprep.subr.bf16.mxu0 %v19698_v63 }
 0x9b7   : > { %12407 = vmatpush1.bf16.msra.mxu0 %v19696_v23 }
 0x9b8   : > { %12408 = vmatprep.subr.bf16.mxu0 %v19704_v3 }
 0x9bb   : > { %12409 = vmatpush1.bf16.msra.mxu0 %v19702_v20 }
 0x9bc   : > { %12410 = vmatprep.subr.bf16.mxu0 %v19710_v34 }
 0x9bf   : > { %12411 = vmatpush1.bf16.msra.mxu0 %v19708_v36 }
 0x9c0   : > { %12412 = vmatprep.subr.bf16.mxu0 %v19716_v7  ;;  %v19774_v7 = vld [vmem:[%s25285_s9 + $0x100] ss:$8 sps:$4 sm:$0xff]  }
 0x9c3   : > { %12413 = vmatpush1.bf16.msra.mxu0 %v19714_v21  ;;  %v19777_v21 = vld [vmem:[%s25285_s9 + $0x268] ss:$8 sps:$4 sm:$0xff]  }
 0x9c4   : > { %12414 = vmatprep.subr.bf16.mxu0 %v19722_v55  ;;  %v19782_v55 = vld [vmem:[%s25285_s9 + $0x114] ss:$8 sps:$4 sm:$0xff]  }
 0x9c7   : > { %12415 = vmatpush1.bf16.msra.mxu0 %v19720_v22  ;;  %v19785_v22 = vld [vmem:[%s25285_s9 + $0x27c] ss:$8 sps:$4 sm:$0xff]  }
 0x9c8   : > { %12416 = vmatprep.subr.bf16.mxu0 %v19728_v38 }
 0x9cb   : > { %12417 = vmatpush1.bf16.msra.mxu0 %v19726_v18 }
 0x9cc   : > { %12418 = vmatprep.subr.bf16.mxu0 %v19734_v51  ;;  %v19780_v51 = vld [vmem:[%s25285_s9 + $0x110] ss:$8 sps:$4 sm:$0xff]  }
 0x9cf   : > { %12419 = vmatpush1.bf16.msra.mxu0 %v19732_v49 }
 0x9d0   : > { %12420 = vmatprep.subr.bf16.mxu0 %v19740_v11 }
 0x9d3   : > { %12421 = vmatpush1.bf16.msra.mxu0 %v19738_v19  ;;  %v19791_v19 = vld [vmem:[%s25285_s9 + $0x28c] ss:$8 sps:$4 sm:$0xff]  }
 0x9d4   : > { %12422 = vmatprep.subr.bf16.mxu0 %v19746_v35  ;;  %v19789_v35 = vld [vmem:[%s25285_s9 + $0x288] ss:$8 sps:$4 sm:$0xff]  }
 0x9d7   : > { %12423 = vmatpush1.bf16.msra.mxu0 %v19744_v4  ;;  %v19794_v4 = vld [vmem:[%s25285_s9 + $0x134] ss:$8 sps:$4 sm:$0xff]  }
 0x9d8   : > { %12424 = vmatprep.subr.bf16.mxu0 %v19752_v50 }
 0x9db   : > { %12425 = vmatpush1.bf16.msra.mxu0 %v19750_v8 }
 0x9dc   : > { %12426 = vmatprep.subr.bf16.mxu0 %v19758_v40 }
 0x9df   : > { %12427 = vmatpush1.bf16.msra.mxu0 %v19756_v15  ;;  %v19795_v15 = vld [vmem:[%s25285_s9 + $0x298] ss:$8 sps:$4 sm:$0xff]  }
 0x9e0   : > { %12428 = vmatprep.subr.bf16.mxu0 %v19764_v30  ;;  %v19800_v30 = vld [vmem:[%s25285_s9 + $0x144] ss:$8 sps:$4 sm:$0xff]  }
 0x9e3   : > { %12429 = vmatpush1.bf16.msra.mxu0 %v19762_v43 }
 0x9e4   : > { %12430 = vmatprep.subr.bf16.mxu0 %v19770_v42  ;;  %v19798_v42 = vld [vmem:[%s25285_s9 + $0x140] ss:$8 sps:$4 sm:$0xff]  }
 0x9e7   : > { %12431 = vmatpush1.bf16.msra.mxu0 %v19768_v16  ;;  %v19806_v16 = vld [vmem:[%s25285_s9 + $0x154] ss:$8 sps:$4 sm:$0xff]  }
 0x9e8   : > { %12451 = vmatprep.subr.bf16.mxu0 %v19776_v12  ;;  %v12161_v12 = vld [vmem:[%s25285_s9 + $0x160] sm:$0xff] }
 0xa51   : > { %v11920_v29 = vpop.f32.mrb[132].mxu0 }
 0xa52   : > { %v11922_v32 = vpop.f32.mrb[133].mxu0 }
 0xa53   : > { %v11924_v52 = vpop.f32.mrb[134].mxu0 }
 0xa54   : > { %v11926_v14 = vpop.f32.mrb[135].mxu0 }
 0xa59   : > { %v11930_v46 = vpop.f32.mrb[136].mxu0 }
 0xa5a   : > { %v11932_v25 = vpop.f32.mrb[137].mxu0 }
 0xa5b   : > { %v11934_v41 = vpop.f32.mrb[138].mxu0 }
 0xa5c   : > { %v11935_v44 = vpop.f32.mrb[139].mxu0 }
 0xa61   : > { %v17621_v45 = vpop.f32.mrb[140].mxu0 }
 0xa62   : > { %v24530_v28 = vpop.f32.mrb[141].mxu0 }
 0xa63   : > { %v17622_v6 = vpop.f32.mrb[142].mxu0 }
 0xa64   : > { %v24532_v31 = vpop.f32.mrb[143].mxu0  ;;  %v19819_v6 = vld [vmem:[%s25287_s0 + $0xc4] ss:$8 sps:$4 sm:$0xff]  }
 0xa6d   : > { %v12037_v47 = vpop.f32.mrb[144].mxu0 }
 0xa6e   : > { %v12102_v0 = vmax.f32 %v11920_v29, %v12037_v47  ;;  %v12039_v58 = vpop.f32.mrb[145].mxu0  ;;  %v19804_v29 = vld [vmem:[%s25285_s9 + $0x150] ss:$8 sps:$4 sm:$0xff]   ;;  %v19822_v47 = vld [vmem:[%s25287_s0 + $0xd4] ss:$8 sps:$4 sm:$0xff]  }
 0xa6f   : > { %v12103_v59 = vmax.f32 %v11922_v32, %v12039_v58  ;;  %v12041_v63 = vpop.f32.mrb[146].mxu0  ;;  %v19807_v32 = vld [vmem:[%s25285_s9 + $0x2b8] ss:$8 sps:$4 sm:$0xff]   ;;  %s19970_s9 = scalar_lea.vmem %s25167_s1, 16 }
 0xa70   : > { %v12105_v23 = vmax.f32 %v11924_v52, %v12041_v63  ;;  %v12043_v3 = vpop.f32.mrb[147].mxu0  ;;  %v16839_v52 = vcombine.high %v12161_v12, %v12161_v12  ;;  %v19820_v58 = vld [vmem:[%s25287_s0 + $0xd0] ss:$8 sps:$4 sm:$0xff]   ;;  %v19823_v63 = vld [vmem:[%s25287_s0 + $0xe0] ss:$8 sps:$4 sm:$0xff]   ;;  %p19971_p11 = scmp.ne.s32.totalorder %s25167_s1, %s19970_s9 }
 0xa71   : > { %v12106_v20 = vmax.f32 %v11926_v14, %v12043_v3  ;;  %v16933_v14 = vcombine.high %v16887_v24, %v16887_v24  ;;  %v19826_v3 = vld [vmem:[%s25287_s0 + $0xf0] ss:$8 sps:$4 sm:$0xff]  }
 0xa72   : > { %v12111_v34 = vpack.c.bf16 %v12105_v23, %v12102_v0  ;;  %v19828_v23 = vld [vmem:[%s25287_s0 + $0xf4] ss:$8 sps:$4 sm:$0xff]   ;;  %p19972_p12 = pnand %p19971_p11, %p20207_p5 }
 0xa73   : > { %v12112_v36 = vpack.c.bf16 %v12106_v20, %v12103_v59  ;;  %v19825_v59 = vld [vmem:[%s25287_s0 + $0xe4] ss:$8 sps:$4 sm:$0xff]  }
 0xa74   : > { %v19831_v20 = vld [vmem:[%s25287_s0 + $0x104] ss:$8 sps:$4 sm:$0xff]   ;;  %p19973_p13 = pneg %p19972_p12 }
 0xa75   : > { %v12047_v38 = vpop.f32.mrb[148].mxu0  ;;  %12432 = vmatprep.mubr.bf16.mxu0 %v12112_v36  ;;  %12811 = vmatprep.mubr.bf16.mxu1 %v12112_v36  ;;  %v19834_v36 = vld [vmem:[%s25287_s0 + $0x114] ss:$8 sps:$4 sm:$0xff]  }
 0xa76   : > { %v12108_v10 = vmax.f32 %v11930_v46, %v12047_v38  ;;  %v12049_v18 = vpop.f32.mrb[149].mxu0  ;;  %12433 = vmatmul.mubr.bf16.vlgmr.msra.gmra.mrb[156].mxu0 %v12111_v34  ;;  %12812 = vmatmul.mubr.bf16.vlgmr.msra.gmra.mrb[192].mxu1 %v12111_v34  ;;  %v16838_v46 = vcombine.low %v12161_v12, %v12161_v12  ;;  %v19829_v34 = vld [vmem:[%s25287_s0 + $0x100] ss:$8 sps:$4 sm:$0xff]   ;;  %v19838_v38 = vld [vmem:[%s25287_s0 + $0x130] ss:$8 sps:$4 sm:$0xff]  }
 0xa77   : > { %v12109_v53 = vmax.f32 %v11932_v25, %v12049_v18  ;;  %12452 = vmatpush1.bf16.msra.mxu0 %v19774_v7  ;;  %12831 = vmatpush1.bf16.msra.mxu1 %v19777_v21  ;;  %v12051_v49 = vpop.f32.mrb[150].mxu0  ;;  %v16932_v25 = vcombine.low %v16887_v24, %v16887_v24  ;;  %v19832_v7 = vld [vmem:[%s25287_s0 + $0x110] ss:$8 sps:$4 sm:$0xff]   ;;  %v19837_v21 = vld [vmem:[%s25287_s0 + $0x124] ss:$8 sps:$4 sm:$0xff]  }
 0xa78   : > { %12453 = vmatprep.subr.bf16.mxu0 %v19782_v55  ;;  %12832 = vmatprep.subr.bf16.mxu1 %v19785_v22  ;;  %v12052_v39 = vpop.f32.mrb[151].mxu0  ;;  %v12114_v1 = vpack.c.bf16 %v12108_v10, %v12108_v10  ;;  %v12395_v41 = vsel %vm10136_vm5, %v16838_v46, 0  ;;  %v19835_v55 = vld [vmem:[%s25287_s0 + $0x120] ss:$8 sps:$4 sm:$0xff]   ;;  %v19840_v22 = vld [vmem:[%s25287_s0 + $0x134] ss:$8 sps:$4 sm:$0xff]  }
 0xa79   : > { %v12115_v11 = vpack.c.bf16 %v12109_v53, %v12109_v53  ;;  %v12774_v44 = vsel %vm10136_vm5, %v16932_v25, 0  ;;  %v19843_v10 = vld [vmem:[%s25287_s0 + $0x144] ss:$8 sps:$4 sm:$0xff]   ;;  %v19841_v18 = vld [vmem:[%s25287_s0 + $0x140] ss:$8 sps:$4 sm:$0xff]  }
 0xa7a   : > { %v19846_v53 = vld [vmem:[%s25287_s0 + $0x154] ss:$8 sps:$4 sm:$0xff]  }
 0xa7b   : > { %12454 = vmatpush1.bf16.msra.mxu0 %v19780_v51  ;;  %12833 = vmatpush1.bf16.msra.mxu1 %v19783_v17  ;;  %v19844_v51 = vld [vmem:[%s25287_s0 + $0x150] ss:$8 sps:$4 sm:$0xff]   ;;  %v19849_v17 = vld [vmem:[%s25287_s0 + $0x4] ss:$8 sps:$4 sm:$0xff]  }
 0xa7c   : > { %12442 = vmatprep.mubr.bf16.mxu0 %v12115_v11  ;;  %12821 = vmatprep.mubr.bf16.mxu1 %v12115_v11 }
 0xa7d   : > { %v17631_v50 = vpop.f32.mrb[152].mxu0  ;;  %12455 = vmatprep.subr.bf16.mxu0 %v19788_v33  ;;  %12834 = vmatprep.subr.bf16.mxu1 %v19791_v19 }
 0xa7e   : > { %v12110_v56 = vmax.f32 %v17621_v45, %v17631_v50  ;;  %v12088_v8 = vpop.f32.mrb[153].mxu0  ;;  %12443 = vmatmul.mubr.bf16.gmra.mrb[160].mxu0 %v12114_v1  ;;  %12822 = vmatmul.mubr.bf16.gmra.mrb[196].mxu1 %v12114_v1  ;;  %v19816_v45 = vld [vmem:[%s25287_s0 + $0xb4] ss:$8 sps:$4 sm:$0xff]  }
 0xa7f   : > { %v12104_v26 = vmax.f32 %v24530_v28, %v12088_v8  ;;  %12456 = vmatpush1.bf16.msra.mxu0 %v19786_v62  ;;  %12835 = vmatpush1.bf16.msra.mxu1 %v19789_v35  ;;  %v17632_v40 = vpop.f32.mrb[154].mxu0  ;;  %v19814_v28 = vld [vmem:[%s25287_s0 + $0xb0] ss:$8 sps:$4 sm:$0xff]  }
 0xa80   : > { %v12091_v27 = vpop.f32.mrb[155].mxu0  ;;  %12457 = vmatprep.subr.bf16.mxu0 %v19794_v4  ;;  %12836 = vmatprep.subr.bf16.mxu1 %v19797_v5  ;;  %v12116_v0 = vpack.c.bf16 %v12110_v56, %v12110_v56 }
 0xa81   : > { %v12107_v43 = vmax.f32 %v24532_v31, %v12091_v27  ;;  %12483 = vmatprep.mubr.bf16.mxu0 %v20034_v2  ;;  %12862 = vmatprep.mubr.bf16.mxu1 %v20034_v2  ;;  %v19817_v31 = vld [vmem:[%s25287_s0 + $0xc0] ss:$8 sps:$4 sm:$0xff]  }
 0xa83   : > { %v12113_v37 = vpack.c.bf16 %v12107_v43, %v12104_v26  ;;  %12458 = vmatpush1.bf16.msra.mxu0 %v19792_v60  ;;  %12837 = vmatpush1.bf16.msra.mxu1 %v19795_v15 }
 0xa84   : > { %12459 = vmatprep.subr.bf16.mxu0 %v19800_v30  ;;  %12838 = vmatprep.subr.bf16.mxu1 %v19803_v9 }
 0xa87   : > { %12460 = vmatpush1.bf16.msra.mxu0 %v19798_v42  ;;  %12839 = vmatpush1.bf16.msra.mxu1 %v19801_v48 }
 0xa88   : > { %12461 = vmatprep.subr.bf16.mxu0 %v19806_v16  ;;  %12840 = vmatprep.subr.bf16.mxu1 %v19809_v61 }
 0xa8b   : > { %12462 = vmatpush1.bf16.msra.mxu0 %v19804_v29  ;;  %12841 = vmatpush1.bf16.msra.mxu1 %v19807_v32 }
 0xa8c   : > { %16840 = vmatprep.subr.msk.bf16.mxu0 %vm10136_vm5, %v16839_v52  ;;  %16934 = vmatprep.subr.msk.bf16.mxu1 %vm10136_vm5, %v16933_v14 }
 0xa8f   : > { %12464 = vmatpush1.bf16.msra.mxu0 %v12395_v41  ;;  %12843 = vmatpush1.bf16.msra.mxu1 %v12774_v44 }
 0xa90   : > { %13085 = vmatprep.subr.bf16.mxu0 %v19816_v45 }
 0xa92   : > { %16841 = vmatmul.mubr.msk.bf16.vlgmr.msra.gmra.mrb[156].mxu0 %vm12387_vm10, %v12113_v37  ;;  %16935 = vmatmul.mubr.msk.bf16.vlgmr.msra.gmra.mrb[192].mxu1 %vm12387_vm10, %v12113_v37 }
 0xa93   : > { %12493 = vmatprep.mubr.bf16.mxu0 %v20034_v2  ;;  %12872 = vmatprep.mubr.bf16.mxu1 %v20034_v2 }
 0xa94   : > { %13086 = vmatpush1.bf16.msra.mxu0 %v19814_v28 }
 0xa95   : > { %13087 = vmatprep.subr.bf16.mxu0 %v19819_v6 }
 0xa98   : > { %13088 = vmatpush1.bf16.msra.mxu0 %v19817_v31 }
 0xa99   : > { %13089 = vmatprep.subr.bf16.mxu0 %v19822_v47 }
 0xa9a   : > { %16842 = vmatmul.mubr.msk.bf16.gmra.mrb[160].mxu0 %vm12387_vm10, %v12116_v0  ;;  %16936 = vmatmul.mubr.msk.bf16.gmra.mrb[196].mxu1 %vm12387_vm10, %v12116_v0 }
 0xa9b   : > { %13587 = vmatprep.mubr.bf16.mxu1 %v20034_v2 }
 0xa9c   : > { %13090 = vmatpush1.bf16.msra.mxu0 %v19820_v58 }
 0xa9d   : > { %13091 = vmatprep.subr.bf16.mxu0 %v19825_v59 }
 0xaa0   : > { %13092 = vmatpush1.bf16.msra.mxu0 %v19823_v63 }
 0xaa1   : > { %13093 = vmatprep.subr.bf16.mxu0 %v19828_v23  ;;  %v19847_v23 = vld [vmem:[%s25287_s0] ss:$8 sps:$4 sm:$0xff]  }
 0xaa4   : > { %13094 = vmatpush1.bf16.msra.mxu0 %v19826_v3 }
 0xaa5   : > { %13095 = vmatprep.subr.bf16.mxu0 %v19831_v20 }
 0xaa8   : > { %13096 = vmatpush1.bf16.msra.mxu0 %v19829_v34 }
 0xaa9   : > { %13097 = vmatprep.subr.bf16.mxu0 %v19834_v36  ;;  %v19852_v36 = vld [vmem:[%s25287_s0 + $0x14] ss:$8 sps:$4 sm:$0xff]  }
 0xaac   : > { %13098 = vmatpush1.bf16.msra.mxu0 %v19832_v7  ;;  %v19850_v7 = vld [vmem:[%s25287_s0 + $0x10] ss:$8 sps:$4 sm:$0xff]  }
 0xaad   : > { %13099 = vmatprep.subr.bf16.mxu0 %v19837_v21  ;;  %v19855_v21 = vld [vmem:[%s25287_s0 + $0x24] ss:$8 sps:$4 sm:$0xff]  }
 0xab0   : > { %13100 = vmatpush1.bf16.msra.mxu0 %v19835_v55 }
 0xab1   : > { %13101 = vmatprep.subr.bf16.mxu0 %v19840_v22  ;;  %v19853_v22 = vld [vmem:[%s25287_s0 + $0x20] ss:$8 sps:$4 sm:$0xff]  }
 0xab4   : > { %13102 = vmatpush1.bf16.msra.mxu0 %v19838_v38 }
 0xab5   : > { %13103 = vmatprep.subr.bf16.mxu0 %v19843_v10  ;;  %v19858_v10 = vld [vmem:[%s25287_s0 + $0x34] ss:$8 sps:$4 sm:$0xff]  }
 0xab8   : > { %13104 = vmatpush1.bf16.msra.mxu0 %v19841_v18  ;;  %v19856_v18 = vld [vmem:[%s25287_s0 + $0x30] ss:$8 sps:$4 sm:$0xff]  }
 0xab9   : > { %13105 = vmatprep.subr.bf16.mxu0 %v19846_v53  ;;  %v19861_v53 = vld [vmem:[%s25287_s0 + $0x44] ss:$8 sps:$4 sm:$0xff]  }
 0xabc   : > { %13106 = vmatpush1.bf16.msra.mxu0 %v19844_v51  ;;  %v19859_v51 = vld [vmem:[%s25287_s0 + $0x40] ss:$8 sps:$4 sm:$0xff]  }
 0xabd   : > { %13250 = vmatprep.subr.bf16.mxu0 %v19849_v17  ;;  %v19864_v17 = vld [vmem:[%s25287_s0 + $0x54] ss:$8 sps:$4 sm:$0xff]  }
 0xb65   : > { %v12485_v49 = vpop.f32.mrb[156].mxu0  ;;  %v12864_v39 = vpop.f32.mrb[192].mxu1 }
 0xb66   : > { %v12881_v11 = vmax.f32 %v12485_v49, %v12864_v39  ;;  %v12487_v33 = vpop.f32.mrb[157].mxu0  ;;  %v12866_v19 = vpop.f32.mrb[193].mxu1  ;;  %v19862_v49 = vld [vmem:[%s25287_s0 + $0x50] ss:$8 sps:$4 sm:$0xff]   ;;  %v19867_v39 = vld [vmem:[%s25287_s0 + $0x64] ss:$8 sps:$4 sm:$0xff]  }
 0xb67   : > { %v12882_v62 = vmax.f32 %v12487_v33, %v12866_v19  ;;  %v12489_v35 = vpop.f32.mrb[158].mxu0  ;;  %v12868_v1 = vpop.f32.mrb[194].mxu1  ;;  %v19870_v33 = vld [vmem:[%s25287_s0 + $0x74] ss:$8 sps:$4 sm:$0xff]   ;;  %v19868_v19 = vld [vmem:[%s25287_s0 + $0x70] ss:$8 sps:$4 sm:$0xff]  }
 0xb68   : > { %v12883_v4 = vmax.f32 %v12489_v35, %v12868_v1  ;;  %v12491_v5 = vpop.f32.mrb[159].mxu0  ;;  %v12870_v50 = vpop.f32.mrb[195].mxu1  ;;  %v19871_v35 = vld [vmem:[%s25287_s0 + $0x80] ss:$8 sps:$4 sm:$0xff]   ;;  %v19876_v1 = vld [vmem:[%s25287_s0 + $0x94] ss:$8 sps:$4 sm:$0xff]  }
 0xb69   : > { %v12884_v56 = vmax.f32 %v12491_v5, %v12870_v50  ;;  %v19879_v5 = vld [vmem:[%s25287_s0 + $0xa4] ss:$8 sps:$4 sm:$0xff]   ;;  %v19877_v50 = vld [vmem:[%s25287_s0 + $0xa0] ss:$8 sps:$4 sm:$0xff]  }
 0xb6a   : > { %v24690_v8 = vpack.c.bf16 %v12883_v4, %v12881_v11  ;;  %v19865_v11 = vld [vmem:[%s25287_s0 + $0x60] ss:$8 sps:$4 sm:$0xff]   ;;  %v19874_v4 = vld [vmem:[%s25287_s0 + $0x90] ss:$8 sps:$4 sm:$0xff]  }
 0xb6b   : > { %v12888_v26 = vpack.c.bf16 %v12884_v56, %v12882_v62  ;;  %v19873_v62 = vld [vmem:[%s25287_s0 + $0x84] ss:$8 sps:$4 sm:$0xff]  }
 0xb6c   : > { %v12939_v40 = vshll.u32 %v24690_v8, 16  ;;  %v12937_v52 = vshrl.u32 %v24690_v8, 16  ;;  %v13328_v25 = vrot.slane %v24690_v8, 1  ;;  %v19882_v56 = vld [vmem:[%s25287_s0 + $0x164] ss:$8 sps:$4 sm:$0xff]  }
 0xb6d   : > { %v12495_v60 = vpop.f32.mrb[160].mxu0  ;;  %v12874_v15 = vpop.f32.mrb[196].mxu1  ;;  %v12951_v27 = vshll.u32 %v12888_v26, 16  ;;  %v12949_v41 = vshrl.u32 %v12888_v26, 16  ;;  %v13331_v45 = vrot.slane %v12888_v26, 1 }
 0xb6e   : > { %v12885_v30 = vmax.f32 %v12495_v60, %v12874_v15  ;;  %v12497_v9 = vpop.f32.mrb[161].mxu0  ;;  %v12876_v43 = vpop.f32.mrb[197].mxu1  ;;  %v12941_v16 = vrot.slane %v12939_v40, 1  ;;  %v19885_v40 = vld [vmem:[%s25287_s0 + $0x174] ss:$8 sps:$4 sm:$0xff]  }
 0xb6f   : > { %v12886_v37 = vmax.f32 %v12497_v9, %v12876_v43  ;;  %v12499_v42 = vpop.f32.mrb[162].mxu0  ;;  %v12878_v48 = vpop.f32.mrb[198].mxu1  ;;  %v12953_v32 = vrot.slane %v12951_v27, 1  ;;  %v19883_v60 = vld [vmem:[%s25287_s0 + $0x170] ss:$8 sps:$4 sm:$0xff]  }
 0xb70   : > { %v24693_v61 = vpack.c.bf16 %v12885_v30, %v12885_v30  ;;  %v12500_v12 = vpop.f32.mrb[163].mxu0  ;;  %v12879_v24 = vpop.f32.mrb[199].mxu1  ;;  %v12942_v31 = vor.u32 %v12941_v16, %v12937_v52  ;;  %v19888_v15 = vld [vmem:[%s25287_s0 + $0x184] ss:$8 sps:$4 sm:$0xff]   ;;  %v19886_v27 = vld [vmem:[%s25287_s0 + $0x180] ss:$8 sps:$4 sm:$0xff]  }
 0xb71   : > { %v24695_v29 = vpack.c.bf16 %v12886_v37, %v12886_v37  ;;  %v12954_v58 = vor.u32 %v12953_v32, %v12949_v41  ;;  %v19889_v30 = vld [vmem:[%s25287_s0 + $0x190] ss:$8 sps:$4 sm:$0xff]   ;;  %v19894_v9 = vld [vmem:[%s25287_s0 + $0x1a4] ss:$8 sps:$4 sm:$0xff]   ;;  %v19892_v43 = vld [vmem:[%s25287_s0 + $0x1a0] ss:$8 sps:$4 sm:$0xff]  }
 0xb72   : > { %v12944_v14 = vshll.u32 %v24693_v61, 16  ;;  %v13329_v46 = vrot.slane %v24693_v61, 1  ;;  %v12960_v55 = vshrl.u32 %v24693_v61, 16  ;;  %v19897_v37 = vld [vmem:[%s25287_s0 + $0x1b4] ss:$8 sps:$4 sm:$0xff]  }
 0xb73   : > { %v12956_v44 = vshll.u32 %v24695_v29, 16  ;;  %v13332_v28 = vrot.slane %v24695_v29, 1  ;;  %v12963_v0 = vshrl.u32 %v24695_v29, 16  ;;  %v19895_v42 = vld [vmem:[%s25287_s0 + $0x1b0] ss:$8 sps:$4 sm:$0xff]  }
 0xb74   : > { %v12946_v6 = vrot.slane %v12944_v14, 1  ;;  %v24706_v47 = vsel %vm4356_vm2, %v13328_v25, %v13329_v46  ;;  %v19900_v48 = vld [vmem:[%s25287_s0 + $0x1c4] ss:$8 sps:$4 sm:$0xff]   ;;  %v19898_v16 = vld [vmem:[%s25287_s0 + $0x1c0] ss:$8 sps:$4 sm:$0xff]  }
 0xb75   : > { %v12958_v59 = vrot.slane %v12956_v44, 1  ;;  %v24712_v63 = vsel %vm4356_vm2, %v13331_v45, %v13332_v28  ;;  %v19903_v12 = vld [vmem:[%s25287_s0 + $0x1d4] ss:$8 sps:$4 sm:$0xff]   ;;  %v19901_v24 = vld [vmem:[%s25287_s0 + $0x1d0] ss:$8 sps:$4 sm:$0xff]   ;;  %vm14628_vm2 = vcmask 1040384  }
 0xb76   : > { %v12947_v3 = vsel %vm2468_vm1, %v12942_v31, %v12946_v6  ;;  %v12962_v38 = vor.u32 %v12960_v55, %v12946_v6  ;;  %v19906_v32 = vld [vmem:[%s25287_s0 + $0x1e4] ss:$8 sps:$4 sm:$0xff]   ;;  %v19904_v52 = vld [vmem:[%s25287_s0 + $0x1e0] ss:$8 sps:$4 sm:$0xff]   ;;  %v19909_v14 = vld [vmem:[%s25287_s0 + $0x1f4] ss:$8 sps:$4 sm:$0xff]  }
 0xb77   : > { %v12959_v20 = vsel %vm2468_vm1, %v12954_v58, %v12958_v59  ;;  %v12965_v34 = vor.u32 %v12963_v0, %v12958_v59  ;;  %v19907_v25 = vld [vmem:[%s25287_s0 + $0x1f0] ss:$8 sps:$4 sm:$0xff]   ;;  %v19912_v41 = vld [vmem:[%s25287_s0 + $0x204] ss:$8 sps:$4 sm:$0xff]   ;;  %v19910_v44 = vld [vmem:[%s25287_s0 + $0x200] ss:$8 sps:$4 sm:$0xff]  }
 0xb78   : > { %16981 = vmatprep.mubr.msk.bf16.mxu0 %vm13078_vm11, %v12959_v20  ;;  %vm14306_vm1 = vcmask 523264  }
 0xb79   : > { %13118 = vmatmul.mubr.bf16.vlgmr.msra.gmra.mrb[164].mxu0 %v12947_v3 }
 0xb7a   : > { %13251 = vmatpush1.bf16.msra.mxu0 %v19847_v23  ;;  %16982 = vmatprep.mubr.msk.bf16.mxu0 %vm13078_vm11, %v12965_v34 }
 0xb7b   : > { %13252 = vmatprep.subr.bf16.mxu0 %v19852_v36 }
 0xb7e   : > { %13253 = vmatpush1.bf16.msra.mxu0 %v19850_v7 }
 0xb7f   : > { %13254 = vmatprep.subr.bf16.mxu0 %v19855_v21 }
 0xb81   : > { %13128 = vmatmul.mubr.bf16.gmra.mrb[168].mxu0 %v12962_v38 }
 0xb82   : > { %13255 = vmatpush1.bf16.msra.mxu0 %v19853_v22  ;;  %17005 = vmatprep.mubr.msk.bf16.mxu0 %vm13078_vm11, %v12888_v26  ;;  %v19880_v26 = vld [vmem:[%s25287_s0 + $0x160] ss:$8 sps:$4 sm:$0xff]  }
 0xb83   : > { %13256 = vmatprep.subr.bf16.mxu0 %v19858_v10 }
 0xb86   : > { %13257 = vmatpush1.bf16.msra.mxu0 %v19856_v18 }
 0xb87   : > { %13258 = vmatprep.subr.bf16.mxu0 %v19861_v53 }
 0xb8a   : > { %13259 = vmatpush1.bf16.msra.mxu0 %v19859_v51 }
 0xb8b   : > { %13260 = vmatprep.subr.bf16.mxu0 %v19864_v17 }
 0xb8e   : > { %13261 = vmatpush1.bf16.msra.mxu0 %v19862_v49 }
 0xb8f   : > { %13262 = vmatprep.subr.bf16.mxu0 %v19867_v39 }
 0xb92   : > { %13263 = vmatpush1.bf16.msra.mxu0 %v19865_v11 }
 0xb93   : > { %13264 = vmatprep.subr.bf16.mxu0 %v19870_v33 }
 0xb96   : > { %13265 = vmatpush1.bf16.msra.mxu0 %v19868_v19 }
 0xb97   : > { %13266 = vmatprep.subr.bf16.mxu0 %v19873_v62 }
 0xb9a   : > { %13267 = vmatpush1.bf16.msra.mxu0 %v19871_v35 }
 0xb9b   : > { %13268 = vmatprep.subr.bf16.mxu0 %v19876_v1 }
 0xb9e   : > { %13269 = vmatpush1.bf16.msra.mxu0 %v19874_v4 }
 0xb9f   : > { %13270 = vmatprep.subr.bf16.mxu0 %v19879_v5 }
 0xba2   : > { %13271 = vmatpush1.bf16.msra.mxu0 %v19877_v50 }
 0xba3   : > { %13452 = vmatprep.subr.bf16.mxu0 %v19882_v56  ;;  %v19913_v56 = vld [vmem:[%s25289_s11] sm:$0x1f]  }
 0xba5   : > { %13283 = vmatmul.mubr.bf16.vlgmr.msra.gmra.mrb[164].mxu0 %v24690_v8  ;;  %v19891_v8 = vld [vmem:[%s25287_s0 + $0x194] ss:$8 sps:$4 sm:$0xff]   ;;  %s14990_s0 = scalar_lea.sflag [#allocation3], %s755_s25 }
 0xba6   : > { %17006 = vmatprep.mubr.msk.bf16.mxu0 %vm13078_vm11, %v24695_v29  ;;  %13453 = vmatpush1.bf16.msra.mxu0 %v19880_v26  ;;  %v13509_v29 = vld [vmem:[%s25288_s10] sm:$0x3]  ;;  %v19914_v26 = vld [vmem:[%s25289_s11 + $0x8] sm:$0x1f]   ;;  %s19974_s10 = sshll.u32 %s20038_s7, 4  ;;  %s19975_s10 = int_to_ptr.vmem [resolvable:$false] %s19974_s10 }
 0xba7   : > { %13454 = vmatprep.subr.bf16.mxu0 %v19885_v40  ;;  %v19915_v40 = vld [vmem:[%s25220_s12] sm:$0xff]   ;;  %s19976_s11 = scalar_lea.vmem %s19975_s10, 32  ;;  %p19977_p0 = scmp.lt.s32.totalorder %s25167_s1, %s19975_s10 }
 0xba8   : > { %p19978_p1 = scmp.lt.s32.totalorder %s19976_s11, %s19970_s9 }
 0xbaa   : > { %13455 = vmatpush1.bf16.msra.mxu0 %v19883_v60  ;;  %v19916_v60 = vld [vmem:[%s25220_s12 + $0x8] sm:$0xff]   ;;  %p19979_p2 = por %p19978_p1, %p19977_p0 }
 0xbab   : > { %13456 = vmatprep.subr.bf16.mxu0 %v19888_v15  ;;  %v19917_v15 = vld [vmem:[%s25220_s12 + $0x10] sm:$0xff]  }
 0xbac   : > { %p19980_p3 = pnand %p19979_p2, %p19973_p13 }
 0xbad   : > { %13293 = vmatmul.mubr.bf16.gmra.mrb[172].mxu0 %v24693_v61  ;;  %v13514_v61 = vrot.slane %v13509_v29, %v21980_v54 }
 0xbae   : > { %13457 = vmatpush1.bf16.msra.mxu0 %v19886_v27  ;;  %17051 = vmatprep.mubr.msk.bf16.mxu0 %vm13078_vm11, %v24712_v63  ;;  %v19918_v27 = vld [vmem:[%s25220_s12 + $0x18] sm:$0xff]  }
 0xbaf   : > { %13458 = vmatprep.subr.bf16.mxu0 %v19891_v8  ;;  %v19919_v8 = vld [vmem:[%s25220_s12 + $0x20] sm:$0xff]  }
 0xbb2   : > { %13459 = vmatpush1.bf16.msra.mxu0 %v19889_v30  ;;  %v19920_v30 = vld [vmem:[%s25220_s12 + $0x28] sm:$0xff]  }
 0xbb3   : > { %13460 = vmatprep.subr.bf16.mxu0 %v19894_v9  ;;  %v19921_v9 = vld [vmem:[%s25220_s12 + $0x30] sm:$0xff]  }
 0xbb6   : > { %13461 = vmatpush1.bf16.msra.mxu0 %v19892_v43  ;;  %v19922_v43 = vld [vmem:[%s25220_s12 + $0x38] sm:$0xff]  }
 0xbb7   : > { %13462 = vmatprep.subr.bf16.mxu0 %v19897_v37  ;;  %v19923_v37 = vld [vmem:[%s25220_s12 + $0x40] sm:$0xff]  }
 0xbba   : > { %13463 = vmatpush1.bf16.msra.mxu0 %v19895_v42  ;;  %v19924_v42 = vld [vmem:[%s25220_s12 + $0x48] sm:$0xff]  }
 0xbbb   : > { %13464 = vmatprep.subr.bf16.mxu0 %v19900_v48 }
 0xbbe   : > { %13465 = vmatpush1.bf16.msra.mxu0 %v19898_v16 }
 0xbbf   : > { %13466 = vmatprep.subr.bf16.mxu0 %v19903_v12 }
 0xbc2   : > { %13467 = vmatpush1.bf16.msra.mxu0 %v19901_v24 }
 0xbc3   : > { %13468 = vmatprep.subr.bf16.mxu0 %v19906_v32 }
 0xbc6   : > { %13469 = vmatpush1.bf16.msra.mxu0 %v19904_v52 }
 0xbc7   : > { %13470 = vmatprep.subr.bf16.mxu0 %v19909_v14 }
 0xbca   : > { %13471 = vmatpush1.bf16.msra.mxu0 %v19907_v25 }
 0xbcb   : > { %13472 = vmatprep.subr.bf16.mxu0 %v19912_v41 }
 0xbce   : > { %13473 = vmatpush1.bf16.msra.mxu0 %v19910_v44 }
 0xbcf   : > { %17647 = vmatprep.subr.bf16.mxu0 %v20035_v57 }
 0xbd1   : > { %13485 = vmatmul.mubr.bf16.vlgmr.msra.gmra.mrb[164].mxu0 %v24706_v47 }
 0xbd2   : > { %17052 = vmatprep.mubr.msk.bf16.mxu0 %vm13078_vm11, %v13332_v28 }
 0xbd9   : > { %13495 = vmatmul.mubr.bf16.gmra.mrb[176].mxu0 %v13329_v46  ;;  %v13518_v46 = vrot.slane %v13509_v29, %v21983_v13  ;;  %v19931_v29 = vld [vmem:[%s25220_s12 + $0x80] sm:$0xff]  }
 0xbda   : > { %17657 = vmatprep.mubr.msk.bf16.mxu0 %vm20036_vm6, %v20035_v57 }
 0xc54   : > { %v13129_v45 = vpop.f32.mrb[168].mxu0 }
 0xc55   : > { %v13131_v6 = vpop.f32.mrb[169].mxu0 }
 0xc56   : > { %v13133_v31 = vpop.f32.mrb[170].mxu0 }
 0xc57   : > { %v13134_v0 = vpop.f32.mrb[171].mxu0 }
 0xc80   : > { %v13294_v58 = vpop.f32.mrb[172].mxu0 }
 0xc81   : > { %v13295_v59 = vadd.f32 %v13294_v58, %v13129_v45  ;;  %v13296_v63 = vpop.f32.mrb[173].mxu0  ;;  %v19925_v58 = vld [vmem:[%s25220_s12 + $0x50] sm:$0xff]  }
 0xc82   : > { %v13297_v23 = vadd.f32 %v13296_v63, %v13131_v6  ;;  %v13298_v3 = vpop.f32.mrb[174].mxu0  ;;  %v19927_v63 = vld [vmem:[%s25220_s12 + $0x60] sm:$0xff]  }
 0xc83   : > { %v13299_v47 = vpop.f32.mrb[175].mxu0  ;;  %v19929_v3 = vld [vmem:[%s25220_s12 + $0x70] sm:$0xff]  }
 0xc84   : > { %v19930_v47 = vld [vmem:[%s25220_s12 + $0x78] sm:$0xff]  }
 0xca4   : > { %v13486_v28 = vpop.f32.mrb[164].mxu0 }
 0xca5   : > { %v13521_v20 = vadd.f32 %v13514_v61, %v13486_v28  ;;  %v13488_v34 = vpop.f32.mrb[165].mxu0  ;;  %v19934_v28 = vld [vmem:[%s25220_s12 + $0x98] sm:$0xff]  }
 0xca6   : > { %v13522_v36 = vadd.f32 %v13518_v46, %v13488_v34  ;;  %v13490_v7 = vpop.f32.mrb[166].mxu0  ;;  %v19937_v34 = vld [vmem:[%s25221_s13 + $0x28] sm:$0xff]  }
 0xca7   : > { %v13523_v21 = vadd.f32 %v13514_v61, %v13490_v7  ;;  %v13492_v55 = vpop.f32.mrb[167].mxu0  ;;  %v13527_v38 = vmax.f32 %v13521_v20, 0.0  ;;  %v19935_v20 = vld [vmem:[%s25221_s13] sm:$0xff]   ;;  %v19938_v7 = vld [vmem:[%s25221_s13 + $0x10] sm:$0xff]  }
 0xca8   : > { %v13524_v22 = vadd.f32 %v13518_v46, %v13492_v55  ;;  %v13528_v18 = vmax.f32 %v13522_v36, 0.0  ;;  %17648 = vmatpush3.bf16.msra.mxu0 %v19935_v20  ;;  %v19939_v36 = vld [vmem:[%s25221_s13 + $0x30] sm:$0xff]   ;;  %v19941_v55 = vld [vmem:[%s25221_s13 + $0x38] sm:$0xff]  }
 0xca9   : > { %v13529_v10 = vmax.f32 %v13523_v21, 0.0  ;;  %17649 = vmatprep.subr.bf16.mxu0 %v20035_v57  ;;  %v19940_v21 = vld [vmem:[%s25221_s13 + $0x18] sm:$0xff]  }
 0xcaa   : > { %v13530_v53 = vmax.f32 %v13524_v22, 0.0  ;;  %v19942_v22 = vld [vmem:[%s25221_s13 + $0x20] sm:$0xff]  }
 0xcab   : > { %v13533_v51 = vpack.c.bf16 %v13529_v10, %v13527_v38  ;;  %v19943_v38 = vld [vmem:[%s25221_s13 + $0x40] sm:$0xff]   ;;  %v19944_v10 = vld [vmem:[%s25221_s13 + $0x48] sm:$0xff]  }
 0xcac   : > { %v13534_v17 = vpack.c.bf16 %v13530_v53, %v13528_v18  ;;  %v13496_v49 = vpop.f32.mrb[176].mxu0 }
 0xcad   : > { %v13507_v39 = vadd.f32 %v13496_v49, %v13295_v59  ;;  %v13498_v11 = vpop.f32.mrb[177].mxu0  ;;  %v19926_v59 = vld [vmem:[%s25220_s12 + $0x58] sm:$0xff]  }
 0xcae   : > { %v13508_v54 = vadd.f32 %v13498_v11, %v13297_v23  ;;  %v13500_v33 = vpop.f32.mrb[178].mxu0  ;;  %13555 = vmatprep.subr.bf16.mxu1 %v13534_v17  ;;  %v19928_v23 = vld [vmem:[%s25220_s12 + $0x68] sm:$0xff]  }
 0xcaf   : > { %v13525_v13 = vadd.f32 %v13514_v61, %v13507_v39  ;;  %v13501_v19 = vpop.f32.mrb[179].mxu0  ;;  %13556 = vmatpush1.bf16.msra.mxu1 %v13533_v51  ;;  %v19932_v61 = vld [vmem:[%s25220_s12 + $0x88] sm:$0xff]  }
 0xcb0   : > { %v13526_v62 = vadd.f32 %v13518_v46, %v13508_v54  ;;  %v19933_v46 = vld [vmem:[%s25220_s12 + $0x90] sm:$0xff]  }
 0xcb1   : > { %v13531_v35 = vmax.f32 %v13525_v13, 0.0 }
 0xcb2   : > { %v13532_v1 = vmax.f32 %v13526_v62, 0.0 }
 0xcb3   : > { %v13535_v4 = vpack.c.bf16 %v13531_v35, %v13531_v35 }
 0xcb4   : > { %v13536_v5 = vpack.c.bf16 %v13532_v1, %v13532_v1 }
 0xcb5   : > { %v13550_v50 = vsel %vm13548_vm12, %v13535_v4, 0  ;;  %v19945_v4 = vld [vmem:[%s25221_s13 + $0x50] sm:$0xff]  }
 0xcb6   : > { %17054 = vmatprep.subr.msk.bf16.mxu1 %vm13548_vm12, %v13536_v5 }
 0xcb7   : > { %13558 = vmatpush1.bf16.msra.mxu1 %v13550_v50 }
 0xcb8   : > { %13609 = vmatprep.subr.bf16.mxu1 %v13534_v17 }
 0xcba   : > { %17055 = vmatmul.mubr.msk.bf16.vlgmr.msra.gmra.mrb[200].mxu1 %vm13544_vm13, %v19913_v56  ;;  %v19947_v56 = vld [vmem:[%s25221_s13 + $0x60] sm:$0xff]  }
 0xcbb   : > { %13610 = vmatpush1.bf16.msra.mxu1 %v13533_v51  ;;  %13641 = vmatprep.mubr.bf16.mxu1 %v20034_v2 }
 0xcbc   : > { %17059 = vmatprep.subr.msk.bf16.mxu1 %vm13548_vm12, %v13536_v5 }
 0xcbf   : > { %13612 = vmatpush1.bf16.msra.mxu1 %v13550_v50  ;;  %v19946_v50 = vld [vmem:[%s25221_s13 + $0x58] sm:$0xff]  }
 0xcc0   : > { %13742 = vmatprep.subr.bf16.mxu1 %v20034_v2 }
 0xcc2   : > { %17060 = vmatmul.mubr.msk.bf16.vlgmr.msra.gmra.mrb[204].mxu1 %vm13544_vm13, %v19914_v26  ;;  %v19948_v26 = vld [vmem:[%s25221_s13 + $0x68] sm:$0xff]  }
 0xcc3   : > { %13743 = vmatpush1.bf16.msra.mxu1 %v19915_v40  ;;  %v19949_v40 = vld [vmem:[%s25221_s13 + $0x70] sm:$0xff]  }
 0xcc4   : > { %13744 = vmatprep.subr.bf16.mxu1 %v20034_v2 }
 0xcc7   : > { %13745 = vmatpush1.bf16.msra.mxu1 %v19916_v60 }
 0xcc8   : > { %13746 = vmatprep.subr.bf16.mxu1 %v20034_v2 }
 0xccb   : > { %13747 = vmatpush1.bf16.msra.mxu1 %v19917_v15 }
 0xccc   : > { %13748 = vmatprep.subr.bf16.mxu1 %v20034_v2 }
 0xccf   : > { %13749 = vmatpush1.bf16.msra.mxu1 %v19918_v27 }
 0xcd0   : > { %13750 = vmatprep.subr.bf16.mxu1 %v20034_v2 }
 0xcd3   : > { %13751 = vmatpush1.bf16.msra.mxu1 %v19919_v8 }
 0xcd4   : > { %13752 = vmatprep.subr.bf16.mxu1 %v20034_v2 }
 0xcd7   : > { %13753 = vmatpush1.bf16.msra.mxu1 %v19920_v30 }
 0xcd8   : > { %13754 = vmatprep.subr.bf16.mxu1 %v20034_v2 }
 0xcdb   : > { %13755 = vmatpush1.bf16.msra.mxu1 %v19921_v9 }
 0xcdc   : > { %13756 = vmatprep.subr.bf16.mxu1 %v20034_v2 }
 0xcdf   : > { %13757 = vmatpush1.bf16.msra.mxu1 %v19922_v43 }
 0xce0   : > { %13758 = vmatprep.subr.bf16.mxu1 %v20034_v2 }
 0xce3   : > { %13759 = vmatpush1.bf16.msra.mxu1 %v19923_v37 }
 0xce4   : > { %13760 = vmatprep.subr.bf16.mxu1 %v20034_v2 }
 0xce7   : > { %13761 = vmatpush1.bf16.msra.mxu1 %v19924_v42 }
 0xce8   : > { %13864 = vmatprep.subr.bf16.mxu1 %v20034_v2 }
 0xd8d   : > { %v13589_v48 = vpop.f32.mrb[200].mxu1 }
 0xd8e   : > { %v13591_v16 = vpop.f32.mrb[201].mxu1 }
 0xd8f   : > { %v13593_v12 = vpop.f32.mrb[202].mxu1 }
 0xd90   : > { %v13595_v24 = vpop.f32.mrb[203].mxu1 }
 0xd95   : > { %v13643_v32 = vpop.f32.mrb[204].mxu1 }
 0xd96   : > { %v13652_v52 = vmax.f32 %v13589_v48, %v13643_v32  ;;  %v13645_v14 = vpop.f32.mrb[205].mxu1 }
 0xd97   : > { %v13653_v25 = vmax.f32 %v13591_v16, %v13645_v14  ;;  %v13647_v41 = vpop.f32.mrb[206].mxu1 }
 0xd98   : > { %v13654_v44 = vmax.f32 %v13593_v12, %v13647_v41  ;;  %v13649_v45 = vpop.f32.mrb[207].mxu1  ;;  %v17141_v12 = vld [vmem:[%s25222_s14] ss:$0 sm:$0xff] }
 0xd99   : > { %v13655_v6 = vmax.f32 %v13595_v24, %v13649_v45 }
 0xd9a   : > { %v13656_v31 = vpack.c.bf16 %v13654_v44, %v13652_v52 }
 0xd9b   : > { %v13657_v0 = vpack.c.bf16 %v13655_v6, %v13653_v25  ;;  %v14179_v6 = vld [vmem:[%s25223_s15] sm:$0x3] }
 0xd9d   : > { %17071 = vmatprep.mubr.msk.bf16.mxu1 %vm13738_vm14, %v13657_v0 }
 0xd9e   : > { %13775 = vmatmul.mubr.bf16.vlgmr.msra.gmra.mrb[208].mxu1 %v13656_v31 }
 0xd9f   : > { %13865 = vmatpush1.bf16.msra.mxu1 %v19925_v58  ;;  %17102 = vmatprep.mubr.msk.bf16.mxu1 %vm13738_vm14, %v13657_v0  ;;  %v19950_v0 = vld [vmem:[%s25224_s16] sm:$0xff]  }
 0xda0   : > { %13866 = vmatprep.subr.bf16.mxu1 %v20034_v2  ;;  %v19951_v58 = vld [vmem:[%s25224_s16 + $0x20] sm:$0xff]  }
 0xda3   : > { %13867 = vmatpush1.bf16.msra.mxu1 %v19926_v59  ;;  %v19952_v59 = vld [vmem:[%s25224_s16 + $0x8] sm:$0xff]  }
 0xda4   : > { %13868 = vmatprep.subr.bf16.mxu1 %v20034_v2 }
 0xda7   : > { %13869 = vmatpush1.bf16.msra.mxu1 %v19927_v63  ;;  %v19953_v63 = vld [vmem:[%s25224_s16 + $0x28] sm:$0xff]  }
 0xda8   : > { %13870 = vmatprep.subr.bf16.mxu1 %v20034_v2 }
 0xdab   : > { %13871 = vmatpush1.bf16.msra.mxu1 %v19928_v23  ;;  %v19954_v23 = vld [vmem:[%s25224_s16 + $0x10] sm:$0xff]  }
 0xdac   : > { %13872 = vmatprep.subr.bf16.mxu1 %v20034_v2 }
 0xdaf   : > { %13873 = vmatpush1.bf16.msra.mxu1 %v19929_v3  ;;  %v19955_v3 = vld [vmem:[%s25224_s16 + $0x30] sm:$0xff]  }
 0xdb0   : > { %13874 = vmatprep.subr.bf16.mxu1 %v20034_v2 }
 0xdb3   : > { %13875 = vmatpush1.bf16.msra.mxu1 %v19930_v47  ;;  %v19956_v47 = vld [vmem:[%s25224_s16 + $0x18] sm:$0xff]  }
 0xdb4   : > { %13876 = vmatprep.subr.bf16.mxu1 %v20034_v2 }
 0xdb7   : > { %13877 = vmatpush1.bf16.msra.mxu1 %v19931_v29  ;;  %v19957_v29 = vld [vmem:[%s25224_s16 + $0x38] sm:$0xff]  }
 0xdb8   : > { %13878 = vmatprep.subr.bf16.mxu1 %v20034_v2 }
 0xdbb   : > { %13879 = vmatpush1.bf16.msra.mxu1 %v19932_v61 }
 0xdbc   : > { %13880 = vmatprep.subr.bf16.mxu1 %v20034_v2 }
 0xdbf   : > { %13881 = vmatpush1.bf16.msra.mxu1 %v19933_v46 }
 0xdc0   : > { %13882 = vmatprep.subr.bf16.mxu1 %v20034_v2  ;;  %v19936_v2 = vld [vmem:[%s25221_s13 + $0x8] sm:$0xff]  }
 0xdc1   : > { %17650 = vmatpush3.bf16.msra.mxu0 %v19936_v2 }
 0xdc2   : > { %17651 = vmatprep.subr.bf16.mxu0 %v20035_v57 }
 0xdc3   : > { %13883 = vmatpush1.bf16.msra.mxu1 %v19934_v28 }
 0xdc4   : > { %17633 = vmatprep.subr.bf16.mxu1 %v20035_v57 }
 0xdc5   : > { %17652 = vmatpush3.bf16.msra.mxu0 %v19938_v7  ;;  %v19958_v7 = vld [vmem:[%s25225_s17] sm:$0xff]  }
 0xdc6   : > { %13897 = vmatmul.mubr.bf16.vlgmr.msra.gmra.mrb[212].mxu1 %v13656_v31  ;;  %17653 = vmatprep.subr.bf16.mxu0 %v20035_v57  ;;  %v17143_v31 = vld [vmem:[%s25223_s15 + $0x2] sm:$0x3] }
 0xdc7   : > { %17643 = vmatprep.mubr.msk.bf16.mxu1 %vm20036_vm6, %v20035_v57  ;;  %17634 = vmatpush3.bf16.msra.mxu1 %v19937_v34 }
 0xdc8   : > { %17635 = vmatprep.subr.bf16.mxu1 %v20035_v57 }
 0xdc9   : > { %17654 = vmatpush3.bf16.msra.mxu0 %v19940_v21 }
 0xdca   : > { %17655 = vmatprep.subr.bf16.mxu0 %v20035_v57 }
 0xdcb   : > { %17636 = vmatpush3.bf16.msra.mxu1 %v19939_v36 }
 0xdcc   : > { %17637 = vmatprep.subr.bf16.mxu1 %v20035_v57 }
 0xdcd   : > { %17656 = vmatpush3.bf16.msra.mxu0 %v19942_v22 }
 0xdce   : > { %17675 = vmatprep.subr.bf16.mxu0 %v20035_v57 }
 0xdcf   : > { %17638 = vmatpush3.bf16.msra.mxu1 %v19941_v55 }
 0xdd0   : > { %17639 = vmatprep.subr.bf16.mxu1 %v20035_v57 }
 0xdd3   : > { %17640 = vmatpush3.bf16.msra.mxu1 %v19943_v38  ;;  %v19959_v38 = vld [vmem:[%s25225_s17 + $0x8] sm:$0xff]  }
 0xdd4   : > { %17641 = vmatprep.subr.bf16.mxu1 %v20035_v57 }
 0xdd7   : > { %17642 = vmatpush3.bf16.msra.mxu1 %v19944_v10  ;;  %v19960_v10 = vld [vmem:[%s25225_s17 + $0x10] sm:$0xff]  }
 0xdd8   : > { %17661 = vmatprep.subr.bf16.mxu1 %v20035_v57 }
 0xe71   : > { %v13776_v18 = vpop.f32.mrb[208].mxu1 }
 0xe72   : > { %v13778_v53 = vpop.f32.mrb[209].mxu1 }
 0xe73   : > { %v13779_v51 = vpop.f32.mrb[210].mxu1 }
 0xe74   : > { %v13781_v17 = vpop.f32.mrb[211].mxu1 }
 0xe99   : > { %v13898_v49 = vpop.f32.mrb[212].mxu1 }
 0xe9a   : > { %v13905_v39 = vmax.f32 %v13776_v18, %v13898_v49  ;;  %v13900_v11 = vpop.f32.mrb[213].mxu1  ;;  %v19961_v18 = vld [vmem:[%s25225_s17 + $0x18] sm:$0xff]  }
 0xe9b   : > { %v13901_v54 = vpop.f32.mrb[214].mxu1 }
 0xe9c   : > { %v13906_v33 = vmax.f32 %v13779_v51, %v13901_v54  ;;  %v13903_v13 = vpop.f32.mrb[215].mxu1 }
 0xe9e   : > { %v13907_v19 = vpack.c.bf16 %v13906_v33, %v13905_v39 }
 0xea0   : > { %v13932_v62 = vshll.u32 %v13907_v19, 16  ;;  %17658 = vmatmul.mubr.msk.bf16.vlgmr.msra.gmra.mrb[180].mxu0 %vm13966_vm15, %v13907_v19  ;;  %v13930_v35 = vshrl.u32 %v13907_v19, 16  ;;  %v14094_v60 = vrot.slane %v13907_v19, 1 }
 0xea1   : > { %17677 = vmatprep.mubr.msk.bf16.mxu0 %vm20036_vm6, %v20035_v57 }
 0xea2   : > { %v13934_v1 = vrot.slane %v13932_v62, 1 }
 0xea4   : > { %v13935_v5 = vor.u32 %v13934_v1, %v13930_v35 }
 0xea6   : > { %17644 = vmatmul.mubr.msk.bf16.vlgmr.msra.gmra.mrb[216].mxu1 %vm13966_vm15, %v13935_v5 }
 0xea7   : > { %17662 = vmatpush3.bf16.msra.mxu1 %v19945_v4  ;;  %17671 = vmatprep.mubr.msk.bf16.mxu1 %vm20036_vm6, %v20035_v57  ;;  %v19962_v4 = vld [vmem:[%s25225_s17 + $0x20] sm:$0xff]  }
 0xea8   : > { %17663 = vmatprep.subr.bf16.mxu1 %v20035_v57 }
 0xeab   : > { %17664 = vmatpush3.bf16.msra.mxu1 %v19946_v50  ;;  %v19963_v50 = vld [vmem:[%s25225_s17 + $0x28] sm:$0xff]  }
 0xeac   : > { %17665 = vmatprep.subr.bf16.mxu1 %v20035_v57 }
 0xeaf   : > { %17666 = vmatpush3.bf16.msra.mxu1 %v19947_v56 }
 0xeb0   : > { %17667 = vmatprep.subr.bf16.mxu1 %v20035_v57 }
 0xeb3   : > { %17668 = vmatpush3.bf16.msra.mxu1 %v19948_v26 }
 0xeb4   : > { %17669 = vmatprep.subr.bf16.mxu1 %v20035_v57 }
 0xeb7   : > { %17670 = vmatpush3.bf16.msra.mxu1 %v19949_v40 }
 0xeb8   : > { %17681 = vmatprep.subr.bf16.mxu1 %v20035_v57 }
 0xeba   : > { %17672 = vmatmul.mubr.msk.bf16.vlgmr.msra.gmra.mrb[220].mxu1 %vm13966_vm15, %v14094_v60 }
 0xebb   : > { %17683 = vmatprep.mubr.msk.bf16.mxu1 %vm20036_vm6, %v20035_v57 }
 0xf73   : > { %v14076_v15 = vpop.f32.mrb[180].mxu0 }
 0xf74   : > { %v17659_v27 = vpop.f32.mrb[181].mxu0 }
 0xf75   : > { %v14079_v8 = vpop.f32.mrb[182].mxu0 }
 0xf76   : > { %v17660_v30 = vpop.f32.mrb[183].mxu0 }
 0xf79   : > { %v14004_v9 = vpop.f32.mrb[216].mxu1 }
 0xf7a   : > { %v14077_v43 = vadd.f32 %v14076_v15, %v14004_v9  ;;  %v17645_v37 = vpop.f32.mrb[217].mxu1 }
 0xf7b   : > { %v14007_v42 = vpop.f32.mrb[218].mxu1 }
 0xf7c   : > { %v17646_v48 = vpop.f32.mrb[219].mxu1  ;;  %v17180_v42 = vld [vmem:[%s25226_s18] ss:$0 sm:$0xff] }
 0xf8d   : > { %v14162_v16 = vpop.f32.mrb[220].mxu1 }
 0xf8e   : > { %v14168_v24 = vadd.f32 %v14162_v16, %v14077_v43  ;;  %v17673_v32 = vpop.f32.mrb[221].mxu1 }
 0xf8f   : > { %v14165_v52 = vpop.f32.mrb[222].mxu1 }
 0xf90   : > { %v14176_v14 = vadd.f32 %v17141_v12, %v14168_v24  ;;  %v17674_v25 = vpop.f32.mrb[223].mxu1 }
 0xf92   : > { %v14177_v41 = vmax.f32 %v14176_v14, 0.0 }
 0xf94   : > { %v14178_v44 = vpack.c.bf16 %v14177_v41, %v14177_v41  ;;  %v14623_v41 = vld [vmem:[%s25227_s19] sm:$0x1] }
 0xf96   : > { %v14185_v45 = vsel %vm10136_vm5, %v14178_v44, 0  ;;  %v17182_v44 = vld [vmem:[%s25227_s19 + $0x1] sm:$0x1]  ;;  %vm14974_vm5 = vcmask 73728  }
 0xf97   : > { %17676 = vmatpush3.bf16.msra.mxu0 %v14185_v45  ;;  %17682 = vmatpush3.bf16.msra.mxu1 %v14185_v45  ;;  %v19964_v45 = vld [vmem:[%s25228_s20] sm:$0xff]  }
 0xf98   : > { %17687 = vmatprep.subr.bf16.mxu0 %v20035_v57  ;;  %17699 = vmatprep.subr.bf16.mxu1 %v20035_v57 }
 0xf9a   : > { %17678 = vmatmul.mubr.msk.bf16.vlgmr.msra.gmra.mrb[184].mxu0 %vm14180_vm0, %v14179_v6  ;;  %17684 = vmatmul.mubr.msk.bf16.vlgmr.msra.gmra.mrb[224].mxu1 %vm14180_vm0, %v17143_v31  ;;  %v19965_v6 = vld [vmem:[%s25228_s20 + $0x8] sm:$0xff]  }
 0xf9b   : > { %17688 = vmatpush3.bf16.msra.mxu0 %v19950_v0  ;;  %17700 = vmatpush3.bf16.msra.mxu1 %v19951_v58 }
 0xf9c   : > { %17689 = vmatprep.subr.bf16.mxu0 %v20035_v57  ;;  %17701 = vmatprep.subr.bf16.mxu1 %v20035_v57 }
 0xf9d   : > { %17695 = vmatprep.mubr.msk.bf16.mxu0 %vm20036_vm6, %v20035_v57  ;;  %17707 = vmatprep.mubr.msk.bf16.mxu1 %vm20036_vm6, %v20035_v57 }
 0xf9f   : > { %17690 = vmatpush3.bf16.msra.mxu0 %v19952_v59  ;;  %17702 = vmatpush3.bf16.msra.mxu1 %v19953_v63 }
 0xfa0   : > { %17691 = vmatprep.subr.bf16.mxu0 %v20035_v57  ;;  %17703 = vmatprep.subr.bf16.mxu1 %v20035_v57 }
 0xfa3   : > { %17692 = vmatpush3.bf16.msra.mxu0 %v19954_v23  ;;  %17704 = vmatpush3.bf16.msra.mxu1 %v19955_v3 }
 0xfa4   : > { %17693 = vmatprep.subr.bf16.mxu0 %v20035_v57  ;;  %17705 = vmatprep.subr.bf16.mxu1 %v20035_v57 }
 0xfa7   : > { %17694 = vmatpush3.bf16.msra.mxu0 %v19956_v47  ;;  %17706 = vmatpush3.bf16.msra.mxu1 %v19957_v29 }
 0xfa8   : > { %17719 = vmatprep.subr.bf16.mxu1 %v20035_v57  ;;  %17711 = vmatprep.subr.bf16.mxu0 %v20035_v57 }
0x106d   : > { %v14221_v61 = vpop.f32.mrb[184].mxu0  ;;  %v14266_v46 = vpop.f32.mrb[224].mxu1 }
0x106e   : > { %v14272_v28 = vmax.f32 %v14221_v61, %v14266_v46  ;;  %v17679_v20 = vpop.f32.mrb[185].mxu0  ;;  %v17685_v34 = vpop.f32.mrb[225].mxu1  ;;  %v14823_v46 = vld [vmem:[%s25229_s21] sm:$0xff] }
0x106f   : > { %v14224_v2 = vpop.f32.mrb[186].mxu0  ;;  %v14269_v36 = vpop.f32.mrb[226].mxu1 }
0x1070   : > { %v14273_v21 = vpack.c.bf16 %v14272_v28, %v14272_v28  ;;  %v17680_v55 = vpop.f32.mrb[187].mxu0  ;;  %v17686_v22 = vpop.f32.mrb[227].mxu1 }
0x1072   : > { %17696 = vmatmul.mubr.msk.bf16.vlgmr.msra.gmra.mrb[188].mxu0 %vm14306_vm1, %v14273_v21  ;;  %17708 = vmatmul.mubr.msk.bf16.vlgmr.msra.gmra.mrb[228].mxu1 %vm14306_vm1, %v14273_v21 }
0x1073   : > { %17720 = vmatpush3.bf16.msra.mxu1 %v19958_v7  ;;  %17723 = vmatprep.mubr.msk.bf16.mxu1 %vm20036_vm6, %v20035_v57 }
0x1074   : > { %17721 = vmatprep.subr.bf16.mxu1 %v20035_v57  ;;  %17715 = vmatprep.mubr.msk.bf16.mxu0 %vm20036_vm6, %v20035_v57 }
0x1075   : > { %17712 = vmatpush3.bf16.msra.mxu0 %v19960_v10 }
0x1076   : > { %17713 = vmatprep.subr.bf16.mxu0 %v20035_v57 }
0x1077   : > { %17722 = vmatpush3.bf16.msra.mxu1 %v19959_v38  ;;  %v14824_v38 = vld [vmem:[%s25230_s22] sm:$0x1] }
0x1078   : > { %17735 = vmatprep.subr.bf16.mxu1 %v20035_v57 }
0x1079   : > { %17714 = vmatpush3.bf16.msra.mxu0 %v19961_v18 }
0x107a   : > { %17727 = vmatprep.subr.bf16.mxu0 %v20035_v57 }
0x1145   : > { %v14344_v53 = vpop.f32.mrb[188].mxu0  ;;  %v14417_v51 = vpop.f32.mrb[228].mxu1 }
0x1146   : > { %v14423_v17 = vmax.f32 %v14344_v53, %v14417_v51  ;;  %v17697_v49 = vpop.f32.mrb[189].mxu0  ;;  %v17709_v39 = vpop.f32.mrb[229].mxu1 }
0x1147   : > { %v14347_v11 = vpop.f32.mrb[190].mxu0  ;;  %v14420_v54 = vpop.f32.mrb[230].mxu1 }
0x1148   : > { %v14424_v33 = vpack.c.bf16 %v14423_v17, %v14423_v17  ;;  %v17698_v13 = vpop.f32.mrb[191].mxu0  ;;  %v17710_v19 = vpop.f32.mrb[231].mxu1  ;;  %v14900_v17 = vld [vmem:[%s25232_s24] sm:$0x1] }
0x114a   : > { %v14437_v62 = vshll.u32 %v14424_v33, 16  ;;  %17724 = vmatmul.mubr.msk.bf16.vlgmr.msra.gmra.mrb[232].mxu1 %vm13738_vm14, %v14424_v33  ;;  %v14435_v35 = vshrl.u32 %v14424_v33, 16  ;;  %v14556_v56 = vrot.slane %v14424_v33, 1 }
0x114b   : > { %17737 = vmatprep.mubr.msk.bf16.mxu1 %vm20036_vm6, %v20035_v57 }
0x114c   : > { %v14439_v1 = vrot.slane %v14437_v62, 1 }
0x114e   : > { %v14440_v5 = vor.u32 %v14439_v1, %v14435_v35 }
0x1150   : > { %17716 = vmatmul.mubr.msk.bf16.vlgmr.msra.gmra.mrb[192].mxu0 %vm13738_vm14, %v14440_v5 }
0x1151   : > { %17728 = vmatpush3.bf16.msra.mxu0 %v19962_v4  ;;  %17731 = vmatprep.mubr.msk.bf16.mxu0 %vm20036_vm6, %v20035_v57 }
0x1152   : > { %17729 = vmatprep.subr.bf16.mxu0 %v20035_v57 }
0x1155   : > { %17730 = vmatpush3.bf16.msra.mxu0 %v19963_v50 }
0x1156   : > { %17741 = vmatprep.subr.bf16.mxu0 %v20035_v57 }
0x1158   : > { %17732 = vmatmul.mubr.msk.bf16.vlgmr.msra.gmra.mrb[196].mxu0 %vm13738_vm14, %v14556_v56 }
0x1159   : > { %17743 = vmatprep.mubr.msk.bf16.mxu0 %vm20036_vm6, %v20035_v57 }
0x121d   : > { %v14544_v26 = vpop.f32.mrb[232].mxu1 }
0x121e   : > { %v17725_v40 = vpop.f32.mrb[233].mxu1 }
0x121f   : > { %v14547_v60 = vpop.f32.mrb[234].mxu1 }
0x1220   : > { %v17726_v15 = vpop.f32.mrb[235].mxu1 }
0x1223   : > { %v14490_v27 = vpop.f32.mrb[192].mxu0 }
0x1224   : > { %v14545_v8 = vadd.f32 %v14544_v26, %v14490_v27  ;;  %v17717_v30 = vpop.f32.mrb[193].mxu0 }
0x1225   : > { %v14493_v9 = vpop.f32.mrb[194].mxu0 }
0x1226   : > { %v17718_v43 = vpop.f32.mrb[195].mxu0 }
0x122b   : > { %v14606_v37 = vpop.f32.mrb[196].mxu0 }
0x122c   : > { %v14612_v48 = vadd.f32 %v14606_v37, %v14545_v8  ;;  %v17733_v16 = vpop.f32.mrb[197].mxu0 }
0x122d   : > { %v14609_v12 = vpop.f32.mrb[198].mxu0 }
0x122e   : > { %v14620_v24 = vadd.f32 %v17180_v42, %v14612_v48  ;;  %v17734_v32 = vpop.f32.mrb[199].mxu0 }
0x1230   : > { %v14621_v52 = vmax.f32 %v14620_v24, 0.0 }
0x1232   : > { %v14622_v14 = vpack.c.bf16 %v14621_v52, %v14621_v52 }
0x1234   : > { %v14630_v25 = vsel %vm14628_vm2, %v14622_v14, 0 }
0x1235   : > { %17736 = vmatpush3.bf16.msra.mxu1 %v14630_v25  ;;  %17742 = vmatpush3.bf16.msra.mxu0 %v14630_v25 }
0x1236   : > { %17747 = vmatprep.subr.bf16.mxu1 %v20035_v57  ;;  %17753 = vmatprep.subr.bf16.mxu0 %v20035_v57 }
0x1238   : > { %17738 = vmatmul.mubr.msk.bf16.vlgmr.msra.gmra.mrb[236].mxu1 %vm14624_vm3, %v14623_v41  ;;  %17744 = vmatmul.mubr.msk.bf16.vlgmr.msra.gmra.mrb[200].mxu0 %vm14624_vm3, %v17182_v44 }
0x1239   : > { %17749 = vmatprep.mubr.msk.bf16.mxu1 %vm20036_vm6, %v20035_v57  ;;  %17755 = vmatprep.mubr.msk.bf16.mxu0 %vm20036_vm6, %v20035_v57 }
0x123a   : > { %17748 = vmatpush3.bf16.msra.mxu1 %v19964_v45  ;;  %17754 = vmatpush3.bf16.msra.mxu0 %v19965_v6 }
0x123b   : > { %17759 = vmatprep.subr.mxu1 %v20035_v57  ;;  %17764 = vmatprep.subr.mxu0 %v20035_v57 }
0x130b   : > { %v14666_v31 = vpop.f32.mrb[236].mxu1  ;;  %v14711_v0 = vpop.f32.mrb[200].mxu0 }
0x130c   : > { %v14717_v58 = vmax.f32 %v14666_v31, %v14711_v0  ;;  %v17739_v59 = vpop.f32.mrb[237].mxu1  ;;  %v17745_v63 = vpop.f32.mrb[201].mxu0 }
0x130d   : > { %v14669_v23 = vpop.f32.mrb[238].mxu1  ;;  %v14714_v3 = vpop.f32.mrb[202].mxu0 }
0x130e   : > { %v14718_v47 = vpack.c.bf16 %v14717_v58, %v14717_v58  ;;  %v17740_v29 = vpop.f32.mrb[239].mxu1  ;;  %v17746_v61 = vpop.f32.mrb[203].mxu0 }
0x1310   : > { %17750 = vmatmul.mubr.msk.bf16.vlgmr.msra.gmra.mrb[240].mxu1 %vm14727_vm4, %v14718_v47  ;;  %17756 = vmatmul.mubr.msk.bf16.vlgmr.msra.gmra.mrb[204].mxu0 %vm14727_vm4, %v14718_v47 }
0x1311   : > { %17761 = vmatprep.mubr.msk.f32.mxu1 %vm20036_vm6, %v20035_v57  ;;  %17766 = vmatprep.mubr.msk.f32.mxu0 %vm20036_vm6, %v20035_v57  ;;  %v14899_v57 = vld [vmem:[%s25231_s23] sm:$0xff] }
0x1312   : > { %17760 = vmatpush3.msra.mxu1 %v14823_v46  ;;  %17765 = vmatpush3.msra.mxu0 %v14899_v57 }
0x13e3   : > { %v14765_v28 = vpop.f32.mrb[240].mxu1  ;;  %v14814_v20 = vpop.f32.mrb[204].mxu0 }
0x13e4   : > { %v14820_v34 = vmax.f32 %v14765_v28, %v14814_v20  ;;  %v17751_v2 = vpop.f32.mrb[241].mxu1  ;;  %v17757_v36 = vpop.f32.mrb[205].mxu0 }
0x13e5   : > { %v14768_v7 = vpop.f32.mrb[242].mxu1  ;;  %v14817_v21 = vpop.f32.mrb[206].mxu0 }
0x13e6   : > { %17762 = vmatmul.mubr.msk.f32.vlgmr.msra.gmra.mrb[244].mxu1 %vm14180_vm0, %v14820_v34  ;;  %v17752_v55 = vpop.f32.mrb[243].mxu1  ;;  %v17758_v22 = vpop.f32.mrb[207].mxu0 }
0x14b9   : > { %v14894_v10 = vpop.f32.mrb[244].mxu1 }
0x14ba   : > { %v14895_v18 = vadd.f32 %v14894_v10, %v14824_v38  ;;  %v17763_v53 = vpop.f32.mrb[245].mxu1 }
0x14bc   : > { %v14898_v51 = vmax.f32 %v14895_v18, 0.0 }
0x14be   : > { %17767 = vmatmul.mubr.msk.f32.vlgmr.msra.gmra.mrb[208].mxu0 %vm14180_vm0, %v14898_v51 }
0x1591   : > { %v14970_v49 = vpop.f32.mrb[208].mxu0 }
0x1592   : > { %v14971_v39 = vadd.f32 %v14970_v49, %v14900_v17  ;;  %v17768_v11 = vpop.f32.mrb[209].mxu0 }
0x1594   : > { %v14975_v54 = vsel %vm14974_vm5, %v14971_v39, -inf }
0x1595   : > { %14976 = vmax.xlane.f32.xlu0 %v14975_v54 }
0x1622   : > { %v14977_v33 = vpop.xlane.xlu0 %14976 }
0x1623   : > { %v14978_v13 = vsub.f32 %v14971_v39, %v14977_v33 }
0x1625   : > { %v14979_v19 = vmul.f32 1.442695, %v14978_v13 }
0x1627   : > { %19966 = vpow2.f32 %v14979_v19 }
0x1631   : > { %v19967_v62 = vpop.eup %19966 }
0x1632   : > { %v14981_v35 = vsel %vm14974_vm5, %v19967_v62, 0.0 }
0x1633   : > { %14982 = vadd.xlane.f32.xlu0 %v14981_v35 }
0x16c0   : > { %v14983_v1 = vpop.xlane.xlu0 %14982 }
0x16c1   : > { %19968 = vlog2.f32 %v14983_v1 }
0x16cb   : > { %v19969_v4 = vpop.eup %19968 }
0x16cc   : > { %v14985_v5 = vmul.f32 0.6931472, %v19969_v4 }
0x16ce   : > { %v14986_v50 = vadd.f32 %v14985_v5, %v14977_v33 }
0x16d0   : > { %v14987_v56 = vsub.f32 %v14971_v39, %v14986_v50 }
0x16d2   : > { %14988 = vst.msk [vmem:[%s756_s4] sm:$0x1] %vm14974_vm5, %v14987_v56 }
0x16d3   : > { %19983 = shalt.err (!%p19980_p3)
}
0x16d4   : > { %s19984_s25 = scalar_lea.hbm %s25165_s29, 16  ;;  %s19988_s8 = scalar_lea.hbm %s25292_s5, 32 }
0x16d5   : > { %p19985_p4 = scmp.ne.s32.totalorder %s25165_s29, %s19984_s25  ;;  %p19989_p9 = scmp.lt.u32.totalorder %s25165_s29, %s25292_s5 }
0x16d6   : > { %p19990_p10 = scmp.lt.u32.totalorder %s19988_s8, %s19984_s25  ;;  %p19992_p12 = scmp.lt.u32.totalorder %s19984_s25, %s25165_s29 }
0x16d7   : > { %p19986_p7 = pnand %p19985_p4, %p20207_p5 }
0x16d8   : > { %p19991_p11 = por %p19990_p10, %p19989_p9 }
0x16d9   : > { %p19987_p8 = pneg %p19986_p7 }
0x16da   : > { %p19993_p13 = por %p19992_p12, %p19991_p11 }
0x16dc   : > { %p19994_p0 = pnand %p19993_p13, %p19987_p8 }
0x16de   : > { %19997 = shalt.err (!%p19994_p0)
}
0x16df   : > { %18478 = dma.vmem_to_hbm [thread:$0]  (%p20207_p5), %s25167_s1, 16, %s25165_s29, %s14990_s0  }
0x16e0 PF: > { %s25293_s11 = sld [smem:[#allocation7_spill]]  ;;  %s25294_s9 = sld [smem:[#allocation5_spill]] }
0x16e6   : > { %p18484_p1 = scmp.ge.s32.totalorder %s25293_s11, 2  ;;  %s15014_s7 = sand.u32 1, %s25294_s9  }
0x16e7   : > { %s15015_s3 = scalar_lea.sflag [#allocation3], %s15014_s7 }
0x16e8   : > { %p18481_p2 = pnand %p18484_p1, %p20211_p6 }
0x16ea   : > { %20015 = dma.done.wait (!%p18481_p2), %s15015_s3, 16  }
0x16eb   : > { %20017 = vsyncadd (!%p18481_p2), %s15015_s3, 4294967280  ;;  %s25296_s30 = sld [smem:[#allocation8_spill]]  ;;  %s25297_s25 = sld [smem:[#allocation6_spill]] }
0x16ec   : > { %s25298_s6 = sld [smem:[#allocation9_spill]]  ;;  %s25299_s29 = smov %s20024_s2 }
0x16f1   : > { %p35_p3 = scmp.ge.s32.totalorder %s25296_s30, 4   ;;  %s25300_s2 = smov %s25297_s25 }
0x16f3   :  { %37 = sbr.rel (!%p35_p3) target bundleno = 17 (0x11), region = 181 }
0x16fa   :  { %15019 = vsyncpa [#allocation3], 1 }
0x16fb   :  { %15021 = vsyncpa [#allocation3 + $0x1], 1 }

</bundles_post_ra>
